<compile_context>
chip_gen: v6e
topology: v6e:2x2x1
jax: 0.10.0
libtpu: 0.0.40
codegen_flags: <defaults>
</compile_context>

<pallas_src>
import numpy as np
import jax
import jax.numpy as jnp
from jax.experimental import pallas as pl
from jax.experimental.pallas import tpu as pltpu

# ----------------------------------------------------------------------------
# Geometry constants ("q-shifted" row-major layouts)
# ----------------------------------------------------------------------------
_W1 = 18      # conv1 padded grid width  (16 + 2*pad)
_P1 = 324     # conv1 padded grid size   (18*18)
_S1 = 19      # conv1 rows are computed at padded positions [19, 305)
_A1 = 286     # number of conv1 rows computed
_M1 = 267     # number of pool-1 max rows computed

_W2 = 10      # conv2 padded grid width  (8 + 2*pad)
_P2 = 100     # conv2 padded grid size   (10*10)
_S2 = 11      # conv2 rows are computed at padded positions [11, 89)
_A2 = 78      # number of conv2 rows computed
_M2 = 67      # number of pool-2 max rows computed


# ----------------------------------------------------------------------------
# Fused kernel (one grid step == BT images packed on the lane axis)
# ----------------------------------------------------------------------------
def _fused_kernel(x_ref, w1_ref, b1_ref, w2_ref, b2_ref, d1_ref, d2_ref,
                  w3_ref, b3_ref, u3_ref, w4_ref, b4_ref, u4_ref,
                  o_ref, abuf1, pbuf, abuf2):
    f32 = jnp.float32
    bt = x_ref.shape[2]                       # images packed on the lane axis

    # ---- conv1: 1 -> 16, 3x3, stride 1, pad 1, ReLU (MXU, N = 16*bt) --------
    # abuf1[q, b*16 + o] = ReLU(conv1) at padded position p = q + _S1, image b.
    s1 = jnp.zeros((_A1, 16 * bt), f32)
    k = 0
    for ky in range(3):
        for kx in range(3):
            off = (ky - 1) * _W1 + (kx - 1) + _S1          # in [0, 38]
            s1 = s1 + jnp.dot(x_ref[0, off:off + _A1, :], w1_ref[k],
                              preferred_element_type=f32)
            k += 1
    abuf1[...] = jnp.maximum(s1 + b1_ref[...], 0.0)

    # ---- maxpool 2x2 /2 + zero re-pad to conv2's 10x10 grid (select matmul) -
    # All shifted reads stay inside the 286 written rows: no margins needed.
    m1 = jnp.maximum(
        jnp.maximum(abuf1[0:_M1, :], abuf1[1:_M1 + 1, :]),
        jnp.maximum(abuf1[_W1:_W1 + _M1, :], abuf1[_W1 + 1:_W1 + 1 + _M1, :]))
    pbuf[...] = jnp.dot(d1_ref[...], m1, preferred_element_type=f32)  # [100,16bt]

    # ---- conv2: 16 -> 4, 3x3, stride 1, pad 1, ReLU --------------------------
    s2 = jnp.zeros((_A2, 4 * bt), f32)
    k = 0
    for ky in range(3):
        for kx in range(3):
            off = (ky - 1) * _W2 + (kx - 1) + _S2          # in [0, 22]
            s2 = s2 + jnp.dot(pbuf[off:off + _A2, :], w2_ref[k],
                              preferred_element_type=f32)
            k += 1
    abuf2[...] = jnp.maximum(s2 + b2_ref[...], 0.0)

    # ---- maxpool 2x2 /2 -> 4x4 row form --------------------------------------
    m2 = jnp.maximum(
        jnp.maximum(abuf2[0:_M2, :], abuf2[1:_M2 + 1, :]),
        jnp.maximum(abuf2[_W2:_W2 + _M2, :], abuf2[_W2 + 1:_W2 + 1 + _M2, :]))
    p2 = jnp.dot(d2_ref[...], m2, preferred_element_type=f32)         # [16, 4bt]

    # ---- t_conv1: 4 -> 16, k=2, stride 2, ReLU -> 8x8 row form ---------------
    s3 = jnp.zeros((64, 16 * bt), f32)
    for t in range(4):
        y = jnp.dot(p2, w3_ref[t], preferred_element_type=f32)        # [16, 16bt]
        s3 = s3 + jnp.dot(u3_ref[t], y, preferred_element_type=f32)   # [64, 16bt]
    a3 = jnp.maximum(s3 + b3_ref[...], 0.0)

    # ---- t_conv2: 16 -> 1, k=2, stride 2, sigmoid -> lane-dense [bt, 256] ----
    s4 = jnp.zeros((bt, 256), f32)
    for t in range(4):
        v = jnp.dot(a3, w4_ref[t], preferred_element_type=f32)        # [64, bt]
        # scatter on the MXU: contract the 64-row axis against u4[t] [64, 256]
        s4 = s4 + jax.lax.dot_general(
            v, u4_ref[t], dimension_numbers=(((0,), (0,)), ((), ())),
            preferred_element_type=f32)
    o_ref[0] = jax.nn.sigmoid(s4 + b4_ref[...])                       # [bt, 256]


# ----------------------------------------------------------------------------
# Parameter / constant packing (done once, outside the forward path)
# ----------------------------------------------------------------------------
def pack_params(params, block_batch=16):
    bt = int(block_batch)
    f32 = np.float32

    conv1_w = np.asarray(params["conv1_w"], f32)    # [16, 1, 3, 3]
    conv2_w = np.asarray(params["conv2_w"], f32)    # [4, 16, 3, 3]
    tconv1_w = np.asarray(params["tconv1_w"], f32)  # [4, 16, 2, 2]
    tconv2_w = np.asarray(params["tconv2_w"], f32)  # [16, 1, 2, 2]

    w1 = conv1_w.transpose(2, 3, 1, 0).reshape(9, 1, 16)    # [k, cin, cout]
    w2 = conv2_w.transpose(2, 3, 1, 0).reshape(9, 16, 4)
    w3 = tconv1_w.transpose(2, 3, 0, 1).reshape(4, 4, 16)   # [t, cin, cout]
    w4 = tconv2_w.transpose(2, 3, 0, 1).reshape(4, 16, 1)

    eye = np.eye(bt, dtype=f32)
    # Block-diagonal per-image channel weights (batch packed image-major on lanes).
    w1b = np.stack([np.kron(eye, w1[k]) for k in range(9)])   # [9,   bt, 16bt]
    w2b = np.stack([np.kron(eye, w2[k]) for k in range(9)])   # [9, 16bt,  4bt]
    w3b = np.stack([np.kron(eye, w3[t]) for t in range(4)])   # [4,  4bt, 16bt]
    w4b = np.stack([np.kron(eye, w4[t]) for t in range(4)])   # [4, 16bt,   bt]

    b1 = np.tile(np.asarray(params["conv1_b"], f32).reshape(1, 16), (1, bt))
    b2 = np.tile(np.asarray(params["conv2_b"], f32).reshape(1, 4), (1, bt))
    b3 = np.tile(np.asarray(params["tconv1_b"], f32).reshape(1, 16), (1, bt))
    b4 = np.asarray(params["tconv2_b"], f32).reshape(1, 1)

    # pool1 select (+ zero re-pad) into conv2's 10x10 padded grid, q1-coords.
    d1 = np.zeros((_P2, _M1), f32)
    for h in range(8):
        for w in range(8):
            d1[(h + 1) * 10 + (w + 1), 36 * h + 2 * w] = 1.0
    # pool2 select -> unpadded 4x4 row form, q2-coords.
    d2 = np.zeros((16, _M2), f32)
    for h in range(4):
        for w in range(4):
            d2[h * 4 + w, 20 * h + 2 * w] = 1.0
    # t_conv1 tap scatter: 4x4 -> 8x8 (row one-hots).
    u3 = np.zeros((4, 64, 16), f32)
    for dy in range(2):
        for dx in range(2):
            for h in range(4):
                for w in range(4):
                    u3[dy * 2 + dx, (2 * h + dy) * 8 + (2 * w + dx), h * 4 + w] = 1.0
    # t_conv2 tap scatter: 8x8 -> 16x16 (row -> output-pixel one-hots).
    u4 = np.zeros((4, 64, 256), f32)
    for dy in range(2):
        for dx in range(2):
            for p in range(64):
                ph, pw = p // 8, p % 8
                u4[dy * 2 + dx, p, (2 * ph + dy) * 16 + (2 * pw + dx)] = 1.0

    return dict(w1=jnp.asarray(w1b), b1=jnp.asarray(b1),
                w2=jnp.asarray(w2b), b2=jnp.asarray(b2),
                w3=jnp.asarray(w3b), b3=jnp.asarray(b3),
                w4=jnp.asarray(w4b), b4=jnp.asarray(b4),
                d1=jnp.asarray(d1), d2=jnp.asarray(d2),
                u3=jnp.asarray(u3), u4=jnp.asarray(u4))


def _const2(shape):
    return pl.BlockSpec(shape, lambda i: (0, 0))


def _const3(shape):
    return pl.BlockSpec(shape, lambda i: (0, 0, 0))


# ----------------------------------------------------------------------------
# Forward pass (single pallas_call, grid over batch tiles)
# ----------------------------------------------------------------------------
def conv_autoencoder_forward(packed, x_nchw):
    bt = packed["w1"].shape[1]                     # lane batch tile (static)
    n = x_nchw.shape[0]
    num_steps = -(-n // bt)
    n_pad = num_steps * bt

    x = x_nchw.astype(jnp.float32).reshape(n, 16, 16)
    if n_pad != n:
        x = jnp.concatenate(
            [x, jnp.zeros((n_pad - n, 16, 16), jnp.float32)], axis=0)
    xp = jnp.pad(x, ((0, 0), (1, 1), (1, 1))).reshape(n_pad, _P1)   # 18x18 grids
    xp = xp.reshape(num_steps, bt, _P1).transpose(0, 2, 1)          # [steps,324,bt]

    out = pl.pallas_call(
        _fused_kernel,
        out_shape=jax.ShapeDtypeStruct((num_steps, bt, 256), jnp.float32),
        grid=(num_steps,),
        in_specs=[
            pl.BlockSpec((1, _P1, bt), lambda i: (i, 0, 0)),   # x tile
            _const3((9, bt, 16 * bt)),       # w1 (block-diag)
            _const2((1, 16 * bt)),           # b1 (lane-tiled)
            _const3((9, 16 * bt, 4 * bt)),   # w2
            _const2((1, 4 * bt)),            # b2
            _const2((_P2, _M1)),             # d1
            _const2((16, _M2)),              # d2
            _const3((4, 4 * bt, 16 * bt)),   # w3
            _const2((1, 16 * bt)),           # b3
            _const3((4, 64, 16)),            # u3
            _const3((4, 16 * bt, bt)),       # w4
            _const2((1, 1)),                 # b4
            _const3((4, 64, 256)),           # u4
        ],
        out_specs=pl.BlockSpec((1, bt, 256), lambda i: (i, 0, 0)),
        scratch_shapes=[
            pltpu.VMEM((_A1, 16 * bt), jnp.float32),   # conv1 activations
            pltpu.VMEM((_P2, 16 * bt), jnp.float32),   # conv2 padded input
            pltpu.VMEM((_A2, 4 * bt), jnp.float32),    # conv2 activations
        ],
        compiler_params=pltpu.CompilerParams(
            dimension_semantics=("parallel",)),
    )(xp, packed["w1"], packed["b1"], packed["w2"], packed["b2"],
      packed["d1"], packed["d2"], packed["w3"], packed["b3"], packed["u3"],
      packed["w4"], packed["b4"], packed["u4"])

    return out.reshape(n_pad, 1, 16, 16)[:n]


# ----------------------------------------------------------------------------
# Params + plain-JAX reference (for a correctness self-check)
# ----------------------------------------------------------------------------
def init_params(key):
    ks = jax.random.split(key, 8)

    def uni(k, shape, fan_in):
        bound = 1.0 / (float(fan_in) ** 0.5)
        return jax.random.uniform(k, shape, jnp.float32, -bound, bound)

    return {
        "conv1_w": uni(ks[0], (16, 1, 3, 3), 1 * 9),
        "conv1_b": uni(ks[1], (16,), 1 * 9),
        "conv2_w": uni(ks[2], (4, 16, 3, 3), 16 * 9),
        "conv2_b": uni(ks[3], (4,), 16 * 9),
        "tconv1_w": uni(ks[4], (4, 16, 2, 2), 4 * 4),
        "tconv1_b": uni(ks[5], (16,), 4 * 4),
        "tconv2_w": uni(ks[6], (16, 1, 2, 2), 16 * 4),
        "tconv2_b": uni(ks[7], (1,), 16 * 4),
    }


def _reference_forward(params, x_nchw):
    hp = jax.lax.Precision.HIGHEST
    x = jnp.transpose(x_nchw, (0, 2, 3, 1)).astype(jnp.float32)   # NHWC

    def conv3x3(x, w_oihw, b):
        n, h, w, _ = x.shape
        xp = jnp.pad(x, ((0, 0), (1, 1), (1, 1), (0, 0)))
        out = jnp.zeros((n, h, w, w_oihw.shape[0]), jnp.float32) + b
        for ky in range(3):
            for kx in range(3):
                out = out + jnp.einsum('nhwc,oc->nhwo',
                                       xp[:, ky:ky + h, kx:kx + w, :],
                                       w_oihw[:, :, ky, kx], precision=hp)
        return out

    def pool2(x):
        n, h, w, c = x.shape
        return jnp.max(x.reshape(n, h // 2, 2, w // 2, 2, c), axis=(2, 4))

    def tconv2x2(x, w_iohw, b):
        n, h, w, _ = x.shape
        cout = w_iohw.shape[1]
        out = jnp.zeros((n, 2 * h, 2 * w, cout), jnp.float32)
        for dy in range(2):
            for dx in range(2):
                contrib = jnp.einsum('nhwc,co->nhwo', x,
                                     w_iohw[:, :, dy, dx], precision=hp)
                out = out.at[:, dy::2, dx::2, :].set(contrib)
        return out + b

    h = jax.nn.relu(conv3x3(x, params["conv1_w"], params["conv1_b"]))
    h = pool2(h)
    h = jax.nn.relu(conv3x3(h, params["conv2_w"], params["conv2_b"]))
    h = pool2(h)
    h = jax.nn.relu(tconv2x2(h, params["tconv1_w"], params["tconv1_b"]))
    h = jax.nn.sigmoid(tconv2x2(h, params["tconv2_w"], params["tconv2_b"]))
    return jnp.transpose(h, (0, 3, 1, 2))


if __name__ == "__main__":
    key = jax.random.PRNGKey(0)
    params = init_params(jax.random.PRNGKey(42))
    packed = pack_params(params, block_batch=16)

    fwd = jax.jit(conv_autoencoder_forward)

    # small demo batch (padded up to one 16-image lane tile inside the wrapper)
    x = jax.random.normal(key, (2, 1, 16, 16), dtype=jnp.float32)
    y = jax.block_until_ready(fwd(packed, x))
    assert y.shape == (2, 1, 16, 16), y.shape
    assert bool(jnp.all(jnp.isfinite(y)))
    assert bool(jnp.all((y >= 0.0) & (y <= 1.0)))   # sigmoid output range
    y_ref = _reference_forward(params, x)
    err = float(jnp.max(jnp.abs(y - y_ref)))
    assert err < 1e-2, f"max abs err {err}"

    # larger batch: exercises multiple grid steps + batch padding
    x2 = jax.random.normal(jax.random.PRNGKey(1), (20, 1, 16, 16),
                           dtype=jnp.float32)
    y2 = jax.block_until_ready(fwd(packed, x2))
    assert y2.shape == (20, 1, 16, 16), y2.shape
    y2_ref = _reference_forward(params, x2)
    err2 = float(jnp.max(jnp.abs(y2 - y2_ref)))
    assert err2 < 1e-2, f"max abs err {err2}"

    print("KERNEL_OK")
</pallas_src>

<mosaic_0001>
module attributes {stable_mosaic.version = 11 : i64} {
  func.func @_fused_kernel(%arg0: i32, %arg1: memref<1x324x16xf32, #tpu.memory_space<vmem>>, %arg2: memref<9x16x256xf32, #tpu.memory_space<vmem>>, %arg3: memref<1x256xf32, #tpu.memory_space<vmem>>, %arg4: memref<9x256x64xf32, #tpu.memory_space<vmem>>, %arg5: memref<1x64xf32, #tpu.memory_space<vmem>>, %arg6: memref<100x267xf32, #tpu.memory_space<vmem>>, %arg7: memref<16x67xf32, #tpu.memory_space<vmem>>, %arg8: memref<4x64x256xf32, #tpu.memory_space<vmem>>, %arg9: memref<1x256xf32, #tpu.memory_space<vmem>>, %arg10: memref<4x64x16xf32, #tpu.memory_space<vmem>>, %arg11: memref<4x256x16xf32, #tpu.memory_space<vmem>>, %arg12: memref<1x1xf32, #tpu.memory_space<vmem>>, %arg13: memref<4x64x256xf32, #tpu.memory_space<vmem>>, %arg14: memref<1x16x256xf32, #tpu.memory_space<vmem>>, %arg15: memref<286x256xf32, #tpu.memory_space<vmem>>, %arg16: memref<100x256xf32, #tpu.memory_space<vmem>>, %arg17: memref<78x64xf32, #tpu.memory_space<vmem>>) attributes {dimension_semantics = [#tpu.dimension_semantics<parallel>], iteration_bounds = array<i64: 1>, scalar_prefetch = 0 : i64, scratch_operands = 3 : i64, tpu.core_type = #tpu.core_type<tc>, window_params = [{transform_indices = @transform_0, window_bounds = array<i64: 1, 324, 16>}, {pipeline_mode = #tpu.pipeline_mode<synchronous>, transform_indices = @transform_1, window_bounds = array<i64: 9, 16, 256>}, {pipeline_mode = #tpu.pipeline_mode<synchronous>, transform_indices = @transform_2, window_bounds = array<i64: 1, 256>}, {pipeline_mode = #tpu.pipeline_mode<synchronous>, transform_indices = @transform_3, window_bounds = array<i64: 9, 256, 64>}, {pipeline_mode = #tpu.pipeline_mode<synchronous>, transform_indices = @transform_4, window_bounds = array<i64: 1, 64>}, {pipeline_mode = #tpu.pipeline_mode<synchronous>, transform_indices = @transform_5, window_bounds = array<i64: 100, 267>}, {pipeline_mode = #tpu.pipeline_mode<synchronous>, transform_indices = @transform_6, window_bounds = array<i64: 16, 67>}, {pipeline_mode = #tpu.pipeline_mode<synchronous>, transform_indices = @transform_7, window_bounds = array<i64: 4, 64, 256>}, {pipeline_mode = #tpu.pipeline_mode<synchronous>, transform_indices = @transform_8, window_bounds = array<i64: 1, 256>}, {pipeline_mode = #tpu.pipeline_mode<synchronous>, transform_indices = @transform_9, window_bounds = array<i64: 4, 64, 16>}, {pipeline_mode = #tpu.pipeline_mode<synchronous>, transform_indices = @transform_10, window_bounds = array<i64: 4, 256, 16>}, {pipeline_mode = #tpu.pipeline_mode<synchronous>, transform_indices = @transform_11, window_bounds = array<i64: 1, 1>}, {pipeline_mode = #tpu.pipeline_mode<synchronous>, transform_indices = @transform_12, window_bounds = array<i64: 4, 64, 256>}, {transform_indices = @transform_13, window_bounds = array<i64: 1, 16, 256>}]} {
    %cst = arith.constant 0.000000e+00 : f32
    %0 = vector.broadcast %cst : f32 to vector<286x256xf32>
    %c0 = arith.constant 0 : index
    %c0_0 = arith.constant 0 : index
    %c0_1 = arith.constant 0 : index
    %1 = vector.load %arg1[%c0, %c0_0, %c0_1] : memref<1x324x16xf32, #tpu.memory_space<vmem>>, vector<1x286x16xf32>
    %2 = vector.shape_cast %1 : vector<1x286x16xf32> to vector<286x16xf32>
    %c0_2 = arith.constant 0 : index
    %c0_3 = arith.constant 0 : index
    %c0_4 = arith.constant 0 : index
    %3 = vector.load %arg2[%c0_2, %c0_3, %c0_4] : memref<9x16x256xf32, #tpu.memory_space<vmem>>, vector<1x16x256xf32>
    %4 = vector.shape_cast %3 : vector<1x16x256xf32> to vector<16x256xf32>
    %cst_5 = arith.constant dense<0.000000e+00> : vector<286x256xf32>
    %5 = tpu.matmul %2, %4, %cst_5 {dimension_numbers = #tpu.dot_dimension_numbers<[1], [0], [0], [1], [0, 0, 1, 1], [], []>} : vector<286x16xf32>, vector<16x256xf32>, vector<286x256xf32> -> vector<286x256xf32>
    %6 = arith.addf %0, %5 : vector<286x256xf32>
    %c0_6 = arith.constant 0 : index
    %c1 = arith.constant 1 : index
    %c0_7 = arith.constant 0 : index
    %7 = vector.load %arg1[%c0_6, %c1, %c0_7] : memref<1x324x16xf32, #tpu.memory_space<vmem>>, vector<1x286x16xf32>
    %8 = vector.shape_cast %7 : vector<1x286x16xf32> to vector<286x16xf32>
    %c1_8 = arith.constant 1 : index
    %c0_9 = arith.constant 0 : index
    %c0_10 = arith.constant 0 : index
    %9 = vector.load %arg2[%c1_8, %c0_9, %c0_10] : memref<9x16x256xf32, #tpu.memory_space<vmem>>, vector<1x16x256xf32>
    %10 = vector.shape_cast %9 : vector<1x16x256xf32> to vector<16x256xf32>
    %cst_11 = arith.constant dense<0.000000e+00> : vector<286x256xf32>
    %11 = tpu.matmul %8, %10, %cst_11 {dimension_numbers = #tpu.dot_dimension_numbers<[1], [0], [0], [1], [0, 0, 1, 1], [], []>} : vector<286x16xf32>, vector<16x256xf32>, vector<286x256xf32> -> vector<286x256xf32>
    %12 = arith.addf %6, %11 : vector<286x256xf32>
    %c0_12 = arith.constant 0 : index
    %c2 = arith.constant 2 : index
    %c0_13 = arith.constant 0 : index
    %13 = vector.load %arg1[%c0_12, %c2, %c0_13] : memref<1x324x16xf32, #tpu.memory_space<vmem>>, vector<1x286x16xf32>
    %14 = vector.shape_cast %13 : vector<1x286x16xf32> to vector<286x16xf32>
    %c2_14 = arith.constant 2 : index
    %c0_15 = arith.constant 0 : index
    %c0_16 = arith.constant 0 : index
    %15 = vector.load %arg2[%c2_14, %c0_15, %c0_16] : memref<9x16x256xf32, #tpu.memory_space<vmem>>, vector<1x16x256xf32>
    %16 = vector.shape_cast %15 : vector<1x16x256xf32> to vector<16x256xf32>
    %cst_17 = arith.constant dense<0.000000e+00> : vector<286x256xf32>
    %17 = tpu.matmul %14, %16, %cst_17 {dimension_numbers = #tpu.dot_dimension_numbers<[1], [0], [0], [1], [0, 0, 1, 1], [], []>} : vector<286x16xf32>, vector<16x256xf32>, vector<286x256xf32> -> vector<286x256xf32>
    %18 = arith.addf %12, %17 : vector<286x256xf32>
    %c0_18 = arith.constant 0 : index
    %c18 = arith.constant 18 : index
    %c0_19 = arith.constant 0 : index
    %19 = vector.load %arg1[%c0_18, %c18, %c0_19] : memref<1x324x16xf32, #tpu.memory_space<vmem>>, vector<1x286x16xf32>
    %20 = vector.shape_cast %19 : vector<1x286x16xf32> to vector<286x16xf32>
    %c3 = arith.constant 3 : index
    %c0_20 = arith.constant 0 : index
    %c0_21 = arith.constant 0 : index
    %21 = vector.load %arg2[%c3, %c0_20, %c0_21] : memref<9x16x256xf32, #tpu.memory_space<vmem>>, vector<1x16x256xf32>
    %22 = vector.shape_cast %21 : vector<1x16x256xf32> to vector<16x256xf32>
    %cst_22 = arith.constant dense<0.000000e+00> : vector<286x256xf32>
    %23 = tpu.matmul %20, %22, %cst_22 {dimension_numbers = #tpu.dot_dimension_numbers<[1], [0], [0], [1], [0, 0, 1, 1], [], []>} : vector<286x16xf32>, vector<16x256xf32>, vector<286x256xf32> -> vector<286x256xf32>
    %24 = arith.addf %18, %23 : vector<286x256xf32>
    %c0_23 = arith.constant 0 : index
    %c19 = arith.constant 19 : index
    %c0_24 = arith.constant 0 : index
    %25 = vector.load %arg1[%c0_23, %c19, %c0_24] : memref<1x324x16xf32, #tpu.memory_space<vmem>>, vector<1x286x16xf32>
    %26 = vector.shape_cast %25 : vector<1x286x16xf32> to vector<286x16xf32>
    %c4 = arith.constant 4 : index
    %c0_25 = arith.constant 0 : index
    %c0_26 = arith.constant 0 : index
    %27 = vector.load %arg2[%c4, %c0_25, %c0_26] : memref<9x16x256xf32, #tpu.memory_space<vmem>>, vector<1x16x256xf32>
    %28 = vector.shape_cast %27 : vector<1x16x256xf32> to vector<16x256xf32>
    %cst_27 = arith.constant dense<0.000000e+00> : vector<286x256xf32>
    %29 = tpu.matmul %26, %28, %cst_27 {dimension_numbers = #tpu.dot_dimension_numbers<[1], [0], [0], [1], [0, 0, 1, 1], [], []>} : vector<286x16xf32>, vector<16x256xf32>, vector<286x256xf32> -> vector<286x256xf32>
    %30 = arith.addf %24, %29 : vector<286x256xf32>
    %c0_28 = arith.constant 0 : index
    %c20 = arith.constant 20 : index
    %c0_29 = arith.constant 0 : index
    %31 = vector.load %arg1[%c0_28, %c20, %c0_29] : memref<1x324x16xf32, #tpu.memory_space<vmem>>, vector<1x286x16xf32>
    %32 = vector.shape_cast %31 : vector<1x286x16xf32> to vector<286x16xf32>
    %c5 = arith.constant 5 : index
    %c0_30 = arith.constant 0 : index
    %c0_31 = arith.constant 0 : index
    %33 = vector.load %arg2[%c5, %c0_30, %c0_31] : memref<9x16x256xf32, #tpu.memory_space<vmem>>, vector<1x16x256xf32>
    %34 = vector.shape_cast %33 : vector<1x16x256xf32> to vector<16x256xf32>
    %cst_32 = arith.constant dense<0.000000e+00> : vector<286x256xf32>
    %35 = tpu.matmul %32, %34, %cst_32 {dimension_numbers = #tpu.dot_dimension_numbers<[1], [0], [0], [1], [0, 0, 1, 1], [], []>} : vector<286x16xf32>, vector<16x256xf32>, vector<286x256xf32> -> vector<286x256xf32>
    %36 = arith.addf %30, %35 : vector<286x256xf32>
    %c0_33 = arith.constant 0 : index
    %c36 = arith.constant 36 : index
    %c0_34 = arith.constant 0 : index
    %37 = vector.load %arg1[%c0_33, %c36, %c0_34] : memref<1x324x16xf32, #tpu.memory_space<vmem>>, vector<1x286x16xf32>
    %38 = vector.shape_cast %37 : vector<1x286x16xf32> to vector<286x16xf32>
    %c6 = arith.constant 6 : index
    %c0_35 = arith.constant 0 : index
    %c0_36 = arith.constant 0 : index
    %39 = vector.load %arg2[%c6, %c0_35, %c0_36] : memref<9x16x256xf32, #tpu.memory_space<vmem>>, vector<1x16x256xf32>
    %40 = vector.shape_cast %39 : vector<1x16x256xf32> to vector<16x256xf32>
    %cst_37 = arith.constant dense<0.000000e+00> : vector<286x256xf32>
    %41 = tpu.matmul %38, %40, %cst_37 {dimension_numbers = #tpu.dot_dimension_numbers<[1], [0], [0], [1], [0, 0, 1, 1], [], []>} : vector<286x16xf32>, vector<16x256xf32>, vector<286x256xf32> -> vector<286x256xf32>
    %42 = arith.addf %36, %41 : vector<286x256xf32>
    %c0_38 = arith.constant 0 : index
    %c37 = arith.constant 37 : index
    %c0_39 = arith.constant 0 : index
    %43 = vector.load %arg1[%c0_38, %c37, %c0_39] : memref<1x324x16xf32, #tpu.memory_space<vmem>>, vector<1x286x16xf32>
    %44 = vector.shape_cast %43 : vector<1x286x16xf32> to vector<286x16xf32>
    %c7 = arith.constant 7 : index
    %c0_40 = arith.constant 0 : index
    %c0_41 = arith.constant 0 : index
    %45 = vector.load %arg2[%c7, %c0_40, %c0_41] : memref<9x16x256xf32, #tpu.memory_space<vmem>>, vector<1x16x256xf32>
    %46 = vector.shape_cast %45 : vector<1x16x256xf32> to vector<16x256xf32>
    %cst_42 = arith.constant dense<0.000000e+00> : vector<286x256xf32>
    %47 = tpu.matmul %44, %46, %cst_42 {dimension_numbers = #tpu.dot_dimension_numbers<[1], [0], [0], [1], [0, 0, 1, 1], [], []>} : vector<286x16xf32>, vector<16x256xf32>, vector<286x256xf32> -> vector<286x256xf32>
    %48 = arith.addf %42, %47 : vector<286x256xf32>
    %c0_43 = arith.constant 0 : index
    %c38 = arith.constant 38 : index
    %c0_44 = arith.constant 0 : index
    %49 = vector.load %arg1[%c0_43, %c38, %c0_44] : memref<1x324x16xf32, #tpu.memory_space<vmem>>, vector<1x286x16xf32>
    %50 = vector.shape_cast %49 : vector<1x286x16xf32> to vector<286x16xf32>
    %c8 = arith.constant 8 : index
    %c0_45 = arith.constant 0 : index
    %c0_46 = arith.constant 0 : index
    %51 = vector.load %arg2[%c8, %c0_45, %c0_46] : memref<9x16x256xf32, #tpu.memory_space<vmem>>, vector<1x16x256xf32>
    %52 = vector.shape_cast %51 : vector<1x16x256xf32> to vector<16x256xf32>
    %cst_47 = arith.constant dense<0.000000e+00> : vector<286x256xf32>
    %53 = tpu.matmul %50, %52, %cst_47 {dimension_numbers = #tpu.dot_dimension_numbers<[1], [0], [0], [1], [0, 0, 1, 1], [], []>} : vector<286x16xf32>, vector<16x256xf32>, vector<286x256xf32> -> vector<286x256xf32>
    %54 = arith.addf %48, %53 : vector<286x256xf32>
    %c0_48 = arith.constant 0 : index
    %c0_49 = arith.constant 0 : index
    %55 = vector.load %arg3[%c0_48, %c0_49] : memref<1x256xf32, #tpu.memory_space<vmem>>, vector<1x256xf32>
    %56 = vector.broadcast %55 : vector<1x256xf32> to vector<286x256xf32>
    %57 = arith.addf %54, %56 : vector<286x256xf32>
    %cst_50 = arith.constant 0.000000e+00 : f32
    %58 = vector.broadcast %cst_50 : f32 to vector<286x256xf32>
    %59 = arith.maximumf %57, %58 : vector<286x256xf32>
    %c0_51 = arith.constant 0 : index
    %c0_52 = arith.constant 0 : index
    %60 = vector.load %arg15[%c0_51, %c0_52] : memref<286x256xf32, #tpu.memory_space<vmem>>, vector<286x256xf32>
    tpu.vector_store %arg15[%c0_51, %c0_52], %59 {strides = array<i32>} : memref<286x256xf32, #tpu.memory_space<vmem>>, vector<286x256xf32>,
    %c0_53 = arith.constant 0 : index
    %c0_54 = arith.constant 0 : index
    %61 = vector.load %arg15[%c0_53, %c0_54] : memref<286x256xf32, #tpu.memory_space<vmem>>, vector<267x256xf32>
    %c1_55 = arith.constant 1 : index
    %c0_56 = arith.constant 0 : index
    %62 = vector.load %arg15[%c1_55, %c0_56] : memref<286x256xf32, #tpu.memory_space<vmem>>, vector<267x256xf32>
    %63 = arith.maximumf %61, %62 : vector<267x256xf32>
    %c18_57 = arith.constant 18 : index
    %c0_58 = arith.constant 0 : index
    %64 = vector.load %arg15[%c18_57, %c0_58] : memref<286x256xf32, #tpu.memory_space<vmem>>, vector<267x256xf32>
    %c19_59 = arith.constant 19 : index
    %c0_60 = arith.constant 0 : index
    %65 = vector.load %arg15[%c19_59, %c0_60] : memref<286x256xf32, #tpu.memory_space<vmem>>, vector<267x256xf32>
    %66 = arith.maximumf %64, %65 : vector<267x256xf32>
    %67 = arith.maximumf %63, %66 : vector<267x256xf32>
    %c0_61 = arith.constant 0 : index
    %c0_62 = arith.constant 0 : index
    %68 = vector.load %arg6[%c0_61, %c0_62] : memref<100x267xf32, #tpu.memory_space<vmem>>, vector<100x267xf32>
    %cst_63 = arith.constant dense<0.000000e+00> : vector<100x256xf32>
    %69 = tpu.matmul %68, %67, %cst_63 {dimension_numbers = #tpu.dot_dimension_numbers<[1], [0], [0], [1], [0, 0, 1, 1], [], []>} : vector<100x267xf32>, vector<267x256xf32>, vector<100x256xf32> -> vector<100x256xf32>
    %c0_64 = arith.constant 0 : index
    %c0_65 = arith.constant 0 : index
    %70 = vector.load %arg16[%c0_64, %c0_65] : memref<100x256xf32, #tpu.memory_space<vmem>>, vector<100x256xf32>
    tpu.vector_store %arg16[%c0_64, %c0_65], %69 {strides = array<i32>} : memref<100x256xf32, #tpu.memory_space<vmem>>, vector<100x256xf32>,
    %cst_66 = arith.constant 0.000000e+00 : f32
    %71 = vector.broadcast %cst_66 : f32 to vector<78x64xf32>
    %c0_67 = arith.constant 0 : index
    %c0_68 = arith.constant 0 : index
    %72 = vector.load %arg16[%c0_67, %c0_68] : memref<100x256xf32, #tpu.memory_space<vmem>>, vector<78x256xf32>
    %c0_69 = arith.constant 0 : index
    %c0_70 = arith.constant 0 : index
    %c0_71 = arith.constant 0 : index
    %73 = vector.load %arg4[%c0_69, %c0_70, %c0_71] : memref<9x256x64xf32, #tpu.memory_space<vmem>>, vector<1x256x64xf32>
    %74 = vector.shape_cast %73 : vector<1x256x64xf32> to vector<256x64xf32>
    %cst_72 = arith.constant dense<0.000000e+00> : vector<78x64xf32>
    %75 = tpu.matmul %72, %74, %cst_72 {dimension_numbers = #tpu.dot_dimension_numbers<[1], [0], [0], [1], [0, 0, 1, 1], [], []>} : vector<78x256xf32>, vector<256x64xf32>, vector<78x64xf32> -> vector<78x64xf32>
    %76 = arith.addf %71, %75 : vector<78x64xf32>
    %c1_73 = arith.constant 1 : index
    %c0_74 = arith.constant 0 : index
    %77 = vector.load %arg16[%c1_73, %c0_74] : memref<100x256xf32, #tpu.memory_space<vmem>>, vector<78x256xf32>
    %c1_75 = arith.constant 1 : index
    %c0_76 = arith.constant 0 : index
    %c0_77 = arith.constant 0 : index
    %78 = vector.load %arg4[%c1_75, %c0_76, %c0_77] : memref<9x256x64xf32, #tpu.memory_space<vmem>>, vector<1x256x64xf32>
    %79 = vector.shape_cast %78 : vector<1x256x64xf32> to vector<256x64xf32>
    %cst_78 = arith.constant dense<0.000000e+00> : vector<78x64xf32>
    %80 = tpu.matmul %77, %79, %cst_78 {dimension_numbers = #tpu.dot_dimension_numbers<[1], [0], [0], [1], [0, 0, 1, 1], [], []>} : vector<78x256xf32>, vector<256x64xf32>, vector<78x64xf32> -> vector<78x64xf32>
    %81 = arith.addf %76, %80 : vector<78x64xf32>
    %c2_79 = arith.constant 2 : index
    %c0_80 = arith.constant 0 : index
    %82 = vector.load %arg16[%c2_79, %c0_80] : memref<100x256xf32, #tpu.memory_space<vmem>>, vector<78x256xf32>
    %c2_81 = arith.constant 2 : index
    %c0_82 = arith.constant 0 : index
    %c0_83 = arith.constant 0 : index
    %83 = vector.load %arg4[%c2_81, %c0_82, %c0_83] : memref<9x256x64xf32, #tpu.memory_space<vmem>>, vector<1x256x64xf32>
    %84 = vector.shape_cast %83 : vector<1x256x64xf32> to vector<256x64xf32>
    %cst_84 = arith.constant dense<0.000000e+00> : vector<78x64xf32>
    %85 = tpu.matmul %82, %84, %cst_84 {dimension_numbers = #tpu.dot_dimension_numbers<[1], [0], [0], [1], [0, 0, 1, 1], [], []>} : vector<78x256xf32>, vector<256x64xf32>, vector<78x64xf32> -> vector<78x64xf32>
    %86 = arith.addf %81, %85 : vector<78x64xf32>
    %c10 = arith.constant 10 : index
    %c0_85 = arith.constant 0 : index
    %87 = vector.load %arg16[%c10, %c0_85] : memref<100x256xf32, #tpu.memory_space<vmem>>, vector<78x256xf32>
    %c3_86 = arith.constant 3 : index
    %c0_87 = arith.constant 0 : index
    %c0_88 = arith.constant 0 : index
    %88 = vector.load %arg4[%c3_86, %c0_87, %c0_88] : memref<9x256x64xf32, #tpu.memory_space<vmem>>, vector<1x256x64xf32>
    %89 = vector.shape_cast %88 : vector<1x256x64xf32> to vector<256x64xf32>
    %cst_89 = arith.constant dense<0.000000e+00> : vector<78x64xf32>
    %90 = tpu.matmul %87, %89, %cst_89 {dimension_numbers = #tpu.dot_dimension_numbers<[1], [0], [0], [1], [0, 0, 1, 1], [], []>} : vector<78x256xf32>, vector<256x64xf32>, vector<78x64xf32> -> vector<78x64xf32>
    %91 = arith.addf %86, %90 : vector<78x64xf32>
    %c11 = arith.constant 11 : index
    %c0_90 = arith.constant 0 : index
    %92 = vector.load %arg16[%c11, %c0_90] : memref<100x256xf32, #tpu.memory_space<vmem>>, vector<78x256xf32>
    %c4_91 = arith.constant 4 : index
    %c0_92 = arith.constant 0 : index
    %c0_93 = arith.constant 0 : index
    %93 = vector.load %arg4[%c4_91, %c0_92, %c0_93] : memref<9x256x64xf32, #tpu.memory_space<vmem>>, vector<1x256x64xf32>
    %94 = vector.shape_cast %93 : vector<1x256x64xf32> to vector<256x64xf32>
    %cst_94 = arith.constant dense<0.000000e+00> : vector<78x64xf32>
    %95 = tpu.matmul %92, %94, %cst_94 {dimension_numbers = #tpu.dot_dimension_numbers<[1], [0], [0], [1], [0, 0, 1, 1], [], []>} : vector<78x256xf32>, vector<256x64xf32>, vector<78x64xf32> -> vector<78x64xf32>
    %96 = arith.addf %91, %95 : vector<78x64xf32>
    %c12 = arith.constant 12 : index
    %c0_95 = arith.constant 0 : index
    %97 = vector.load %arg16[%c12, %c0_95] : memref<100x256xf32, #tpu.memory_space<vmem>>, vector<78x256xf32>
    %c5_96 = arith.constant 5 : index
    %c0_97 = arith.constant 0 : index
    %c0_98 = arith.constant 0 : index
    %98 = vector.load %arg4[%c5_96, %c0_97, %c0_98] : memref<9x256x64xf32, #tpu.memory_space<vmem>>, vector<1x256x64xf32>
    %99 = vector.shape_cast %98 : vector<1x256x64xf32> to vector<256x64xf32>
    %cst_99 = arith.constant dense<0.000000e+00> : vector<78x64xf32>
    %100 = tpu.matmul %97, %99, %cst_99 {dimension_numbers = #tpu.dot_dimension_numbers<[1], [0], [0], [1], [0, 0, 1, 1], [], []>} : vector<78x256xf32>, vector<256x64xf32>, vector<78x64xf32> -> vector<78x64xf32>
    %101 = arith.addf %96, %100 : vector<78x64xf32>
    %c20_100 = arith.constant 20 : index
    %c0_101 = arith.constant 0 : index
    %102 = vector.load %arg16[%c20_100, %c0_101] : memref<100x256xf32, #tpu.memory_space<vmem>>, vector<78x256xf32>
    %c6_102 = arith.constant 6 : index
    %c0_103 = arith.constant 0 : index
    %c0_104 = arith.constant 0 : index
    %103 = vector.load %arg4[%c6_102, %c0_103, %c0_104] : memref<9x256x64xf32, #tpu.memory_space<vmem>>, vector<1x256x64xf32>
    %104 = vector.shape_cast %103 : vector<1x256x64xf32> to vector<256x64xf32>
    %cst_105 = arith.constant dense<0.000000e+00> : vector<78x64xf32>
    %105 = tpu.matmul %102, %104, %cst_105 {dimension_numbers = #tpu.dot_dimension_numbers<[1], [0], [0], [1], [0, 0, 1, 1], [], []>} : vector<78x256xf32>, vector<256x64xf32>, vector<78x64xf32> -> vector<78x64xf32>
    %106 = arith.addf %101, %105 : vector<78x64xf32>
    %c21 = arith.constant 21 : index
    %c0_106 = arith.constant 0 : index
    %107 = vector.load %arg16[%c21, %c0_106] : memref<100x256xf32, #tpu.memory_space<vmem>>, vector<78x256xf32>
    %c7_107 = arith.constant 7 : index
    %c0_108 = arith.constant 0 : index
    %c0_109 = arith.constant 0 : index
    %108 = vector.load %arg4[%c7_107, %c0_108, %c0_109] : memref<9x256x64xf32, #tpu.memory_space<vmem>>, vector<1x256x64xf32>
    %109 = vector.shape_cast %108 : vector<1x256x64xf32> to vector<256x64xf32>
    %cst_110 = arith.constant dense<0.000000e+00> : vector<78x64xf32>
    %110 = tpu.matmul %107, %109, %cst_110 {dimension_numbers = #tpu.dot_dimension_numbers<[1], [0], [0], [1], [0, 0, 1, 1], [], []>} : vector<78x256xf32>, vector<256x64xf32>, vector<78x64xf32> -> vector<78x64xf32>
    %111 = arith.addf %106, %110 : vector<78x64xf32>
    %c22 = arith.constant 22 : index
    %c0_111 = arith.constant 0 : index
    %112 = vector.load %arg16[%c22, %c0_111] : memref<100x256xf32, #tpu.memory_space<vmem>>, vector<78x256xf32>
    %c8_112 = arith.constant 8 : index
    %c0_113 = arith.constant 0 : index
    %c0_114 = arith.constant 0 : index
    %113 = vector.load %arg4[%c8_112, %c0_113, %c0_114] : memref<9x256x64xf32, #tpu.memory_space<vmem>>, vector<1x256x64xf32>
    %114 = vector.shape_cast %113 : vector<1x256x64xf32> to vector<256x64xf32>
    %cst_115 = arith.constant dense<0.000000e+00> : vector<78x64xf32>
    %115 = tpu.matmul %112, %114, %cst_115 {dimension_numbers = #tpu.dot_dimension_numbers<[1], [0], [0], [1], [0, 0, 1, 1], [], []>} : vector<78x256xf32>, vector<256x64xf32>, vector<78x64xf32> -> vector<78x64xf32>
    %116 = arith.addf %111, %115 : vector<78x64xf32>
    %c0_116 = arith.constant 0 : index
    %c0_117 = arith.constant 0 : index
    %117 = vector.load %arg5[%c0_116, %c0_117] : memref<1x64xf32, #tpu.memory_space<vmem>>, vector<1x64xf32>
    %118 = vector.broadcast %117 : vector<1x64xf32> to vector<78x64xf32>
    %119 = arith.addf %116, %118 : vector<78x64xf32>
    %cst_118 = arith.constant 0.000000e+00 : f32
    %120 = vector.broadcast %cst_118 : f32 to vector<78x64xf32>
    %121 = arith.maximumf %119, %120 : vector<78x64xf32>
    %c0_119 = arith.constant 0 : index
    %c0_120 = arith.constant 0 : index
    %122 = vector.load %arg17[%c0_119, %c0_120] : memref<78x64xf32, #tpu.memory_space<vmem>>, vector<78x64xf32>
    tpu.vector_store %arg17[%c0_119, %c0_120], %121 {strides = array<i32>} : memref<78x64xf32, #tpu.memory_space<vmem>>, vector<78x64xf32>,
    %c0_121 = arith.constant 0 : index
    %c0_122 = arith.constant 0 : index
    %123 = vector.load %arg17[%c0_121, %c0_122] : memref<78x64xf32, #tpu.memory_space<vmem>>, vector<67x64xf32>
    %c1_123 = arith.constant 1 : index
    %c0_124 = arith.constant 0 : index
    %124 = vector.load %arg17[%c1_123, %c0_124] : memref<78x64xf32, #tpu.memory_space<vmem>>, vector<67x64xf32>
    %125 = arith.maximumf %123, %124 : vector<67x64xf32>
    %c10_125 = arith.constant 10 : index
    %c0_126 = arith.constant 0 : index
    %126 = vector.load %arg17[%c10_125, %c0_126] : memref<78x64xf32, #tpu.memory_space<vmem>>, vector<67x64xf32>
    %c11_127 = arith.constant 11 : index
    %c0_128 = arith.constant 0 : index
    %127 = vector.load %arg17[%c11_127, %c0_128] : memref<78x64xf32, #tpu.memory_space<vmem>>, vector<67x64xf32>
    %128 = arith.maximumf %126, %127 : vector<67x64xf32>
    %129 = arith.maximumf %125, %128 : vector<67x64xf32>
    %c0_129 = arith.constant 0 : index
    %c0_130 = arith.constant 0 : index
    %130 = vector.load %arg7[%c0_129, %c0_130] : memref<16x67xf32, #tpu.memory_space<vmem>>, vector<16x67xf32>
    %cst_131 = arith.constant dense<0.000000e+00> : vector<16x64xf32>
    %131 = tpu.matmul %130, %129, %cst_131 {dimension_numbers = #tpu.dot_dimension_numbers<[1], [0], [0], [1], [0, 0, 1, 1], [], []>} : vector<16x67xf32>, vector<67x64xf32>, vector<16x64xf32> -> vector<16x64xf32>
    %cst_132 = arith.constant 0.000000e+00 : f32
    %132 = vector.broadcast %cst_132 : f32 to vector<64x256xf32>
    %c0_133 = arith.constant 0 : index
    %c0_134 = arith.constant 0 : index
    %c0_135 = arith.constant 0 : index
    %133 = vector.load %arg8[%c0_133, %c0_134, %c0_135] : memref<4x64x256xf32, #tpu.memory_space<vmem>>, vector<1x64x256xf32>
    %134 = vector.shape_cast %133 : vector<1x64x256xf32> to vector<64x256xf32>
    %cst_136 = arith.constant dense<0.000000e+00> : vector<16x256xf32>
    %135 = tpu.matmul %131, %134, %cst_136 {dimension_numbers = #tpu.dot_dimension_numbers<[1], [0], [0], [1], [0, 0, 1, 1], [], []>} : vector<16x64xf32>, vector<64x256xf32>, vector<16x256xf32> -> vector<16x256xf32>
    %c0_137 = arith.constant 0 : index
    %c0_138 = arith.constant 0 : index
    %c0_139 = arith.constant 0 : index
    %136 = vector.load %arg10[%c0_137, %c0_138, %c0_139] : memref<4x64x16xf32, #tpu.memory_space<vmem>>, vector<1x64x16xf32>
    %137 = vector.shape_cast %136 : vector<1x64x16xf32> to vector<64x16xf32>
    %cst_140 = arith.constant dense<0.000000e+00> : vector<64x256xf32>
    %138 = tpu.matmul %137, %135, %cst_140 {dimension_numbers = #tpu.dot_dimension_numbers<[1], [0], [0], [1], [0, 0, 1, 1], [], []>} : vector<64x16xf32>, vector<16x256xf32>, vector<64x256xf32> -> vector<64x256xf32>
    %139 = arith.addf %132, %138 : vector<64x256xf32>
    %c1_141 = arith.constant 1 : index
    %c0_142 = arith.constant 0 : index
    %c0_143 = arith.constant 0 : index
    %140 = vector.load %arg8[%c1_141, %c0_142, %c0_143] : memref<4x64x256xf32, #tpu.memory_space<vmem>>, vector<1x64x256xf32>
    %141 = vector.shape_cast %140 : vector<1x64x256xf32> to vector<64x256xf32>
    %cst_144 = arith.constant dense<0.000000e+00> : vector<16x256xf32>
    %142 = tpu.matmul %131, %141, %cst_144 {dimension_numbers = #tpu.dot_dimension_numbers<[1], [0], [0], [1], [0, 0, 1, 1], [], []>} : vector<16x64xf32>, vector<64x256xf32>, vector<16x256xf32> -> vector<16x256xf32>
    %c1_145 = arith.constant 1 : index
    %c0_146 = arith.constant 0 : index
    %c0_147 = arith.constant 0 : index
    %143 = vector.load %arg10[%c1_145, %c0_146, %c0_147] : memref<4x64x16xf32, #tpu.memory_space<vmem>>, vector<1x64x16xf32>
    %144 = vector.shape_cast %143 : vector<1x64x16xf32> to vector<64x16xf32>
    %cst_148 = arith.constant dense<0.000000e+00> : vector<64x256xf32>
    %145 = tpu.matmul %144, %142, %cst_148 {dimension_numbers = #tpu.dot_dimension_numbers<[1], [0], [0], [1], [0, 0, 1, 1], [], []>} : vector<64x16xf32>, vector<16x256xf32>, vector<64x256xf32> -> vector<64x256xf32>
    %146 = arith.addf %139, %145 : vector<64x256xf32>
    %c2_149 = arith.constant 2 : index
    %c0_150 = arith.constant 0 : index
    %c0_151 = arith.constant 0 : index
    %147 = vector.load %arg8[%c2_149, %c0_150, %c0_151] : memref<4x64x256xf32, #tpu.memory_space<vmem>>, vector<1x64x256xf32>
    %148 = vector.shape_cast %147 : vector<1x64x256xf32> to vector<64x256xf32>
    %cst_152 = arith.constant dense<0.000000e+00> : vector<16x256xf32>
    %149 = tpu.matmul %131, %148, %cst_152 {dimension_numbers = #tpu.dot_dimension_numbers<[1], [0], [0], [1], [0, 0, 1, 1], [], []>} : vector<16x64xf32>, vector<64x256xf32>, vector<16x256xf32> -> vector<16x256xf32>
    %c2_153 = arith.constant 2 : index
    %c0_154 = arith.constant 0 : index
    %c0_155 = arith.constant 0 : index
    %150 = vector.load %arg10[%c2_153, %c0_154, %c0_155] : memref<4x64x16xf32, #tpu.memory_space<vmem>>, vector<1x64x16xf32>
    %151 = vector.shape_cast %150 : vector<1x64x16xf32> to vector<64x16xf32>
    %cst_156 = arith.constant dense<0.000000e+00> : vector<64x256xf32>
    %152 = tpu.matmul %151, %149, %cst_156 {dimension_numbers = #tpu.dot_dimension_numbers<[1], [0], [0], [1], [0, 0, 1, 1], [], []>} : vector<64x16xf32>, vector<16x256xf32>, vector<64x256xf32> -> vector<64x256xf32>
    %153 = arith.addf %146, %152 : vector<64x256xf32>
    %c3_157 = arith.constant 3 : index
    %c0_158 = arith.constant 0 : index
    %c0_159 = arith.constant 0 : index
    %154 = vector.load %arg8[%c3_157, %c0_158, %c0_159] : memref<4x64x256xf32, #tpu.memory_space<vmem>>, vector<1x64x256xf32>
    %155 = vector.shape_cast %154 : vector<1x64x256xf32> to vector<64x256xf32>
    %cst_160 = arith.constant dense<0.000000e+00> : vector<16x256xf32>
    %156 = tpu.matmul %131, %155, %cst_160 {dimension_numbers = #tpu.dot_dimension_numbers<[1], [0], [0], [1], [0, 0, 1, 1], [], []>} : vector<16x64xf32>, vector<64x256xf32>, vector<16x256xf32> -> vector<16x256xf32>
    %c3_161 = arith.constant 3 : index
    %c0_162 = arith.constant 0 : index
    %c0_163 = arith.constant 0 : index
    %157 = vector.load %arg10[%c3_161, %c0_162, %c0_163] : memref<4x64x16xf32, #tpu.memory_space<vmem>>, vector<1x64x16xf32>
    %158 = vector.shape_cast %157 : vector<1x64x16xf32> to vector<64x16xf32>
    %cst_164 = arith.constant dense<0.000000e+00> : vector<64x256xf32>
    %159 = tpu.matmul %158, %156, %cst_164 {dimension_numbers = #tpu.dot_dimension_numbers<[1], [0], [0], [1], [0, 0, 1, 1], [], []>} : vector<64x16xf32>, vector<16x256xf32>, vector<64x256xf32> -> vector<64x256xf32>
    %160 = arith.addf %153, %159 : vector<64x256xf32>
    %c0_165 = arith.constant 0 : index
    %c0_166 = arith.constant 0 : index
    %161 = vector.load %arg9[%c0_165, %c0_166] : memref<1x256xf32, #tpu.memory_space<vmem>>, vector<1x256xf32>
    %162 = vector.broadcast %161 : vector<1x256xf32> to vector<64x256xf32>
    %163 = arith.addf %160, %162 : vector<64x256xf32>
    %cst_167 = arith.constant 0.000000e+00 : f32
    %164 = vector.broadcast %cst_167 : f32 to vector<64x256xf32>
    %165 = arith.maximumf %163, %164 : vector<64x256xf32>
    %cst_168 = arith.constant 0.000000e+00 : f32
    %166 = vector.broadcast %cst_168 : f32 to vector<16x256xf32>
    %c0_169 = arith.constant 0 : index
    %c0_170 = arith.constant 0 : index
    %c0_171 = arith.constant 0 : index
    %167 = vector.load %arg11[%c0_169, %c0_170, %c0_171] : memref<4x256x16xf32, #tpu.memory_space<vmem>>, vector<1x256x16xf32>
    %168 = vector.shape_cast %167 : vector<1x256x16xf32> to vector<256x16xf32>
    %cst_172 = arith.constant dense<0.000000e+00> : vector<64x16xf32>
    %169 = tpu.matmul %165, %168, %cst_172 {dimension_numbers = #tpu.dot_dimension_numbers<[1], [0], [0], [1], [0, 0, 1, 1], [], []>} : vector<64x256xf32>, vector<256x16xf32>, vector<64x16xf32> -> vector<64x16xf32>
    %c0_173 = arith.constant 0 : index
    %c0_174 = arith.constant 0 : index
    %c0_175 = arith.constant 0 : index
    %170 = vector.load %arg13[%c0_173, %c0_174, %c0_175] : memref<4x64x256xf32, #tpu.memory_space<vmem>>, vector<1x64x256xf32>
    %171 = vector.shape_cast %170 : vector<1x64x256xf32> to vector<64x256xf32>
    %cst_176 = arith.constant dense<0.000000e+00> : vector<16x256xf32>
    %172 = tpu.matmul %169, %171, %cst_176 {dimension_numbers = #tpu.dot_dimension_numbers<[0], [0], [1], [1], [0, 1, 1, 1], [], []>} : vector<64x16xf32>, vector<64x256xf32>, vector<16x256xf32> -> vector<16x256xf32>
    %173 = arith.addf %166, %172 : vector<16x256xf32>
    %c1_177 = arith.constant 1 : index
    %c0_178 = arith.constant 0 : index
    %c0_179 = arith.constant 0 : index
    %174 = vector.load %arg11[%c1_177, %c0_178, %c0_179] : memref<4x256x16xf32, #tpu.memory_space<vmem>>, vector<1x256x16xf32>
    %175 = vector.shape_cast %174 : vector<1x256x16xf32> to vector<256x16xf32>
    %cst_180 = arith.constant dense<0.000000e+00> : vector<64x16xf32>
    %176 = tpu.matmul %165, %175, %cst_180 {dimension_numbers = #tpu.dot_dimension_numbers<[1], [0], [0], [1], [0, 0, 1, 1], [], []>} : vector<64x256xf32>, vector<256x16xf32>, vector<64x16xf32> -> vector<64x16xf32>
    %c1_181 = arith.constant 1 : index
    %c0_182 = arith.constant 0 : index
    %c0_183 = arith.constant 0 : index
    %177 = vector.load %arg13[%c1_181, %c0_182, %c0_183] : memref<4x64x256xf32, #tpu.memory_space<vmem>>, vector<1x64x256xf32>
    %178 = vector.shape_cast %177 : vector<1x64x256xf32> to vector<64x256xf32>
    %cst_184 = arith.constant dense<0.000000e+00> : vector<16x256xf32>
    %179 = tpu.matmul %176, %178, %cst_184 {dimension_numbers = #tpu.dot_dimension_numbers<[0], [0], [1], [1], [0, 1, 1, 1], [], []>} : vector<64x16xf32>, vector<64x256xf32>, vector<16x256xf32> -> vector<16x256xf32>
    %180 = arith.addf %173, %179 : vector<16x256xf32>
    %c2_185 = arith.constant 2 : index
    %c0_186 = arith.constant 0 : index
    %c0_187 = arith.constant 0 : index
    %181 = vector.load %arg11[%c2_185, %c0_186, %c0_187] : memref<4x256x16xf32, #tpu.memory_space<vmem>>, vector<1x256x16xf32>
    %182 = vector.shape_cast %181 : vector<1x256x16xf32> to vector<256x16xf32>
    %cst_188 = arith.constant dense<0.000000e+00> : vector<64x16xf32>
    %183 = tpu.matmul %165, %182, %cst_188 {dimension_numbers = #tpu.dot_dimension_numbers<[1], [0], [0], [1], [0, 0, 1, 1], [], []>} : vector<64x256xf32>, vector<256x16xf32>, vector<64x16xf32> -> vector<64x16xf32>
    %c2_189 = arith.constant 2 : index
    %c0_190 = arith.constant 0 : index
    %c0_191 = arith.constant 0 : index
    %184 = vector.load %arg13[%c2_189, %c0_190, %c0_191] : memref<4x64x256xf32, #tpu.memory_space<vmem>>, vector<1x64x256xf32>
    %185 = vector.shape_cast %184 : vector<1x64x256xf32> to vector<64x256xf32>
    %cst_192 = arith.constant dense<0.000000e+00> : vector<16x256xf32>
    %186 = tpu.matmul %183, %185, %cst_192 {dimension_numbers = #tpu.dot_dimension_numbers<[0], [0], [1], [1], [0, 1, 1, 1], [], []>} : vector<64x16xf32>, vector<64x256xf32>, vector<16x256xf32> -> vector<16x256xf32>
    %187 = arith.addf %180, %186 : vector<16x256xf32>
    %c3_193 = arith.constant 3 : index
    %c0_194 = arith.constant 0 : index
    %c0_195 = arith.constant 0 : index
    %188 = vector.load %arg11[%c3_193, %c0_194, %c0_195] : memref<4x256x16xf32, #tpu.memory_space<vmem>>, vector<1x256x16xf32>
    %189 = vector.shape_cast %188 : vector<1x256x16xf32> to vector<256x16xf32>
    %cst_196 = arith.constant dense<0.000000e+00> : vector<64x16xf32>
    %190 = tpu.matmul %165, %189, %cst_196 {dimension_numbers = #tpu.dot_dimension_numbers<[1], [0], [0], [1], [0, 0, 1, 1], [], []>} : vector<64x256xf32>, vector<256x16xf32>, vector<64x16xf32> -> vector<64x16xf32>
    %c3_197 = arith.constant 3 : index
    %c0_198 = arith.constant 0 : index
    %c0_199 = arith.constant 0 : index
    %191 = vector.load %arg13[%c3_197, %c0_198, %c0_199] : memref<4x64x256xf32, #tpu.memory_space<vmem>>, vector<1x64x256xf32>
    %192 = vector.shape_cast %191 : vector<1x64x256xf32> to vector<64x256xf32>
    %cst_200 = arith.constant dense<0.000000e+00> : vector<16x256xf32>
    %193 = tpu.matmul %190, %192, %cst_200 {dimension_numbers = #tpu.dot_dimension_numbers<[0], [0], [1], [1], [0, 1, 1, 1], [], []>} : vector<64x16xf32>, vector<64x256xf32>, vector<16x256xf32> -> vector<16x256xf32>
    %194 = arith.addf %187, %193 : vector<16x256xf32>
    %c0_201 = arith.constant 0 : index
    %c0_202 = arith.constant 0 : index
    %195 = vector.load %arg12[%c0_201, %c0_202] : memref<1x1xf32, #tpu.memory_space<vmem>>, vector<1x1xf32>
    %196 = vector.broadcast %195 : vector<1x1xf32> to vector<16x256xf32>
    %197 = arith.addf %194, %196 : vector<16x256xf32>
    %198 = arith.negf %197 : vector<16x256xf32>
    %199 = math.exp %198 : vector<16x256xf32>
    %cst_203 = arith.constant 1.000000e+00 : f32
    %200 = vector.broadcast %cst_203 : f32 to vector<16x256xf32>
    %201 = arith.addf %200, %199 : vector<16x256xf32>
    %202 = arith.divf %200, %201 : vector<16x256xf32>
    %c0_204 = arith.constant 0 : index
    %c0_205 = arith.constant 0 : index
    %c0_206 = arith.constant 0 : index
    %203 = vector.load %arg14[%c0_204, %c0_205, %c0_206] : memref<1x16x256xf32, #tpu.memory_space<vmem>>, vector<1x16x256xf32>
    %204 = vector.shape_cast %203 : vector<1x16x256xf32> to vector<16x256xf32>
    %205 = vector.shape_cast %202 : vector<16x256xf32> to vector<1x16x256xf32>
    tpu.vector_store %arg14[%c0_204, %c0_205, %c0_206], %205 {strides = array<i32>} : memref<1x16x256xf32, #tpu.memory_space<vmem>>, vector<1x16x256xf32>,
    return
  }
  func.func @transform_0(%arg0: i32) -> (i32, i32, i32) {
    %c0_i32 = arith.constant 0 : i32
    %c0_i32_0 = arith.constant 0 : i32
    %c0_i32_1 = arith.constant 0 : i32
    return %arg0, %c0_i32, %c0_i32_0 : i32, i32, i32
  }
  func.func @transform_1(%arg0: i32) -> (i32, i32, i32) {
    %c0_i32 = arith.constant 0 : i32
    %c0_i32_0 = arith.constant 0 : i32
    %c0_i32_1 = arith.constant 0 : i32
    %c0_i32_2 = arith.constant 0 : i32
    return %c0_i32, %c0_i32_0, %c0_i32_1 : i32, i32, i32
  }
  func.func @transform_2(%arg0: i32) -> (i32, i32) {
    %c0_i32 = arith.constant 0 : i32
    %c0_i32_0 = arith.constant 0 : i32
    %c0_i32_1 = arith.constant 0 : i32
    return %c0_i32, %c0_i32_0 : i32, i32
  }
  func.func @transform_3(%arg0: i32) -> (i32, i32, i32) {
    %c0_i32 = arith.constant 0 : i32
    %c0_i32_0 = arith.constant 0 : i32
    %c0_i32_1 = arith.constant 0 : i32
    %c0_i32_2 = arith.constant 0 : i32
    return %c0_i32, %c0_i32_0, %c0_i32_1 : i32, i32, i32
  }
  func.func @transform_4(%arg0: i32) -> (i32, i32) {
    %c0_i32 = arith.constant 0 : i32
    %c0_i32_0 = arith.constant 0 : i32
    %c0_i32_1 = arith.constant 0 : i32
    return %c0_i32, %c0_i32_0 : i32, i32
  }
  func.func @transform_5(%arg0: i32) -> (i32, i32) {
    %c0_i32 = arith.constant 0 : i32
    %c0_i32_0 = arith.constant 0 : i32
    %c0_i32_1 = arith.constant 0 : i32
    return %c0_i32, %c0_i32_0 : i32, i32
  }
  func.func @transform_6(%arg0: i32) -> (i32, i32) {
    %c0_i32 = arith.constant 0 : i32
    %c0_i32_0 = arith.constant 0 : i32
    %c0_i32_1 = arith.constant 0 : i32
    return %c0_i32, %c0_i32_0 : i32, i32
  }
  func.func @transform_7(%arg0: i32) -> (i32, i32, i32) {
    %c0_i32 = arith.constant 0 : i32
    %c0_i32_0 = arith.constant 0 : i32
    %c0_i32_1 = arith.constant 0 : i32
    %c0_i32_2 = arith.constant 0 : i32
    return %c0_i32, %c0_i32_0, %c0_i32_1 : i32, i32, i32
  }
  func.func @transform_8(%arg0: i32) -> (i32, i32) {
    %c0_i32 = arith.constant 0 : i32
    %c0_i32_0 = arith.constant 0 : i32
    %c0_i32_1 = arith.constant 0 : i32
    return %c0_i32, %c0_i32_0 : i32, i32
  }
  func.func @transform_9(%arg0: i32) -> (i32, i32, i32) {
    %c0_i32 = arith.constant 0 : i32
    %c0_i32_0 = arith.constant 0 : i32
    %c0_i32_1 = arith.constant 0 : i32
    %c0_i32_2 = arith.constant 0 : i32
    return %c0_i32, %c0_i32_0, %c0_i32_1 : i32, i32, i32
  }
  func.func @transform_10(%arg0: i32) -> (i32, i32, i32) {
    %c0_i32 = arith.constant 0 : i32
    %c0_i32_0 = arith.constant 0 : i32
    %c0_i32_1 = arith.constant 0 : i32
    %c0_i32_2 = arith.constant 0 : i32
    return %c0_i32, %c0_i32_0, %c0_i32_1 : i32, i32, i32
  }
  func.func @transform_11(%arg0: i32) -> (i32, i32) {
    %c0_i32 = arith.constant 0 : i32
    %c0_i32_0 = arith.constant 0 : i32
    %c0_i32_1 = arith.constant 0 : i32
    return %c0_i32, %c0_i32_0 : i32, i32
  }
  func.func @transform_12(%arg0: i32) -> (i32, i32, i32) {
    %c0_i32 = arith.constant 0 : i32
    %c0_i32_0 = arith.constant 0 : i32
    %c0_i32_1 = arith.constant 0 : i32
    %c0_i32_2 = arith.constant 0 : i32
    return %c0_i32, %c0_i32_0, %c0_i32_1 : i32, i32, i32
  }
  func.func @transform_13(%arg0: i32) -> (i32, i32, i32) {
    %c0_i32 = arith.constant 0 : i32
    %c0_i32_0 = arith.constant 0 : i32
    %c0_i32_1 = arith.constant 0 : i32
    return %arg0, %c0_i32, %c0_i32_0 : i32, i32, i32
  }
}

</mosaic_0001>

<bundles_post_ra>
// kernel: conv_autoencoder_forward.1
= control target key start
LH: loop header
LB: loop body
LE: loop exit
PB: predicated region body
PF: predicated region fallthrough
CT: control target
= control target key end

     0   :  { %v19489_v3 = vmov 0.0   ;;  %vm127_vm0 = vcmask 130048   ;;  %vm4788_vm1 = vcmask 1046528   ;;  %vm5183_vm2 = vcmask 1045504   ;;  %s19475_s1 = inlined_call_operand.vmem [shape: f32[9,16,256], index: 1, kind: input, shape index: {}]   ;;  %s19476_s0 = inlined_call_operand.vmem [shape: f32[1,324,16], index: 0, kind: input, shape index: {}]   ;;  %s19477_s2 = inlined_call_operand.vmem [shape: f32[1,256], index: 2, kind: input, shape index: {}]   ;;  %s19478_s5 = inlined_call_operand.vmem [shape: f32[100,267], index: 5, kind: input, shape index: {}]   ;;  %s19479_s3 = inlined_call_operand.vmem [shape: f32[9,256,64], index: 3, kind: input, shape index: {}]   ;;  %s19480_s6 = inlined_call_operand.vmem [shape: f32[16,67], index: 6, kind: input, shape index: {}]   ;;  %s19481_s7 = inlined_call_operand.vmem [shape: f32[4,64,256], index: 7, kind: input, shape index: {}]   ;;  %s19482_s4 = inlined_call_operand.vmem [shape: f32[1,64], index: 4, kind: input, shape index: {}]   ;;  %s19483_s9 = inlined_call_operand.vmem [shape: f32[4,64,16], index: 9, kind: input, shape index: {}]   ;;  %s19484_s10 = inlined_call_operand.vmem [shape: f32[4,256,16], index: 10, kind: input, shape index: {}]   ;;  %s19485_s8 = inlined_call_operand.vmem [shape: f32[1,256], index: 8, kind: input, shape index: {}]   ;;  %s19486_s12 = inlined_call_operand.vmem [shape: f32[4,64,256], index: 12, kind: input, shape index: {}]   ;;  %s19487_s11 = inlined_call_operand.<no memory space> [shape: f32[1,1], index: 11, kind: input, shape index: {}]   ;;  %s19488_s13 = inlined_call_operand.vmem [shape: f32[1,16,256], index: 13, kind: output, shape index: {}]  }
   0x1   :  { %v10308_v0 = vld [vmem:[%s19475_s1 + $0x38] sm:$0xff]  ;;  %v10307_v1 = vld [vmem:[%s19475_s1 + $0x30] sm:$0xff]  ;;  %v10306_v2 = vld [vmem:[%s19475_s1 + $0x28] sm:$0xff]  ;;  %300 = vmatprep.mubr.f32.mxu0 %v19489_v3  ;;  %498 = vmatprep.mubr.f32.mxu1 %v19489_v3  ;;  %vm5533_vm3 = vcmask 1042432   ;;  %vm5493_vm4 = vcmask 89088   ;;  %vm7756_vm5 = vcmask 1041408  }
   0x2   :  { %264 = vmatprep.subr.mxu0 %v10308_v0  ;;  %12019 = vmatprep.subr.mxu1 %v10308_v0  ;;  %v10305_v4 = vld [vmem:[%s19475_s1 + $0x20] sm:$0xff]  ;;  %v119_v6 = vld [vmem:[%s19476_s0 + $0x109] sm:$0xff]  ;;  %v85_v7 = vld [vmem:[%s19475_s1 + $0x18] sm:$0xff]  ;;  %vm7035_vm6 = vcmask 1043456   ;;  %vm6806_vm7 = vcmask 1044480   ;;  %vm8048_vm8 = vcmask 547840  }
   0x3   :  { %265 = vmatpush1.msra.mxu0 %v10307_v1  ;;  %12021 = vmatpush1.msra.mxu1 %v10307_v1  ;;  %v86_v5 = vld [vmem:[%s19476_s0 + $0x1] sm:$0xff]  ;;  %v84_v8 = vld [vmem:[%s19475_s1 + $0x10] sm:$0xff]  ;;  %v121_v14 = vld [vmem:[%s19476_s0 + $0x119] sm:$0x3f]  ;;  %vm7971_vm9 = vcmask 523264   ;;  %vm7981_vm10 = vcmask 521216  }
   0x4   :  { %266 = vmatprep.subr.mxu0 %v10306_v2  ;;  %12020 = vmatprep.subr.mxu1 %v10306_v2  ;;  %v87_v9 = vld [vmem:[%s19476_s0 + $0x9] sm:$0xff]  ;;  %v120_v10 = vld [vmem:[%s19476_s0 + $0x111] sm:$0xff]  ;;  %v82_v12 = vld [vmem:[%s19475_s1] sm:$0xff] }
   0x5   :  { %267 = vmatpush1.msra.mxu0 %v10305_v4  ;;  %12022 = vmatpush1.msra.mxu1 %v10305_v4  ;;  %v83_v11 = vld [vmem:[%s19475_s1 + $0x8] sm:$0xff]  ;;  %v88_v13 = vld [vmem:[%s19476_s0 + $0x11] sm:$0xff]  ;;  %v89_v17 = vld [vmem:[%s19476_s0 + $0x19] sm:$0xff] }
   0x6   :  { %10309 = vmatmul.mubr.msk.f32.vlgmr.msra.gmra.mxu0 %vm127_vm0, %v86_v5  ;;  %10342 = vmatmul.mubr.msk.f32.vlgmr.msra.gmra.mxu1 %vm127_vm0, %v119_v6  ;;  %v10384_v15 = vld [vmem:[%s19475_s1 + $0x58] sm:$0xff]  ;;  %v10383_v16 = vld [vmem:[%s19475_s1 + $0x50] sm:$0xff]  ;;  %v46_v18 = vld [vmem:[%s19476_s0] sm:$0xff] }
   0x7   :  { %306 = vmatprep.mubr.f32.mxu0 %v19489_v3  ;;  %504 = vmatprep.mubr.f32.mxu1 %v19489_v3  ;;  %v90_v19 = vld [vmem:[%s19476_s0 + $0x21] sm:$0xff]  ;;  %v91_v21 = vld [vmem:[%s19476_s0 + $0x29] sm:$0xff]  ;;  %v92_v25 = vld [vmem:[%s19476_s0 + $0x31] sm:$0xff] }
   0x8   :  { %653 = vmatprep.subr.mxu1 %v85_v7  ;;  %1083 = vmatprep.subr.mxu0 %v10384_v15  ;;  %v47_v20 = vld [vmem:[%s19476_s0 + $0x8] sm:$0xff]  ;;  %v48_v22 = vld [vmem:[%s19476_s0 + $0x10] sm:$0xff]  ;;  %v10381_v24 = vld [vmem:[%s19475_s1 + $0x40] sm:$0xff] }
   0x9   :  { %654 = vmatpush1.msra.mxu1 %v84_v8  ;;  %1084 = vmatpush1.msra.mxu0 %v10383_v16  ;;  %v10382_v23 = vld [vmem:[%s19475_s1 + $0x48] sm:$0xff]  ;;  %v49_v26 = vld [vmem:[%s19476_s0 + $0x18] sm:$0xff]  ;;  %v50_v28 = vld [vmem:[%s19476_s0 + $0x20] sm:$0xff] }
   0xa   :  { %10310 = vmatmul.mubr.msk.f32.gmra.mxu0 %vm127_vm0, %v87_v9  ;;  %10343 = vmatmul.mubr.msk.f32.gmra.mxu1 %vm127_vm0, %v120_v10  ;;  %v93_v27 = vld [vmem:[%s19476_s0 + $0x39] sm:$0xff]  ;;  %v10423_v30 = vld [vmem:[%s19475_s1 + $0x70] sm:$0xff]  ;;  %v10422_v31 = vld [vmem:[%s19475_s1 + $0x68] sm:$0xff] }
   0xb   :  { %312 = vmatprep.mubr.f32.mxu0 %v19489_v3  ;;  %510 = vmatprep.mubr.f32.mxu1 %v19489_v3  ;;  %v10424_v29 = vld [vmem:[%s19475_s1 + $0x78] sm:$0xff]  ;;  %v10421_v32 = vld [vmem:[%s19475_s1 + $0x60] sm:$0xff]  ;;  %v51_v34 = vld [vmem:[%s19476_s0 + $0x28] sm:$0xff] }
   0xc   :  { %655 = vmatprep.subr.mxu1 %v83_v11  ;;  %1085 = vmatprep.subr.mxu0 %v10382_v23  ;;  %v94_v33 = vld [vmem:[%s19476_s0 + $0x41] sm:$0xff]  ;;  %v95_v35 = vld [vmem:[%s19476_s0 + $0x49] sm:$0xff]  ;;  %v96_v37 = vld [vmem:[%s19476_s0 + $0x51] sm:$0xff] }
   0xd   :  { %656 = vmatpush1.msra.mxu1 %v82_v12  ;;  %1086 = vmatpush1.msra.mxu0 %v10381_v24  ;;  %v52_v36 = vld [vmem:[%s19476_s0 + $0x30] sm:$0xff]  ;;  %v53_v38 = vld [vmem:[%s19476_s0 + $0x38] sm:$0xff]  ;;  %v54_v40 = vld [vmem:[%s19476_s0 + $0x40] sm:$0xff] }
   0xe   :  { %10311 = vmatmul.mubr.msk.f32.gmra.mxu0 %vm127_vm0, %v88_v13  ;;  %10344 = vmatmul.mubr.msk.f32.gmra.mxu1 %vm127_vm0, %v121_v14  ;;  %v97_v39 = vld [vmem:[%s19476_s0 + $0x59] sm:$0xff]  ;;  %v98_v41 = vld [vmem:[%s19476_s0 + $0x61] sm:$0xff]  ;;  %v99_v43 = vld [vmem:[%s19476_s0 + $0x69] sm:$0xff] }
   0xf   :  { %318 = vmatprep.mubr.f32.mxu0 %v19489_v3  ;;  %689 = vmatprep.mubr.f32.mxu1 %v19489_v3  ;;  %v55_v42 = vld [vmem:[%s19476_s0 + $0x48] sm:$0xff]  ;;  %v56_v44 = vld [vmem:[%s19476_s0 + $0x50] sm:$0xff]  ;;  %v10464_v45 = vld [vmem:[%s19475_s1 + $0x98] sm:$0xff] }
  0x10   :  { %1585 = vmatprep.subr.mxu1 %v10424_v29  ;;  %v100_v46 = vld [vmem:[%s19476_s0 + $0x71] sm:$0xff]  ;;  %2087 = vmatprep.subr.mxu0 %v10464_v45  ;;  %v101_v48 = vld [vmem:[%s19476_s0 + $0x79] sm:$0xff]  ;;  %v102_v50 = vld [vmem:[%s19476_s0 + $0x81] sm:$0xff] }
  0x11   :  { %v57_v47 = vld [vmem:[%s19476_s0 + $0x58] sm:$0xff]  ;;  %v58_v49 = vld [vmem:[%s19476_s0 + $0x60] sm:$0xff]  ;;  %v59_v51 = vld [vmem:[%s19476_s0 + $0x68] sm:$0xff] }
  0x12   :  { %10312 = vmatmul.mubr.msk.f32.gmra.mxu0 %vm127_vm0, %v89_v17  ;;  %10345 = vmatmul.mubr.msk.f32.vlgmr.msra.gmra.mxu1 %vm127_vm0, %v46_v18  ;;  %v103_v52 = vld [vmem:[%s19476_s0 + $0x89] sm:$0xff]  ;;  %v104_v54 = vld [vmem:[%s19476_s0 + $0x91] sm:$0xff]  ;;  %v105_v56 = vld [vmem:[%s19476_s0 + $0x99] sm:$0xff] }
  0x13   :  { %324 = vmatprep.mubr.f32.mxu0 %v19489_v3  ;;  %695 = vmatprep.mubr.f32.mxu1 %v19489_v3  ;;  %v60_v53 = vld [vmem:[%s19476_s0 + $0x70] sm:$0xff]  ;;  %v61_v55 = vld [vmem:[%s19476_s0 + $0x78] sm:$0xff]  ;;  %v62_v57 = vld [vmem:[%s19476_s0 + $0x80] sm:$0xff] }
  0x14   :  { %1586 = vmatpush1.msra.mxu1 %v10423_v30  ;;  %v106_v58 = vld [vmem:[%s19476_s0 + $0xa1] sm:$0xff]  ;;  %v107_v60 = vld [vmem:[%s19476_s0 + $0xa9] sm:$0xff]  ;;  %v108_v62 = vld [vmem:[%s19476_s0 + $0xb1] sm:$0xff] }
  0x15   :  { %1587 = vmatprep.subr.mxu1 %v10422_v31  ;;  %v63_v59 = vld [vmem:[%s19476_s0 + $0x88] sm:$0xff]  ;;  %v64_v61 = vld [vmem:[%s19476_s0 + $0x90] sm:$0xff]  ;;  %v65_v63 = vld [vmem:[%s19476_s0 + $0x98] sm:$0xff] }
  0x16   :  { %10313 = vmatmul.mubr.msk.f32.gmra.mxu0 %vm127_vm0, %v90_v19  ;;  %10346 = vmatmul.mubr.msk.f32.gmra.mxu1 %vm127_vm0, %v47_v20  ;;  %v109_v0 = vld [vmem:[%s19476_s0 + $0xb9] sm:$0xff]  ;;  %v110_v2 = vld [vmem:[%s19476_s0 + $0xc1] sm:$0xff]  ;;  %v111_v5 = vld [vmem:[%s19476_s0 + $0xc9] sm:$0xff] }
  0x17   :  { %330 = vmatprep.mubr.f32.mxu0 %v19489_v3  ;;  %701 = vmatprep.mubr.f32.mxu1 %v19489_v3  ;;  %v66_v1 = vld [vmem:[%s19476_s0 + $0xa0] sm:$0xff]  ;;  %v67_v4 = vld [vmem:[%s19476_s0 + $0xa8] sm:$0xff]  ;;  %v68_v6 = vld [vmem:[%s19476_s0 + $0xb0] sm:$0xff] }
  0x18   :  { %1588 = vmatpush1.msra.mxu1 %v10421_v32  ;;  %v112_v7 = vld [vmem:[%s19476_s0 + $0xd1] sm:$0xff]  ;;  %v113_v9 = vld [vmem:[%s19476_s0 + $0xd9] sm:$0xff]  ;;  %v114_v11 = vld [vmem:[%s19476_s0 + $0xe1] sm:$0xff] }
  0x19   :  { %v69_v8 = vld [vmem:[%s19476_s0 + $0xb8] sm:$0xff]  ;;  %v70_v10 = vld [vmem:[%s19476_s0 + $0xc0] sm:$0xff]  ;;  %v71_v12 = vld [vmem:[%s19476_s0 + $0xc8] sm:$0xff] }
  0x1a   :  { %10314 = vmatmul.mubr.msk.f32.gmra.mxu0 %vm127_vm0, %v91_v21  ;;  %10347 = vmatmul.mubr.msk.f32.gmra.mxu1 %vm127_vm0, %v48_v22  ;;  %v115_v13 = vld [vmem:[%s19476_s0 + $0xe9] sm:$0xff]  ;;  %v116_v15 = vld [vmem:[%s19476_s0 + $0xf1] sm:$0xff]  ;;  %v117_v17 = vld [vmem:[%s19476_s0 + $0xf9] sm:$0xff] }
  0x1b   :  { %336 = vmatprep.mubr.f32.mxu0 %v19489_v3  ;;  %707 = vmatprep.mubr.f32.mxu1 %v19489_v3  ;;  %v72_v14 = vld [vmem:[%s19476_s0 + $0xd0] sm:$0xff]  ;;  %v73_v16 = vld [vmem:[%s19476_s0 + $0xd8] sm:$0xff]  ;;  %v74_v18 = vld [vmem:[%s19476_s0 + $0xe0] sm:$0xff] }
  0x1c   :  { %v118_v19 = vld [vmem:[%s19476_s0 + $0x101] sm:$0xff]  ;;  %v76_v21 = vld [vmem:[%s19476_s0 + $0xf0] sm:$0xff] }
  0x1d   :  { %v75_v20 = vld [vmem:[%s19476_s0 + $0xe8] sm:$0xff]  ;;  %v10463_v23 = vld [vmem:[%s19475_s1 + $0x90] sm:$0xff]  ;;  %v909_v31 = vld [vmem:[%s19476_s0 + $0x1a] sm:$0xff] }
  0x1e   :  { %10315 = vmatmul.mubr.msk.f32.gmra.mxu0 %vm127_vm0, %v92_v25  ;;  %10348 = vmatmul.mubr.msk.f32.gmra.mxu1 %vm127_vm0, %v49_v26  ;;  %v906_v22 = vld [vmem:[%s19476_s0 + $0x2] sm:$0xff]  ;;  %v77_v25 = vld [vmem:[%s19476_s0 + $0xf8] sm:$0xff]  ;;  %v907_v26 = vld [vmem:[%s19476_s0 + $0xa] sm:$0xff] }
  0x1f   :  { %342 = vmatprep.mubr.f32.mxu0 %v19489_v3  ;;  %713 = vmatprep.mubr.f32.mxu1 %v19489_v3  ;;  %v10462_v24 = vld [vmem:[%s19475_s1 + $0x88] sm:$0xff]  ;;  %v908_v29 = vld [vmem:[%s19476_s0 + $0x12] sm:$0xff]  ;;  %v917_v45 = vld [vmem:[%s19476_s0 + $0x5a] sm:$0xff] }
  0x20   :  { %v79_v30 = vld [vmem:[%s19476_s0 + $0x108] sm:$0xff]  ;;  %v80_v32 = vld [vmem:[%s19476_s0 + $0x110] sm:$0xff] }
  0x22   :  { %10316 = vmatmul.mubr.msk.f32.gmra.mxu0 %vm127_vm0, %v93_v27  ;;  %10349 = vmatmul.mubr.msk.f32.gmra.mxu1 %vm127_vm0, %v50_v28  ;;  %v10461_v27 = vld [vmem:[%s19475_s1 + $0x80] sm:$0xff] }
  0x23   :  { %348 = vmatprep.mubr.f32.mxu0 %v19489_v3  ;;  %719 = vmatprep.mubr.f32.mxu1 %v19489_v3  ;;  %v78_v28 = vld [vmem:[%s19476_s0 + $0x100] sm:$0xff] }
  0x26   :  { %10317 = vmatmul.mubr.msk.f32.gmra.mxu0 %vm127_vm0, %v94_v33  ;;  %10350 = vmatmul.mubr.msk.f32.gmra.mxu1 %vm127_vm0, %v51_v34  ;;  %v910_v33 = vld [vmem:[%s19476_s0 + $0x22] sm:$0xff]  ;;  %v81_v34 = vld [vmem:[%s19476_s0 + $0x118] sm:$0x3f] }
  0x27   :  { %354 = vmatprep.mubr.f32.mxu0 %v19489_v3  ;;  %725 = vmatprep.mubr.f32.mxu1 %v19489_v3 }
  0x2a   :  { %10318 = vmatmul.mubr.msk.f32.gmra.mxu0 %vm127_vm0, %v95_v35  ;;  %10351 = vmatmul.mubr.msk.f32.gmra.mxu1 %vm127_vm0, %v52_v36  ;;  %v911_v35 = vld [vmem:[%s19476_s0 + $0x2a] sm:$0xff]  ;;  %v912_v36 = vld [vmem:[%s19476_s0 + $0x32] sm:$0xff] }
  0x2b   :  { %360 = vmatprep.mubr.f32.mxu0 %v19489_v3  ;;  %731 = vmatprep.mubr.f32.mxu1 %v19489_v3 }
  0x2e   :  { %10319 = vmatmul.mubr.msk.f32.gmra.mxu0 %vm127_vm0, %v96_v37  ;;  %10352 = vmatmul.mubr.msk.f32.gmra.mxu1 %vm127_vm0, %v53_v38  ;;  %v913_v37 = vld [vmem:[%s19476_s0 + $0x3a] sm:$0xff]  ;;  %v914_v38 = vld [vmem:[%s19476_s0 + $0x42] sm:$0xff] }
  0x2f   :  { %366 = vmatprep.mubr.f32.mxu0 %v19489_v3  ;;  %737 = vmatprep.mubr.f32.mxu1 %v19489_v3 }
  0x32   :  { %10320 = vmatmul.mubr.msk.f32.gmra.mxu0 %vm127_vm0, %v97_v39  ;;  %10353 = vmatmul.mubr.msk.f32.gmra.mxu1 %vm127_vm0, %v54_v40  ;;  %v915_v39 = vld [vmem:[%s19476_s0 + $0x4a] sm:$0xff]  ;;  %v10504_v40 = vld [vmem:[%s19475_s1 + $0xb8] sm:$0xff] }
  0x33   :  { %372 = vmatprep.mubr.f32.mxu0 %v19489_v3  ;;  %743 = vmatprep.mubr.f32.mxu1 %v19489_v3 }
  0x34   :  { %2589 = vmatprep.subr.mxu1 %v10504_v40 }
  0x36   :  { %10321 = vmatmul.mubr.msk.f32.gmra.mxu0 %vm127_vm0, %v98_v41  ;;  %10354 = vmatmul.mubr.msk.f32.gmra.mxu1 %vm127_vm0, %v55_v42  ;;  %v10503_v41 = vld [vmem:[%s19475_s1 + $0xb0] sm:$0xff] }
  0x37   :  { %378 = vmatprep.mubr.f32.mxu0 %v19489_v3  ;;  %749 = vmatprep.mubr.f32.mxu1 %v19489_v3  ;;  %v916_v42 = vld [vmem:[%s19476_s0 + $0x52] sm:$0xff] }
  0x3a   :  { %10322 = vmatmul.mubr.msk.f32.gmra.mxu0 %vm127_vm0, %v99_v43  ;;  %10355 = vmatmul.mubr.msk.f32.gmra.mxu1 %vm127_vm0, %v56_v44  ;;  %v10502_v43 = vld [vmem:[%s19475_s1 + $0xa8] sm:$0xff]  ;;  %v10501_v44 = vld [vmem:[%s19475_s1 + $0xa0] sm:$0xff] }
  0x3b   :  { %384 = vmatprep.mubr.f32.mxu0 %v19489_v3  ;;  %755 = vmatprep.mubr.f32.mxu1 %v19489_v3 }
  0x3e   :  { %10323 = vmatmul.mubr.msk.f32.gmra.mxu0 %vm127_vm0, %v100_v46  ;;  %10356 = vmatmul.mubr.msk.f32.gmra.mxu1 %vm127_vm0, %v57_v47  ;;  %v918_v46 = vld [vmem:[%s19476_s0 + $0x62] sm:$0xff]  ;;  %v919_v47 = vld [vmem:[%s19476_s0 + $0x6a] sm:$0xff] }
  0x3f   :  { %390 = vmatprep.mubr.f32.mxu0 %v19489_v3  ;;  %761 = vmatprep.mubr.f32.mxu1 %v19489_v3 }
  0x42   :  { %10324 = vmatmul.mubr.msk.f32.gmra.mxu0 %vm127_vm0, %v101_v48  ;;  %10357 = vmatmul.mubr.msk.f32.gmra.mxu1 %vm127_vm0, %v58_v49  ;;  %v920_v48 = vld [vmem:[%s19476_s0 + $0x72] sm:$0xff]  ;;  %v921_v49 = vld [vmem:[%s19476_s0 + $0x7a] sm:$0xff] }
  0x43   :  { %396 = vmatprep.mubr.f32.mxu0 %v19489_v3  ;;  %767 = vmatprep.mubr.f32.mxu1 %v19489_v3 }
  0x46   :  { %10325 = vmatmul.mubr.msk.f32.gmra.mxu0 %vm127_vm0, %v102_v50  ;;  %10358 = vmatmul.mubr.msk.f32.gmra.mxu1 %vm127_vm0, %v59_v51 }
  0x47   :  { %402 = vmatprep.mubr.f32.mxu0 %v19489_v3  ;;  %773 = vmatprep.mubr.f32.mxu1 %v19489_v3 }
  0x4a   :  { %10326 = vmatmul.mubr.msk.f32.gmra.mxu0 %vm127_vm0, %v103_v52  ;;  %10359 = vmatmul.mubr.msk.f32.gmra.mxu1 %vm127_vm0, %v60_v53  ;;  %v922_v52 = vld [vmem:[%s19476_s0 + $0x82] sm:$0xff] }
  0x4b   :  { %408 = vmatprep.mubr.f32.mxu0 %v19489_v3  ;;  %779 = vmatprep.mubr.f32.mxu1 %v19489_v3 }
  0x4e   :  { %10327 = vmatmul.mubr.msk.f32.gmra.mxu0 %vm127_vm0, %v104_v54  ;;  %10360 = vmatmul.mubr.msk.f32.gmra.mxu1 %vm127_vm0, %v61_v55 }
  0x4f   :  { %414 = vmatprep.mubr.f32.mxu0 %v19489_v3  ;;  %785 = vmatprep.mubr.f32.mxu1 %v19489_v3 }
  0x52   :  { %10328 = vmatmul.mubr.msk.f32.gmra.mxu0 %vm127_vm0, %v105_v56  ;;  %10361 = vmatmul.mubr.msk.f32.gmra.mxu1 %vm127_vm0, %v62_v57  ;;  %v923_v57 = vld [vmem:[%s19476_s0 + $0x8a] sm:$0xff] }
  0x53   :  { %420 = vmatprep.mubr.f32.mxu0 %v19489_v3  ;;  %791 = vmatprep.mubr.f32.mxu1 %v19489_v3 }
  0x56   :  { %10329 = vmatmul.mubr.msk.f32.gmra.mxu0 %vm127_vm0, %v106_v58  ;;  %10362 = vmatmul.mubr.msk.f32.gmra.mxu1 %vm127_vm0, %v63_v59  ;;  %v10544_v58 = vld [vmem:[%s19475_s1 + $0xd8] sm:$0xff] }
  0x57   :  { %426 = vmatprep.mubr.f32.mxu0 %v19489_v3  ;;  %797 = vmatprep.mubr.f32.mxu1 %v19489_v3 }
  0x5a   :  { %10330 = vmatmul.mubr.msk.f32.gmra.mxu0 %vm127_vm0, %v107_v60  ;;  %10363 = vmatmul.mubr.msk.f32.gmra.mxu1 %vm127_vm0, %v64_v61 }
  0x5b   :  { %432 = vmatprep.mubr.f32.mxu0 %v19489_v3  ;;  %803 = vmatprep.mubr.f32.mxu1 %v19489_v3 }
  0x5e   :  { %10331 = vmatmul.mubr.msk.f32.gmra.mxu0 %vm127_vm0, %v108_v62  ;;  %10364 = vmatmul.mubr.msk.f32.gmra.mxu1 %vm127_vm0, %v65_v63  ;;  %v924_v63 = vld [vmem:[%s19476_s0 + $0x92] sm:$0xff] }
  0x5f   :  { %438 = vmatprep.mubr.f32.mxu0 %v19489_v3  ;;  %809 = vmatprep.mubr.f32.mxu1 %v19489_v3 }
  0x62   :  { %10332 = vmatmul.mubr.msk.f32.gmra.mxu0 %vm127_vm0, %v109_v0  ;;  %10365 = vmatmul.mubr.msk.f32.gmra.mxu1 %vm127_vm0, %v66_v1 }
  0x63   :  { %444 = vmatprep.mubr.f32.mxu0 %v19489_v3  ;;  %815 = vmatprep.mubr.f32.mxu1 %v19489_v3 }
  0x66   :  { %10333 = vmatmul.mubr.msk.f32.gmra.mxu0 %vm127_vm0, %v110_v2  ;;  %10366 = vmatmul.mubr.msk.f32.gmra.mxu1 %vm127_vm0, %v67_v4 }
  0x67   :  { %450 = vmatprep.mubr.f32.mxu0 %v19489_v3  ;;  %821 = vmatprep.mubr.f32.mxu1 %v19489_v3 }
  0x6a   :  { %10334 = vmatmul.mubr.msk.f32.gmra.mxu0 %vm127_vm0, %v111_v5  ;;  %10367 = vmatmul.mubr.msk.f32.gmra.mxu1 %vm127_vm0, %v68_v6  ;;  %v925_v6 = vld [vmem:[%s19476_s0 + $0x9a] sm:$0xff] }
  0x6b   :  { %456 = vmatprep.mubr.f32.mxu0 %v19489_v3  ;;  %827 = vmatprep.mubr.f32.mxu1 %v19489_v3 }
  0x6e   :  { %10335 = vmatmul.mubr.msk.f32.gmra.mxu0 %vm127_vm0, %v112_v7  ;;  %10368 = vmatmul.mubr.msk.f32.gmra.mxu1 %vm127_vm0, %v69_v8 }
  0x6f   :  { %462 = vmatprep.mubr.f32.mxu0 %v19489_v3  ;;  %833 = vmatprep.mubr.f32.mxu1 %v19489_v3 }
  0x72   :  { %10336 = vmatmul.mubr.msk.f32.gmra.mxu0 %vm127_vm0, %v113_v9  ;;  %10369 = vmatmul.mubr.msk.f32.gmra.mxu1 %vm127_vm0, %v70_v10 }
  0x73   :  { %468 = vmatprep.mubr.f32.mxu0 %v19489_v3  ;;  %839 = vmatprep.mubr.f32.mxu1 %v19489_v3 }
  0x76   :  { %10337 = vmatmul.mubr.msk.f32.gmra.mxu0 %vm127_vm0, %v114_v11  ;;  %10370 = vmatmul.mubr.msk.f32.gmra.mxu1 %vm127_vm0, %v71_v12 }
  0x77   :  { %474 = vmatprep.mubr.f32.mxu0 %v19489_v3  ;;  %845 = vmatprep.mubr.f32.mxu1 %v19489_v3 }
  0x7a   :  { %10338 = vmatmul.mubr.msk.f32.gmra.mxu0 %vm127_vm0, %v115_v13  ;;  %10371 = vmatmul.mubr.msk.f32.gmra.mxu1 %vm127_vm0, %v72_v14  ;;  %v926_v13 = vld [vmem:[%s19476_s0 + $0xa2] sm:$0xff] }
  0x7b   :  { %480 = vmatprep.mubr.f32.mxu0 %v19489_v3  ;;  %851 = vmatprep.mubr.f32.mxu1 %v19489_v3 }
  0x7e   :  { %10339 = vmatmul.mubr.msk.f32.gmra.mxu0 %vm127_vm0, %v116_v15  ;;  %10372 = vmatmul.mubr.msk.f32.gmra.mxu1 %vm127_vm0, %v73_v16 }
  0x7f   :  { %486 = vmatprep.mubr.f32.mxu0 %v19489_v3  ;;  %857 = vmatprep.mubr.f32.mxu1 %v19489_v3 }
  0x82   :  { %10340 = vmatmul.mubr.msk.f32.gmra.mxu0 %vm127_vm0, %v117_v17  ;;  %10373 = vmatmul.mubr.msk.f32.gmra.mxu1 %vm127_vm0, %v74_v18 }
  0x83   :  { %492 = vmatprep.mubr.f32.mxu0 %v19489_v3  ;;  %863 = vmatprep.mubr.f32.mxu1 %v19489_v3 }
  0x86   :  { %10341 = vmatmul.mubr.msk.f32.gmra.mxu0 %vm127_vm0, %v118_v19  ;;  %10374 = vmatmul.mubr.msk.f32.gmra.mxu1 %vm127_vm0, %v75_v20  ;;  %v927_v20 = vld [vmem:[%s19476_s0 + $0xaa] sm:$0xff] }
  0x87   :  { %869 = vmatprep.mubr.f32.mxu1 %v19489_v3  ;;  %1119 = vmatprep.mubr.f32.mxu0 %v19489_v3 }
  0x8a   :  { %10375 = vmatmul.mubr.msk.f32.gmra.mxu1 %vm127_vm0, %v76_v21  ;;  %10385 = vmatmul.mubr.msk.f32.vlgmr.msra.gmra.mxu0 %vm127_vm0, %v906_v22 }
  0x8b   :  { %875 = vmatprep.mubr.f32.mxu1 %v19489_v3  ;;  %1125 = vmatprep.mubr.f32.mxu0 %v19489_v3 }
  0x8c   :  { %2088 = vmatpush1.msra.mxu0 %v10463_v23 }
  0x8d   :  { %2089 = vmatprep.subr.mxu0 %v10462_v24 }
  0x8e   :  { %10376 = vmatmul.mubr.msk.f32.gmra.mxu1 %vm127_vm0, %v77_v25  ;;  %10386 = vmatmul.mubr.msk.f32.gmra.mxu0 %vm127_vm0, %v907_v26 }
  0x8f   :  { %881 = vmatprep.mubr.f32.mxu1 %v19489_v3  ;;  %1131 = vmatprep.mubr.f32.mxu0 %v19489_v3 }
  0x90   :  { %2090 = vmatpush1.msra.mxu0 %v10461_v27  ;;  %v928_v27 = vld [vmem:[%s19476_s0 + $0xb2] sm:$0xff] }
  0x91   :  { %3091 = vmatprep.subr.mxu0 %v10544_v58  ;;  %v932_v58 = vld [vmem:[%s19476_s0 + $0xd2] sm:$0xff] }
  0x92   :  { %10377 = vmatmul.mubr.msk.f32.gmra.mxu1 %vm127_vm0, %v78_v28  ;;  %10387 = vmatmul.mubr.msk.f32.gmra.mxu0 %vm127_vm0, %v908_v29 }
  0x93   :  { %887 = vmatprep.mubr.f32.mxu1 %v19489_v3  ;;  %1137 = vmatprep.mubr.f32.mxu0 %v19489_v3 }
  0x96   :  { %10378 = vmatmul.mubr.msk.f32.gmra.mxu1 %vm127_vm0, %v79_v30  ;;  %10388 = vmatmul.mubr.msk.f32.gmra.mxu0 %vm127_vm0, %v909_v31 }
  0x97   :  { %893 = vmatprep.mubr.f32.mxu1 %v19489_v3  ;;  %1143 = vmatprep.mubr.f32.mxu0 %v19489_v3 }
  0x9a   :  { %10379 = vmatmul.mubr.msk.f32.gmra.mxu1 %vm127_vm0, %v80_v32  ;;  %10389 = vmatmul.mubr.msk.f32.gmra.mxu0 %vm127_vm0, %v910_v33 }
  0x9b   :  { %899 = vmatprep.mubr.f32.mxu1 %v19489_v3  ;;  %1149 = vmatprep.mubr.f32.mxu0 %v19489_v3 }
  0x9e   :  { %10380 = vmatmul.mubr.msk.f32.gmra.mxu1 %vm127_vm0, %v81_v34  ;;  %10390 = vmatmul.mubr.msk.f32.gmra.mxu0 %vm127_vm0, %v911_v35  ;;  %v929_v34 = vld [vmem:[%s19476_s0 + $0xba] sm:$0xff] }
  0x9f   :  { %1155 = vmatprep.mubr.f32.mxu0 %v19489_v3  ;;  %1621 = vmatprep.mubr.f32.mxu1 %v19489_v3 }
  0xa2   :  { %10391 = vmatmul.mubr.msk.f32.gmra.mxu0 %vm127_vm0, %v912_v36  ;;  %10425 = vmatmul.mubr.msk.f32.vlgmr.msra.gmra.mxu1 %vm127_vm0, %v908_v29 }
  0xa3   :  { %1161 = vmatprep.mubr.f32.mxu0 %v19489_v3  ;;  %1627 = vmatprep.mubr.f32.mxu1 %v19489_v3 }
  0xa4   :  { %2590 = vmatpush1.msra.mxu1 %v10503_v41  ;;  %v930_v41 = vld [vmem:[%s19476_s0 + $0xc2] sm:$0xff] }
  0xa5   :  { %2591 = vmatprep.subr.mxu1 %v10502_v43 }
  0xa6   :  { %10392 = vmatmul.mubr.msk.f32.gmra.mxu0 %vm127_vm0, %v913_v37  ;;  %10426 = vmatmul.mubr.msk.f32.gmra.mxu1 %vm127_vm0, %v909_v31 }
  0xa7   :  { %1167 = vmatprep.mubr.f32.mxu0 %v19489_v3  ;;  %1633 = vmatprep.mubr.f32.mxu1 %v19489_v3 }
  0xa8   :  { %2592 = vmatpush1.msra.mxu1 %v10501_v44 }
  0xaa   :  { %10393 = vmatmul.mubr.msk.f32.gmra.mxu0 %vm127_vm0, %v914_v38  ;;  %10427 = vmatmul.mubr.msk.f32.gmra.mxu1 %vm127_vm0, %v910_v33 }
  0xab   :  { %1173 = vmatprep.mubr.f32.mxu0 %v19489_v3  ;;  %1639 = vmatprep.mubr.f32.mxu1 %v19489_v3 }
  0xae   :  { %10394 = vmatmul.mubr.msk.f32.gmra.mxu0 %vm127_vm0, %v915_v39  ;;  %10428 = vmatmul.mubr.msk.f32.gmra.mxu1 %vm127_vm0, %v911_v35 }
  0xaf   :  { %1179 = vmatprep.mubr.f32.mxu0 %v19489_v3  ;;  %1645 = vmatprep.mubr.f32.mxu1 %v19489_v3 }
  0xb2   :  { %10395 = vmatmul.mubr.msk.f32.gmra.mxu0 %vm127_vm0, %v916_v42  ;;  %10429 = vmatmul.mubr.msk.f32.gmra.mxu1 %vm127_vm0, %v912_v36 }
  0xb3   :  { %1185 = vmatprep.mubr.f32.mxu0 %v19489_v3  ;;  %1651 = vmatprep.mubr.f32.mxu1 %v19489_v3 }
  0xb6   :  { %10396 = vmatmul.mubr.msk.f32.gmra.mxu0 %vm127_vm0, %v917_v45  ;;  %10430 = vmatmul.mubr.msk.f32.gmra.mxu1 %vm127_vm0, %v913_v37 }
  0xb7   :  { %1191 = vmatprep.mubr.f32.mxu0 %v19489_v3  ;;  %1657 = vmatprep.mubr.f32.mxu1 %v19489_v3 }
  0xba   :  { %10397 = vmatmul.mubr.msk.f32.gmra.mxu0 %vm127_vm0, %v918_v46  ;;  %10431 = vmatmul.mubr.msk.f32.gmra.mxu1 %vm127_vm0, %v914_v38 }
  0xbb   :  { %1197 = vmatprep.mubr.f32.mxu0 %v19489_v3  ;;  %1663 = vmatprep.mubr.f32.mxu1 %v19489_v3 }
  0xbe   :  { %10398 = vmatmul.mubr.msk.f32.gmra.mxu0 %vm127_vm0, %v919_v47  ;;  %10432 = vmatmul.mubr.msk.f32.gmra.mxu1 %vm127_vm0, %v915_v39 }
  0xbf   :  { %1203 = vmatprep.mubr.f32.mxu0 %v19489_v3  ;;  %1669 = vmatprep.mubr.f32.mxu1 %v19489_v3 }
  0xc2   :  { %10399 = vmatmul.mubr.msk.f32.gmra.mxu0 %vm127_vm0, %v920_v48  ;;  %10433 = vmatmul.mubr.msk.f32.gmra.mxu1 %vm127_vm0, %v916_v42 }
  0xc3   :  { %1209 = vmatprep.mubr.f32.mxu0 %v19489_v3  ;;  %1675 = vmatprep.mubr.f32.mxu1 %v19489_v3 }
  0xc6   :  { %v302_v50 = vpop.f32.mrf.mxu0  ;;  %v12644_v51 = vpop.f32.mrf.mxu1  ;;  %10400 = vmatmul.mubr.msk.f32.gmra.mxu0 %vm127_vm0, %v921_v49  ;;  %10434 = vmatmul.mubr.msk.f32.gmra.mxu1 %vm127_vm0, %v917_v45 }
  0xc7   :  { %19555 = vst [vmem:[#allocation6_spill] sm:$0xff] %v12644_v51  ;;  %1215 = vmatprep.mubr.f32.mxu0 %v19489_v3  ;;  %1681 = vmatprep.mubr.f32.mxu1 %v19489_v3 }
  0xc8   :  { %v304_v53 = vpop.f32.mrf.mxu0  ;;  %v12653_v54 = vpop.f32.mrf.mxu1 }
  0xc9   :  { %19556 = vst [vmem:[#allocation7_spill] sm:$0xff] %v12653_v54 }
  0xca   :  { %v308_v55 = vpop.f32.mrf.mxu0  ;;  %v12655_v56 = vpop.f32.mrf.mxu1  ;;  %10401 = vmatmul.mubr.msk.f32.gmra.mxu0 %vm127_vm0, %v922_v52  ;;  %10435 = vmatmul.mubr.msk.f32.gmra.mxu1 %vm127_vm0, %v918_v46 }
  0xcb   :  { %19557 = vst [vmem:[#allocation8_spill] sm:$0xff] %v12655_v56  ;;  %1221 = vmatprep.mubr.f32.mxu0 %v19489_v3  ;;  %1687 = vmatprep.mubr.f32.mxu1 %v19489_v3 }
  0xcc   :  { %v310_v59 = vpop.f32.mrf.mxu0  ;;  %v12667_v60 = vpop.f32.mrf.mxu1 }
  0xcd   :  { %19558 = vst [vmem:[#allocation9_spill] sm:$0xff] %v12667_v60 }
  0xce   :  { %v314_v61 = vpop.f32.mrf.mxu0  ;;  %v12669_v62 = vpop.f32.mrf.mxu1  ;;  %10402 = vmatmul.mubr.msk.f32.gmra.mxu0 %vm127_vm0, %v923_v57  ;;  %10436 = vmatmul.mubr.msk.f32.gmra.mxu1 %vm127_vm0, %v919_v47 }
  0xcf   :  { %19559 = vst [vmem:[#allocation10_spill] sm:$0xff] %v12669_v62  ;;  %1227 = vmatprep.mubr.f32.mxu0 %v19489_v3  ;;  %1693 = vmatprep.mubr.f32.mxu1 %v19489_v3 }
  0xd0   :  { %v316_v0 = vpop.f32.mrf.mxu0  ;;  %v12678_v1 = vpop.f32.mrf.mxu1 }
  0xd1   :  { %19560 = vst [vmem:[#allocation11_spill] sm:$0xff] %v12678_v1 }
  0xd2   :  { %v320_v2 = vpop.f32.mrf.mxu0  ;;  %v691_v4 = vpop.f32.mrf.mxu1  ;;  %10403 = vmatmul.mubr.msk.f32.gmra.mxu0 %vm127_vm0, %v924_v63  ;;  %10437 = vmatmul.mubr.msk.f32.gmra.mxu1 %vm127_vm0, %v920_v48  ;;  %v931_v48 = vld [vmem:[%s19476_s0 + $0xca] sm:$0xff] }
  0xd3   :  { %v12682_v5 = vadd.f32 %v691_v4, %v302_v50  ;;  %1233 = vmatprep.mubr.f32.mxu0 %v19489_v3  ;;  %1699 = vmatprep.mubr.f32.mxu1 %v19489_v3 }
  0xd4   :  { %v322_v7 = vpop.f32.mrf.mxu0  ;;  %v693_v8 = vpop.f32.mrf.mxu1 }
  0xd5   :  { %v12689_v9 = vadd.f32 %v693_v8, %v304_v53 }
  0xd6   :  { %v326_v10 = vpop.f32.mrf.mxu0  ;;  %v697_v11 = vpop.f32.mrf.mxu1  ;;  %10404 = vmatmul.mubr.msk.f32.gmra.mxu0 %vm127_vm0, %v925_v6  ;;  %10438 = vmatmul.mubr.msk.f32.gmra.mxu1 %vm127_vm0, %v921_v49 }
  0xd7   :  { %v12693_v12 = vadd.f32 %v697_v11, %v308_v55  ;;  %1239 = vmatprep.mubr.f32.mxu0 %v19489_v3  ;;  %1705 = vmatprep.mubr.f32.mxu1 %v19489_v3 }
  0xd8   :  { %v328_v14 = vpop.f32.mrf.mxu0  ;;  %v699_v15 = vpop.f32.mrf.mxu1 }
  0xd9   :  { %v12700_v16 = vadd.f32 %v699_v15, %v310_v59  ;;  %v934_v15 = vld [vmem:[%s19476_s0 + $0xe2] sm:$0xff] }
  0xda   :  { %v332_v17 = vpop.f32.mrf.mxu0  ;;  %v703_v18 = vpop.f32.mrf.mxu1  ;;  %10405 = vmatmul.mubr.msk.f32.gmra.mxu0 %vm127_vm0, %v926_v13  ;;  %10439 = vmatmul.mubr.msk.f32.gmra.mxu1 %vm127_vm0, %v922_v52 }
  0xdb   :  { %v12704_v19 = vadd.f32 %v703_v18, %v314_v61  ;;  %1245 = vmatprep.mubr.f32.mxu0 %v19489_v3  ;;  %1711 = vmatprep.mubr.f32.mxu1 %v19489_v3 }
  0xdc   :  { %v334_v21 = vpop.f32.mrf.mxu0  ;;  %v705_v22 = vpop.f32.mrf.mxu1 }
  0xdd   :  { %v12711_v23 = vadd.f32 %v705_v22, %v316_v0 }
  0xde   :  { %v338_v24 = vpop.f32.mrf.mxu0  ;;  %v709_v25 = vpop.f32.mrf.mxu1  ;;  %10406 = vmatmul.mubr.msk.f32.gmra.mxu0 %vm127_vm0, %v927_v20  ;;  %10440 = vmatmul.mubr.msk.f32.gmra.mxu1 %vm127_vm0, %v923_v57 }
  0xdf   :  { %v12715_v26 = vadd.f32 %v709_v25, %v320_v2  ;;  %1251 = vmatprep.mubr.f32.mxu0 %v19489_v3  ;;  %1717 = vmatprep.mubr.f32.mxu1 %v19489_v3  ;;  %v935_v25 = vld [vmem:[%s19476_s0 + $0xea] sm:$0xff] }
  0xe0   :  { %v340_v28 = vpop.f32.mrf.mxu0  ;;  %v711_v29 = vpop.f32.mrf.mxu1 }
  0xe1   :  { %v12722_v30 = vadd.f32 %v711_v29, %v322_v7 }
  0xe2   :  { %v344_v31 = vpop.f32.mrf.mxu0  ;;  %v715_v32 = vpop.f32.mrf.mxu1  ;;  %10407 = vmatmul.mubr.msk.f32.gmra.mxu0 %vm127_vm0, %v928_v27  ;;  %10441 = vmatmul.mubr.msk.f32.gmra.mxu1 %vm127_vm0, %v924_v63 }
  0xe3   :  { %v12726_v33 = vadd.f32 %v715_v32, %v326_v10  ;;  %1257 = vmatprep.mubr.f32.mxu0 %v19489_v3  ;;  %1723 = vmatprep.mubr.f32.mxu1 %v19489_v3 }
  0xe4   :  { %v346_v35 = vpop.f32.mrf.mxu0  ;;  %v717_v36 = vpop.f32.mrf.mxu1 }
  0xe5   :  { %v12733_v37 = vadd.f32 %v717_v36, %v328_v14 }
  0xe6   :  { %v350_v38 = vpop.f32.mrf.mxu0  ;;  %v721_v39 = vpop.f32.mrf.mxu1  ;;  %10408 = vmatmul.mubr.msk.f32.gmra.mxu0 %vm127_vm0, %v929_v34  ;;  %10442 = vmatmul.mubr.msk.f32.gmra.mxu1 %vm127_vm0, %v925_v6  ;;  %v933_v6 = vld [vmem:[%s19476_s0 + $0xda] sm:$0xff] }
  0xe7   :  { %v12737_v40 = vadd.f32 %v721_v39, %v332_v17  ;;  %1263 = vmatprep.mubr.f32.mxu0 %v19489_v3  ;;  %1729 = vmatprep.mubr.f32.mxu1 %v19489_v3 }
  0xe8   :  { %v352_v42 = vpop.f32.mrf.mxu0  ;;  %v723_v43 = vpop.f32.mrf.mxu1 }
  0xe9   :  { %v12744_v44 = vadd.f32 %v723_v43, %v334_v21 }
  0xea   :  { %v356_v45 = vpop.f32.mrf.mxu0  ;;  %v727_v46 = vpop.f32.mrf.mxu1  ;;  %10409 = vmatmul.mubr.msk.f32.gmra.mxu0 %vm127_vm0, %v930_v41  ;;  %10443 = vmatmul.mubr.msk.f32.gmra.mxu1 %vm127_vm0, %v926_v13 }
  0xeb   :  { %v12748_v47 = vadd.f32 %v727_v46, %v338_v24  ;;  %1269 = vmatprep.mubr.f32.mxu0 %v19489_v3  ;;  %1735 = vmatprep.mubr.f32.mxu1 %v19489_v3 }
  0xec   :  { %v358_v49 = vpop.f32.mrf.mxu0  ;;  %v729_v50 = vpop.f32.mrf.mxu1 }
  0xed   :  { %v12755_v52 = vadd.f32 %v729_v50, %v340_v28 }
  0xee   :  { %v362_v53 = vpop.f32.mrf.mxu0  ;;  %v733_v55 = vpop.f32.mrf.mxu1  ;;  %10410 = vmatmul.mubr.msk.f32.gmra.mxu0 %vm127_vm0, %v931_v48  ;;  %10444 = vmatmul.mubr.msk.f32.gmra.mxu1 %vm127_vm0, %v927_v20 }
  0xef   :  { %v12759_v57 = vadd.f32 %v733_v55, %v344_v31  ;;  %1275 = vmatprep.mubr.f32.mxu0 %v19489_v3  ;;  %1741 = vmatprep.mubr.f32.mxu1 %v19489_v3 }
  0xf0   :  { %v364_v59 = vpop.f32.mrf.mxu0  ;;  %v735_v61 = vpop.f32.mrf.mxu1 }
  0xf1   :  { %v12766_v63 = vadd.f32 %v735_v61, %v346_v35  ;;  %v936_v35 = vld [vmem:[%s19476_s0 + $0xf2] sm:$0xff] }
  0xf2   :  { %v368_v0 = vpop.f32.mrf.mxu0  ;;  %v739_v2 = vpop.f32.mrf.mxu1  ;;  %10411 = vmatmul.mubr.msk.f32.gmra.mxu0 %vm127_vm0, %v932_v58  ;;  %10445 = vmatmul.mubr.msk.f32.gmra.mxu1 %vm127_vm0, %v928_v27 }
  0xf3   :  { %v12770_v4 = vadd.f32 %v739_v2, %v350_v38  ;;  %1281 = vmatprep.mubr.f32.mxu0 %v19489_v3  ;;  %1747 = vmatprep.mubr.f32.mxu1 %v19489_v3 }
  0xf4   :  { %v370_v7 = vpop.f32.mrf.mxu0  ;;  %v741_v8 = vpop.f32.mrf.mxu1 }
  0xf5   :  { %v12777_v10 = vadd.f32 %v741_v8, %v352_v42  ;;  %v939_v8 = vld [vmem:[%s19476_s0 + $0x10a] sm:$0xff] }
  0xf6   :  { %v374_v11 = vpop.f32.mrf.mxu0  ;;  %v745_v13 = vpop.f32.mrf.mxu1  ;;  %10412 = vmatmul.mubr.msk.f32.gmra.mxu0 %vm127_vm0, %v933_v6  ;;  %10446 = vmatmul.mubr.msk.f32.gmra.mxu1 %vm127_vm0, %v929_v34 }
  0xf7   :  { %v12781_v14 = vadd.f32 %v745_v13, %v356_v45  ;;  %1287 = vmatprep.mubr.f32.mxu0 %v19489_v3  ;;  %1753 = vmatprep.mubr.f32.mxu1 %v19489_v3  ;;  %v937_v45 = vld [vmem:[%s19476_s0 + $0xfa] sm:$0xff] }
  0xf8   :  { %v376_v17 = vpop.f32.mrf.mxu0  ;;  %v747_v18 = vpop.f32.mrf.mxu1 }
  0xf9   :  { %v12788_v20 = vadd.f32 %v747_v18, %v358_v49 }
  0xfa   :  { %v380_v21 = vpop.f32.mrf.mxu0  ;;  %v751_v22 = vpop.f32.mrf.mxu1  ;;  %10413 = vmatmul.mubr.msk.f32.gmra.mxu0 %vm127_vm0, %v934_v15  ;;  %10447 = vmatmul.mubr.msk.f32.gmra.mxu1 %vm127_vm0, %v930_v41 }
  0xfb   :  { %v12792_v24 = vadd.f32 %v751_v22, %v362_v53  ;;  %1293 = vmatprep.mubr.f32.mxu0 %v19489_v3  ;;  %1759 = vmatprep.mubr.f32.mxu1 %v19489_v3  ;;  %v940_v22 = vld [vmem:[%s19476_s0 + $0x112] sm:$0xff] }
  0xfc   :  { %v382_v27 = vpop.f32.mrf.mxu0  ;;  %v753_v28 = vpop.f32.mrf.mxu1 }
  0xfd   :  { %v12799_v29 = vadd.f32 %v753_v28, %v364_v59 }
  0xfe   :  { %v386_v31 = vpop.f32.mrf.mxu0  ;;  %v757_v32 = vpop.f32.mrf.mxu1  ;;  %10414 = vmatmul.mubr.msk.f32.gmra.mxu0 %vm127_vm0, %v935_v25  ;;  %10448 = vmatmul.mubr.msk.f32.gmra.mxu1 %vm127_vm0, %v931_v48 }
  0xff   :  { %v12803_v34 = vadd.f32 %v757_v32, %v368_v0  ;;  %1299 = vmatprep.mubr.f32.mxu0 %v19489_v3  ;;  %1765 = vmatprep.mubr.f32.mxu1 %v19489_v3 }
 0x100   :  { %v388_v36 = vpop.f32.mrf.mxu0  ;;  %v759_v38 = vpop.f32.mrf.mxu1 }
 0x101   :  { %v12810_v39 = vadd.f32 %v759_v38, %v370_v7  ;;  %v941_v38 = vld [vmem:[%s19476_s0 + $0x11a] sm:$0x3f] }
 0x102   :  { %v392_v41 = vpop.f32.mrf.mxu0  ;;  %v763_v42 = vpop.f32.mrf.mxu1  ;;  %10415 = vmatmul.mubr.msk.f32.gmra.mxu0 %vm127_vm0, %v936_v35  ;;  %10449 = vmatmul.mubr.msk.f32.gmra.mxu1 %vm127_vm0, %v932_v58  ;;  %v938_v58 = vld [vmem:[%s19476_s0 + $0x102] sm:$0xff] }
 0x103   :  { %v12814_v43 = vadd.f32 %v763_v42, %v374_v11  ;;  %1305 = vmatprep.mubr.f32.mxu0 %v19489_v3  ;;  %1771 = vmatprep.mubr.f32.mxu1 %v19489_v3 }
 0x104   :  { %v394_v46 = vpop.f32.mrf.mxu0  ;;  %v765_v48 = vpop.f32.mrf.mxu1 }
 0x105   :  { %v12821_v49 = vadd.f32 %v765_v48, %v376_v17 }
 0x106   :  { %v398_v50 = vpop.f32.mrf.mxu0  ;;  %v769_v53 = vpop.f32.mrf.mxu1  ;;  %10416 = vmatmul.mubr.msk.f32.gmra.mxu0 %vm127_vm0, %v937_v45  ;;  %10450 = vmatmul.mubr.msk.f32.gmra.mxu1 %vm127_vm0, %v933_v6 }
 0x107   :  { %v12825_v55 = vadd.f32 %v769_v53, %v380_v21  ;;  %1311 = vmatprep.mubr.f32.mxu0 %v19489_v3  ;;  %1777 = vmatprep.mubr.f32.mxu1 %v19489_v3 }
 0x108   :  { %v400_v59 = vpop.f32.mrf.mxu0  ;;  %v771_v61 = vpop.f32.mrf.mxu1 }
 0x109   :  { %v12832_v0 = vadd.f32 %v771_v61, %v382_v27 }
 0x10a   :  { %v404_v2 = vpop.f32.mrf.mxu0  ;;  %v775_v7 = vpop.f32.mrf.mxu1  ;;  %10417 = vmatmul.mubr.msk.f32.gmra.mxu0 %vm127_vm0, %v938_v58  ;;  %10451 = vmatmul.mubr.msk.f32.gmra.mxu1 %vm127_vm0, %v934_v15 }
 0x10b   :  { %v12836_v6 = vadd.f32 %v775_v7, %v386_v31  ;;  %1317 = vmatprep.mubr.f32.mxu0 %v19489_v3  ;;  %1783 = vmatprep.mubr.f32.mxu1 %v19489_v3 }
 0x10c   :  { %v406_v11 = vpop.f32.mrf.mxu0  ;;  %v777_v13 = vpop.f32.mrf.mxu1 }
 0x10d   :  { %v12843_v17 = vadd.f32 %v777_v13, %v388_v36  ;;  %v10543_v13 = vld [vmem:[%s19475_s1 + $0xd0] sm:$0xff] }
 0x10e   :  { %v410_v18 = vpop.f32.mrf.mxu0  ;;  %v781_v21 = vpop.f32.mrf.mxu1  ;;  %10418 = vmatmul.mubr.msk.f32.gmra.mxu0 %vm127_vm0, %v939_v8  ;;  %10452 = vmatmul.mubr.msk.f32.gmra.mxu1 %vm127_vm0, %v935_v25 }
 0x10f   :  { %v12847_v15 = vadd.f32 %v781_v21, %v392_v41  ;;  %1323 = vmatprep.mubr.f32.mxu0 %v19489_v3  ;;  %1789 = vmatprep.mubr.f32.mxu1 %v19489_v3 }
 0x110   :  { %v412_v27 = vpop.f32.mrf.mxu0  ;;  %v783_v28 = vpop.f32.mrf.mxu1 }
 0x111   :  { %v12854_v31 = vadd.f32 %v783_v28, %v394_v46 }
 0x112   :  { %v416_v32 = vpop.f32.mrf.mxu0  ;;  %v787_v36 = vpop.f32.mrf.mxu1  ;;  %10419 = vmatmul.mubr.msk.f32.gmra.mxu0 %vm127_vm0, %v940_v22  ;;  %10453 = vmatmul.mubr.msk.f32.gmra.mxu1 %vm127_vm0, %v936_v35 }
 0x113   :  { %v12858_v25 = vadd.f32 %v787_v36, %v398_v50  ;;  %1329 = vmatprep.mubr.f32.mxu0 %v19489_v3  ;;  %1795 = vmatprep.mubr.f32.mxu1 %v19489_v3  ;;  %v1910_v50 = vld [vmem:[%s19476_s0 + $0x13] sm:$0xff] }
 0x114   :  { %v418_v41 = vpop.f32.mrf.mxu0  ;;  %v789_v42 = vpop.f32.mrf.mxu1 }
 0x115   :  { %v12865_v46 = vadd.f32 %v789_v42, %v400_v59  ;;  %v10541_v42 = vld [vmem:[%s19475_s1 + $0xc0] sm:$0xff] }
 0x116   :  { %v422_v48 = vpop.f32.mrf.mxu0  ;;  %v793_v53 = vpop.f32.mrf.mxu1  ;;  %10420 = vmatmul.mubr.msk.f32.gmra.mxu0 %vm127_vm0, %v941_v38  ;;  %10454 = vmatmul.mubr.msk.f32.gmra.mxu1 %vm127_vm0, %v937_v45 }
 0x117   :  { %v12869_v35 = vadd.f32 %v793_v53, %v404_v2  ;;  %1801 = vmatprep.mubr.f32.mxu1 %v19489_v3  ;;  %2123 = vmatprep.mubr.f32.mxu0 %v19489_v3  ;;  %v10542_v2 = vld [vmem:[%s19475_s1 + $0xc8] sm:$0xff] }
 0x118   :  { %v424_v61 = vpop.f32.mrf.mxu0  ;;  %v795_v7 = vpop.f32.mrf.mxu1 }
 0x119   :  { %v12876_v59 = vadd.f32 %v795_v7, %v406_v11  ;;  %v1911_v11 = vld [vmem:[%s19476_s0 + $0x1b] sm:$0xff] }
 0x11a   :  { %v428_v21 = vpop.f32.mrf.mxu0  ;;  %v799_v45 = vpop.f32.mrf.mxu1  ;;  %10455 = vmatmul.mubr.msk.f32.gmra.mxu1 %vm127_vm0, %v938_v58  ;;  %10465 = vmatmul.mubr.msk.f32.vlgmr.msra.gmra.mxu0 %vm127_vm0, %v1910_v50 }
 0x11b   :  { %v12886_v28 = vadd.f32 %v799_v45, %v410_v18  ;;  %1807 = vmatprep.mubr.f32.mxu1 %v19489_v3  ;;  %2129 = vmatprep.mubr.f32.mxu0 %v19489_v3 }
 0x11c   :  { %v430_v36 = vpop.f32.mrf.mxu0  ;;  %v801_v38 = vpop.f32.mrf.mxu1  ;;  %3092 = vmatpush1.msra.mxu0 %v10543_v13 }
 0x11d   :  { %v12893_v58 = vadd.f32 %v801_v38, %v412_v27  ;;  %3093 = vmatprep.subr.mxu0 %v10542_v2  ;;  %v1912_v27 = vld [vmem:[%s19476_s0 + $0x23] sm:$0xff] }
 0x11e   :  { %v434_v18 = vpop.f32.mrf.mxu0  ;;  %v805_v53 = vpop.f32.mrf.mxu1  ;;  %10456 = vmatmul.mubr.msk.f32.gmra.mxu1 %vm127_vm0, %v939_v8  ;;  %10466 = vmatmul.mubr.msk.f32.gmra.mxu0 %vm127_vm0, %v1911_v11 }
 0x11f   :  { %v12900_v50 = vadd.f32 %v805_v53, %v416_v32  ;;  %1813 = vmatprep.mubr.f32.mxu1 %v19489_v3  ;;  %2135 = vmatprep.mubr.f32.mxu0 %v19489_v3  ;;  %v1441_v32 = vld [vmem:[%s19476_s0 + $0x11a] sm:$0xff] }
 0x120   :  { %v436_v7 = vpop.f32.mrf.mxu0  ;;  %v807_v13 = vpop.f32.mrf.mxu1  ;;  %3094 = vmatpush1.msra.mxu0 %v10541_v42 }
 0x121   :  { %v12907_v45 = vadd.f32 %v807_v13, %v418_v41  ;;  %v1913_v41 = vld [vmem:[%s19476_s0 + $0x2b] sm:$0xff]  ;;  %v1442_v13 = vld [vmem:[%s19476_s0 + $0x122] sm:$0xff] }
 0x122   :  { %v440_v2 = vpop.f32.mrf.mxu0  ;;  %v811_v38 = vpop.f32.mrf.mxu1  ;;  %10457 = vmatmul.mubr.msk.f32.gmra.mxu1 %vm127_vm0, %v940_v22  ;;  %10467 = vmatmul.mubr.msk.f32.gmra.mxu0 %vm127_vm0, %v1912_v27 }
 0x123   :  { %v12911_v8 = vadd.f32 %v811_v38, %v422_v48  ;;  %1819 = vmatprep.mubr.f32.mxu1 %v19489_v3  ;;  %2141 = vmatprep.mubr.f32.mxu0 %v19489_v3 }
 0x124   :  { %v442_v11 = vpop.f32.mrf.mxu0  ;;  %v813_v42 = vpop.f32.mrf.mxu1 }
 0x125   :  { %v12921_v53 = vadd.f32 %v813_v42, %v424_v61  ;;  %v1914_v61 = vld [vmem:[%s19476_s0 + $0x33] sm:$0xff] }
 0x126   :  { %v446_v22 = vpop.f32.mrf.mxu0  ;;  %v817_v27 = vpop.f32.mrf.mxu1  ;;  %10458 = vmatmul.mubr.msk.f32.gmra.mxu1 %vm127_vm0, %v1441_v32  ;;  %10468 = vmatmul.mubr.msk.f32.gmra.mxu0 %vm127_vm0, %v1913_v41 }
 0x127   :  { %v12925_v48 = vadd.f32 %v817_v27, %v428_v21  ;;  %1825 = vmatprep.mubr.f32.mxu1 %v19489_v3  ;;  %2147 = vmatprep.mubr.f32.mxu0 %v19489_v3  ;;  %v1443_v27 = vld [vmem:[%s19476_s0 + $0x12a] sm:$0x3f] }
 0x128   :  { %v448_v38 = vpop.f32.mrf.mxu0  ;;  %v819_v42 = vpop.f32.mrf.mxu1 }
 0x129   :  { %v12935_v1 = vadd.f32 %v819_v42, %v430_v36  ;;  %v1915_v36 = vld [vmem:[%s19476_s0 + $0x3b] sm:$0xff] }
 0x12a   :  { %v452_v32 = vpop.f32.mrf.mxu0  ;;  %v823_v41 = vpop.f32.mrf.mxu1  ;;  %10459 = vmatmul.mubr.msk.f32.gmra.mxu1 %vm127_vm0, %v1442_v13  ;;  %10469 = vmatmul.mubr.msk.f32.gmra.mxu0 %vm127_vm0, %v1914_v61 }
 0x12b   :  { %v12939_v21 = vadd.f32 %v823_v41, %v434_v18  ;;  %1831 = vmatprep.mubr.f32.mxu1 %v19489_v3  ;;  %2153 = vmatprep.mubr.f32.mxu0 %v19489_v3  ;;  %v1916_v41 = vld [vmem:[%s19476_s0 + $0x43] sm:$0xff] }
 0x12c   :  { %v454_v42 = vpop.f32.mrf.mxu0  ;;  %v825_v62 = vpop.f32.mrf.mxu1 }
 0x12d   :  { %v12949_v60 = vadd.f32 %v825_v62, %v436_v7  ;;  %v2412_v62 = vld [vmem:[%s19476_s0 + $0x14] sm:$0xff] }
 0x12e   :  { %v458_v13 = vpop.f32.mrf.mxu0  ;;  %v829_v61 = vpop.f32.mrf.mxu1  ;;  %10460 = vmatmul.mubr.msk.f32.gmra.mxu1 %vm127_vm0, %v1443_v27  ;;  %10470 = vmatmul.mubr.msk.f32.gmra.mxu0 %vm127_vm0, %v1915_v36 }
 0x12f   :  { %19561 = vst [vmem:[#allocation12_spill] sm:$0xff] %v12949_v60  ;;  %v12953_v18 = vadd.f32 %v829_v61, %v440_v2  ;;  %2159 = vmatprep.mubr.f32.mxu0 %v19489_v3  ;;  %2625 = vmatprep.mubr.f32.mxu1 %v19489_v3  ;;  %v1917_v61 = vld [vmem:[%s19476_s0 + $0x4b] sm:$0xff] }
 0x130   :  { %v460_v7 = vpop.f32.mrf.mxu0  ;;  %v831_v56 = vpop.f32.mrf.mxu1 }
 0x131   :  { %19562 = vst [vmem:[#allocation13_spill] sm:$0xff] %v12953_v18  ;;  %v12963_v54 = vadd.f32 %v831_v56, %v442_v11  ;;  %v2413_v56 = vld [vmem:[%s19476_s0 + $0x1c] sm:$0xff] }
 0x132   :  { %v464_v27 = vpop.f32.mrf.mxu0  ;;  %v835_v36 = vpop.f32.mrf.mxu1  ;;  %10471 = vmatmul.mubr.msk.f32.gmra.mxu0 %vm127_vm0, %v1916_v41  ;;  %10505 = vmatmul.mubr.msk.f32.vlgmr.msra.gmra.mxu1 %vm127_vm0, %v2412_v62  ;;  %v10581_v18 = vld [vmem:[%s19475_s1 + $0xe0] sm:$0xff] }
 0x133   :  { %19563 = vst [vmem:[#allocation14_spill] sm:$0xff] %v12963_v54  ;;  %v12967_v2 = vadd.f32 %v835_v36, %v446_v22  ;;  %2165 = vmatprep.mubr.f32.mxu0 %v19489_v3  ;;  %2631 = vmatprep.mubr.f32.mxu1 %v19489_v3  ;;  %v1918_v36 = vld [vmem:[%s19476_s0 + $0x53] sm:$0xff] }
 0x134   :  { %v466_v11 = vpop.f32.mrf.mxu0  ;;  %v837_v51 = vpop.f32.mrf.mxu1 }
 0x135   :  { %19564 = vst [vmem:[#allocation15_spill] sm:$0xff] %v12967_v2  ;;  %v12977_v54 = vadd.f32 %v837_v51, %v448_v38  ;;  %v12991_v51 = vld [vmem:[%s19476_s0 + $0x24] sm:$0xff] }
 0x136   :  { %v470_v41 = vpop.f32.mrf.mxu0  ;;  %v841_v62 = vpop.f32.mrf.mxu1  ;;  %10472 = vmatmul.mubr.msk.f32.gmra.mxu0 %vm127_vm0, %v1917_v61  ;;  %10506 = vmatmul.mubr.msk.f32.gmra.mxu1 %vm127_vm0, %v2413_v56  ;;  %19567 = vst [vmem:[#allocation18_spill] sm:$0xff] %v12991_v51 }
 0x137   :  { %19565 = vst [vmem:[#allocation16_spill] sm:$0xff] %v12977_v54  ;;  %v12981_v22 = vadd.f32 %v841_v62, %v452_v32  ;;  %2171 = vmatprep.mubr.f32.mxu0 %v19489_v3  ;;  %2637 = vmatprep.mubr.f32.mxu1 %v19489_v3 }
 0x138   :  { %v472_v38 = vpop.f32.mrf.mxu0  ;;  %v843_v54 = vpop.f32.mrf.mxu1 }
 0x139   :  { %19566 = vst [vmem:[#allocation17_spill] sm:$0xff] %v12981_v22  ;;  %v12993_v61 = vadd.f32 %v843_v54, %v454_v42  ;;  %v1919_v22 = vld [vmem:[%s19476_s0 + $0x5b] sm:$0xff]  ;;  %v13008_v54 = vld [vmem:[%s19476_s0 + $0x2c] sm:$0xff] }
 0x13a   :  { %v476_v56 = vpop.f32.mrf.mxu0  ;;  %v847_v32 = vpop.f32.mrf.mxu1  ;;  %10473 = vmatmul.mubr.msk.f32.gmra.mxu0 %vm127_vm0, %v1918_v36  ;;  %10507 = vmatmul.mubr.msk.f32.gmra.mxu1 %vm127_vm0, %v12991_v51  ;;  %19570 = vst [vmem:[#allocation21_spill] sm:$0xff] %v13008_v54  ;;  %v19573_v51 = vmov 0.0  }
 0x13b   :  { %19568 = vst [vmem:[#allocation19_spill] sm:$0xff] %v12993_v61  ;;  %v12998_v62 = vadd.f32 %v847_v32, %v458_v13  ;;  %2177 = vmatprep.mubr.f32.mxu0 %v19489_v3  ;;  %2643 = vmatprep.mubr.f32.mxu1 %v19489_v3  ;;  %v10584_v13 = vld [vmem:[%s19475_s1 + $0xf8] sm:$0xff]  ;;  %v10583_v3 = vld [vmem:[%s19475_s1 + $0xf0] sm:$0xff] }
 0x13c   :  { %v478_v42 = vpop.f32.mrf.mxu0  ;;  %v849_v36 = vpop.f32.mrf.mxu1  ;;  %3593 = vmatprep.subr.mxu1 %v10584_v13 }
 0x13d   :  { %19569 = vst [vmem:[#allocation20_spill] sm:$0xff] %v12998_v62  ;;  %v13010_v61 = vadd.f32 %v849_v36, %v460_v7  ;;  %v1920_v7 = vld [vmem:[%s19476_s0 + $0x63] sm:$0xff]  ;;  %3594 = vmatpush1.msra.mxu1 %v10583_v3  ;;  %v1921_v3 = vld [vmem:[%s19476_s0 + $0x6b] sm:$0xff] }
 0x13e   :  { %v482_v32 = vpop.f32.mrf.mxu0  ;;  %v853_v62 = vpop.f32.mrf.mxu1  ;;  %10474 = vmatmul.mubr.msk.f32.gmra.mxu0 %vm127_vm0, %v1919_v22  ;;  %10508 = vmatmul.mubr.msk.f32.gmra.mxu1 %vm127_vm0, %v13008_v54  ;;  %v13031_v22 = vld [vmem:[%s19476_s0 + $0x34] sm:$0xff] }
 0x13f   :  { %19571 = vst [vmem:[#allocation22_spill] sm:$0xff] %v13010_v61  ;;  %v13021_v2 = vadd.f32 %v853_v62, %v464_v27  ;;  %2183 = vmatprep.mubr.f32.mxu0 %v19573_v51  ;;  %2649 = vmatprep.mubr.f32.mxu1 %v19573_v51  ;;  %v10582_v27 = vld [vmem:[%s19475_s1 + $0xe8] sm:$0xff] }
 0x140   :  { %v484_v36 = vpop.f32.mrf.mxu0  ;;  %v855_v61 = vpop.f32.mrf.mxu1  ;;  %3595 = vmatprep.subr.mxu1 %v10582_v27  ;;  %v1922_v27 = vld [vmem:[%s19476_s0 + $0x73] sm:$0xff] }
 0x141   :  { %19572 = vst [vmem:[#allocation23_spill] sm:$0xff] %v13021_v2  ;;  %v13033_v54 = vadd.f32 %v855_v61, %v466_v11  ;;  %v13054_v11 = vld [vmem:[%s19476_s0 + $0x3c] sm:$0xff]  ;;  %3596 = vmatpush1.msra.mxu1 %v10581_v18  ;;  %v13071_v18 = vld [vmem:[%s19476_s0 + $0x44] sm:$0xff] }
 0x142   :  { %v488_v62 = vpop.f32.mrf.mxu0  ;;  %v859_v2 = vpop.f32.mrf.mxu1  ;;  %10475 = vmatmul.mubr.msk.f32.gmra.mxu0 %vm127_vm0, %v1920_v7  ;;  %10509 = vmatmul.mubr.msk.f32.gmra.mxu1 %vm127_vm0, %v13031_v22  ;;  %19577 = vst [vmem:[#allocation27_spill] sm:$0xff] %v13071_v18 }
 0x143   :  { %v13044_v60 = vadd.f32 %v859_v2, %v470_v41  ;;  %2189 = vmatprep.mubr.f32.mxu0 %v19573_v51  ;;  %2655 = vmatprep.mubr.f32.mxu1 %v19573_v51 }
 0x144   :  { %v490_v61 = vpop.f32.mrf.mxu0  ;;  %v861_v13 = vpop.f32.mrf.mxu1 }
 0x145   :  { %19574 = vst [vmem:[#allocation24_spill] sm:$0xff] %v13044_v60  ;;  %v13056_v7 = vadd.f32 %v861_v13, %v472_v38 }
 0x146   :  { %v494_v2 = vpop.f32.mrf.mxu0  ;;  %v865_v41 = vpop.f32.mrf.mxu1  ;;  %10476 = vmatmul.mubr.msk.f32.gmra.mxu0 %vm127_vm0, %v1921_v3  ;;  %10510 = vmatmul.mubr.msk.f32.gmra.mxu1 %vm127_vm0, %v13054_v11 }
 0x147   :  { %19575 = vst [vmem:[#allocation25_spill] sm:$0xff] %v13056_v7  ;;  %v13061_v60 = vadd.f32 %v865_v41, %v476_v56  ;;  %2195 = vmatprep.mubr.f32.mxu0 %v19573_v51  ;;  %2661 = vmatprep.mubr.f32.mxu1 %v19573_v51 }
 0x148   :  { %v496_v38 = vpop.f32.mrf.mxu0  ;;  %v867_v3 = vpop.f32.mrf.mxu1 }
 0x149   :  { %19576 = vst [vmem:[#allocation26_spill] sm:$0xff] %v13061_v60  ;;  %v13073_v13 = vadd.f32 %v867_v3, %v478_v42  ;;  %v1923_v42 = vld [vmem:[%s19476_s0 + $0x7b] sm:$0xff] }
 0x14a   :  { %v871_v7 = vpop.f32.mrf.mxu1  ;;  %v1121_v56 = vpop.f32.mrf.mxu0  ;;  %10477 = vmatmul.mubr.msk.f32.gmra.mxu0 %vm127_vm0, %v1922_v27  ;;  %10511 = vmatmul.mubr.msk.f32.gmra.mxu1 %vm127_vm0, %v13071_v18  ;;  %v13091_v27 = vld [vmem:[%s19476_s0 + $0x4c] sm:$0xff] }
 0x14b   :  { %19578 = vst [vmem:[#allocation28_spill] sm:$0xff] %v13073_v13  ;;  %v13078_v41 = vadd.f32 %v871_v7, %v482_v32  ;;  %v13081_v60 = vadd.f32 %v1121_v56, %v12682_v5  ;;  %2201 = vmatprep.mubr.f32.mxu0 %v19573_v51  ;;  %2667 = vmatprep.mubr.f32.mxu1 %v19573_v51 }
 0x14c   :  { %v873_v3 = vpop.f32.mrf.mxu1  ;;  %v1123_v13 = vpop.f32.mrf.mxu0 }
 0x14d   :  { %19579 = vst [vmem:[#allocation29_spill] sm:$0xff] %v13078_v41  ;;  %v13093_v32 = vadd.f32 %v873_v3, %v484_v36  ;;  %v13096_v5 = vadd.f32 %v1123_v13, %v12689_v9  ;;  %v1924_v9 = vld [vmem:[%s19476_s0 + $0x83] sm:$0xff]  ;;  %v13114_v36 = vld [vmem:[%s19476_s0 + $0x54] sm:$0xff] }
 0x14e   :  { %v877_v7 = vpop.f32.mrf.mxu1  ;;  %v1127_v56 = vpop.f32.mrf.mxu0  ;;  %10478 = vmatmul.mubr.msk.f32.gmra.mxu0 %vm127_vm0, %v1923_v42  ;;  %10512 = vmatmul.mubr.msk.f32.gmra.mxu1 %vm127_vm0, %v13091_v27 }
 0x14f   :  { %v13101_v41 = vadd.f32 %v877_v7, %v488_v62  ;;  %v13104_v18 = vadd.f32 %v1127_v56, %v12693_v12  ;;  %2207 = vmatprep.mubr.f32.mxu0 %v19573_v51  ;;  %2673 = vmatprep.mubr.f32.mxu1 %v19573_v51 }
 0x150   :  { %v879_v13 = vpop.f32.mrf.mxu1  ;;  %v1129_v42 = vpop.f32.mrf.mxu0 }
 0x151   :  { %19580 = vst [vmem:[#allocation30_spill] sm:$0xff] %v13101_v41  ;;  %v13116_v62 = vadd.f32 %v879_v13, %v490_v61  ;;  %v13119_v12 = vadd.f32 %v1129_v42, %v12700_v16  ;;  %v1925_v16 = vld [vmem:[%s19476_s0 + $0x8b] sm:$0xff]  ;;  %v13137_v61 = vld [vmem:[%s19476_s0 + $0x5c] sm:$0xff] }
 0x152   :  { %v883_v3 = vpop.f32.mrf.mxu1  ;;  %v1133_v7 = vpop.f32.mrf.mxu0  ;;  %10479 = vmatmul.mubr.msk.f32.gmra.mxu0 %vm127_vm0, %v1924_v9  ;;  %10513 = vmatmul.mubr.msk.f32.gmra.mxu1 %vm127_vm0, %v13114_v36 }
 0x153   :  { %v13124_v56 = vadd.f32 %v883_v3, %v494_v2  ;;  %v13127_v41 = vadd.f32 %v1133_v7, %v12704_v19  ;;  %2213 = vmatprep.mubr.f32.mxu0 %v19573_v51  ;;  %2679 = vmatprep.mubr.f32.mxu1 %v19573_v51 }
 0x154   :  { %v885_v9 = vpop.f32.mrf.mxu1  ;;  %v1135_v13 = vpop.f32.mrf.mxu0 }
 0x155   :  { %19581 = vst [vmem:[#allocation31_spill] sm:$0xff] %v13124_v56  ;;  %v13139_v2 = vadd.f32 %v885_v9, %v496_v38  ;;  %v13142_v19 = vadd.f32 %v1135_v13, %v12711_v23  ;;  %v1926_v23 = vld [vmem:[%s19476_s0 + $0x93] sm:$0xff]  ;;  %v13160_v38 = vld [vmem:[%s19476_s0 + $0x64] sm:$0xff] }
 0x156   :  { %v13144_v42 = vpop.f32.mrf.mxu1  ;;  %v1139_v3 = vpop.f32.mrf.mxu0  ;;  %10480 = vmatmul.mubr.msk.f32.gmra.mxu0 %vm127_vm0, %v1925_v16  ;;  %10514 = vmatmul.mubr.msk.f32.gmra.mxu1 %vm127_vm0, %v13137_v61 }
 0x157   :  { %19582 = vst [vmem:[#allocation32_spill] sm:$0xff] %v13139_v2  ;;  %19583 = vst [vmem:[#allocation33_spill] sm:$0xff] %v13144_v42  ;;  %v13150_v7 = vadd.f32 %v1139_v3, %v12715_v26  ;;  %2219 = vmatprep.mubr.f32.mxu0 %v19573_v51  ;;  %2685 = vmatprep.mubr.f32.mxu1 %v19573_v51 }
 0x158   :  { %v13162_v16 = vpop.f32.mrf.mxu1  ;;  %v1141_v9 = vpop.f32.mrf.mxu0 }
 0x159   :  { %19584 = vst [vmem:[#allocation34_spill] sm:$0xff] %v13162_v16  ;;  %v13165_v13 = vadd.f32 %v1141_v9, %v12722_v30  ;;  %v1927_v30 = vld [vmem:[%s19476_s0 + $0x9b] sm:$0xff]  ;;  %v13183_v9 = vld [vmem:[%s19476_s0 + $0x6c] sm:$0xff] }
 0x15a   :  { %v13167_v26 = vpop.f32.mrf.mxu1  ;;  %v1145_v3 = vpop.f32.mrf.mxu0  ;;  %10481 = vmatmul.mubr.msk.f32.gmra.mxu0 %vm127_vm0, %v1926_v23  ;;  %10515 = vmatmul.mubr.msk.f32.gmra.mxu1 %vm127_vm0, %v13160_v38  ;;  %19586 = vst [vmem:[#allocation36_spill] sm:$0xff] %v13183_v9  ;;  %v10624_v23 = vld [vmem:[%s19475_s1 + $0x118] sm:$0xff] }
 0x15b   :  { %19585 = vst [vmem:[#allocation35_spill] sm:$0xff] %v13167_v26  ;;  %v13173_v2 = vadd.f32 %v1145_v3, %v12726_v33  ;;  %2225 = vmatprep.mubr.f32.mxu0 %v19573_v51  ;;  %2691 = vmatprep.mubr.f32.mxu1 %v19573_v51 }
 0x15c   :  { %v13188_v26 = vpop.f32.mrf.mxu1  ;;  %v1147_v33 = vpop.f32.mrf.mxu0  ;;  %4095 = vmatprep.subr.mxu0 %v10624_v23  ;;  %v13209_v23 = vld [vmem:[%s19476_s0 + $0x74] sm:$0xff] }
 0x15d   :  { %19587 = vst [vmem:[#allocation37_spill] sm:$0xff] %v13188_v26  ;;  %v13191_v3 = vadd.f32 %v1147_v33, %v12733_v37  ;;  %v1928_v37 = vld [vmem:[%s19476_s0 + $0xa3] sm:$0xff]  ;;  %19589 = vst [vmem:[#allocation39_spill] sm:$0xff] %v13209_v23 }
 0x15e   :  { %v13193_v16 = vpop.f32.mrf.mxu1  ;;  %v1151_v42 = vpop.f32.mrf.mxu0  ;;  %10482 = vmatmul.mubr.msk.f32.gmra.mxu0 %vm127_vm0, %v1927_v30  ;;  %10516 = vmatmul.mubr.msk.f32.gmra.mxu1 %vm127_vm0, %v13183_v9 }
 0x15f   :  { %19588 = vst [vmem:[#allocation38_spill] sm:$0xff] %v13193_v16  ;;  %v13199_v56 = vadd.f32 %v1151_v42, %v12737_v40  ;;  %2231 = vmatprep.mubr.f32.mxu0 %v19573_v51  ;;  %2697 = vmatprep.mubr.f32.mxu1 %v19573_v51 }
 0x160   :  { %v13211_v30 = vpop.f32.mrf.mxu1  ;;  %v1153_v33 = vpop.f32.mrf.mxu0 }
 0x161   :  { %19590 = vst [vmem:[#allocation40_spill] sm:$0xff] %v13211_v30  ;;  %v13214_v16 = vadd.f32 %v1153_v33, %v12744_v44  ;;  %v1929_v44 = vld [vmem:[%s19476_s0 + $0xab] sm:$0xff] }
 0x162   :  { %v1157_v40 = vpop.f32.mrf.mxu0  ;;  %v1623_v42 = vpop.f32.mrf.mxu1  ;;  %10483 = vmatmul.mubr.msk.f32.gmra.mxu0 %vm127_vm0, %v1928_v37  ;;  %10517 = vmatmul.mubr.msk.f32.gmra.mxu1 %vm127_vm0, %v13209_v23  ;;  %v13233_v37 = vld [vmem:[%s19476_s0 + $0x7c] sm:$0xff] }
 0x163   :  { %v13220_v26 = vadd.f32 %v1157_v40, %v12748_v47  ;;  %v13223_v9 = vadd.f32 %v1623_v42, %v13081_v60  ;;  %2237 = vmatprep.mubr.f32.mxu0 %v19573_v51  ;;  %2703 = vmatprep.mubr.f32.mxu1 %v19573_v51 }
 0x164   :  { %v1159_v33 = vpop.f32.mrf.mxu0  ;;  %v1625_v30 = vpop.f32.mrf.mxu1 }
 0x165   :  { %19591 = vst [vmem:[#allocation41_spill] sm:$0xff] %v13223_v9  ;;  %v13236_v47 = vadd.f32 %v1159_v33, %v12755_v52  ;;  %v13239_v60 = vadd.f32 %v1625_v30, %v13096_v5  ;;  %v1930_v52 = vld [vmem:[%s19476_s0 + $0xb3] sm:$0xff]  ;;  %v13258_v5 = vld [vmem:[%s19476_s0 + $0x84] sm:$0xff] }
 0x166   :  { %v1163_v40 = vpop.f32.mrf.mxu0  ;;  %v1629_v42 = vpop.f32.mrf.mxu1  ;;  %10484 = vmatmul.mubr.msk.f32.gmra.mxu0 %vm127_vm0, %v1929_v44  ;;  %10518 = vmatmul.mubr.msk.f32.gmra.mxu1 %vm127_vm0, %v13233_v37 }
 0x167   :  { %v13245_v9 = vadd.f32 %v1163_v40, %v12759_v57  ;;  %v13248_v23 = vadd.f32 %v1629_v42, %v13104_v18  ;;  %2243 = vmatprep.mubr.f32.mxu0 %v19573_v51  ;;  %2709 = vmatprep.mubr.f32.mxu1 %v19573_v51 }
 0x168   :  { %v1165_v30 = vpop.f32.mrf.mxu0  ;;  %v1631_v44 = vpop.f32.mrf.mxu1 }
 0x169   :  { %19592 = vst [vmem:[#allocation42_spill] sm:$0xff] %v13248_v23  ;;  %v13261_v57 = vadd.f32 %v1165_v30, %v12766_v63  ;;  %v13264_v18 = vadd.f32 %v1631_v44, %v13119_v12  ;;  %v1931_v63 = vld [vmem:[%s19476_s0 + $0xbb] sm:$0xff]  ;;  %v13283_v12 = vld [vmem:[%s19476_s0 + $0x8c] sm:$0xff] }
 0x16a   :  { %v1169_v33 = vpop.f32.mrf.mxu0  ;;  %v1635_v40 = vpop.f32.mrf.mxu1  ;;  %10485 = vmatmul.mubr.msk.f32.gmra.mxu0 %vm127_vm0, %v1930_v52  ;;  %10519 = vmatmul.mubr.msk.f32.gmra.mxu1 %vm127_vm0, %v13258_v5 }
 0x16b   :  { %v13270_v42 = vadd.f32 %v1169_v33, %v12770_v4  ;;  %v13273_v23 = vadd.f32 %v1635_v40, %v13127_v41  ;;  %2249 = vmatprep.mubr.f32.mxu0 %v19573_v51  ;;  %2715 = vmatprep.mubr.f32.mxu1 %v19573_v51 }
 0x16c   :  { %v1171_v52 = vpop.f32.mrf.mxu0  ;;  %v1637_v30 = vpop.f32.mrf.mxu1 }
 0x16d   :  { %19593 = vst [vmem:[#allocation43_spill] sm:$0xff] %v13273_v23  ;;  %v13286_v4 = vadd.f32 %v1171_v52, %v12777_v10  ;;  %v13289_v41 = vadd.f32 %v1637_v30, %v13142_v19  ;;  %v1932_v10 = vld [vmem:[%s19476_s0 + $0xc3] sm:$0xff]  ;;  %v13308_v19 = vld [vmem:[%s19476_s0 + $0x94] sm:$0xff] }
 0x16e   :  { %v1175_v44 = vpop.f32.mrf.mxu0  ;;  %v1641_v33 = vpop.f32.mrf.mxu1  ;;  %10486 = vmatmul.mubr.msk.f32.gmra.mxu0 %vm127_vm0, %v1931_v63  ;;  %10520 = vmatmul.mubr.msk.f32.gmra.mxu1 %vm127_vm0, %v13283_v12 }
 0x16f   :  { %v13295_v40 = vadd.f32 %v1175_v44, %v12781_v14  ;;  %v13298_v23 = vadd.f32 %v1641_v33, %v13150_v7  ;;  %2255 = vmatprep.mubr.f32.mxu0 %v19573_v51  ;;  %2721 = vmatprep.mubr.f32.mxu1 %v19573_v51 }
 0x170   :  { %v1177_v63 = vpop.f32.mrf.mxu0  ;;  %v1643_v52 = vpop.f32.mrf.mxu1 }
 0x171   :  { %19594 = vst [vmem:[#allocation44_spill] sm:$0xff] %v13298_v23  ;;  %v13311_v14 = vadd.f32 %v1177_v63, %v12788_v20  ;;  %v13314_v7 = vadd.f32 %v1643_v52, %v13165_v13  ;;  %v1933_v20 = vld [vmem:[%s19476_s0 + $0xcb] sm:$0xff]  ;;  %v13333_v13 = vld [vmem:[%s19476_s0 + $0x9c] sm:$0xff] }
 0x172   :  { %v1181_v30 = vpop.f32.mrf.mxu0  ;;  %v1647_v44 = vpop.f32.mrf.mxu1  ;;  %10487 = vmatmul.mubr.msk.f32.gmra.mxu0 %vm127_vm0, %v1932_v10  ;;  %10521 = vmatmul.mubr.msk.f32.gmra.mxu1 %vm127_vm0, %v13308_v19 }
 0x173   :  { %v13320_v33 = vadd.f32 %v1181_v30, %v12792_v24  ;;  %v13323_v23 = vadd.f32 %v1647_v44, %v13173_v2  ;;  %2261 = vmatprep.mubr.f32.mxu0 %v19573_v51  ;;  %2727 = vmatprep.mubr.f32.mxu1 %v19573_v51 }
 0x174   :  { %v1183_v10 = vpop.f32.mrf.mxu0  ;;  %v1649_v63 = vpop.f32.mrf.mxu1 }
 0x175   :  { %19595 = vst [vmem:[#allocation45_spill] sm:$0xff] %v13323_v23  ;;  %v13336_v24 = vadd.f32 %v1183_v10, %v12799_v29  ;;  %v13339_v2 = vadd.f32 %v1649_v63, %v13191_v3  ;;  %v1934_v29 = vld [vmem:[%s19476_s0 + $0xd3] sm:$0xff]  ;;  %v13358_v3 = vld [vmem:[%s19476_s0 + $0xa4] sm:$0xff] }
 0x176   :  { %v1187_v52 = vpop.f32.mrf.mxu0  ;;  %v1653_v30 = vpop.f32.mrf.mxu1  ;;  %10488 = vmatmul.mubr.msk.f32.gmra.mxu0 %vm127_vm0, %v1933_v20  ;;  %10522 = vmatmul.mubr.msk.f32.gmra.mxu1 %vm127_vm0, %v13333_v13 }
 0x177   :  { %v13345_v44 = vadd.f32 %v1187_v52, %v12803_v34  ;;  %v13348_v23 = vadd.f32 %v1653_v30, %v13199_v56  ;;  %2267 = vmatprep.mubr.f32.mxu0 %v19573_v51  ;;  %2733 = vmatprep.mubr.f32.mxu1 %v19573_v51 }
 0x178   :  { %v1189_v20 = vpop.f32.mrf.mxu0  ;;  %v1655_v10 = vpop.f32.mrf.mxu1 }
 0x179   :  { %19596 = vst [vmem:[#allocation46_spill] sm:$0xff] %v13348_v23  ;;  %v13361_v34 = vadd.f32 %v1189_v20, %v12810_v39  ;;  %v13364_v56 = vadd.f32 %v1655_v10, %v13214_v16  ;;  %v1935_v39 = vld [vmem:[%s19476_s0 + $0xdb] sm:$0xff]  ;;  %v13383_v16 = vld [vmem:[%s19476_s0 + $0xac] sm:$0xff] }
 0x17a   :  { %v1193_v63 = vpop.f32.mrf.mxu0  ;;  %v1659_v52 = vpop.f32.mrf.mxu1  ;;  %10489 = vmatmul.mubr.msk.f32.gmra.mxu0 %vm127_vm0, %v1934_v29  ;;  %10523 = vmatmul.mubr.msk.f32.gmra.mxu1 %vm127_vm0, %v13358_v3 }
 0x17b   :  { %v13370_v30 = vadd.f32 %v1193_v63, %v12814_v43  ;;  %v13373_v23 = vadd.f32 %v1659_v52, %v13220_v26  ;;  %2273 = vmatprep.mubr.f32.mxu0 %v19573_v51  ;;  %2739 = vmatprep.mubr.f32.mxu1 %v19573_v51 }
 0x17c   :  { %v1195_v29 = vpop.f32.mrf.mxu0  ;;  %v1661_v20 = vpop.f32.mrf.mxu1 }
 0x17d   :  { %19597 = vst [vmem:[#allocation47_spill] sm:$0xff] %v13373_v23  ;;  %v13386_v43 = vadd.f32 %v1195_v29, %v12821_v49  ;;  %v13389_v26 = vadd.f32 %v1661_v20, %v13236_v47  ;;  %v1936_v49 = vld [vmem:[%s19476_s0 + $0xe3] sm:$0xff]  ;;  %v13408_v47 = vld [vmem:[%s19476_s0 + $0xb4] sm:$0xff] }
 0x17e   :  { %v1199_v10 = vpop.f32.mrf.mxu0  ;;  %v1665_v63 = vpop.f32.mrf.mxu1  ;;  %10490 = vmatmul.mubr.msk.f32.gmra.mxu0 %vm127_vm0, %v1935_v39  ;;  %10524 = vmatmul.mubr.msk.f32.gmra.mxu1 %vm127_vm0, %v13383_v16 }
 0x17f   :  { %v13395_v52 = vadd.f32 %v1199_v10, %v12825_v55  ;;  %v13398_v23 = vadd.f32 %v1665_v63, %v13245_v9  ;;  %2279 = vmatprep.mubr.f32.mxu0 %v19573_v51  ;;  %2745 = vmatprep.mubr.f32.mxu1 %v19573_v51 }
 0x180   :  { %v1201_v39 = vpop.f32.mrf.mxu0  ;;  %v1667_v29 = vpop.f32.mrf.mxu1 }
 0x181   :  { %19598 = vst [vmem:[#allocation48_spill] sm:$0xff] %v13398_v23  ;;  %v13411_v55 = vadd.f32 %v1201_v39, %v12832_v0  ;;  %v13414_v9 = vadd.f32 %v1667_v29, %v13261_v57  ;;  %v1937_v0 = vld [vmem:[%s19476_s0 + $0xeb] sm:$0xff]  ;;  %v13433_v57 = vld [vmem:[%s19476_s0 + $0xbc] sm:$0xff] }
 0x182   :  { %v1205_v20 = vpop.f32.mrf.mxu0  ;;  %v1671_v10 = vpop.f32.mrf.mxu1  ;;  %10491 = vmatmul.mubr.msk.f32.gmra.mxu0 %vm127_vm0, %v1936_v49  ;;  %10525 = vmatmul.mubr.msk.f32.gmra.mxu1 %vm127_vm0, %v13408_v47 }
 0x183   :  { %v13420_v63 = vadd.f32 %v1205_v20, %v12836_v6  ;;  %v13423_v23 = vadd.f32 %v1671_v10, %v13270_v42  ;;  %2285 = vmatprep.mubr.f32.mxu0 %v19573_v51  ;;  %2751 = vmatprep.mubr.f32.mxu1 %v19573_v51 }
 0x184   :  { %v1207_v49 = vpop.f32.mrf.mxu0  ;;  %v1673_v39 = vpop.f32.mrf.mxu1 }
 0x185   :  { %19599 = vst [vmem:[#allocation49_spill] sm:$0xff] %v13423_v23  ;;  %v13436_v6 = vadd.f32 %v1207_v49, %v12843_v17  ;;  %v13439_v42 = vadd.f32 %v1673_v39, %v13286_v4  ;;  %v1938_v17 = vld [vmem:[%s19476_s0 + $0xf3] sm:$0xff]  ;;  %v13458_v4 = vld [vmem:[%s19476_s0 + $0xc4] sm:$0xff] }
 0x186   :  { %v1211_v29 = vpop.f32.mrf.mxu0  ;;  %v1677_v20 = vpop.f32.mrf.mxu1  ;;  %10492 = vmatmul.mubr.msk.f32.gmra.mxu0 %vm127_vm0, %v1937_v0  ;;  %10526 = vmatmul.mubr.msk.f32.gmra.mxu1 %vm127_vm0, %v13433_v57 }
 0x187   :  { %v13445_v10 = vadd.f32 %v1211_v29, %v12847_v15  ;;  %v13448_v23 = vadd.f32 %v1677_v20, %v13295_v40  ;;  %2291 = vmatprep.mubr.f32.mxu0 %v19573_v51  ;;  %2757 = vmatprep.mubr.f32.mxu1 %v19573_v51 }
 0x188   :  { %v1213_v0 = vpop.f32.mrf.mxu0  ;;  %v1679_v49 = vpop.f32.mrf.mxu1 }
 0x189   :  { %19600 = vst [vmem:[#allocation50_spill] sm:$0xff] %v13448_v23  ;;  %v13461_v15 = vadd.f32 %v1213_v0, %v12854_v31  ;;  %v13464_v40 = vadd.f32 %v1679_v49, %v13311_v14  ;;  %v1939_v31 = vld [vmem:[%s19476_s0 + $0xfb] sm:$0xff]  ;;  %v13483_v14 = vld [vmem:[%s19476_s0 + $0xcc] sm:$0xff] }
 0x18a   :  { %v1217_v39 = vpop.f32.mrf.mxu0  ;;  %v1683_v29 = vpop.f32.mrf.mxu1  ;;  %10493 = vmatmul.mubr.msk.f32.gmra.mxu0 %vm127_vm0, %v1938_v17  ;;  %10527 = vmatmul.mubr.msk.f32.gmra.mxu1 %vm127_vm0, %v13458_v4 }
 0x18b   :  { %v13470_v20 = vadd.f32 %v1217_v39, %v12858_v25  ;;  %v13473_v23 = vadd.f32 %v1683_v29, %v13320_v33  ;;  %2297 = vmatprep.mubr.f32.mxu0 %v19573_v51  ;;  %2763 = vmatprep.mubr.f32.mxu1 %v19573_v51 }
 0x18c   :  { %v1219_v17 = vpop.f32.mrf.mxu0  ;;  %v1685_v0 = vpop.f32.mrf.mxu1 }
 0x18d   :  { %19601 = vst [vmem:[#allocation51_spill] sm:$0xff] %v13473_v23  ;;  %v13486_v25 = vadd.f32 %v1219_v17, %v12865_v46  ;;  %v13489_v33 = vadd.f32 %v1685_v0, %v13336_v24  ;;  %v1940_v46 = vld [vmem:[%s19476_s0 + $0x103] sm:$0xff]  ;;  %v13508_v24 = vld [vmem:[%s19476_s0 + $0xd4] sm:$0xff] }
 0x18e   :  { %v1223_v49 = vpop.f32.mrf.mxu0  ;;  %v1689_v39 = vpop.f32.mrf.mxu1  ;;  %10494 = vmatmul.mubr.msk.f32.gmra.mxu0 %vm127_vm0, %v1939_v31  ;;  %10528 = vmatmul.mubr.msk.f32.gmra.mxu1 %vm127_vm0, %v13483_v14 }
 0x18f   :  { %v13495_v29 = vadd.f32 %v1223_v49, %v12869_v35  ;;  %v13498_v23 = vadd.f32 %v1689_v39, %v13345_v44  ;;  %2303 = vmatprep.mubr.f32.mxu0 %v19573_v51  ;;  %2769 = vmatprep.mubr.f32.mxu1 %v19573_v51 }
 0x190   :  { %v1225_v31 = vpop.f32.mrf.mxu0  ;;  %v1691_v17 = vpop.f32.mrf.mxu1 }
 0x191   :  { %19602 = vst [vmem:[#allocation52_spill] sm:$0xff] %v13498_v23  ;;  %v13511_v35 = vadd.f32 %v1225_v31, %v12876_v59  ;;  %v13514_v44 = vadd.f32 %v1691_v17, %v13361_v34  ;;  %v1941_v59 = vld [vmem:[%s19476_s0 + $0x10b] sm:$0xff]  ;;  %v13533_v34 = vld [vmem:[%s19476_s0 + $0xdc] sm:$0xff] }
 0x192   :  { %v1229_v0 = vpop.f32.mrf.mxu0  ;;  %v1695_v49 = vpop.f32.mrf.mxu1  ;;  %10495 = vmatmul.mubr.msk.f32.gmra.mxu0 %vm127_vm0, %v1940_v46  ;;  %10529 = vmatmul.mubr.msk.f32.gmra.mxu1 %vm127_vm0, %v13508_v24 }
 0x193   :  { %v13520_v39 = vadd.f32 %v1229_v0, %v12886_v28  ;;  %v13523_v23 = vadd.f32 %v1695_v49, %v13370_v30  ;;  %2309 = vmatprep.mubr.f32.mxu0 %v19573_v51  ;;  %2775 = vmatprep.mubr.f32.mxu1 %v19573_v51 }
 0x194   :  { %v1231_v46 = vpop.f32.mrf.mxu0  ;;  %v1697_v31 = vpop.f32.mrf.mxu1 }
 0x195   :  { %19603 = vst [vmem:[#allocation53_spill] sm:$0xff] %v13523_v23  ;;  %v13536_v28 = vadd.f32 %v1231_v46, %v12893_v58  ;;  %v13539_v30 = vadd.f32 %v1697_v31, %v13386_v43  ;;  %v1942_v58 = vld [vmem:[%s19476_s0 + $0x113] sm:$0xff]  ;;  %v13558_v43 = vld [vmem:[%s19476_s0 + $0xe4] sm:$0xff] }
 0x196   :  { %v1235_v17 = vpop.f32.mrf.mxu0  ;;  %v1701_v0 = vpop.f32.mrf.mxu1  ;;  %10496 = vmatmul.mubr.msk.f32.gmra.mxu0 %vm127_vm0, %v1941_v59  ;;  %10530 = vmatmul.mubr.msk.f32.gmra.mxu1 %vm127_vm0, %v13533_v34 }
 0x197   :  { %v13545_v49 = vadd.f32 %v1235_v17, %v12900_v50  ;;  %v13548_v23 = vadd.f32 %v1701_v0, %v13395_v52  ;;  %2315 = vmatprep.mubr.f32.mxu0 %v19573_v51  ;;  %2781 = vmatprep.mubr.f32.mxu1 %v19573_v51 }
 0x198   :  { %v1237_v59 = vpop.f32.mrf.mxu0  ;;  %v1703_v46 = vpop.f32.mrf.mxu1 }
 0x199   :  { %19604 = vst [vmem:[#allocation54_spill] sm:$0xff] %v13548_v23  ;;  %v13561_v50 = vadd.f32 %v1237_v59, %v12907_v45  ;;  %v13564_v52 = vadd.f32 %v1703_v46, %v13411_v55  ;;  %v1943_v45 = vld [vmem:[%s19476_s0 + $0x11b] sm:$0xff]  ;;  %v13583_v55 = vld [vmem:[%s19476_s0 + $0xec] sm:$0xff] }
 0x19a   :  { %v1241_v31 = vpop.f32.mrf.mxu0  ;;  %v1707_v17 = vpop.f32.mrf.mxu1  ;;  %10497 = vmatmul.mubr.msk.f32.gmra.mxu0 %vm127_vm0, %v1942_v58  ;;  %10531 = vmatmul.mubr.msk.f32.gmra.mxu1 %vm127_vm0, %v13558_v43 }
 0x19b   :  { %v13570_v0 = vadd.f32 %v1241_v31, %v12911_v8  ;;  %v13573_v23 = vadd.f32 %v1707_v17, %v13420_v63  ;;  %2321 = vmatprep.mubr.f32.mxu0 %v19573_v51  ;;  %2787 = vmatprep.mubr.f32.mxu1 %v19573_v51 }
 0x19c   :  { %v1243_v58 = vpop.f32.mrf.mxu0  ;;  %v1709_v59 = vpop.f32.mrf.mxu1 }
 0x19d   :  { %19605 = vst [vmem:[#allocation55_spill] sm:$0xff] %v13573_v23  ;;  %v13586_v8 = vadd.f32 %v1243_v58, %v12921_v53  ;;  %v13589_v63 = vadd.f32 %v1709_v59, %v13436_v6  ;;  %v1944_v53 = vld [vmem:[%s19476_s0 + $0x123] sm:$0xff]  ;;  %v13608_v6 = vld [vmem:[%s19476_s0 + $0xf4] sm:$0xff] }
 0x19e   :  { %v1247_v46 = vpop.f32.mrf.mxu0  ;;  %v1713_v31 = vpop.f32.mrf.mxu1  ;;  %10498 = vmatmul.mubr.msk.f32.gmra.mxu0 %vm127_vm0, %v1943_v45  ;;  %10532 = vmatmul.mubr.msk.f32.gmra.mxu1 %vm127_vm0, %v13583_v55  ;;  %19608 = vst [vmem:[#allocation58_spill] sm:$0xff] %v13608_v6 }
 0x19f   :  { %19606 = vst [vmem:[#allocation56_spill] sm:$0xff] %v13589_v63  ;;  %v13595_v17 = vadd.f32 %v1247_v46, %v12925_v48  ;;  %v13598_v23 = vadd.f32 %v1713_v31, %v13445_v10  ;;  %2327 = vmatprep.mubr.f32.mxu0 %v19573_v51  ;;  %2793 = vmatprep.mubr.f32.mxu1 %v19573_v51 }
 0x1a0   :  { %v1249_v45 = vpop.f32.mrf.mxu0  ;;  %v1715_v58 = vpop.f32.mrf.mxu1 }
 0x1a1   :  { %19607 = vst [vmem:[#allocation57_spill] sm:$0xff] %v13598_v23  ;;  %v13611_v48 = vadd.f32 %v1249_v45, %v12935_v1  ;;  %v13614_v10 = vadd.f32 %v1715_v58, %v13461_v15  ;;  %v1945_v1 = vld [vmem:[%s19476_s0 + $0x12b] sm:$0x3f]  ;;  %v13633_v15 = vld [vmem:[%s19476_s0 + $0xfc] sm:$0xff] }
 0x1a2   :  { %v1253_v59 = vpop.f32.mrf.mxu0  ;;  %v1719_v46 = vpop.f32.mrf.mxu1  ;;  %10499 = vmatmul.mubr.msk.f32.gmra.mxu0 %vm127_vm0, %v1944_v53  ;;  %10533 = vmatmul.mubr.msk.f32.gmra.mxu1 %vm127_vm0, %v13608_v6  ;;  %19611 = vst [vmem:[#allocation61_spill] sm:$0xff] %v13633_v15 }
 0x1a3   :  { %19609 = vst [vmem:[#allocation59_spill] sm:$0xff] %v13614_v10  ;;  %v13620_v31 = vadd.f32 %v1253_v59, %v12939_v21  ;;  %v13623_v23 = vadd.f32 %v1719_v46, %v13470_v20  ;;  %2333 = vmatprep.mubr.f32.mxu0 %v19573_v51  ;;  %2799 = vmatprep.mubr.f32.mxu1 %v19573_v51  ;;  %v19612_v21 = vld [vmem:[#allocation12_spill] sm:$0xff] }
 0x1a4   :  { %v1255_v53 = vpop.f32.mrf.mxu0  ;;  %v1721_v45 = vpop.f32.mrf.mxu1 }
 0x1a5   :  { %19610 = vst [vmem:[#allocation60_spill] sm:$0xff] %v13623_v23  ;;  %v13636_v58 = vadd.f32 %v1255_v53, %v19612_v21  ;;  %v13639_v20 = vadd.f32 %v1721_v45, %v13486_v25  ;;  %v19614_v23 = vld [vmem:[#allocation13_spill] sm:$0xff]  ;;  %v13655_v25 = vld [vmem:[%s19476_s0 + $0x104] sm:$0xff] }
 0x1a6   :  { %v1259_v59 = vpop.f32.mrf.mxu0  ;;  %v1725_v46 = vpop.f32.mrf.mxu1  ;;  %10500 = vmatmul.mubr.msk.f32.gmra.mxu0 %vm127_vm0, %v1945_v1  ;;  %10534 = vmatmul.mubr.msk.f32.gmra.mxu1 %vm127_vm0, %v13633_v15  ;;  %19616 = vst [vmem:[#allocation62_spill] sm:$0xff] %v13655_v25  ;;  %v19617_v45 = vld [vmem:[#allocation14_spill] sm:$0xff] }
 0x1a7   :  { %19613 = vst [vmem:[#allocation12_spill] sm:$0xff] %v13639_v20  ;;  %v13645_v10 = vadd.f32 %v1259_v59, %v19614_v23  ;;  %v13648_v63 = vadd.f32 %v1725_v46, %v13495_v29  ;;  %2805 = vmatprep.mubr.f32.mxu1 %v19573_v51  ;;  %3127 = vmatprep.mubr.f32.mxu0 %v19573_v51  ;;  %v10623_v29 = vld [vmem:[%s19475_s1 + $0x110] sm:$0xff] }
 0x1a8   :  { %v1261_v53 = vpop.f32.mrf.mxu0  ;;  %v1727_v1 = vpop.f32.mrf.mxu1 }
 0x1a9   :  { %19615 = vst [vmem:[#allocation13_spill] sm:$0xff] %v13648_v63  ;;  %v13658_v21 = vadd.f32 %v1261_v53, %v19617_v45  ;;  %v13661_v23 = vadd.f32 %v1727_v1, %v13511_v35  ;;  %v19619_v63 = vld [vmem:[#allocation18_spill] sm:$0xff]  ;;  %v19620_v45 = vld [vmem:[#allocation15_spill] sm:$0xff] }
 0x1aa   :  { %v1265_v59 = vpop.f32.mrf.mxu0  ;;  %v1731_v46 = vpop.f32.mrf.mxu1  ;;  %10535 = vmatmul.mubr.msk.f32.gmra.mxu1 %vm127_vm0, %v13655_v25  ;;  %10545 = vmatmul.mubr.msk.f32.vlgmr.msra.gmra.mxu0 %vm127_vm0, %v19619_v63  ;;  %v10622_v53 = vld [vmem:[%s19475_s1 + $0x108] sm:$0xff]  ;;  %v19622_v25 = vld [vmem:[#allocation16_spill] sm:$0xff] }
 0x1ab   :  { %19618 = vst [vmem:[#allocation14_spill] sm:$0xff] %v13661_v23  ;;  %v13674_v20 = vadd.f32 %v1265_v59, %v19620_v45  ;;  %v13677_v35 = vadd.f32 %v1731_v46, %v13520_v39  ;;  %2811 = vmatprep.mubr.f32.mxu1 %v19573_v51  ;;  %3133 = vmatprep.mubr.f32.mxu0 %v19573_v51  ;;  %v13684_v1 = vld [vmem:[%s19476_s0 + $0x10c] sm:$0xff]  ;;  %v10621_v39 = vld [vmem:[%s19475_s1 + $0x100] sm:$0xff] }
 0x1ac   :  { %v1267_v63 = vpop.f32.mrf.mxu0  ;;  %v1733_v23 = vpop.f32.mrf.mxu1  ;;  %4096 = vmatpush1.msra.mxu0 %v10623_v29  ;;  %v19625_v29 = vld [vmem:[#allocation17_spill] sm:$0xff] }
 0x1ad   :  { %19621 = vst [vmem:[#allocation18_spill] sm:$0xff] %v13677_v35  ;;  %v13687_v15 = vadd.f32 %v1267_v63, %v19622_v25  ;;  %v13690_v59 = vadd.f32 %v1733_v23, %v13536_v28  ;;  %4097 = vmatprep.subr.mxu0 %v10622_v53  ;;  %v19624_v35 = vld [vmem:[#allocation21_spill] sm:$0xff]  ;;  %v19627_v63 = vld [vmem:[#allocation19_spill] sm:$0xff] }
 0x1ae   :  { %v1271_v46 = vpop.f32.mrf.mxu0  ;;  %v1737_v45 = vpop.f32.mrf.mxu1  ;;  %10536 = vmatmul.mubr.msk.f32.gmra.mxu1 %vm127_vm0, %v13684_v1  ;;  %10546 = vmatmul.mubr.msk.f32.gmra.mxu0 %vm127_vm0, %v19624_v35  ;;  %v13710_v28 = vld [vmem:[%s19476_s0 + $0x114] sm:$0xff] }
 0x1af   :  { %19623 = vst [vmem:[#allocation15_spill] sm:$0xff] %v13690_v59  ;;  %v13700_v6 = vadd.f32 %v1271_v46, %v19625_v29  ;;  %v13703_v25 = vadd.f32 %v1737_v45, %v13545_v49  ;;  %2817 = vmatprep.mubr.f32.mxu1 %v19573_v51  ;;  %3139 = vmatprep.mubr.f32.mxu0 %v19573_v51  ;;  %v19628_v29 = vld [vmem:[#allocation20_spill] sm:$0xff] }
 0x1b0   :  { %v1273_v23 = vpop.f32.mrf.mxu0  ;;  %v1739_v53 = vpop.f32.mrf.mxu1  ;;  %4098 = vmatpush1.msra.mxu0 %v10621_v39 }
 0x1b1   :  { %19626 = vst [vmem:[#allocation16_spill] sm:$0xff] %v13703_v25  ;;  %v13713_v35 = vadd.f32 %v1273_v23, %v19627_v63  ;;  %v13716_v46 = vadd.f32 %v1739_v53, %v13561_v50  ;;  %v13733_v50 = vld [vmem:[%s19476_s0 + $0x11c] sm:$0xff] }
 0x1b2   :  { %v1277_v49 = vpop.f32.mrf.mxu0  ;;  %v1743_v45 = vpop.f32.mrf.mxu1  ;;  %10537 = vmatmul.mubr.msk.f32.gmra.mxu1 %vm127_vm0, %v13710_v28  ;;  %10547 = vmatmul.mubr.msk.f32.gmra.mxu0 %vm127_vm0, %v13031_v22  ;;  %v19630_v53 = vld [vmem:[#allocation22_spill] sm:$0xff] }
 0x1b3   :  { %v13723_v25 = vadd.f32 %v1277_v49, %v19628_v29  ;;  %v13726_v59 = vadd.f32 %v1743_v45, %v13570_v0  ;;  %2823 = vmatprep.mubr.f32.mxu1 %v19573_v51  ;;  %3145 = vmatprep.mubr.f32.mxu0 %v19573_v51  ;;  %v19632_v45 = vld [vmem:[#allocation23_spill] sm:$0xff] }
 0x1b4   :  { %v1279_v39 = vpop.f32.mrf.mxu0  ;;  %v1745_v23 = vpop.f32.mrf.mxu1 }
 0x1b5   :  { %19629 = vst [vmem:[#allocation21_spill] sm:$0xff] %v13726_v59  ;;  %v13736_v63 = vadd.f32 %v1279_v39, %v19630_v53  ;;  %v13739_v22 = vadd.f32 %v1745_v23, %v13586_v8  ;;  %v13756_v8 = vld [vmem:[%s19476_s0 + $0x124] sm:$0xff] }
 0x1b6   :  { %v1283_v49 = vpop.f32.mrf.mxu0  ;;  %v1749_v0 = vpop.f32.mrf.mxu1  ;;  %10538 = vmatmul.mubr.msk.f32.gmra.mxu1 %vm127_vm0, %v13733_v50  ;;  %10548 = vmatmul.mubr.msk.f32.gmra.mxu0 %vm127_vm0, %v13054_v11 }
 0x1b7   :  { %19631 = vst [vmem:[#allocation17_spill] sm:$0xff] %v13739_v22  ;;  %v13746_v29 = vadd.f32 %v1283_v49, %v19632_v45  ;;  %v13749_v59 = vadd.f32 %v1749_v0, %v13595_v17  ;;  %2829 = vmatprep.mubr.f32.mxu1 %v19573_v51  ;;  %3151 = vmatprep.mubr.f32.mxu0 %v19573_v51  ;;  %v19635_v0 = vld [vmem:[#allocation27_spill] sm:$0xff]  ;;  %v19636_v45 = vld [vmem:[#allocation24_spill] sm:$0xff] }
 0x1b8   :  { %v1285_v39 = vpop.f32.mrf.mxu0  ;;  %v1751_v23 = vpop.f32.mrf.mxu1 }
 0x1b9   :  { %19633 = vst [vmem:[#allocation19_spill] sm:$0xff] %v13749_v59  ;;  %v13759_v53 = vadd.f32 %v1285_v39, %v13033_v54  ;;  %v13762_v11 = vadd.f32 %v1751_v23, %v13611_v48  ;;  %v2447_v54 = vld [vmem:[%s19476_s0 + $0x12c] sm:$0x3f]  ;;  %v19638_v23 = vld [vmem:[#allocation25_spill] sm:$0xff] }
 0x1ba   :  { %v1289_v49 = vpop.f32.mrf.mxu0  ;;  %v1755_v17 = vpop.f32.mrf.mxu1  ;;  %10539 = vmatmul.mubr.msk.f32.gmra.mxu1 %vm127_vm0, %v13756_v8  ;;  %10549 = vmatmul.mubr.msk.f32.gmra.mxu0 %vm127_vm0, %v19635_v0 }
 0x1bb   :  { %19634 = vst [vmem:[#allocation20_spill] sm:$0xff] %v13762_v11  ;;  %v13769_v59 = vadd.f32 %v1289_v49, %v19636_v45  ;;  %v13772_v22 = vadd.f32 %v1755_v17, %v13620_v31  ;;  %2835 = vmatprep.mubr.f32.mxu1 %v19573_v51  ;;  %3157 = vmatprep.mubr.f32.mxu0 %v19573_v51  ;;  %v19640_v31 = vld [vmem:[#allocation26_spill] sm:$0xff] }
 0x1bc   :  { %v1291_v48 = vpop.f32.mrf.mxu0  ;;  %v1757_v39 = vpop.f32.mrf.mxu1 }
 0x1bd   :  { %19637 = vst [vmem:[#allocation22_spill] sm:$0xff] %v13772_v22  ;;  %v13780_v11 = vadd.f32 %v1291_v48, %v19638_v23  ;;  %v13783_v0 = vadd.f32 %v1757_v39, %v13636_v58  ;;  %v3416_v58 = vld [vmem:[%s19476_s0 + $0x25] sm:$0xff] }
 0x1be   :  { %v1295_v49 = vpop.f32.mrf.mxu0  ;;  %v1761_v45 = vpop.f32.mrf.mxu1  ;;  %10540 = vmatmul.mubr.msk.f32.gmra.mxu1 %vm127_vm0, %v2447_v54  ;;  %10550 = vmatmul.mubr.msk.f32.gmra.mxu0 %vm127_vm0, %v13091_v27  ;;  %v19642_v54 = vld [vmem:[#allocation28_spill] sm:$0xff] }
 0x1bf   :  { %19639 = vst [vmem:[#allocation23_spill] sm:$0xff] %v13783_v0  ;;  %v13789_v17 = vadd.f32 %v1295_v49, %v19640_v31  ;;  %v13792_v22 = vadd.f32 %v1761_v45, %v13645_v10  ;;  %3163 = vmatprep.mubr.f32.mxu0 %v19573_v51  ;;  %3629 = vmatprep.mubr.f32.mxu1 %v19573_v51  ;;  %v19644_v10 = vld [vmem:[#allocation29_spill] sm:$0xff] }
 0x1c0   :  { %v1297_v48 = vpop.f32.mrf.mxu0  ;;  %v1763_v39 = vpop.f32.mrf.mxu1 }
 0x1c1   :  { %19641 = vst [vmem:[#allocation27_spill] sm:$0xff] %v13792_v22  ;;  %v13800_v23 = vadd.f32 %v1297_v48, %v19642_v54  ;;  %v13803_v27 = vadd.f32 %v1763_v39, %v13658_v21  ;;  %v3417_v21 = vld [vmem:[%s19476_s0 + $0x2d] sm:$0xff] }
 0x1c2   :  { %v1301_v49 = vpop.f32.mrf.mxu0  ;;  %v1767_v31 = vpop.f32.mrf.mxu1  ;;  %10551 = vmatmul.mubr.msk.f32.gmra.mxu0 %vm127_vm0, %v13114_v36  ;;  %10585 = vmatmul.mubr.msk.f32.vlgmr.msra.gmra.mxu1 %vm127_vm0, %v3416_v58 }
 0x1c3   :  { %19643 = vst [vmem:[#allocation24_spill] sm:$0xff] %v13803_v27  ;;  %v13809_v45 = vadd.f32 %v1301_v49, %v19644_v10  ;;  %v13812_v22 = vadd.f32 %v1767_v31, %v13674_v20  ;;  %3169 = vmatprep.mubr.f32.mxu0 %v19573_v51  ;;  %3635 = vmatprep.mubr.f32.mxu1 %v19573_v51  ;;  %v19647_v20 = vld [vmem:[#allocation30_spill] sm:$0xff] }
 0x1c4   :  { %v1303_v48 = vpop.f32.mrf.mxu0  ;;  %v1769_v39 = vpop.f32.mrf.mxu1 }
 0x1c5   :  { %19645 = vst [vmem:[#allocation25_spill] sm:$0xff] %v13812_v22  ;;  %v13820_v36 = vadd.f32 %v1303_v48, %v13093_v32  ;;  %v13823_v58 = vadd.f32 %v1769_v39, %v13687_v15  ;;  %v3418_v32 = vld [vmem:[%s19476_s0 + $0x35] sm:$0xff] }
 0x1c6   :  { %v1307_v54 = vpop.f32.mrf.mxu0  ;;  %v1773_v49 = vpop.f32.mrf.mxu1  ;;  %10552 = vmatmul.mubr.msk.f32.gmra.mxu0 %vm127_vm0, %v13137_v61  ;;  %10586 = vmatmul.mubr.msk.f32.gmra.mxu1 %vm127_vm0, %v3417_v21 }
 0x1c7   :  { %19646 = vst [vmem:[#allocation26_spill] sm:$0xff] %v13823_v58  ;;  %v13829_v31 = vadd.f32 %v1307_v54, %v19647_v20  ;;  %v13832_v10 = vadd.f32 %v1773_v49, %v13700_v6  ;;  %3175 = vmatprep.mubr.f32.mxu0 %v19573_v51  ;;  %3641 = vmatprep.mubr.f32.mxu1 %v19573_v51  ;;  %v19650_v6 = vld [vmem:[#allocation31_spill] sm:$0xff]  ;;  %v19658_v58 = vld [vmem:[#allocation34_spill] sm:$0xff] }
 0x1c8   :  { %v1309_v15 = vpop.f32.mrf.mxu0  ;;  %v1775_v48 = vpop.f32.mrf.mxu1 }
 0x1c9   :  { %19648 = vst [vmem:[#allocation28_spill] sm:$0xff] %v13832_v10  ;;  %v13840_v61 = vadd.f32 %v1309_v15, %v13116_v62  ;;  %v13843_v21 = vadd.f32 %v1775_v48, %v13713_v35  ;;  %v3419_v62 = vld [vmem:[%s19476_s0 + $0x3d] sm:$0xff] }
 0x1ca   :  { %v1313_v39 = vpop.f32.mrf.mxu0  ;;  %v1779_v54 = vpop.f32.mrf.mxu1  ;;  %10553 = vmatmul.mubr.msk.f32.gmra.mxu0 %vm127_vm0, %v13160_v38  ;;  %10587 = vmatmul.mubr.msk.f32.gmra.mxu1 %vm127_vm0, %v3418_v32  ;;  %v19652_v48 = vld [vmem:[#allocation6_spill] sm:$0xff]  ;;  %v19653_v38 = vld [vmem:[#allocation33_spill] sm:$0xff]  ;;  %v19654_v32 = vld [vmem:[#allocation32_spill] sm:$0xff] }
 0x1cb   :  { %19649 = vst [vmem:[#allocation29_spill] sm:$0xff] %v13843_v21  ;;  %v13849_v49 = vadd.f32 %v1313_v39, %v19650_v6  ;;  %v13852_v20 = vadd.f32 %v1779_v54, %v13723_v25  ;;  %3181 = vmatprep.mubr.f32.mxu0 %v19573_v51  ;;  %3647 = vmatprep.mubr.f32.mxu1 %v19573_v51  ;;  %v19656_v6 = vld [vmem:[#allocation36_spill] sm:$0xff] }
 0x1cc   :  { %v1315_v35 = vpop.f32.mrf.mxu0  ;;  %v1781_v15 = vpop.f32.mrf.mxu1  ;;  %v890_v21 = vadd.f32 %v19653_v38, %v19652_v48  ;;  %v19660_v38 = vld [vmem:[#allocation8_spill] sm:$0xff] }
 0x1cd   :  { %19651 = vst [vmem:[#allocation30_spill] sm:$0xff] %v13852_v20  ;;  %v13862_v10 = vadd.f32 %v1315_v35, %v19654_v32  ;;  %v13865_v39 = vadd.f32 %v1781_v15, %v13736_v63  ;;  %v19657_v20 = vld [vmem:[#allocation7_spill] sm:$0xff] }
 0x1ce   :  { %v1319_v25 = vpop.f32.mrf.mxu0  ;;  %v1785_v54 = vpop.f32.mrf.mxu1  ;;  %10554 = vmatmul.mubr.msk.f32.gmra.mxu0 %vm127_vm0, %v19656_v6  ;;  %10588 = vmatmul.mubr.msk.f32.gmra.mxu1 %vm127_vm0, %v3419_v62  ;;  %v892_v22 = vadd.f32 %v19658_v58, %v19657_v20  ;;  %v3420_v63 = vld [vmem:[%s19476_s0 + $0x45] sm:$0xff] }
 0x1cf   :  { %19655 = vst [vmem:[#allocation31_spill] sm:$0xff] %v13865_v39  ;;  %v13872_v27 = vadd.f32 %v1319_v25, %v890_v21  ;;  %v13875_v48 = vadd.f32 %v1785_v54, %v13746_v29  ;;  %3187 = vmatprep.mubr.f32.mxu0 %v19573_v51  ;;  %3653 = vmatprep.mubr.f32.mxu1 %v19573_v51  ;;  %v19661_v62 = vld [vmem:[#allocation35_spill] sm:$0xff]  ;;  %v19663_v25 = vld [vmem:[#allocation9_spill] sm:$0xff] }
 0x1d0   :  { %v1321_v35 = vpop.f32.mrf.mxu0  ;;  %v1787_v15 = vpop.f32.mrf.mxu1  ;;  %v896_v32 = vadd.f32 %v19661_v62, %v19660_v38  ;;  %v19662_v20 = vld [vmem:[#allocation39_spill] sm:$0xff]  ;;  %v19664_v54 = vld [vmem:[#allocation37_spill] sm:$0xff] }
 0x1d1   :  { %19659 = vst [vmem:[#allocation6_spill] sm:$0xff] %v13875_v48  ;;  %v13884_v6 = vadd.f32 %v1321_v35, %v892_v22  ;;  %v13887_v58 = vadd.f32 %v1787_v15, %v13759_v53  ;;  %v898_v48 = vadd.f32 %v19664_v54, %v19663_v25  ;;  %v3421_v22 = vld [vmem:[%s19476_s0 + $0x4d] sm:$0xff]  ;;  %v19666_v15 = vld [vmem:[#allocation10_spill] sm:$0xff] }
 0x1d2   :  { %v1325_v29 = vpop.f32.mrf.mxu0  ;;  %v1791_v21 = vpop.f32.mrf.mxu1  ;;  %10555 = vmatmul.mubr.msk.f32.gmra.mxu0 %vm127_vm0, %v19662_v20  ;;  %10589 = vmatmul.mubr.msk.f32.gmra.mxu1 %vm127_vm0, %v3420_v63  ;;  %v19667_v63 = vld [vmem:[#allocation38_spill] sm:$0xff]  ;;  %v19669_v20 = vld [vmem:[#allocation40_spill] sm:$0xff] }
 0x1d3   :  { %v13894_v39 = vadd.f32 %v1325_v29, %v896_v32  ;;  %v13897_v0 = vadd.f32 %v1791_v21, %v13769_v59  ;;  %3193 = vmatprep.mubr.f32.mxu0 %v19573_v51  ;;  %3659 = vmatprep.mubr.f32.mxu1 %v19573_v51  ;;  %v902_v38 = vadd.f32 %v19667_v63, %v19666_v15  ;;  %v19668_v21 = vld [vmem:[#allocation11_spill] sm:$0xff]  ;;  %v19670_v63 = vld [vmem:[#allocation41_spill] sm:$0xff] }
 0x1d4   :  { %v1327_v53 = vpop.f32.mrf.mxu0  ;;  %v1793_v35 = vpop.f32.mrf.mxu1  ;;  %v904_v25 = vadd.f32 %v19669_v20, %v19668_v21 }
 0x1d5   :  { %19665 = vst [vmem:[#allocation33_spill] sm:$0xff] %v13897_v0  ;;  %v13906_v62 = vadd.f32 %v1327_v53, %v898_v48  ;;  %v13909_v32 = vadd.f32 %v1793_v35, %v13780_v11  ;;  %v3422_v11 = vld [vmem:[%s19476_s0 + $0x55] sm:$0xff] }
 0x1d6   :  { %v1331_v59 = vpop.f32.mrf.mxu0  ;;  %v1797_v29 = vpop.f32.mrf.mxu1  ;;  %10556 = vmatmul.mubr.msk.f32.gmra.mxu0 %vm127_vm0, %v13233_v37  ;;  %10590 = vmatmul.mubr.msk.f32.gmra.mxu1 %vm127_vm0, %v3421_v22 }
 0x1d7   :  { %v13916_v54 = vadd.f32 %v1331_v59, %v902_v38  ;;  %v13919_v0 = vadd.f32 %v1797_v29, %v13789_v17  ;;  %3199 = vmatprep.mubr.f32.mxu0 %v19573_v51  ;;  %3665 = vmatprep.mubr.f32.mxu1 %v19573_v51 }
 0x1d8   :  { %v1333_v48 = vpop.f32.mrf.mxu0  ;;  %v1799_v37 = vpop.f32.mrf.mxu1 }
 0x1d9   :  { %v13926_v53 = vadd.f32 %v1333_v48, %v904_v25  ;;  %v13929_v22 = vadd.f32 %v1799_v37, %v13800_v23  ;;  %v3423_v23 = vld [vmem:[%s19476_s0 + $0x5d] sm:$0xff] }
 0x1da   :  { %v1803_v35 = vpop.f32.mrf.mxu1  ;;  %v2125_v15 = vpop.f32.mrf.mxu0  ;;  %10557 = vmatmul.mubr.msk.f32.gmra.mxu0 %vm127_vm0, %v13258_v5  ;;  %10591 = vmatmul.mubr.msk.f32.gmra.mxu1 %vm127_vm0, %v3422_v11  ;;  %v19671_v11 = vld [vmem:[#allocation42_spill] sm:$0xff] }
 0x1db   :  { %v13935_v17 = vadd.f32 %v1803_v35, %v13809_v45  ;;  %v13938_v38 = vadd.f32 %v2125_v15, %v19670_v63  ;;  %3205 = vmatprep.mubr.f32.mxu0 %v19573_v51  ;;  %3671 = vmatprep.mubr.f32.mxu1 %v19573_v51 }
 0x1dc   :  { %v1805_v59 = vpop.f32.mrf.mxu1  ;;  %v2127_v29 = vpop.f32.mrf.mxu0 }
 0x1dd   :  { %v13946_v5 = vadd.f32 %v1805_v59, %v13820_v36  ;;  %v13949_v21 = vadd.f32 %v2127_v29, %v13239_v60  ;;  %v3424_v60 = vld [vmem:[%s19476_s0 + $0x65] sm:$0xff] }
 0x1de   :  { %v1809_v45 = vpop.f32.mrf.mxu1  ;;  %v2131_v20 = vpop.f32.mrf.mxu0  ;;  %10558 = vmatmul.mubr.msk.f32.gmra.mxu0 %vm127_vm0, %v13283_v12  ;;  %10592 = vmatmul.mubr.msk.f32.gmra.mxu1 %vm127_vm0, %v3423_v23  ;;  %v19672_v23 = vld [vmem:[#allocation43_spill] sm:$0xff] }
 0x1df   :  { %v13955_v25 = vadd.f32 %v1809_v45, %v13829_v31  ;;  %v13958_v48 = vadd.f32 %v2131_v20, %v19671_v11  ;;  %3211 = vmatprep.mubr.f32.mxu0 %v19573_v51  ;;  %3677 = vmatprep.mubr.f32.mxu1 %v19573_v51 }
 0x1e0   :  { %v1811_v36 = vpop.f32.mrf.mxu1  ;;  %v2133_v37 = vpop.f32.mrf.mxu0 }
 0x1e1   :  { %v13966_v12 = vadd.f32 %v1811_v36, %v13840_v61  ;;  %v13969_v35 = vadd.f32 %v2133_v37, %v13264_v18  ;;  %v3425_v18 = vld [vmem:[%s19476_s0 + $0x6d] sm:$0xff] }
 0x1e2   :  { %v1815_v31 = vpop.f32.mrf.mxu1  ;;  %v2137_v15 = vpop.f32.mrf.mxu0  ;;  %10559 = vmatmul.mubr.msk.f32.gmra.mxu0 %vm127_vm0, %v13308_v19  ;;  %10593 = vmatmul.mubr.msk.f32.gmra.mxu1 %vm127_vm0, %v3424_v60  ;;  %v19673_v60 = vld [vmem:[#allocation44_spill] sm:$0xff] }
 0x1e3   :  { %v13975_v63 = vadd.f32 %v1815_v31, %v13849_v49  ;;  %v13978_v59 = vadd.f32 %v2137_v15, %v19672_v23  ;;  %3217 = vmatprep.mubr.f32.mxu0 %v19573_v51  ;;  %3683 = vmatprep.mubr.f32.mxu1 %v19573_v51 }
 0x1e4   :  { %v1817_v61 = vpop.f32.mrf.mxu1  ;;  %v2139_v29 = vpop.f32.mrf.mxu0 }
 0x1e5   :  { %v13986_v19 = vadd.f32 %v1817_v61, %v13862_v10  ;;  %v13989_v45 = vadd.f32 %v2139_v29, %v13289_v41  ;;  %v3426_v41 = vld [vmem:[%s19476_s0 + $0x75] sm:$0xff] }
 0x1e6   :  { %v1821_v49 = vpop.f32.mrf.mxu1  ;;  %v2143_v20 = vpop.f32.mrf.mxu0  ;;  %10560 = vmatmul.mubr.msk.f32.gmra.mxu0 %vm127_vm0, %v13333_v13  ;;  %10594 = vmatmul.mubr.msk.f32.gmra.mxu1 %vm127_vm0, %v3425_v18  ;;  %v19674_v18 = vld [vmem:[#allocation45_spill] sm:$0xff] }
 0x1e7   :  { %v13995_v11 = vadd.f32 %v1821_v49, %v13872_v27  ;;  %v13998_v36 = vadd.f32 %v2143_v20, %v19673_v60  ;;  %3223 = vmatprep.mubr.f32.mxu0 %v19573_v51  ;;  %3689 = vmatprep.mubr.f32.mxu1 %v19573_v51 }
 0x1e8   :  { %v1823_v10 = vpop.f32.mrf.mxu1  ;;  %v2145_v37 = vpop.f32.mrf.mxu0 }
 0x1e9   :  { %v14006_v13 = vadd.f32 %v1823_v10, %v13884_v6  ;;  %v14009_v31 = vadd.f32 %v2145_v37, %v13314_v7  ;;  %v3427_v7 = vld [vmem:[%s19476_s0 + $0x7d] sm:$0xff] }
 0x1ea   :  { %v1827_v27 = vpop.f32.mrf.mxu1  ;;  %v2149_v15 = vpop.f32.mrf.mxu0  ;;  %10561 = vmatmul.mubr.msk.f32.gmra.mxu0 %vm127_vm0, %v13358_v3  ;;  %10595 = vmatmul.mubr.msk.f32.gmra.mxu1 %vm127_vm0, %v3426_v41  ;;  %v19675_v41 = vld [vmem:[#allocation46_spill] sm:$0xff] }
 0x1eb   :  { %v14015_v23 = vadd.f32 %v1827_v27, %v13894_v39  ;;  %v14018_v61 = vadd.f32 %v2149_v15, %v19674_v18  ;;  %3229 = vmatprep.mubr.f32.mxu0 %v19573_v51  ;;  %3695 = vmatprep.mubr.f32.mxu1 %v19573_v51  ;;  %v19676_v18 = vld [vmem:[#allocation47_spill] sm:$0xff] }
 0x1ec   :  { %v1829_v6 = vpop.f32.mrf.mxu1  ;;  %v2151_v29 = vpop.f32.mrf.mxu0 }
 0x1ed   :  { %v14026_v3 = vadd.f32 %v1829_v6, %v13906_v62  ;;  %v14029_v49 = vadd.f32 %v2151_v29, %v13339_v2  ;;  %v3428_v2 = vld [vmem:[%s19476_s0 + $0x85] sm:$0xff] }
 0x1ee   :  { %v1833_v39 = vpop.f32.mrf.mxu1  ;;  %v2155_v20 = vpop.f32.mrf.mxu0  ;;  %10562 = vmatmul.mubr.msk.f32.gmra.mxu0 %vm127_vm0, %v13383_v16  ;;  %10596 = vmatmul.mubr.msk.f32.gmra.mxu1 %vm127_vm0, %v3427_v7 }
 0x1ef   :  { %v14035_v60 = vadd.f32 %v1833_v39, %v13916_v54  ;;  %v14038_v10 = vadd.f32 %v2155_v20, %v19675_v41  ;;  %3235 = vmatprep.mubr.f32.mxu0 %v19573_v51  ;;  %3701 = vmatprep.mubr.f32.mxu1 %v19573_v51 }
 0x1f0   :  { %v1835_v62 = vpop.f32.mrf.mxu1  ;;  %v2157_v37 = vpop.f32.mrf.mxu0 }
 0x1f1   :  { %v14046_v16 = vadd.f32 %v1835_v62, %v13926_v53  ;;  %v14049_v27 = vadd.f32 %v2157_v37, %v13364_v56  ;;  %v3429_v56 = vld [vmem:[%s19476_s0 + $0x8d] sm:$0xff] }
 0x1f2   :  { %v2161_v54 = vpop.f32.mrf.mxu0  ;;  %v2627_v15 = vpop.f32.mrf.mxu1  ;;  %10563 = vmatmul.mubr.msk.f32.gmra.mxu0 %vm127_vm0, %v13408_v47  ;;  %10597 = vmatmul.mubr.msk.f32.gmra.mxu1 %vm127_vm0, %v3428_v2 }
 0x1f3   :  { %v14055_v7 = vadd.f32 %v2161_v54, %v19676_v18  ;;  %v14058_v6 = vadd.f32 %v2627_v15, %v13938_v38  ;;  %3241 = vmatprep.mubr.f32.mxu0 %v19573_v51  ;;  %3707 = vmatprep.mubr.f32.mxu1 %v19573_v51  ;;  %v19677_v38 = vld [vmem:[#allocation48_spill] sm:$0xff] }
 0x1f4   :  { %v2163_v53 = vpop.f32.mrf.mxu0  ;;  %v2629_v29 = vpop.f32.mrf.mxu1 }
 0x1f5   :  { %v14066_v47 = vadd.f32 %v2163_v53, %v13389_v26  ;;  %v14069_v39 = vadd.f32 %v2629_v29, %v13949_v21  ;;  %v3430_v26 = vld [vmem:[%s19476_s0 + $0x95] sm:$0xff] }
 0x1f6   :  { %v2167_v20 = vpop.f32.mrf.mxu0  ;;  %v2633_v41 = vpop.f32.mrf.mxu1  ;;  %10564 = vmatmul.mubr.msk.f32.gmra.mxu0 %vm127_vm0, %v13433_v57  ;;  %10598 = vmatmul.mubr.msk.f32.gmra.mxu1 %vm127_vm0, %v3429_v56 }
 0x1f7   :  { %v14075_v2 = vadd.f32 %v2167_v20, %v19677_v38  ;;  %v14078_v62 = vadd.f32 %v2633_v41, %v13958_v48  ;;  %3247 = vmatprep.mubr.f32.mxu0 %v19573_v51  ;;  %3713 = vmatprep.mubr.f32.mxu1 %v19573_v51  ;;  %v19678_v48 = vld [vmem:[#allocation49_spill] sm:$0xff] }
 0x1f8   :  { %v2169_v21 = vpop.f32.mrf.mxu0  ;;  %v2635_v37 = vpop.f32.mrf.mxu1 }
 0x1f9   :  { %v14086_v57 = vadd.f32 %v2169_v21, %v13414_v9  ;;  %v14089_v54 = vadd.f32 %v2635_v37, %v13969_v35  ;;  %v3431_v9 = vld [vmem:[%s19476_s0 + $0x9d] sm:$0xff] }
 0x1fa   :  { %v2173_v15 = vpop.f32.mrf.mxu0  ;;  %v2639_v18 = vpop.f32.mrf.mxu1  ;;  %10565 = vmatmul.mubr.msk.f32.gmra.mxu0 %vm127_vm0, %v13458_v4  ;;  %10599 = vmatmul.mubr.msk.f32.gmra.mxu1 %vm127_vm0, %v3430_v26 }
 0x1fb   :  { %v14095_v56 = vadd.f32 %v2173_v15, %v19678_v48  ;;  %v14098_v53 = vadd.f32 %v2639_v18, %v13978_v59  ;;  %3253 = vmatprep.mubr.f32.mxu0 %v19573_v51  ;;  %3719 = vmatprep.mubr.f32.mxu1 %v19573_v51  ;;  %v19679_v59 = vld [vmem:[#allocation50_spill] sm:$0xff] }
 0x1fc   :  { %v2175_v35 = vpop.f32.mrf.mxu0  ;;  %v2641_v29 = vpop.f32.mrf.mxu1 }
 0x1fd   :  { %v14106_v4 = vadd.f32 %v2175_v35, %v13439_v42  ;;  %v14109_v20 = vadd.f32 %v2641_v29, %v13989_v45  ;;  %v3432_v42 = vld [vmem:[%s19476_s0 + $0xa5] sm:$0xff] }
 0x1fe   :  { %v2179_v41 = vpop.f32.mrf.mxu0  ;;  %v2645_v38 = vpop.f32.mrf.mxu1  ;;  %10566 = vmatmul.mubr.msk.f32.gmra.mxu0 %vm127_vm0, %v13483_v14  ;;  %10600 = vmatmul.mubr.msk.f32.gmra.mxu1 %vm127_vm0, %v3431_v9 }
 0x1ff   :  { %v14115_v26 = vadd.f32 %v2179_v41, %v19679_v59  ;;  %v14118_v21 = vadd.f32 %v2645_v38, %v13998_v36  ;;  %3259 = vmatprep.mubr.f32.mxu0 %v19573_v51  ;;  %3725 = vmatprep.mubr.f32.mxu1 %v19573_v51  ;;  %v19680_v36 = vld [vmem:[#allocation51_spill] sm:$0xff] }
 0x200   :  { %v2181_v45 = vpop.f32.mrf.mxu0  ;;  %v2647_v37 = vpop.f32.mrf.mxu1 }
 0x201   :  { %v14126_v14 = vadd.f32 %v2181_v45, %v13464_v40  ;;  %v14129_v15 = vadd.f32 %v2647_v37, %v14009_v31  ;;  %v3433_v40 = vld [vmem:[%s19476_s0 + $0xad] sm:$0xff] }
 0x202   :  { %v2185_v18 = vpop.f32.mrf.mxu0  ;;  %v2651_v48 = vpop.f32.mrf.mxu1  ;;  %10567 = vmatmul.mubr.msk.f32.gmra.mxu0 %vm127_vm0, %v13508_v24  ;;  %10601 = vmatmul.mubr.msk.f32.gmra.mxu1 %vm127_vm0, %v3432_v42 }
 0x203   :  { %v14135_v9 = vadd.f32 %v2185_v18, %v19680_v36  ;;  %v14138_v35 = vadd.f32 %v2651_v48, %v14018_v61  ;;  %3265 = vmatprep.mubr.f32.mxu0 %v19573_v51  ;;  %3731 = vmatprep.mubr.f32.mxu1 %v19573_v51  ;;  %v19681_v61 = vld [vmem:[#allocation52_spill] sm:$0xff] }
 0x204   :  { %v2187_v31 = vpop.f32.mrf.mxu0  ;;  %v2653_v29 = vpop.f32.mrf.mxu1 }
 0x205   :  { %v14146_v24 = vadd.f32 %v2187_v31, %v13489_v33  ;;  %v14149_v41 = vadd.f32 %v2653_v29, %v14029_v49  ;;  %v3434_v33 = vld [vmem:[%s19476_s0 + $0xb5] sm:$0xff] }
 0x206   :  { %v2191_v38 = vpop.f32.mrf.mxu0  ;;  %v2657_v59 = vpop.f32.mrf.mxu1  ;;  %10568 = vmatmul.mubr.msk.f32.gmra.mxu0 %vm127_vm0, %v13533_v34  ;;  %10602 = vmatmul.mubr.msk.f32.gmra.mxu1 %vm127_vm0, %v3433_v40 }
 0x207   :  { %v14155_v42 = vadd.f32 %v2191_v38, %v19681_v61  ;;  %v14158_v45 = vadd.f32 %v2657_v59, %v14038_v10  ;;  %3271 = vmatprep.mubr.f32.mxu0 %v19573_v51  ;;  %3737 = vmatprep.mubr.f32.mxu1 %v19573_v51  ;;  %v19682_v10 = vld [vmem:[#allocation53_spill] sm:$0xff] }
 0x208   :  { %v2193_v49 = vpop.f32.mrf.mxu0  ;;  %v2659_v37 = vpop.f32.mrf.mxu1 }
 0x209   :  { %v14166_v34 = vadd.f32 %v2193_v49, %v13514_v44  ;;  %v14169_v18 = vadd.f32 %v2659_v37, %v14049_v27  ;;  %v3435_v44 = vld [vmem:[%s19476_s0 + $0xbd] sm:$0xff] }
 0x20a   :  { %v2197_v48 = vpop.f32.mrf.mxu0  ;;  %v2663_v36 = vpop.f32.mrf.mxu1  ;;  %10569 = vmatmul.mubr.msk.f32.gmra.mxu0 %vm127_vm0, %v13558_v43  ;;  %10603 = vmatmul.mubr.msk.f32.gmra.mxu1 %vm127_vm0, %v3434_v33 }
 0x20b   :  { %v14175_v40 = vadd.f32 %v2197_v48, %v19682_v10  ;;  %v14178_v31 = vadd.f32 %v2663_v36, %v14055_v7  ;;  %3277 = vmatprep.mubr.f32.mxu0 %v19573_v51  ;;  %3743 = vmatprep.mubr.f32.mxu1 %v19573_v51  ;;  %v19683_v7 = vld [vmem:[#allocation54_spill] sm:$0xff] }
 0x20c   :  { %v2199_v27 = vpop.f32.mrf.mxu0  ;;  %v2665_v29 = vpop.f32.mrf.mxu1 }
 0x20d   :  { %v14186_v43 = vadd.f32 %v2199_v27, %v13539_v30  ;;  %v14189_v38 = vadd.f32 %v2665_v29, %v14066_v47  ;;  %v3436_v30 = vld [vmem:[%s19476_s0 + $0xc5] sm:$0xff] }
 0x20e   :  { %v2203_v59 = vpop.f32.mrf.mxu0  ;;  %v2669_v61 = vpop.f32.mrf.mxu1  ;;  %10570 = vmatmul.mubr.msk.f32.gmra.mxu0 %vm127_vm0, %v13583_v55  ;;  %10604 = vmatmul.mubr.msk.f32.gmra.mxu1 %vm127_vm0, %v3435_v44  ;;  %v19685_v44 = vld [vmem:[#allocation55_spill] sm:$0xff] }
 0x20f   :  { %v14195_v33 = vadd.f32 %v2203_v59, %v19683_v7  ;;  %v14198_v49 = vadd.f32 %v2669_v61, %v14075_v2  ;;  %3283 = vmatprep.mubr.f32.mxu0 %v19573_v51  ;;  %3749 = vmatprep.mubr.f32.mxu1 %v19573_v51  ;;  %v19684_v2 = vld [vmem:[#allocation58_spill] sm:$0xff]  ;;  %v19686_v61 = vld [vmem:[#allocation56_spill] sm:$0xff] }
 0x210   :  { %v2205_v47 = vpop.f32.mrf.mxu0  ;;  %v2671_v37 = vpop.f32.mrf.mxu1 }
 0x211   :  { %v14206_v55 = vadd.f32 %v2205_v47, %v13564_v52  ;;  %v14209_v48 = vadd.f32 %v2671_v37, %v14086_v57  ;;  %v3437_v52 = vld [vmem:[%s19476_s0 + $0xcd] sm:$0xff] }
 0x212   :  { %v2209_v36 = vpop.f32.mrf.mxu0  ;;  %v2675_v10 = vpop.f32.mrf.mxu1  ;;  %10571 = vmatmul.mubr.msk.f32.gmra.mxu0 %vm127_vm0, %v19684_v2  ;;  %10605 = vmatmul.mubr.msk.f32.gmra.mxu1 %vm127_vm0, %v3436_v30 }
 0x213   :  { %v14215_v27 = vadd.f32 %v2209_v36, %v19685_v44  ;;  %v14218_v29 = vadd.f32 %v2675_v10, %v14095_v56  ;;  %3289 = vmatprep.mubr.f32.mxu0 %v19573_v51  ;;  %3755 = vmatprep.mubr.f32.mxu1 %v19573_v51  ;;  %v19687_v56 = vld [vmem:[#allocation61_spill] sm:$0xff] }
 0x214   :  { %v2211_v57 = vpop.f32.mrf.mxu0  ;;  %v2677_v59 = vpop.f32.mrf.mxu1  ;;  %v19688_v36 = vld [vmem:[#allocation57_spill] sm:$0xff] }
 0x215   :  { %v14226_v7 = vadd.f32 %v2211_v57, %v19686_v61  ;;  %v14229_v30 = vadd.f32 %v2677_v59, %v14106_v4  ;;  %v3438_v4 = vld [vmem:[%s19476_s0 + $0xd5] sm:$0xff]  ;;  %v19690_v59 = vld [vmem:[#allocation59_spill] sm:$0xff] }
 0x216   :  { %v2215_v47 = vpop.f32.mrf.mxu0  ;;  %v2681_v37 = vpop.f32.mrf.mxu1  ;;  %10572 = vmatmul.mubr.msk.f32.gmra.mxu0 %vm127_vm0, %v19687_v56  ;;  %10606 = vmatmul.mubr.msk.f32.gmra.mxu1 %vm127_vm0, %v3437_v52 }
 0x217   :  { %v14235_v10 = vadd.f32 %v2215_v47, %v19688_v36  ;;  %v14238_v2 = vadd.f32 %v2681_v37, %v14115_v26  ;;  %3295 = vmatprep.mubr.f32.mxu0 %v19573_v51  ;;  %3761 = vmatprep.mubr.f32.mxu1 %v19573_v51  ;;  %v19691_v26 = vld [vmem:[#allocation62_spill] sm:$0xff]  ;;  %v19692_v37 = vld [vmem:[#allocation60_spill] sm:$0xff] }
 0x218   :  { %v2217_v44 = vpop.f32.mrf.mxu0  ;;  %v2683_v57 = vpop.f32.mrf.mxu1 }
 0x219   :  { %19689 = vst [vmem:[#allocation32_spill] sm:$0xff] %v14238_v2  ;;  %v14246_v61 = vadd.f32 %v2217_v44, %v19690_v59  ;;  %v14249_v52 = vadd.f32 %v2683_v57, %v14126_v14  ;;  %v3439_v14 = vld [vmem:[%s19476_s0 + $0xdd] sm:$0xff]  ;;  %v19694_v59 = vld [vmem:[#allocation12_spill] sm:$0xff] }
 0x21a   :  { %v2221_v47 = vpop.f32.mrf.mxu0  ;;  %v2687_v56 = vpop.f32.mrf.mxu1  ;;  %10573 = vmatmul.mubr.msk.f32.gmra.mxu0 %vm127_vm0, %v19691_v26  ;;  %10607 = vmatmul.mubr.msk.f32.gmra.mxu1 %vm127_vm0, %v3438_v4 }
 0x21b   :  { %v14255_v36 = vadd.f32 %v2221_v47, %v19692_v37  ;;  %v14258_v2 = vadd.f32 %v2687_v56, %v14135_v9  ;;  %3301 = vmatprep.mubr.f32.mxu0 %v19573_v51  ;;  %3767 = vmatprep.mubr.f32.mxu1 %v19573_v51  ;;  %v19696_v9 = vld [vmem:[#allocation13_spill] sm:$0xff] }
 0x21c   :  { %v2223_v44 = vpop.f32.mrf.mxu0  ;;  %v2689_v57 = vpop.f32.mrf.mxu1 }
 0x21d   :  { %19693 = vst [vmem:[#allocation36_spill] sm:$0xff] %v14258_v2  ;;  %v14266_v26 = vadd.f32 %v2223_v44, %v19694_v59  ;;  %v14269_v4 = vadd.f32 %v2689_v57, %v14146_v24  ;;  %v3440_v24 = vld [vmem:[%s19476_s0 + $0xe5] sm:$0xff] }
 0x21e   :  { %v2227_v47 = vpop.f32.mrf.mxu0  ;;  %v2693_v37 = vpop.f32.mrf.mxu1  ;;  %10574 = vmatmul.mubr.msk.f32.gmra.mxu0 %vm127_vm0, %v13684_v1  ;;  %10608 = vmatmul.mubr.msk.f32.gmra.mxu1 %vm127_vm0, %v3439_v14  ;;  %v19697_v59 = vld [vmem:[#allocation14_spill] sm:$0xff] }
 0x21f   :  { %19695 = vst [vmem:[#allocation7_spill] sm:$0xff] %v14266_v26  ;;  %v14275_v56 = vadd.f32 %v2227_v47, %v19696_v9  ;;  %v14278_v2 = vadd.f32 %v2693_v37, %v14155_v42  ;;  %3307 = vmatprep.mubr.f32.mxu0 %v19573_v51  ;;  %3773 = vmatprep.mubr.f32.mxu1 %v19573_v51  ;;  %v19699_v42 = vld [vmem:[#allocation18_spill] sm:$0xff] }
 0x220   :  { %v2229_v44 = vpop.f32.mrf.mxu0  ;;  %v2695_v57 = vpop.f32.mrf.mxu1 }
 0x221   :  { %v14286_v1 = vadd.f32 %v2229_v44, %v19697_v59  ;;  %v14289_v14 = vadd.f32 %v2695_v57, %v14166_v34  ;;  %v3441_v34 = vld [vmem:[%s19476_s0 + $0xed] sm:$0xff] }
 0x222   :  { %v2233_v47 = vpop.f32.mrf.mxu0  ;;  %v2699_v9 = vpop.f32.mrf.mxu1  ;;  %10575 = vmatmul.mubr.msk.f32.gmra.mxu0 %vm127_vm0, %v13710_v28  ;;  %10609 = vmatmul.mubr.msk.f32.gmra.mxu1 %vm127_vm0, %v3440_v24  ;;  %v19700_v59 = vld [vmem:[#allocation15_spill] sm:$0xff] }
 0x223   :  { %19698 = vst [vmem:[#allocation34_spill] sm:$0xff] %v14286_v1  ;;  %v14295_v37 = vadd.f32 %v2233_v47, %v19699_v42  ;;  %v14298_v26 = vadd.f32 %v2699_v9, %v14175_v40  ;;  %3313 = vmatprep.mubr.f32.mxu0 %v19573_v51  ;;  %3779 = vmatprep.mubr.f32.mxu1 %v19573_v51  ;;  %v19702_v40 = vld [vmem:[#allocation16_spill] sm:$0xff] }
 0x224   :  { %v2235_v44 = vpop.f32.mrf.mxu0  ;;  %v2701_v57 = vpop.f32.mrf.mxu1 }
 0x225   :  { %v14306_v28 = vadd.f32 %v2235_v44, %v19700_v59  ;;  %v14309_v24 = vadd.f32 %v2701_v57, %v14186_v43  ;;  %v3442_v43 = vld [vmem:[%s19476_s0 + $0xf5] sm:$0xff] }
 0x226   :  { %v2239_v47 = vpop.f32.mrf.mxu0  ;;  %v2705_v42 = vpop.f32.mrf.mxu1  ;;  %10576 = vmatmul.mubr.msk.f32.gmra.mxu0 %vm127_vm0, %v13733_v50  ;;  %10610 = vmatmul.mubr.msk.f32.gmra.mxu1 %vm127_vm0, %v3441_v34 }
 0x227   :  { %19701 = vst [vmem:[#allocation8_spill] sm:$0xff] %v14306_v28  ;;  %v14315_v9 = vadd.f32 %v2239_v47, %v19702_v40  ;;  %v14318_v1 = vadd.f32 %v2705_v42, %v14195_v33  ;;  %3319 = vmatprep.mubr.f32.mxu0 %v19573_v51  ;;  %3785 = vmatprep.mubr.f32.mxu1 %v19573_v51  ;;  %v19704_v33 = vld [vmem:[#allocation21_spill] sm:$0xff] }
 0x228   :  { %v2241_v44 = vpop.f32.mrf.mxu0  ;;  %v2707_v57 = vpop.f32.mrf.mxu1 }
 0x229   :  { %v14326_v50 = vadd.f32 %v2241_v44, %v13716_v46  ;;  %v14329_v34 = vadd.f32 %v2707_v57, %v14206_v55  ;;  %v2947_v46 = vld [vmem:[%s19476_s0 + $0x12c] sm:$0xff]  ;;  %v19705_v44 = vld [vmem:[#allocation17_spill] sm:$0xff] }
 0x22a   :  { %v2245_v59 = vpop.f32.mrf.mxu0  ;;  %v2711_v47 = vpop.f32.mrf.mxu1  ;;  %10577 = vmatmul.mubr.msk.f32.gmra.mxu0 %vm127_vm0, %v13756_v8  ;;  %10611 = vmatmul.mubr.msk.f32.gmra.mxu1 %vm127_vm0, %v3442_v43  ;;  %v3443_v8 = vld [vmem:[%s19476_s0 + $0xfd] sm:$0xff] }
 0x22b   :  { %19703 = vst [vmem:[#allocation35_spill] sm:$0xff] %v14326_v50  ;;  %v14335_v42 = vadd.f32 %v2245_v59, %v19704_v33  ;;  %v14338_v40 = vadd.f32 %v2711_v47, %v14215_v27  ;;  %3325 = vmatprep.mubr.f32.mxu0 %v19573_v51  ;;  %3791 = vmatprep.mubr.f32.mxu1 %v19573_v51  ;;  %v19707_v33 = vld [vmem:[#allocation19_spill] sm:$0xff] }
 0x22c   :  { %v2247_v55 = vpop.f32.mrf.mxu0  ;;  %v2713_v43 = vpop.f32.mrf.mxu1 }
 0x22d   :  { %v14349_v57 = vadd.f32 %v2247_v55, %v19705_v44  ;;  %v14352_v27 = vadd.f32 %v2713_v43, %v14226_v7  ;;  %v2948_v7 = vld [vmem:[%s19476_s0 + $0x134] sm:$0xff] }
 0x22e   :  { %v2251_v59 = vpop.f32.mrf.mxu0  ;;  %v2717_v47 = vpop.f32.mrf.mxu1  ;;  %10578 = vmatmul.mubr.msk.f32.gmra.mxu0 %vm127_vm0, %v2947_v46  ;;  %10612 = vmatmul.mubr.msk.f32.gmra.mxu1 %vm127_vm0, %v3443_v8  ;;  %v3444_v46 = vld [vmem:[%s19476_s0 + $0x105] sm:$0xff]  ;;  %v19709_v43 = vld [vmem:[#allocation20_spill] sm:$0xff] }
 0x22f   :  { %19706 = vst [vmem:[#allocation39_spill] sm:$0xff] %v14349_v57  ;;  %v14357_v50 = vadd.f32 %v2251_v59, %v19707_v33  ;;  %v14360_v28 = vadd.f32 %v2717_v47, %v14235_v10  ;;  %3331 = vmatprep.mubr.f32.mxu0 %v19573_v51  ;;  %3797 = vmatprep.mubr.f32.mxu1 %v19573_v51  ;;  %v19711_v33 = vld [vmem:[#allocation22_spill] sm:$0xff] }
 0x230   :  { %v2253_v55 = vpop.f32.mrf.mxu0  ;;  %v2719_v8 = vpop.f32.mrf.mxu1 }
 0x231   :  { %19708 = vst [vmem:[#allocation9_spill] sm:$0xff] %v14360_v28  ;;  %v14371_v44 = vadd.f32 %v2253_v55, %v19709_v43  ;;  %v14374_v10 = vadd.f32 %v2719_v8, %v14246_v61  ;;  %v2949_v61 = vld [vmem:[%s19476_s0 + $0x13c] sm:$0x3f]  ;;  %v19713_v8 = vld [vmem:[#allocation23_spill] sm:$0xff] }
 0x232   :  { %v2257_v59 = vpop.f32.mrf.mxu0  ;;  %v2723_v47 = vpop.f32.mrf.mxu1  ;;  %10579 = vmatmul.mubr.msk.f32.gmra.mxu0 %vm127_vm0, %v2948_v7  ;;  %10613 = vmatmul.mubr.msk.f32.gmra.mxu1 %vm127_vm0, %v3444_v46  ;;  %v3445_v7 = vld [vmem:[%s19476_s0 + $0x10d] sm:$0xff] }
 0x233   :  { %19710 = vst [vmem:[#allocation37_spill] sm:$0xff] %v14371_v44  ;;  %v14379_v57 = vadd.f32 %v2257_v59, %v19711_v33  ;;  %v14382_v28 = vadd.f32 %v2723_v47, %v14255_v36  ;;  %3337 = vmatprep.mubr.f32.mxu0 %v19573_v51  ;;  %3803 = vmatprep.mubr.f32.mxu1 %v19573_v51  ;;  %v19715_v47 = vld [vmem:[#allocation27_spill] sm:$0xff] }
 0x234   :  { %v2259_v55 = vpop.f32.mrf.mxu0  ;;  %v14392_v46 = vpop.f32.mrf.mxu1 }
 0x235   :  { %19712 = vst [vmem:[#allocation10_spill] sm:$0xff] %v14392_v46  ;;  %v14395_v43 = vadd.f32 %v2259_v55, %v19713_v8  ;;  %v3446_v55 = vld [vmem:[%s19476_s0 + $0x115] sm:$0xff] }
 0x236   :  { %v2263_v36 = vpop.f32.mrf.mxu0  ;;  %v2729_v59 = vpop.f32.mrf.mxu1  ;;  %10580 = vmatmul.mubr.msk.f32.gmra.mxu0 %vm127_vm0, %v2949_v61  ;;  %10614 = vmatmul.mubr.msk.f32.gmra.mxu1 %vm127_vm0, %v3445_v7  ;;  %v3918_v61 = vld [vmem:[%s19476_s0 + $0x26] sm:$0xff] }
 0x237   :  { %19714 = vst [vmem:[#allocation38_spill] sm:$0xff] %v14395_v43  ;;  %v14400_v33 = vadd.f32 %v2263_v36, %v19715_v47  ;;  %v14403_v44 = vadd.f32 %v2729_v59, %v14275_v56  ;;  %3809 = vmatprep.mubr.f32.mxu1 %v19573_v51  ;;  %4131 = vmatprep.mubr.f32.mxu0 %v19573_v51  ;;  %v19718_v36 = vld [vmem:[#allocation24_spill] sm:$0xff]  ;;  %v19720_v43 = vld [vmem:[#allocation25_spill] sm:$0xff] }
 0x238   :  { %v2265_v8 = vpop.f32.mrf.mxu0  ;;  %v14413_v7 = vpop.f32.mrf.mxu1 }
 0x239   :  { %19716 = vst [vmem:[#allocation11_spill] sm:$0xff] %v14403_v44  ;;  %19717 = vst [vmem:[#allocation40_spill] sm:$0xff] %v14413_v7  ;;  %v14416_v47 = vadd.f32 %v2265_v8, %v19718_v36  ;;  %v3447_v8 = vld [vmem:[%s19476_s0 + $0x11d] sm:$0xff] }
 0x23a   :  { %v2269_v56 = vpop.f32.mrf.mxu0  ;;  %v2735_v59 = vpop.f32.mrf.mxu1  ;;  %10615 = vmatmul.mubr.msk.f32.gmra.mxu1 %vm127_vm0, %v3446_v55  ;;  %10625 = vmatmul.mubr.msk.f32.vlgmr.msra.gmra.mxu0 %vm127_vm0, %v3918_v61  ;;  %v3919_v55 = vld [vmem:[%s19476_s0 + $0x2e] sm:$0xff] }
 0x23b   :  { %19719 = vst [vmem:[#allocation41_spill] sm:$0xff] %v14416_v47  ;;  %v14421_v46 = vadd.f32 %v2269_v56, %v19720_v43  ;;  %v14424_v44 = vadd.f32 %v2735_v59, %v14295_v37  ;;  %3815 = vmatprep.mubr.f32.mxu1 %v19573_v51  ;;  %4137 = vmatprep.mubr.f32.mxu0 %v19573_v51  ;;  %v19723_v43 = vld [vmem:[#allocation26_spill] sm:$0xff]  ;;  %v19725_v47 = vld [vmem:[#allocation28_spill] sm:$0xff] }
 0x23c   :  { %v2271_v36 = vpop.f32.mrf.mxu0  ;;  %v14434_v61 = vpop.f32.mrf.mxu1 }
 0x23d   :  { %19721 = vst [vmem:[#allocation42_spill] sm:$0xff] %v14424_v44  ;;  %19722 = vst [vmem:[#allocation43_spill] sm:$0xff] %v14434_v61  ;;  %v14437_v56 = vadd.f32 %v2271_v36, %v19723_v43  ;;  %v3448_v36 = vld [vmem:[%s19476_s0 + $0x125] sm:$0xff] }
 0x23e   :  { %v2275_v37 = vpop.f32.mrf.mxu0  ;;  %v2741_v59 = vpop.f32.mrf.mxu1  ;;  %10616 = vmatmul.mubr.msk.f32.gmra.mxu1 %vm127_vm0, %v3447_v8  ;;  %10626 = vmatmul.mubr.msk.f32.gmra.mxu0 %vm127_vm0, %v3919_v55  ;;  %v3920_v8 = vld [vmem:[%s19476_s0 + $0x36] sm:$0xff] }
 0x23f   :  { %19724 = vst [vmem:[#allocation44_spill] sm:$0xff] %v14437_v56  ;;  %v14442_v7 = vadd.f32 %v2275_v37, %v19725_v47  ;;  %v14445_v44 = vadd.f32 %v2741_v59, %v14315_v9  ;;  %3821 = vmatprep.mubr.f32.mxu1 %v19573_v51  ;;  %4143 = vmatprep.mubr.f32.mxu0 %v19573_v51  ;;  %v19728_v47 = vld [vmem:[#allocation29_spill] sm:$0xff]  ;;  %v19730_v56 = vld [vmem:[#allocation30_spill] sm:$0xff] }
 0x240   :  { %v2277_v43 = vpop.f32.mrf.mxu0  ;;  %v14455_v55 = vpop.f32.mrf.mxu1 }
 0x241   :  { %19726 = vst [vmem:[#allocation45_spill] sm:$0xff] %v14445_v44  ;;  %19727 = vst [vmem:[#allocation46_spill] sm:$0xff] %v14455_v55  ;;  %v14458_v37 = vadd.f32 %v2277_v43, %v19728_v47  ;;  %v3449_v43 = vld [vmem:[%s19476_s0 + $0x12d] sm:$0xff] }
 0x242   :  { %v2281_v9 = vpop.f32.mrf.mxu0  ;;  %v2747_v59 = vpop.f32.mrf.mxu1  ;;  %10617 = vmatmul.mubr.msk.f32.gmra.mxu1 %vm127_vm0, %v3448_v36  ;;  %10627 = vmatmul.mubr.msk.f32.gmra.mxu0 %vm127_vm0, %v3920_v8  ;;  %v3921_v36 = vld [vmem:[%s19476_s0 + $0x3e] sm:$0xff] }
 0x243   :  { %19729 = vst [vmem:[#allocation47_spill] sm:$0xff] %v14458_v37  ;;  %v14463_v61 = vadd.f32 %v2281_v9, %v19730_v56  ;;  %v14466_v44 = vadd.f32 %v2747_v59, %v14335_v42  ;;  %3827 = vmatprep.mubr.f32.mxu1 %v19573_v51  ;;  %4149 = vmatprep.mubr.f32.mxu0 %v19573_v51  ;;  %v19733_v56 = vld [vmem:[#allocation31_spill] sm:$0xff]  ;;  %v19735_v37 = vld [vmem:[#allocation6_spill] sm:$0xff] }
 0x244   :  { %v2283_v47 = vpop.f32.mrf.mxu0  ;;  %v14476_v8 = vpop.f32.mrf.mxu1 }
 0x245   :  { %19731 = vst [vmem:[#allocation48_spill] sm:$0xff] %v14466_v44  ;;  %19732 = vst [vmem:[#allocation49_spill] sm:$0xff] %v14476_v8  ;;  %v14479_v9 = vadd.f32 %v2283_v47, %v19733_v56  ;;  %v3450_v47 = vld [vmem:[%s19476_s0 + $0x135] sm:$0xff] }
 0x246   :  { %v2287_v42 = vpop.f32.mrf.mxu0  ;;  %v2753_v59 = vpop.f32.mrf.mxu1  ;;  %10618 = vmatmul.mubr.msk.f32.gmra.mxu1 %vm127_vm0, %v3449_v43  ;;  %10628 = vmatmul.mubr.msk.f32.gmra.mxu0 %vm127_vm0, %v3921_v36  ;;  %v3922_v43 = vld [vmem:[%s19476_s0 + $0x46] sm:$0xff] }
 0x247   :  { %19734 = vst [vmem:[#allocation50_spill] sm:$0xff] %v14479_v9  ;;  %v14484_v55 = vadd.f32 %v2287_v42, %v19735_v37  ;;  %v14487_v44 = vadd.f32 %v2753_v59, %v14357_v50  ;;  %3833 = vmatprep.mubr.f32.mxu1 %v19573_v51  ;;  %4155 = vmatprep.mubr.f32.mxu0 %v19573_v51  ;;  %v19738_v59 = vld [vmem:[#allocation33_spill] sm:$0xff] }
 0x248   :  { %v2289_v56 = vpop.f32.mrf.mxu0  ;;  %v14497_v36 = vpop.f32.mrf.mxu1 }
 0x249   :  { %19736 = vst [vmem:[#allocation51_spill] sm:$0xff] %v14497_v36  ;;  %v14500_v37 = vadd.f32 %v2289_v56, %v13887_v58  ;;  %v3451_v58 = vld [vmem:[%s19476_s0 + $0x13d] sm:$0x3f] }
 0x24a   :  { %v2293_v50 = vpop.f32.mrf.mxu0  ;;  %v2759_v42 = vpop.f32.mrf.mxu1  ;;  %10619 = vmatmul.mubr.msk.f32.gmra.mxu1 %vm127_vm0, %v3450_v47  ;;  %10629 = vmatmul.mubr.msk.f32.gmra.mxu0 %vm127_vm0, %v3922_v43  ;;  %v3923_v47 = vld [vmem:[%s19476_s0 + $0x4e] sm:$0xff] }
 0x24b   :  { %19737 = vst [vmem:[#allocation52_spill] sm:$0xff] %v14500_v37  ;;  %v14505_v9 = vadd.f32 %v2293_v50, %v19738_v59  ;;  %v14508_v8 = vadd.f32 %v2759_v42, %v14379_v57  ;;  %3839 = vmatprep.mubr.f32.mxu1 %v19573_v51  ;;  %4161 = vmatprep.mubr.f32.mxu0 %v19573_v51 }
 0x24c   :  { %v2295_v56 = vpop.f32.mrf.mxu0  ;;  %v14518_v43 = vpop.f32.mrf.mxu1 }
 0x24d   :  { %19739 = vst [vmem:[#allocation53_spill] sm:$0xff] %v14518_v43  ;;  %v14521_v50 = vadd.f32 %v2295_v56, %v13909_v32  ;;  %v3924_v43 = vld [vmem:[%s19476_s0 + $0x56] sm:$0xff] }
 0x24e   :  { %v2299_v57 = vpop.f32.mrf.mxu0  ;;  %v2765_v42 = vpop.f32.mrf.mxu1  ;;  %10620 = vmatmul.mubr.msk.f32.gmra.mxu1 %vm127_vm0, %v3451_v58  ;;  %10630 = vmatmul.mubr.msk.f32.gmra.mxu0 %vm127_vm0, %v3923_v47  ;;  %v3925_v47 = vld [vmem:[%s19476_s0 + $0x5e] sm:$0xff] }
 0x24f   :  { %19740 = vst [vmem:[#allocation54_spill] sm:$0xff] %v14521_v50  ;;  %v2398_v59 = vadd.f32 %v2299_v57, %v13919_v0  ;;  %v14527_v37 = vadd.f32 %v2765_v42, %v14400_v33  ;;  %4167 = vmatprep.mubr.f32.mxu0 %v19573_v51 }
 0x250   :  { %v2301_v36 = vpop.f32.mrf.mxu0  ;;  %v14533_v32 = vpop.f32.mrf.mxu1 }
 0x251   :  { %v14536_v56 = vadd.f32 %v2301_v36, %v13929_v22 }
 0x252   :  { %v2305_v58 = vpop.f32.mrf.mxu0  ;;  %v2771_v50 = vpop.f32.mrf.mxu1  ;;  %10631 = vmatmul.mubr.msk.f32.gmra.mxu0 %vm127_vm0, %v3924_v43  ;;  %v3926_v43 = vld [vmem:[%s19476_s0 + $0x66] sm:$0xff] }
 0x253   :  { %19741 = vst [vmem:[#allocation58_spill] sm:$0xff] %v14536_v56  ;;  %v2400_v0 = vadd.f32 %v2305_v58, %v13935_v17  ;;  %v14541_v33 = vadd.f32 %v2771_v50, %v14421_v46  ;;  %4173 = vmatprep.mubr.f32.mxu0 %v19573_v51 }
 0x254   :  { %v2307_v57 = vpop.f32.mrf.mxu0  ;;  %v14547_v42 = vpop.f32.mrf.mxu1 }
 0x255   :  { %v14550_v22 = vadd.f32 %v2307_v57, %v13946_v5 }
 0x256   :  { %v2311_v36 = vpop.f32.mrf.mxu0  ;;  %v2777_v56 = vpop.f32.mrf.mxu1  ;;  %10632 = vmatmul.mubr.msk.f32.gmra.mxu0 %vm127_vm0, %v3925_v47 }
 0x257   :  { %19742 = vst [vmem:[#allocation55_spill] sm:$0xff] %v14550_v22  ;;  %v2402_v17 = vadd.f32 %v2311_v36, %v13955_v25  ;;  %v14555_v46 = vadd.f32 %v2777_v56, %v14442_v7  ;;  %4179 = vmatprep.mubr.f32.mxu0 %v19573_v51  ;;  %v3927_v56 = vld [vmem:[%s19476_s0 + $0x6e] sm:$0xff] }
 0x258   :  { %v2313_v50 = vpop.f32.mrf.mxu0  ;;  %v14561_v58 = vpop.f32.mrf.mxu1 }
 0x259   :  { %v14564_v5 = vadd.f32 %v2313_v50, %v13966_v12 }
 0x25a   :  { %v2317_v57 = vpop.f32.mrf.mxu0  ;;  %v2783_v22 = vpop.f32.mrf.mxu1  ;;  %10633 = vmatmul.mubr.msk.f32.gmra.mxu0 %vm127_vm0, %v3926_v43 }
 0x25b   :  { %19743 = vst [vmem:[#allocation56_spill] sm:$0xff] %v14564_v5  ;;  %v2404_v25 = vadd.f32 %v2317_v57, %v13975_v63  ;;  %v14569_v7 = vadd.f32 %v2783_v22, %v14463_v61  ;;  %4185 = vmatprep.mubr.f32.mxu0 %v19573_v51  ;;  %v3928_v22 = vld [vmem:[%s19476_s0 + $0x76] sm:$0xff] }
 0x25c   :  { %v2319_v47 = vpop.f32.mrf.mxu0  ;;  %v14575_v36 = vpop.f32.mrf.mxu1 }
 0x25d   :  { %v14578_v12 = vadd.f32 %v2319_v47, %v13986_v19 }
 0x25e   :  { %v2323_v50 = vpop.f32.mrf.mxu0  ;;  %v2789_v5 = vpop.f32.mrf.mxu1  ;;  %10634 = vmatmul.mubr.msk.f32.gmra.mxu0 %vm127_vm0, %v3927_v56 }
 0x25f   :  { %19744 = vst [vmem:[#allocation61_spill] sm:$0xff] %v14578_v12  ;;  %v2406_v63 = vadd.f32 %v2323_v50, %v13995_v11  ;;  %v14583_v61 = vadd.f32 %v2789_v5, %v14484_v55  ;;  %4191 = vmatprep.mubr.f32.mxu0 %v19573_v51  ;;  %v3929_v5 = vld [vmem:[%s19476_s0 + $0x7e] sm:$0xff] }
 0x260   :  { %v2325_v43 = vpop.f32.mrf.mxu0  ;;  %v14589_v57 = vpop.f32.mrf.mxu1 }
 0x261   :  { %v14592_v19 = vadd.f32 %v2325_v43, %v14006_v13 }
 0x262   :  { %v2329_v47 = vpop.f32.mrf.mxu0  ;;  %v2795_v12 = vpop.f32.mrf.mxu1  ;;  %10635 = vmatmul.mubr.msk.f32.gmra.mxu0 %vm127_vm0, %v3928_v22 }
 0x263   :  { %19745 = vst [vmem:[#allocation57_spill] sm:$0xff] %v14592_v19  ;;  %v2408_v11 = vadd.f32 %v2329_v47, %v14015_v23  ;;  %v14597_v55 = vadd.f32 %v2795_v12, %v14505_v9  ;;  %4197 = vmatprep.mubr.f32.mxu0 %v19573_v51  ;;  %v3930_v12 = vld [vmem:[%s19476_s0 + $0x86] sm:$0xff] }
 0x264   :  { %v2331_v56 = vpop.f32.mrf.mxu0  ;;  %v14603_v50 = vpop.f32.mrf.mxu1 }
 0x265   :  { %v14606_v13 = vadd.f32 %v2331_v56, %v14026_v3 }
 0x266   :  { %v2335_v43 = vpop.f32.mrf.mxu0  ;;  %v2801_v19 = vpop.f32.mrf.mxu1  ;;  %10636 = vmatmul.mubr.msk.f32.gmra.mxu0 %vm127_vm0, %v3929_v5 }
 0x267   :  { %19746 = vst [vmem:[#allocation59_spill] sm:$0xff] %v14606_v13  ;;  %v2410_v23 = vadd.f32 %v2335_v43, %v14035_v60  ;;  %v14610_v9 = vadd.f32 %v2801_v19, %v2398_v59  ;;  %4203 = vmatprep.mubr.f32.mxu0 %v19573_v51  ;;  %v3931_v59 = vld [vmem:[%s19476_s0 + $0x8e] sm:$0xff] }
 0x268   :  { %v2337_v22 = vpop.f32.mrf.mxu0  ;;  %v14616_v47 = vpop.f32.mrf.mxu1 }
 0x269   :  { %v14619_v3 = vadd.f32 %v2337_v22, %v14046_v16 }
 0x26a   :  { %v2807_v56 = vpop.f32.mrf.mxu1  ;;  %v3129_v13 = vpop.f32.mrf.mxu0  ;;  %10637 = vmatmul.mubr.msk.f32.gmra.mxu0 %vm127_vm0, %v3930_v12 }
 0x26b   :  { %19747 = vst [vmem:[#allocation62_spill] sm:$0xff] %v14619_v3  ;;  %v14622_v5 = vadd.f32 %v2807_v56, %v2400_v0  ;;  %v14625_v60 = vadd.f32 %v3129_v13, %v14058_v6  ;;  %4209 = vmatprep.mubr.f32.mxu0 %v19573_v51  ;;  %v3932_v13 = vld [vmem:[%s19476_s0 + $0x96] sm:$0xff] }
 0x26c   :  { %v14631_v19 = vpop.f32.mrf.mxu1  ;;  %v3131_v43 = vpop.f32.mrf.mxu0 }
 0x26d   :  { %v14634_v16 = vadd.f32 %v3131_v43, %v14069_v39 }
 0x26e   :  { %v2813_v22 = vpop.f32.mrf.mxu1  ;;  %v3135_v3 = vpop.f32.mrf.mxu0  ;;  %10638 = vmatmul.mubr.msk.f32.gmra.mxu0 %vm127_vm0, %v3931_v59 }
 0x26f   :  { %19748 = vst [vmem:[#allocation60_spill] sm:$0xff] %v14634_v16  ;;  %v14637_v0 = vadd.f32 %v2813_v22, %v2402_v17  ;;  %v14640_v6 = vadd.f32 %v3135_v3, %v14078_v62  ;;  %4215 = vmatprep.mubr.f32.mxu0 %v19573_v51  ;;  %v3933_v3 = vld [vmem:[%s19476_s0 + $0x9e] sm:$0xff] }
 0x270   :  { %v14646_v12 = vpop.f32.mrf.mxu1  ;;  %v3137_v56 = vpop.f32.mrf.mxu0 }
 0x271   :  { %v14649_v39 = vadd.f32 %v3137_v56, %v14089_v54 }
 0x272   :  { %v2819_v43 = vpop.f32.mrf.mxu1  ;;  %v3141_v16 = vpop.f32.mrf.mxu0  ;;  %10639 = vmatmul.mubr.msk.f32.gmra.mxu0 %vm127_vm0, %v3932_v13 }
 0x273   :  { %19749 = vst [vmem:[#allocation12_spill] sm:$0xff] %v14649_v39  ;;  %v14652_v17 = vadd.f32 %v2819_v43, %v2404_v25  ;;  %v14655_v62 = vadd.f32 %v3141_v16, %v14098_v53  ;;  %4221 = vmatprep.mubr.f32.mxu0 %v19573_v51  ;;  %v3934_v16 = vld [vmem:[%s19476_s0 + $0xa6] sm:$0xff] }
 0x274   :  { %v14661_v59 = vpop.f32.mrf.mxu1  ;;  %v3143_v22 = vpop.f32.mrf.mxu0 }
 0x275   :  { %v14664_v54 = vadd.f32 %v3143_v22, %v14109_v20 }
 0x276   :  { %v2825_v56 = vpop.f32.mrf.mxu1  ;;  %v3147_v39 = vpop.f32.mrf.mxu0  ;;  %10640 = vmatmul.mubr.msk.f32.gmra.mxu0 %vm127_vm0, %v3933_v3 }
 0x277   :  { %19750 = vst [vmem:[#allocation13_spill] sm:$0xff] %v14664_v54  ;;  %v14667_v25 = vadd.f32 %v2825_v56, %v2406_v63  ;;  %v14670_v53 = vadd.f32 %v3147_v39, %v14118_v21  ;;  %4227 = vmatprep.mubr.f32.mxu0 %v19573_v51  ;;  %v3935_v39 = vld [vmem:[%s19476_s0 + $0xae] sm:$0xff] }
 0x278   :  { %v14676_v13 = vpop.f32.mrf.mxu1  ;;  %v3149_v43 = vpop.f32.mrf.mxu0 }
 0x279   :  { %v14679_v20 = vadd.f32 %v3149_v43, %v14129_v15 }
 0x27a   :  { %v2831_v22 = vpop.f32.mrf.mxu1  ;;  %v3153_v54 = vpop.f32.mrf.mxu0  ;;  %10641 = vmatmul.mubr.msk.f32.gmra.mxu0 %vm127_vm0, %v3934_v16 }
 0x27b   :  { %19751 = vst [vmem:[#allocation14_spill] sm:$0xff] %v14679_v20  ;;  %v14682_v63 = vadd.f32 %v2831_v22, %v2408_v11  ;;  %v14685_v21 = vadd.f32 %v3153_v54, %v14138_v35  ;;  %4233 = vmatprep.mubr.f32.mxu0 %v19573_v51  ;;  %v3936_v54 = vld [vmem:[%s19476_s0 + $0xb6] sm:$0xff] }
 0x27c   :  { %v14691_v3 = vpop.f32.mrf.mxu1  ;;  %v3155_v56 = vpop.f32.mrf.mxu0 }
 0x27d   :  { %v14694_v15 = vadd.f32 %v3155_v56, %v14149_v41 }
 0x27e   :  { %v2837_v43 = vpop.f32.mrf.mxu1  ;;  %v3159_v20 = vpop.f32.mrf.mxu0  ;;  %10642 = vmatmul.mubr.msk.f32.gmra.mxu0 %vm127_vm0, %v3935_v39 }
 0x27f   :  { %19752 = vst [vmem:[#allocation18_spill] sm:$0xff] %v14694_v15  ;;  %v14697_v11 = vadd.f32 %v2837_v43, %v2410_v23  ;;  %v14700_v35 = vadd.f32 %v3159_v20, %v14158_v45  ;;  %4239 = vmatprep.mubr.f32.mxu0 %v19573_v51  ;;  %v3937_v23 = vld [vmem:[%s19476_s0 + $0xbe] sm:$0xff] }
 0x280   :  { %v14706_v16 = vpop.f32.mrf.mxu1  ;;  %v3161_v22 = vpop.f32.mrf.mxu0 }
 0x281   :  { %19753 = vst [vmem:[#allocation15_spill] sm:$0xff] %v14700_v35  ;;  %v14709_v41 = vadd.f32 %v3161_v22, %v14169_v18 }
 0x282   :  { %v3165_v56 = vpop.f32.mrf.mxu0  ;;  %v14711_v15 = vpop.f32.mrf.mxu1  ;;  %10643 = vmatmul.mubr.msk.f32.gmra.mxu0 %vm127_vm0, %v3936_v54  ;;  %v3938_v54 = vld [vmem:[%s19476_s0 + $0xc6] sm:$0xff] }
 0x283   :  { %19754 = vst [vmem:[#allocation16_spill] sm:$0xff] %v14709_v41  ;;  %v14715_v45 = vadd.f32 %v3165_v56, %v14178_v31  ;;  %4245 = vmatprep.mubr.f32.mxu0 %v19573_v51 }
 0x284   :  { %v3167_v20 = vpop.f32.mrf.mxu0  ;;  %v14721_v39 = vpop.f32.mrf.mxu1 }
 0x285   :  { %19755 = vst [vmem:[#allocation21_spill] sm:$0xff] %v14715_v45  ;;  %v14724_v18 = vadd.f32 %v3167_v20, %v14189_v38 }
 0x286   :  { %v3171_v43 = vpop.f32.mrf.mxu0  ;;  %v14726_v22 = vpop.f32.mrf.mxu1  ;;  %10644 = vmatmul.mubr.msk.f32.gmra.mxu0 %vm127_vm0, %v3937_v23  ;;  %v3939_v23 = vld [vmem:[%s19476_s0 + $0xce] sm:$0xff] }
 0x287   :  { %19756 = vst [vmem:[#allocation17_spill] sm:$0xff] %v14724_v18  ;;  %v14730_v31 = vadd.f32 %v3171_v43, %v14198_v49  ;;  %4251 = vmatprep.mubr.f32.mxu0 %v19573_v51 }
 0x288   :  { %v3173_v56 = vpop.f32.mrf.mxu0  ;;  %v14736_v45 = vpop.f32.mrf.mxu1 }
 0x289   :  { %19757 = vst [vmem:[#allocation19_spill] sm:$0xff] %v14730_v31  ;;  %v14739_v38 = vadd.f32 %v3173_v56, %v14209_v48 }
 0x28a   :  { %v3177_v20 = vpop.f32.mrf.mxu0  ;;  %v14741_v18 = vpop.f32.mrf.mxu1  ;;  %10645 = vmatmul.mubr.msk.f32.gmra.mxu0 %vm127_vm0, %v3938_v54  ;;  %v19761_v54 = vld [vmem:[#allocation32_spill] sm:$0xff] }
 0x28b   :  { %19758 = vst [vmem:[#allocation20_spill] sm:$0xff] %v14739_v38  ;;  %v14745_v49 = vadd.f32 %v3177_v20, %v14218_v29  ;;  %4257 = vmatprep.mubr.f32.mxu0 %v19573_v51  ;;  %v3940_v20 = vld [vmem:[%s19476_s0 + $0xd6] sm:$0xff] }
 0x28c   :  { %v3179_v43 = vpop.f32.mrf.mxu0  ;;  %v14751_v31 = vpop.f32.mrf.mxu1 }
 0x28d   :  { %19759 = vst [vmem:[#allocation22_spill] sm:$0xff] %v14745_v49  ;;  %v14754_v48 = vadd.f32 %v3179_v43, %v14229_v30 }
 0x28e   :  { %v3183_v56 = vpop.f32.mrf.mxu0  ;;  %v14756_v38 = vpop.f32.mrf.mxu1  ;;  %10646 = vmatmul.mubr.msk.f32.gmra.mxu0 %vm127_vm0, %v3939_v23  ;;  %v19764_v23 = vld [vmem:[#allocation36_spill] sm:$0xff] }
 0x28f   :  { %19760 = vst [vmem:[#allocation23_spill] sm:$0xff] %v14754_v48  ;;  %v14760_v29 = vadd.f32 %v3183_v56, %v19761_v54  ;;  %4263 = vmatprep.mubr.f32.mxu0 %v19573_v51  ;;  %v3941_v54 = vld [vmem:[%s19476_s0 + $0xde] sm:$0xff] }
 0x290   :  { %v3185_v49 = vpop.f32.mrf.mxu0  ;;  %v14766_v41 = vpop.f32.mrf.mxu1 }
 0x291   :  { %19762 = vst [vmem:[#allocation27_spill] sm:$0xff] %v14760_v29  ;;  %v14769_v30 = vadd.f32 %v3185_v49, %v14249_v52 }
 0x292   :  { %v3189_v43 = vpop.f32.mrf.mxu0  ;;  %v14771_v48 = vpop.f32.mrf.mxu1  ;;  %10647 = vmatmul.mubr.msk.f32.gmra.mxu0 %vm127_vm0, %v3940_v20 }
 0x293   :  { %19763 = vst [vmem:[#allocation24_spill] sm:$0xff] %v14769_v30  ;;  %v14775_v56 = vadd.f32 %v3189_v43, %v19764_v23  ;;  %4269 = vmatprep.mubr.f32.mxu0 %v19573_v51  ;;  %v3942_v43 = vld [vmem:[%s19476_s0 + $0xe6] sm:$0xff] }
 0x294   :  { %v3191_v29 = vpop.f32.mrf.mxu0  ;;  %v14781_v35 = vpop.f32.mrf.mxu1 }
 0x295   :  { %19765 = vst [vmem:[#allocation25_spill] sm:$0xff] %v14775_v56  ;;  %v14784_v52 = vadd.f32 %v3191_v29, %v14269_v4 }
 0x296   :  { %v3195_v49 = vpop.f32.mrf.mxu0  ;;  %v14786_v30 = vpop.f32.mrf.mxu1  ;;  %10648 = vmatmul.mubr.msk.f32.gmra.mxu0 %vm127_vm0, %v3941_v54  ;;  %v3943_v54 = vld [vmem:[%s19476_s0 + $0xee] sm:$0xff] }
 0x297   :  { %19766 = vst [vmem:[#allocation26_spill] sm:$0xff] %v14784_v52  ;;  %v14790_v20 = vadd.f32 %v3195_v49, %v14278_v2  ;;  %4275 = vmatprep.mubr.f32.mxu0 %v19573_v51 }
 0x298   :  { %v3197_v23 = vpop.f32.mrf.mxu0  ;;  %v14796_v56 = vpop.f32.mrf.mxu1 }
 0x299   :  { %19767 = vst [vmem:[#allocation28_spill] sm:$0xff] %v14790_v20  ;;  %v14799_v4 = vadd.f32 %v3197_v23, %v14289_v14 }
 0x29a   :  { %v3201_v29 = vpop.f32.mrf.mxu0  ;;  %v14801_v52 = vpop.f32.mrf.mxu1  ;;  %10649 = vmatmul.mubr.msk.f32.gmra.mxu0 %vm127_vm0, %v3942_v43  ;;  %v3944_v43 = vld [vmem:[%s19476_s0 + $0xf6] sm:$0xff] }
 0x29b   :  { %19768 = vst [vmem:[#allocation29_spill] sm:$0xff] %v14799_v4  ;;  %v14805_v2 = vadd.f32 %v3201_v29, %v14298_v26  ;;  %4281 = vmatprep.mubr.f32.mxu0 %v19573_v51 }
 0x29c   :  { %v3203_v49 = vpop.f32.mrf.mxu0  ;;  %v14811_v20 = vpop.f32.mrf.mxu1 }
 0x29d   :  { %19769 = vst [vmem:[#allocation30_spill] sm:$0xff] %v14805_v2  ;;  %v14814_v14 = vadd.f32 %v3203_v49, %v14309_v24 }
 0x29e   :  { %v3207_v23 = vpop.f32.mrf.mxu0  ;;  %v14816_v4 = vpop.f32.mrf.mxu1  ;;  %10650 = vmatmul.mubr.msk.f32.gmra.mxu0 %vm127_vm0, %v3943_v54  ;;  %v3945_v54 = vld [vmem:[%s19476_s0 + $0xfe] sm:$0xff] }
 0x29f   :  { %19770 = vst [vmem:[#allocation31_spill] sm:$0xff] %v14814_v14  ;;  %v14820_v26 = vadd.f32 %v3207_v23, %v14318_v1  ;;  %4287 = vmatprep.mubr.f32.mxu0 %v19573_v51 }
 0x2a0   :  { %v3209_v29 = vpop.f32.mrf.mxu0  ;;  %v14826_v2 = vpop.f32.mrf.mxu1 }
 0x2a1   :  { %19771 = vst [vmem:[#allocation6_spill] sm:$0xff] %v14820_v26  ;;  %v14829_v24 = vadd.f32 %v3209_v29, %v14329_v34 }
 0x2a2   :  { %v3213_v49 = vpop.f32.mrf.mxu0  ;;  %v14831_v14 = vpop.f32.mrf.mxu1  ;;  %10651 = vmatmul.mubr.msk.f32.gmra.mxu0 %vm127_vm0, %v3944_v43  ;;  %v19776_v43 = vld [vmem:[#allocation9_spill] sm:$0xff] }
 0x2a3   :  { %19772 = vst [vmem:[#allocation33_spill] sm:$0xff] %v14829_v24  ;;  %19773 = vst [vmem:[#allocation32_spill] sm:$0xff] %v14831_v14  ;;  %v14835_v1 = vadd.f32 %v3213_v49, %v14338_v40  ;;  %4293 = vmatprep.mubr.f32.mxu0 %v19573_v51  ;;  %v3946_v49 = vld [vmem:[%s19476_s0 + $0x106] sm:$0xff] }
 0x2a4   :  { %v3215_v23 = vpop.f32.mrf.mxu0  ;;  %v14841_v26 = vpop.f32.mrf.mxu1 }
 0x2a5   :  { %19774 = vst [vmem:[#allocation36_spill] sm:$0xff] %v14835_v1  ;;  %v14844_v34 = vadd.f32 %v3215_v23, %v14352_v27 }
 0x2a6   :  { %v3219_v29 = vpop.f32.mrf.mxu0  ;;  %v14846_v24 = vpop.f32.mrf.mxu1  ;;  %10652 = vmatmul.mubr.msk.f32.gmra.mxu0 %vm127_vm0, %v3945_v54 }
 0x2a7   :  { %19775 = vst [vmem:[#allocation63_spill] sm:$0xff] %v14844_v34  ;;  %v14850_v40 = vadd.f32 %v3219_v29, %v19776_v43  ;;  %4299 = vmatprep.mubr.f32.mxu0 %v19573_v51  ;;  %v3947_v29 = vld [vmem:[%s19476_s0 + $0x10e] sm:$0xff] }
 0x2a8   :  { %v3221_v1 = vpop.f32.mrf.mxu0  ;;  %v14856_v14 = vpop.f32.mrf.mxu1 }
 0x2a9   :  { %19777 = vst [vmem:[#allocation9_spill] sm:$0xff] %v14850_v40  ;;  %v14859_v27 = vadd.f32 %v3221_v1, %v14374_v10 }
 0x2aa   :  { %v3225_v23 = vpop.f32.mrf.mxu0  ;;  %v14861_v34 = vpop.f32.mrf.mxu1  ;;  %10653 = vmatmul.mubr.msk.f32.gmra.mxu0 %vm127_vm0, %v3946_v49 }
 0x2ab   :  { %19778 = vst [vmem:[#allocation64_spill] sm:$0xff] %v14859_v27  ;;  %v14865_v54 = vadd.f32 %v3225_v23, %v14382_v28  ;;  %4305 = vmatprep.mubr.f32.mxu0 %v19573_v51  ;;  %v19783_v27 = vld [vmem:[#allocation11_spill] sm:$0xff]  ;;  %v3948_v28 = vld [vmem:[%s19476_s0 + $0x116] sm:$0xff] }
 0x2ac   :  { %v14871_v43 = vpop.f32.mrf.mxu0  ;;  %v14873_v40 = vpop.f32.mrf.mxu1 }
 0x2ad   :  { %19779 = vst [vmem:[#allocation65_spill] sm:$0xff] %v14865_v54  ;;  %19780 = vst [vmem:[#allocation66_spill] sm:$0xff] %v14871_v43 }
 0x2ae   :  { %19781 = vst [vmem:[#allocation67_spill] sm:$0xff] %v14873_v40  ;;  %v3231_v10 = vpop.f32.mrf.mxu0  ;;  %v14875_v1 = vpop.f32.mrf.mxu1  ;;  %10654 = vmatmul.mubr.msk.f32.gmra.mxu0 %vm127_vm0, %v3947_v29 }
 0x2af   :  { %19782 = vst [vmem:[#allocation68_spill] sm:$0xff] %v14875_v1  ;;  %v14879_v49 = vadd.f32 %v3231_v10, %v19783_v27  ;;  %4311 = vmatprep.mubr.f32.mxu0 %v19573_v51  ;;  %v19788_v1 = vld [vmem:[#allocation42_spill] sm:$0xff] }
 0x2b0   :  { %v14885_v23 = vpop.f32.mrf.mxu0  ;;  %v14887_v54 = vpop.f32.mrf.mxu1  ;;  %v3949_v27 = vld [vmem:[%s19476_s0 + $0x11e] sm:$0xff] }
 0x2b1   :  { %19784 = vst [vmem:[#allocation11_spill] sm:$0xff] %v14879_v49  ;;  %19785 = vst [vmem:[#allocation69_spill] sm:$0xff] %v14885_v23 }
 0x2b2   :  { %19786 = vst [vmem:[#allocation70_spill] sm:$0xff] %v14887_v54  ;;  %v3237_v43 = vpop.f32.mrf.mxu0  ;;  %v14889_v40 = vpop.f32.mrf.mxu1  ;;  %10655 = vmatmul.mubr.msk.f32.gmra.mxu0 %vm127_vm0, %v3948_v28 }
 0x2b3   :  { %19787 = vst [vmem:[#allocation71_spill] sm:$0xff] %v14889_v40  ;;  %v14893_v29 = vadd.f32 %v3237_v43, %v19788_v1  ;;  %4317 = vmatprep.mubr.f32.mxu0 %v19573_v51  ;;  %v19793_v40 = vld [vmem:[#allocation45_spill] sm:$0xff]  ;;  %v3950_v43 = vld [vmem:[%s19476_s0 + $0x126] sm:$0xff] }
 0x2b4   :  { %v14899_v10 = vpop.f32.mrf.mxu0  ;;  %v14901_v49 = vpop.f32.mrf.mxu1 }
 0x2b5   :  { %19789 = vst [vmem:[#allocation42_spill] sm:$0xff] %v14893_v29  ;;  %19790 = vst [vmem:[#allocation72_spill] sm:$0xff] %v14899_v10 }
 0x2b6   :  { %19791 = vst [vmem:[#allocation73_spill] sm:$0xff] %v14901_v49  ;;  %v3243_v23 = vpop.f32.mrf.mxu0  ;;  %v14903_v54 = vpop.f32.mrf.mxu1  ;;  %10656 = vmatmul.mubr.msk.f32.gmra.mxu0 %vm127_vm0, %v3949_v27 }
 0x2b7   :  { %19792 = vst [vmem:[#allocation74_spill] sm:$0xff] %v14903_v54  ;;  %v14907_v28 = vadd.f32 %v3243_v23, %v19793_v40  ;;  %4323 = vmatprep.mubr.f32.mxu0 %v19573_v51  ;;  %v19797_v54 = vld [vmem:[#allocation48_spill] sm:$0xff] }
 0x2b8   :  { %v14913_v1 = vpop.f32.mrf.mxu0  ;;  %v14915_v29 = vpop.f32.mrf.mxu1  ;;  %v3951_v40 = vld [vmem:[%s19476_s0 + $0x12e] sm:$0xff] }
 0x2b9   :  { %19794 = vst [vmem:[#allocation45_spill] sm:$0xff] %v14907_v28  ;;  %19795 = vst [vmem:[#allocation75_spill] sm:$0xff] %v14913_v1 }
 0x2ba   :  { %19796 = vst [vmem:[#allocation76_spill] sm:$0xff] %v14915_v29  ;;  %v3249_v10 = vpop.f32.mrf.mxu0  ;;  %v14917_v49 = vpop.f32.mrf.mxu1  ;;  %10657 = vmatmul.mubr.msk.f32.gmra.mxu0 %vm127_vm0, %v3950_v43 }
 0x2bb   :  { %v14921_v27 = vadd.f32 %v3249_v10, %v19797_v54  ;;  %4329 = vmatprep.mubr.f32.mxu0 %v19573_v51  ;;  %v3952_v54 = vld [vmem:[%s19476_s0 + $0x136] sm:$0xff] }
 0x2bc   :  { %v14927_v23 = vpop.f32.mrf.mxu0  ;;  %v14929_v28 = vpop.f32.mrf.mxu1 }
 0x2bd   :  { %19798 = vst [vmem:[#allocation48_spill] sm:$0xff] %v14921_v27  ;;  %19799 = vst [vmem:[#allocation77_spill] sm:$0xff] %v14927_v23 }
 0x2be   :  { %19800 = vst [vmem:[#allocation78_spill] sm:$0xff] %v14929_v28  ;;  %v3255_v1 = vpop.f32.mrf.mxu0  ;;  %v14931_v29 = vpop.f32.mrf.mxu1  ;;  %10658 = vmatmul.mubr.msk.f32.gmra.mxu0 %vm127_vm0, %v3951_v40 }
 0x2bf   :  { %19801 = vst [vmem:[#allocation79_spill] sm:$0xff] %v14931_v29  ;;  %v14935_v43 = vadd.f32 %v3255_v1, %v14487_v44  ;;  %4335 = vmatprep.mubr.f32.mxu0 %v19573_v51  ;;  %v3953_v44 = vld [vmem:[%s19476_s0 + $0x13e] sm:$0x3f] }
 0x2c0   :  { %v14941_v10 = vpop.f32.mrf.mxu0  ;;  %v14943_v27 = vpop.f32.mrf.mxu1 }
 0x2c1   :  { %19802 = vst [vmem:[#allocation80_spill] sm:$0xff] %v14935_v43  ;;  %19803 = vst [vmem:[#allocation81_spill] sm:$0xff] %v14941_v10 }
 0x2c2   :  { %19804 = vst [vmem:[#allocation82_spill] sm:$0xff] %v14943_v27  ;;  %v3261_v23 = vpop.f32.mrf.mxu0  ;;  %v14945_v28 = vpop.f32.mrf.mxu1  ;;  %10659 = vmatmul.mubr.msk.f32.gmra.mxu0 %vm127_vm0, %v3952_v54 }
 0x2c3   :  { %19805 = vst [vmem:[#allocation83_spill] sm:$0xff] %v14945_v28  ;;  %v14949_v40 = vadd.f32 %v3261_v23, %v14508_v8  ;;  %4341 = vmatprep.mubr.f32.mxu0 %v19573_v51 }
 0x2c4   :  { %v14955_v1 = vpop.f32.mrf.mxu0  ;;  %v14957_v43 = vpop.f32.mrf.mxu1 }
 0x2c5   :  { %19806 = vst [vmem:[#allocation84_spill] sm:$0xff] %v14949_v40  ;;  %19807 = vst [vmem:[#allocation85_spill] sm:$0xff] %v14955_v1 }
 0x2c6   :  { %19808 = vst [vmem:[#allocation86_spill] sm:$0xff] %v14957_v43  ;;  %v3267_v10 = vpop.f32.mrf.mxu0  ;;  %v14959_v27 = vpop.f32.mrf.mxu1  ;;  %10660 = vmatmul.mubr.msk.f32.gmra.mxu0 %vm127_vm0, %v3953_v44 }
 0x2c7   :  { %19809 = vst [vmem:[#allocation87_spill] sm:$0xff] %v14959_v27  ;;  %v14963_v54 = vadd.f32 %v3267_v10, %v14527_v37 }
 0x2c8   :  { %v14965_v8 = vpop.f32.mrf.mxu0  ;;  %v14967_v23 = vpop.f32.mrf.mxu1 }
 0x2c9   :  { %19810 = vst [vmem:[#allocation88_spill] sm:$0xff] %v14963_v54  ;;  %19811 = vst [vmem:[#allocation89_spill] sm:$0xff] %v14967_v23 }
 0x2ca   :  { %v3273_v51 = vpop.f32.mrf.mxu0  ;;  %v14969_v40 = vpop.f32.mrf.mxu1 }
 0x2cb   :  { %v14972_v28 = vadd.f32 %v3273_v51, %v14541_v33 }
 0x2cc   :  { %v14974_v1 = vpop.f32.mrf.mxu0  ;;  %v14976_v43 = vpop.f32.mrf.mxu1 }
 0x2cd   :  { %19812 = vst [vmem:[#allocation90_spill] sm:$0xff] %v14972_v28  ;;  %19813 = vst [vmem:[#allocation91_spill] sm:$0xff] %v14974_v1 }
 0x2ce   :  { %19814 = vst [vmem:[#allocation92_spill] sm:$0xff] %v14976_v43  ;;  %v3279_v27 = vpop.f32.mrf.mxu0  ;;  %v14978_v29 = vpop.f32.mrf.mxu1 }
 0x2cf   :  { %19815 = vst [vmem:[#allocation93_spill] sm:$0xff] %v14978_v29  ;;  %v14981_v37 = vadd.f32 %v3279_v27, %v14555_v46 }
 0x2d0   :  { %v14983_v10 = vpop.f32.mrf.mxu0  ;;  %v14985_v44 = vpop.f32.mrf.mxu1 }
 0x2d1   :  { %19816 = vst [vmem:[#allocation94_spill] sm:$0xff] %v14981_v37  ;;  %19817 = vst [vmem:[#allocation95_spill] sm:$0xff] %v14983_v10 }
 0x2d2   :  { %19818 = vst [vmem:[#allocation96_spill] sm:$0xff] %v14985_v44  ;;  %v3285_v54 = vpop.f32.mrf.mxu0  ;;  %v14987_v23 = vpop.f32.mrf.mxu1 }
 0x2d3   :  { %19819 = vst [vmem:[#allocation97_spill] sm:$0xff] %v14987_v23  ;;  %v14990_v51 = vadd.f32 %v3285_v54, %v14569_v7 }
 0x2d4   :  { %v14992_v33 = vpop.f32.mrf.mxu0  ;;  %v14994_v28 = vpop.f32.mrf.mxu1 }
 0x2d5   :  { %19820 = vst [vmem:[#allocation98_spill] sm:$0xff] %v14990_v51  ;;  %19821 = vst [vmem:[#allocation99_spill] sm:$0xff] %v14992_v33 }
 0x2d6   :  { %19822 = vst [vmem:[#allocation100_spill] sm:$0xff] %v14994_v28  ;;  %v3291_v43 = vpop.f32.mrf.mxu0  ;;  %v14996_v1 = vpop.f32.mrf.mxu1 }
 0x2d7   :  { %19823 = vst [vmem:[#allocation101_spill] sm:$0xff] %v14996_v1  ;;  %v14999_v46 = vadd.f32 %v3291_v43, %v14583_v61 }
 0x2d8   :  { %v15001_v27 = vpop.f32.mrf.mxu0  ;;  %v15003_v37 = vpop.f32.mrf.mxu1 }
 0x2d9   :  { %19824 = vst [vmem:[#allocation102_spill] sm:$0xff] %v14999_v46  ;;  %19825 = vst [vmem:[#allocation103_spill] sm:$0xff] %v15001_v27 }
 0x2da   :  { %19826 = vst [vmem:[#allocation104_spill] sm:$0xff] %v15003_v37  ;;  %v3297_v44 = vpop.f32.mrf.mxu0  ;;  %v15005_v10 = vpop.f32.mrf.mxu1 }
 0x2db   :  { %19827 = vst [vmem:[#allocation105_spill] sm:$0xff] %v15005_v10  ;;  %v15008_v7 = vadd.f32 %v3297_v44, %v14597_v55  ;;  %v19858_v10 = vld [vmem:[#allocation39_spill] sm:$0xff] }
 0x2dc   :  { %v15010_v54 = vpop.f32.mrf.mxu0  ;;  %v15012_v51 = vpop.f32.mrf.mxu1 }
 0x2dd   :  { %19828 = vst [vmem:[#allocation106_spill] sm:$0xff] %v15008_v7  ;;  %19829 = vst [vmem:[#allocation107_spill] sm:$0xff] %v15010_v54 }
 0x2de   :  { %19830 = vst [vmem:[#allocation108_spill] sm:$0xff] %v15012_v51  ;;  %v3303_v28 = vpop.f32.mrf.mxu0  ;;  %v15014_v33 = vpop.f32.mrf.mxu1 }
 0x2df   :  { %19831 = vst [vmem:[#allocation109_spill] sm:$0xff] %v15014_v33  ;;  %v15017_v61 = vadd.f32 %v3303_v28, %v14610_v9 }
 0x2e0   :  { %v15019_v43 = vpop.f32.mrf.mxu0  ;;  %v15021_v46 = vpop.f32.mrf.mxu1 }
 0x2e1   :  { %19832 = vst [vmem:[#allocation110_spill] sm:$0xff] %v15017_v61  ;;  %19833 = vst [vmem:[#allocation111_spill] sm:$0xff] %v15019_v43 }
 0x2e2   :  { %19834 = vst [vmem:[#allocation112_spill] sm:$0xff] %v15021_v46  ;;  %v3309_v37 = vpop.f32.mrf.mxu0  ;;  %v15023_v27 = vpop.f32.mrf.mxu1  ;;  %v4422_v46 = vlaneseq }
 0x2e3   :  { %19835 = vst [vmem:[#allocation113_spill] sm:$0xff] %v15023_v27  ;;  %v15026_v55 = vadd.f32 %v3309_v37, %v14622_v5 }
 0x2e4   :  { %v15028_v44 = vpop.f32.mrf.mxu0  ;;  %v15030_v7 = vpop.f32.mrf.mxu1 }
 0x2e5   :  { %19836 = vst [vmem:[#allocation114_spill] sm:$0xff] %v15026_v55  ;;  %19837 = vst [vmem:[#allocation115_spill] sm:$0xff] %v15028_v44  ;;  %v19852_v44 = vld [vmem:[#allocation40_spill] sm:$0xff] }
 0x2e6   :  { %19838 = vst [vmem:[#allocation116_spill] sm:$0xff] %v15030_v7  ;;  %v3315_v51 = vpop.f32.mrf.mxu0  ;;  %v15032_v54 = vpop.f32.mrf.mxu1  ;;  %v15050_v7 = vshrl.u32 %v4422_v46, 7  ;;  %v19857_v46 = vld [vmem:[#allocation46_spill] sm:$0xff] }
 0x2e7   :  { %19839 = vst [vmem:[#allocation117_spill] sm:$0xff] %v15032_v54  ;;  %v15035_v9 = vadd.f32 %v3315_v51, %v14637_v0  ;;  %v19849_v51 = vld [vmem:[#allocation7_spill] sm:$0xff] }
 0x2e8   :  { %v15037_v28 = vpop.f32.mrf.mxu0  ;;  %v15039_v61 = vpop.f32.mrf.mxu1  ;;  %19847 = vst [vmem:[#allocation125_spill] sm:$0xff] %v15050_v7 }
 0x2e9   :  { %19840 = vst [vmem:[#allocation118_spill] sm:$0xff] %v15035_v9  ;;  %19841 = vst [vmem:[#allocation119_spill] sm:$0xff] %v15037_v28  ;;  %v19850_v9 = vld [vmem:[#allocation10_spill] sm:$0xff] }
 0x2ea   :  { %19842 = vst [vmem:[#allocation120_spill] sm:$0xff] %v15039_v61  ;;  %v3321_v43 = vpop.f32.mrf.mxu0  ;;  %v15041_v27 = vpop.f32.mrf.mxu1  ;;  %v2875_v28 = vadd.f32 %v19850_v9, %v19849_v51  ;;  %v19851_v61 = vld [vmem:[#allocation34_spill] sm:$0xff] }
 0x2eb   :  { %19843 = vst [vmem:[#allocation121_spill] sm:$0xff] %v15041_v27  ;;  %v15044_v5 = vadd.f32 %v3321_v43, %v14652_v17  ;;  %v15058_v33 = vadd.f32 %v19852_v44, %v19851_v61  ;;  %v19854_v17 = vld [vmem:[#allocation8_spill] sm:$0xff]  ;;  %v19855_v43 = vld [vmem:[#allocation43_spill] sm:$0xff] }
 0x2ec   :  { %v15046_v37 = vpop.f32.mrf.mxu0  ;;  %v15048_v55 = vpop.f32.mrf.mxu1 }
 0x2ed   :  { %19844 = vst [vmem:[#allocation122_spill] sm:$0xff] %v15044_v5  ;;  %19845 = vst [vmem:[#allocation123_spill] sm:$0xff] %v15046_v37  ;;  %v15065_v5 = vadd.f32 %v19855_v43, %v19854_v17  ;;  %v19864_v17 = vld [vmem:[#allocation38_spill] sm:$0xff]  ;;  %v19865_v43 = vld [vmem:[#allocation53_spill] sm:$0xff] }
 0x2ee   :  { %19846 = vst [vmem:[#allocation124_spill] sm:$0xff] %v15048_v55  ;;  %v3327_v54 = vpop.f32.mrf.mxu0  ;;  %v15052_v0 = vpop.f32.mrf.mxu1  ;;  %v19856_v55 = vld [vmem:[#allocation35_spill] sm:$0xff] }
 0x2ef   :  { %19848 = vst [vmem:[#allocation126_spill] sm:$0xff] %v15052_v0  ;;  %v15061_v27 = vadd.f32 %v3327_v54, %v14667_v25  ;;  %v15069_v37 = vadd.f32 %v19857_v46, %v19856_v55  ;;  %v19859_v0 = vld [vmem:[#allocation49_spill] sm:$0xff]  ;;  %v19863_v54 = vld [vmem:[#allocation51_spill] sm:$0xff] }
 0x2f0   :  { %v15073_v1 = vadd.f32 %v19859_v0, %v19858_v10  ;;  %v15075_v9 = vpop.f32.mrf.mxu0  ;;  %v15077_v51 = vpop.f32.mrf.mxu1  ;;  %v19862_v25 = vld [vmem:[#allocation37_spill] sm:$0xff]  ;;  %v19872_v0 = vld [vmem:[#allocation54_spill] sm:$0xff] }
 0x2f1   :  { %19853 = vst [vmem:[#allocation7_spill] sm:$0xff] %v15061_v27  ;;  %19860 = vst [vmem:[#allocation10_spill] sm:$0xff] %v15075_v9  ;;  %v15082_v44 = vadd.f32 %v19863_v54, %v19862_v25  ;;  %v15086_v27 = vadd.f32 %v19865_v43, %v19864_v17  ;;  %v19866_v55 = vld [vmem:[#allocation41_spill] sm:$0xff]  ;;  %v19868_v25 = vld [vmem:[#allocation47_spill] sm:$0xff]  ;;  %v15116_v29 = vadd.f32 %v14603_v50, %v19872_v0 }
 0x2f2   :  { %19861 = vst [vmem:[#allocation34_spill] sm:$0xff] %v15077_v51  ;;  %v15090_v46 = vadd.f32 %v14533_v32, %v19866_v55  ;;  %v4420_v10 = vld [vmem:[%s19477_s2] sm:$0x3]  ;;  %v19867_v51 = vld [vmem:[#allocation44_spill] sm:$0xff]  ;;  %v15102_v54 = vadd.f32 %v14561_v58, %v19868_v25  ;;  %v3333_v9 = vpop.f32.mrf.mxu0  ;;  %v15112_v23 = vpop.f32.mrf.mxu1  ;;  %v19874_v58 = vld [vmem:[#allocation55_spill] sm:$0xff] }
 0x2f3   :  { %v15098_v61 = vadd.f32 %v14547_v42, %v19867_v51  ;;  %v19869_v17 = vld [vmem:[#allocation50_spill] sm:$0xff]  ;;  %v19870_v32 = vld [vmem:[#allocation52_spill] sm:$0xff]  ;;  %19871 = vst [vmem:[#allocation40_spill] sm:$0xff] %v15112_v23  ;;  %v15124_v25 = vadd.f32 %v14631_v19, %v19874_v58  ;;  %v19878_v50 = vld [vmem:[#allocation57_spill] sm:$0xff]  ;;  %v19880_v19 = vsub.s32 0, %v15050_v7 }
 0x2f4   :  { %v15106_v43 = vadd.f32 %v14575_v36, %v19869_v17  ;;  %v15110_v55 = vadd.f32 %v14589_v57, %v19870_v32  ;;  %v19873_v42 = vld [vmem:[#allocation58_spill] sm:$0xff]  ;;  %v15127_v36 = vadd.f32 %v3333_v9, %v14682_v63  ;;  %v19876_v57 = vld [vmem:[#allocation56_spill] sm:$0xff]  ;;  %v19877_v32 = vld [vmem:[#allocation61_spill] sm:$0xff]  ;;  %v15139_v0 = vadd.f32 %v14676_v13, %v19878_v50 }
 0x2f5   :  { %v15120_v51 = vadd.f32 %v14616_v47, %v19873_v42  ;;  %v15131_v17 = vadd.f32 %v14646_v12, %v19876_v57  ;;  %v15135_v23 = vadd.f32 %v14661_v59, %v19877_v32  ;;  %v15141_v47 = vpop.f32.mrf.mxu0  ;;  %v15143_v42 = vpop.f32.mrf.mxu1  ;;  %v15147_v63 = vrot.slane %v4420_v10, %v19880_v19  ;;  %v19881_v9 = vld [vmem:[#allocation59_spill] sm:$0xff]  ;;  %v19882_v58 = vld [vmem:[#allocation62_spill] sm:$0xff]  ;;  %v19884_v50 = vld [vmem:[#allocation60_spill] sm:$0xff] }
 0x2f6   :  { %19875 = vst [vmem:[#allocation8_spill] sm:$0xff] %v15127_v36  ;;  %19879 = vst [vmem:[#allocation43_spill] sm:$0xff] %v15143_v42  ;;  %v15151_v12 = vadd.f32 %v14691_v3, %v19881_v9  ;;  %v15155_v59 = vadd.f32 %v14706_v16, %v19882_v58  ;;  %v3846_v13 = vadd.f32 %v14711_v15, %v14625_v60  ;;  %v19883_v57 = vsub.s32 1, %v15050_v7  ;;  %v19885_v42 = vld [vmem:[#allocation12_spill] sm:$0xff]  ;;  %v19886_v60 = vld [vmem:[#allocation13_spill] sm:$0xff] }
 0x2f7   :  { %v3847_v36 = vadd.f32 %v14721_v39, %v19884_v50  ;;  %v3848_v19 = vadd.f32 %v14726_v22, %v14640_v6  ;;  %v3849_v3 = vadd.f32 %v14736_v45, %v19885_v42  ;;  %v15171_v16 = vadd.f32 %v14741_v18, %v14655_v62  ;;  %v3339_v9 = vpop.f32.mrf.mxu0  ;;  %v15173_v58 = vpop.f32.mrf.mxu1  ;;  %v19889_v18 = vld [vmem:[#allocation18_spill] sm:$0xff]  ;;  %v19894_v50 = vld [vmem:[#allocation19_spill] sm:$0xff] }
 0x2f8   :  { %v15161_v32 = vrot.slane %v4420_v10, %v19883_v57  ;;  %v15177_v15 = vadd.f32 %v14751_v31, %v19886_v60  ;;  %v15181_v39 = vadd.f32 %v14756_v38, %v14670_v53  ;;  %v19887_v10 = vld [vmem:[#allocation14_spill] sm:$0xff]  ;;  %v15188_v45 = vadd.f32 %v3339_v9, %v14697_v11  ;;  %v19890_v31 = vld [vmem:[#allocation15_spill] sm:$0xff]  ;;  %v19891_v53 = vld [vmem:[#allocation16_spill] sm:$0xff] }
 0x2f9   :  { %v15185_v6 = vadd.f32 %v14766_v41, %v19887_v10  ;;  %v15192_v62 = vadd.f32 %v14771_v48, %v14685_v21  ;;  %v15196_v22 = vadd.f32 %v14781_v35, %v19889_v18  ;;  %v15200_v42 = vadd.f32 %v14786_v30, %v19890_v31  ;;  %v15206_v41 = vpop.f32.mrf.mxu0  ;;  %v15208_v11 = vpop.f32.mrf.mxu1  ;;  %v19892_v57 = vld [vmem:[#allocation21_spill] sm:$0xff]  ;;  %v19895_v9 = vld [vmem:[#allocation20_spill] sm:$0xff]  ;;  %v19896_v60 = vld [vmem:[#allocation22_spill] sm:$0xff] }
 0x2fa   :  { %19888 = vst [vmem:[#allocation35_spill] sm:$0xff] %v15188_v45  ;;  %v15204_v38 = vadd.f32 %v14796_v56, %v19891_v53  ;;  %v15212_v21 = vadd.f32 %v14801_v52, %v19892_v57  ;;  %v19893_v48 = vld [vmem:[#allocation17_spill] sm:$0xff]  ;;  %v15220_v30 = vadd.f32 %v14816_v4, %v19894_v50  ;;  %v15224_v56 = vadd.f32 %v14826_v2, %v19895_v9  ;;  %v19897_v10 = vld [vmem:[#allocation32_spill] sm:$0xff]  ;;  %v19899_v31 = vld [vmem:[#allocation23_spill] sm:$0xff] }
 0x2fb   :  { %v15216_v35 = vadd.f32 %v14811_v20, %v19893_v48  ;;  %v15228_v18 = vadd.f32 %v19897_v10, %v19896_v60  ;;  %v15232_v52 = vadd.f32 %v14841_v26, %v19899_v31  ;;  %v19901_v53 = vld [vmem:[#allocation27_spill] sm:$0xff]  ;;  %v19903_v57 = vld [vmem:[#allocation24_spill] sm:$0xff]  ;;  %v15242_v48 = vpop.f32.mrf.mxu1  ;;  %v4133_v2 = vpop.f32.mrf.mxu0  ;;  %v19905_v50 = vld [vmem:[#allocation25_spill] sm:$0xff] }
 0x2fc   :  { %v15236_v20 = vadd.f32 %v14846_v24, %v19901_v53  ;;  %v15240_v4 = vadd.f32 %v14856_v14, %v19903_v57  ;;  %v15246_v9 = vadd.f32 %v14861_v34, %v19905_v50  ;;  %v19907_v60 = vld [vmem:[#allocation66_spill] sm:$0xff]  ;;  %v19909_v26 = vld [vmem:[#allocation67_spill] sm:$0xff]  ;;  %v4348_v45 = vadd.f32 %v4133_v2, %v3846_v13  ;;  %v19911_v24 = vld [vmem:[#allocation28_spill] sm:$0xff] }
 0x2fd   :  { %19898 = vst [vmem:[#allocation46_spill] sm:$0xff] %v15228_v18  ;;  %19900 = vst [vmem:[#allocation39_spill] sm:$0xff] %v15232_v52  ;;  %v3377_v10 = vadd.f32 %v19907_v60, %v2875_v28  ;;  %v19908_v7 = vld [vmem:[#allocation26_spill] sm:$0xff]  ;;  %v19912_v53 = vld [vmem:[#allocation68_spill] sm:$0xff]  ;;  %v15267_v28 = vpop.f32.mrf.mxu1 }
 0x2fe   :  { %19902 = vst [vmem:[#allocation49_spill] sm:$0xff] %v15236_v20  ;;  %19904 = vst [vmem:[#allocation37_spill] sm:$0xff] %v15240_v4  ;;  %v15251_v31 = vadd.f32 %v19909_v26, %v19908_v7  ;;  %v15255_v20 = vadd.f32 %v19912_v53, %v19911_v24  ;;  %v19914_v14 = vld [vmem:[#allocation69_spill] sm:$0xff]  ;;  %v19916_v52 = vld [vmem:[#allocation70_spill] sm:$0xff]  ;;  %v4135_v7 = vpop.f32.mrf.mxu0 }
 0x2ff   :  { %19906 = vst [vmem:[#allocation51_spill] sm:$0xff] %v15246_v9  ;;  %v3379_v57 = vadd.f32 %v19914_v14, %v15058_v33  ;;  %v19915_v4 = vld [vmem:[#allocation29_spill] sm:$0xff]  ;;  %v19918_v34 = vld [vmem:[#allocation30_spill] sm:$0xff]  ;;  %v19919_v50 = vld [vmem:[#allocation71_spill] sm:$0xff]  ;;  %v4432_v33 = vadd.f32 %v15147_v63, %v4348_v45  ;;  %v4349_v53 = vadd.f32 %v4135_v7, %v3847_v36 }
 0x300   :  { %19910 = vst [vmem:[#allocation38_spill] sm:$0xff] %v15251_v31  ;;  %19913 = vst [vmem:[#allocation53_spill] sm:$0xff] %v15255_v20  ;;  %v15261_v18 = vadd.f32 %v19916_v52, %v19915_v4  ;;  %v15265_v9 = vadd.f32 %v19919_v50, %v19918_v34  ;;  %v19921_v13 = vld [vmem:[#allocation72_spill] sm:$0xff]  ;;  %v19922_v60 = vld [vmem:[#allocation31_spill] sm:$0xff] }
 0x301   :  { %v3381_v2 = vadd.f32 %v19921_v13, %v15065_v5  ;;  %v19923_v26 = vld [vmem:[#allocation73_spill] sm:$0xff]  ;;  %v19925_v14 = vld [vmem:[#allocation6_spill] sm:$0xff]  ;;  %v19928_v34 = vld [vmem:[#allocation75_spill] sm:$0xff]  ;;  %v15290_v13 = vpop.f32.mrf.mxu1  ;;  %v4504_v7 = vmax.f32 %v4432_v33, 0.0 }
 0x302   :  { %19917 = vst [vmem:[#allocation41_spill] sm:$0xff] %v15261_v18  ;;  %19920 = vst [vmem:[#allocation44_spill] sm:$0xff] %v15265_v9  ;;  %v15273_v24 = vadd.f32 %v19923_v26, %v19922_v60  ;;  %v19926_v52 = vld [vmem:[#allocation74_spill] sm:$0xff]  ;;  %v3383_v50 = vadd.f32 %v19928_v34, %v15069_v37  ;;  %v19929_v9 = vld [vmem:[#allocation33_spill] sm:$0xff]  ;;  %v4139_v60 = vpop.f32.mrf.mxu0  ;;  %v4433_v26 = vadd.f32 %v15161_v32, %v4349_v53 }
 0x303   :  { %v15278_v4 = vadd.f32 %v19926_v52, %v19925_v14  ;;  %v19930_v18 = vld [vmem:[#allocation76_spill] sm:$0xff]  ;;  %v19934_v36 = vld [vmem:[#allocation77_spill] sm:$0xff]  ;;  %v4350_v14 = vadd.f32 %v4139_v60, %v3848_v19  ;;  %v19935_v52 = vld [vmem:[#allocation63_spill] sm:$0xff]  ;;  %4576 = vst [vmem:[#allocation2 + $0xc8] sm:$0xff] %v4504_v7 }
 0x304   :  { %19924 = vst [vmem:[#allocation47_spill] sm:$0xff] %v15273_v24  ;;  %v15284_v20 = vadd.f32 %v19930_v18, %v19929_v9  ;;  %v19932_v31 = vld [vmem:[#allocation36_spill] sm:$0xff]  ;;  %v3385_v45 = vadd.f32 %v19934_v36, %v15073_v1  ;;  %v19936_v37 = vld [vmem:[#allocation78_spill] sm:$0xff]  ;;  %v19937_v18 = vld [vmem:[#allocation9_spill] sm:$0xff]  ;;  %v15309_v1 = vpop.f32.mrf.mxu1  ;;  %v4141_v33 = vpop.f32.mrf.mxu0  ;;  %v4505_v36 = vmax.f32 %v4433_v26, 0.0 }
 0x305   :  { %19927 = vst [vmem:[#allocation50_spill] sm:$0xff] %v15278_v4  ;;  %v15288_v5 = vadd.f32 %v14917_v49, %v19932_v31  ;;  %v15297_v34 = vadd.f32 %v19936_v37, %v19935_v52  ;;  %v19938_v9 = vld [vmem:[#allocation79_spill] sm:$0xff]  ;;  %v19940_v49 = vld [vmem:[#allocation81_spill] sm:$0xff]  ;;  %v19942_v4 = vld [vmem:[#allocation82_spill] sm:$0xff]  ;;  %v4434_v52 = vadd.f32 %v15147_v63, %v4350_v14  ;;  %v4351_v37 = vadd.f32 %v4141_v33, %v3849_v3 }
 0x306   :  { %19931 = vst [vmem:[#allocation52_spill] sm:$0xff] %v15284_v20  ;;  %v15301_v20 = vadd.f32 %v19938_v9, %v19937_v18  ;;  %v3387_v31 = vadd.f32 %v19940_v49, %v15082_v44  ;;  %v19944_v53 = vld [vmem:[#allocation65_spill] sm:$0xff]  ;;  %v19945_v19 = vld [vmem:[#allocation83_spill] sm:$0xff]  ;;  %v19947_v44 = vld [vmem:[#allocation86_spill] sm:$0xff]  ;;  %v15331_v14 = vpop.f32.mrf.mxu1 }
 0x307   :  { %19933 = vst [vmem:[#allocation54_spill] sm:$0xff] %v15288_v5  ;;  %v19941_v5 = vld [vmem:[#allocation64_spill] sm:$0xff]  ;;  %v15313_v60 = vadd.f32 %v19945_v19, %v19944_v53  ;;  %v19946_v18 = vld [vmem:[#allocation85_spill] sm:$0xff]  ;;  %v15319_v49 = vadd.f32 %v19947_v44, %v3377_v10  ;;  %v4145_v53 = vpop.f32.mrf.mxu0  ;;  %4577 = vst [vmem:[#allocation2 + $0x8] sm:$0xff] %v4505_v36  ;;  %v4506_v26 = vmax.f32 %v4434_v52, 0.0  ;;  %v4435_v3 = vadd.f32 %v15161_v32, %v4351_v37 }
 0x308   :  { %19939 = vst [vmem:[#allocation58_spill] sm:$0xff] %v15301_v20  ;;  %v15307_v24 = vadd.f32 %v19942_v4, %v19941_v5  ;;  %v3389_v9 = vadd.f32 %v19946_v18, %v15086_v27  ;;  %v19948_v4 = vld [vmem:[#allocation11_spill] sm:$0xff]  ;;  %v3391_v20 = vadd.f32 %v14965_v8, %v15090_v46  ;;  %v19950_v19 = vld [vmem:[#allocation89_spill] sm:$0xff]  ;;  %v4352_v27 = vadd.f32 %v4145_v53, %v15171_v16  ;;  %v19951_v10 = vld [vmem:[#allocation42_spill] sm:$0xff] }
 0x309   :  { %v19949_v5 = vld [vmem:[#allocation87_spill] sm:$0xff]  ;;  %v15328_v7 = vadd.f32 %v19950_v19, %v3379_v57  ;;  %v15336_v33 = vadd.f32 %v14969_v40, %v19951_v10  ;;  %v19953_v8 = vld [vmem:[#allocation92_spill] sm:$0xff]  ;;  %v19954_v57 = vld [vmem:[#allocation45_spill] sm:$0xff]  ;;  %v4147_v52 = vpop.f32.mrf.mxu0  ;;  %4578 = vst [vmem:[#allocation2 + $0x40] sm:$0xff] %v4506_v26  ;;  %v4507_v16 = vmax.f32 %v4435_v3, 0.0 }
 0x30a   :  { %19943 = vst [vmem:[#allocation55_spill] sm:$0xff] %v15307_v24  ;;  %v15323_v24 = vadd.f32 %v19949_v5, %v19948_v4  ;;  %v19952_v18 = vld [vmem:[#allocation91_spill] sm:$0xff]  ;;  %v15341_v46 = vadd.f32 %v19953_v8, %v3381_v2  ;;  %v19955_v4 = vld [vmem:[#allocation93_spill] sm:$0xff]  ;;  %v4436_v53 = vadd.f32 %v15147_v63, %v4352_v27  ;;  %v4353_v40 = vadd.f32 %v4147_v52, %v15177_v15  ;;  %v19958_v19 = vld [vmem:[#allocation96_spill] sm:$0xff]  ;;  %v15367_v27 = vpop.f32.mrf.mxu1 }
 0x30b   :  { %v3393_v44 = vadd.f32 %v19952_v18, %v15098_v61  ;;  %v15345_v36 = vadd.f32 %v19955_v4, %v19954_v57  ;;  %v19957_v37 = vld [vmem:[#allocation95_spill] sm:$0xff]  ;;  %v15352_v10 = vadd.f32 %v19958_v19, %v3383_v50  ;;  %v19959_v61 = vld [vmem:[#allocation48_spill] sm:$0xff]  ;;  %v19960_v2 = vld [vmem:[#allocation97_spill] sm:$0xff]  ;;  %4579 = vst [vmem:[#allocation2 + $0x28] sm:$0xff] %v4507_v16 }
 0x30c   :  { %v3395_v5 = vadd.f32 %v19957_v37, %v15102_v54  ;;  %v15356_v18 = vadd.f32 %v19960_v2, %v19959_v61  ;;  %v19961_v8 = vld [vmem:[#allocation99_spill] sm:$0xff]  ;;  %v19962_v4 = vld [vmem:[#allocation100_spill] sm:$0xff]  ;;  %v4151_v54 = vpop.f32.mrf.mxu0  ;;  %v19964_v3 = vld [vmem:[#allocation101_spill] sm:$0xff]  ;;  %v4508_v15 = vmax.f32 %v4436_v53, 0.0  ;;  %v4437_v50 = vadd.f32 %v15161_v32, %v4353_v40 }
 0x30d   :  { %19956 = vst [vmem:[#allocation56_spill] sm:$0xff] %v15345_v36  ;;  %v3397_v57 = vadd.f32 %v19961_v8, %v15106_v43  ;;  %v15361_v36 = vadd.f32 %v19962_v4, %v3385_v45  ;;  %v19963_v26 = vld [vmem:[#allocation80_spill] sm:$0xff]  ;;  %v4354_v52 = vadd.f32 %v4151_v54, %v15181_v39  ;;  %v19966_v19 = vld [vmem:[#allocation103_spill] sm:$0xff]  ;;  %v19969_v8 = vld [vmem:[#allocation105_spill] sm:$0xff] }
 0x30e   :  { %v15365_v37 = vadd.f32 %v19964_v3, %v19963_v26  ;;  %v3399_v61 = vadd.f32 %v19966_v19, %v15110_v55  ;;  %v19967_v43 = vld [vmem:[#allocation104_spill] sm:$0xff]  ;;  %v19971_v26 = vld [vmem:[#allocation107_spill] sm:$0xff]  ;;  %v4153_v53 = vpop.f32.mrf.mxu0  ;;  %4580 = vst [vmem:[#allocation2 + $0xe8] sm:$0xff] %v4508_v15  ;;  %v4509_v40 = vmax.f32 %v4437_v50, 0.0 }
 0x30f   :  { %v15374_v2 = vadd.f32 %v19967_v43, %v3387_v31  ;;  %v19968_v45 = vld [vmem:[#allocation84_spill] sm:$0xff]  ;;  %v3401_v16 = vadd.f32 %v19971_v26, %v15116_v29  ;;  %v4438_v39 = vadd.f32 %v15147_v63, %v4354_v52  ;;  %v4355_v55 = vadd.f32 %v4153_v53, %v15185_v6  ;;  %v19974_v31 = vld [vmem:[#allocation109_spill] sm:$0xff]  ;;  %v19975_v43 = vld [vmem:[#allocation111_spill] sm:$0xff]  ;;  %v3829_v6 = vpop.f32.mrf.mxu1 }
 0x310   :  { %19965 = vst [vmem:[#allocation61_spill] sm:$0xff] %v15365_v37  ;;  %v15378_v4 = vadd.f32 %v19969_v8, %v19968_v45  ;;  %v19972_v3 = vld [vmem:[#allocation108_spill] sm:$0xff]  ;;  %v3403_v45 = vadd.f32 %v19975_v43, %v15120_v51  ;;  %v19978_v29 = vld [vmem:[#allocation90_spill] sm:$0xff]  ;;  %v19979_v26 = vld [vmem:[#allocation113_spill] sm:$0xff]  ;;  %v4157_v15 = vpop.f32.mrf.mxu0 }
 0x311   :  { %v15383_v37 = vadd.f32 %v19972_v3, %v3389_v9  ;;  %v19973_v54 = vld [vmem:[#allocation88_spill] sm:$0xff]  ;;  %v15398_v9 = vadd.f32 %v19979_v26, %v19978_v29  ;;  %v19981_v50 = vld [vmem:[#allocation115_spill] sm:$0xff]  ;;  %4581 = vst [vmem:[#allocation2 + $0xf0] sm:$0xff] %v4509_v40  ;;  %v4510_v53 = vmax.f32 %v4438_v39, 0.0  ;;  %v4439_v3 = vadd.f32 %v15161_v32, %v4355_v55  ;;  %v19985_v43 = vld [vmem:[#allocation117_spill] sm:$0xff] }
 0x312   :  { %19970 = vst [vmem:[#allocation57_spill] sm:$0xff] %v15378_v4  ;;  %v15389_v19 = vadd.f32 %v19974_v31, %v19973_v54  ;;  %v19976_v8 = vld [vmem:[#allocation112_spill] sm:$0xff]  ;;  %v3405_v52 = vadd.f32 %v19981_v50, %v15124_v25  ;;  %v4356_v54 = vadd.f32 %v4157_v15, %v15192_v62  ;;  %v19987_v29 = vld [vmem:[#allocation119_spill] sm:$0xff]  ;;  %v4159_v25 = vpop.f32.mrf.mxu0  ;;  %v19990_v40 = vld [vmem:[#allocation98_spill] sm:$0xff] }
 0x313   :  { %v15394_v4 = vadd.f32 %v19976_v8, %v3391_v20  ;;  %19980 = vst [vmem:[#allocation62_spill] sm:$0xff] %v15398_v9  ;;  %v19982_v31 = vld [vmem:[#allocation116_spill] sm:$0xff]  ;;  %v19984_v20 = vld [vmem:[#allocation94_spill] sm:$0xff]  ;;  %v3407_v26 = vadd.f32 %v19987_v29, %v15131_v17  ;;  %v19991_v39 = vld [vmem:[#allocation121_spill] sm:$0xff]  ;;  %v4511_v62 = vmax.f32 %v4439_v3, 0.0  ;;  %v4357_v55 = vadd.f32 %v4159_v25, %v15196_v22 }
 0x314   :  { %v15405_v51 = vadd.f32 %v19982_v31, %v3393_v44  ;;  %v15409_v8 = vadd.f32 %v19985_v43, %v19984_v20  ;;  %v19988_v9 = vld [vmem:[#allocation120_spill] sm:$0xff]  ;;  %v15418_v50 = vadd.f32 %v19991_v39, %v19990_v40  ;;  %4582 = vst [vmem:[#allocation2 + $0x70] sm:$0xff] %v4510_v53  ;;  %v15421_v44 = vadd.f32 %v15147_v63, %v4356_v54  ;;  %v19993_v15 = vld [vmem:[#allocation123_spill] sm:$0xff]  ;;  %v19999_v29 = vld [vmem:[#allocation10_spill] sm:$0xff]  ;;  %v4163_v53 = vpop.f32.mrf.mxu0  ;;  %v3831_v54 = vpop.f32.mrf.mxu1 }
 0x315   :  { %19977 = vst [vmem:[#allocation59_spill] sm:$0xff] %v15394_v4  ;;  %v15414_v4 = vadd.f32 %v19988_v9, %v3395_v5  ;;  %v3409_v31 = vadd.f32 %v19993_v15, %v15135_v23  ;;  %v19994_v20 = vld [vmem:[#allocation124_spill] sm:$0xff]  ;;  %v19996_v5 = vld [vmem:[#allocation102_spill] sm:$0xff]  ;;  %v3411_v40 = vadd.f32 %v19999_v29, %v15139_v0  ;;  %4583 = vst [vmem:[#allocation2 + $0x120] sm:$0xff] %v4511_v62 }
 0x316   :  { %19983 = vst [vmem:[#allocation60_spill] sm:$0xff] %v15405_v51  ;;  %19986 = vst [vmem:[#allocation12_spill] sm:$0xff] %v15409_v8  ;;  %v15427_v17 = vadd.f32 %v19994_v20, %v3397_v57  ;;  %v19997_v9 = vld [vmem:[#allocation126_spill] sm:$0xff]  ;;  %v4512_v22 = vmax.f32 %v15421_v44, 0.0  ;;  %v15440_v23 = vadd.f32 %v15161_v32, %v4357_v55  ;;  %v4358_v57 = vadd.f32 %v4163_v53, %v15200_v42  ;;  %v20003_v15 = vld [vmem:[#allocation40_spill] sm:$0xff]  ;;  %v4165_v55 = vpop.f32.mrf.mxu0 }
 0x317   :  { %19989 = vst [vmem:[#allocation13_spill] sm:$0xff] %v15414_v4  ;;  %19992 = vst [vmem:[#allocation14_spill] sm:$0xff] %v15418_v50  ;;  %v15431_v43 = vadd.f32 %v19997_v9, %v19996_v5  ;;  %v20000_v3 = vld [vmem:[#allocation34_spill] sm:$0xff]  ;;  %v15449_v0 = vadd.f32 %v15141_v47, %v15151_v12  ;;  %v15460_v42 = vadd.f32 %v15206_v41, %v15155_v59 }
 0x318   :  { %19995 = vst [vmem:[#allocation18_spill] sm:$0xff] %v15427_v17  ;;  %v15436_v39 = vadd.f32 %v20000_v3, %v3399_v61  ;;  %v20002_v25 = vld [vmem:[#allocation106_spill] sm:$0xff]  ;;  %v20006_v61 = vld [vmem:[#allocation43_spill] sm:$0xff]  ;;  %v4513_v9 = vmax.f32 %v15440_v23, 0.0  ;;  %v15464_v29 = vadd.f32 %v15147_v63, %v4358_v57  ;;  %v4359_v47 = vadd.f32 %v4165_v55, %v15204_v38  ;;  %v4169_v41 = vpop.f32.mrf.mxu0  ;;  %v3835_v57 = vpop.f32.mrf.mxu1  ;;  %v20051_v17 = vld [vmem:[#allocation44_spill] sm:$0xff] }
 0x319   :  { %19998 = vst [vmem:[#allocation15_spill] sm:$0xff] %v15431_v43  ;;  %v15445_v20 = vadd.f32 %v20003_v15, %v20002_v25  ;;  %20005 = vst [vmem:[#allocation17_spill] sm:$0xff] %v15449_v0  ;;  %v15452_v5 = vadd.f32 %v20006_v61, %v3401_v16  ;;  %v20008_v62 = vld [vmem:[#allocation110_spill] sm:$0xff]  ;;  %v15468_v12 = vadd.f32 %v15208_v11, %v3403_v45  ;;  %v15489_v45 = vld [vmem:[#allocation2 + $0xc8] sm:$0xfe] }
 0x31a   :  { %20001 = vst [vmem:[#allocation16_spill] sm:$0xff] %v15436_v39  ;;  %v15456_v44 = vadd.f32 %v15173_v58, %v20008_v62  ;;  %20010 = vst [vmem:[#allocation22_spill] sm:$0xff] %v15460_v42  ;;  %v20012_v16 = vld [vmem:[#allocation114_spill] sm:$0xff]  ;;  %v15475_v58 = vadd.f32 %v15267_v28, %v3405_v52  ;;  %v15482_v23 = vadd.f32 %v15309_v1, %v3407_v26  ;;  %v4514_v38 = vmax.f32 %v15464_v29, 0.0  ;;  %v20022_v25 = vld [vmem:[#allocation7_spill] sm:$0xff]  ;;  %v4171_v15 = vpop.f32.mrf.mxu0 }
 0x31b   :  { %20004 = vst [vmem:[#allocation21_spill] sm:$0xff] %v15445_v20  ;;  %20007 = vst [vmem:[#allocation19_spill] sm:$0xff] %v15452_v5  ;;  %v15472_v53 = vadd.f32 %v15242_v48, %v20012_v16  ;;  %v20015_v3 = vld [vmem:[#allocation118_spill] sm:$0xff]  ;;  %v15486_v11 = vadd.f32 %v15161_v32, %v4359_v47  ;;  %v4360_v48 = vadd.f32 %v4169_v41, %v15212_v21  ;;  %v4654_v61 = vld [vmem:[#allocation2 + $0x70] sm:$0xff] }
 0x31c   :  { %20009 = vst [vmem:[#allocation20_spill] sm:$0xff] %v15456_v44  ;;  %20011 = vst [vmem:[#allocation32_spill] sm:$0xff] %v15468_v12  ;;  %v15479_v59 = vadd.f32 %v15290_v13, %v20015_v3  ;;  %v20019_v28 = vld [vmem:[#allocation122_spill] sm:$0xff]  ;;  %v15496_v13 = vadd.f32 %v15367_v27, %v3409_v31  ;;  %v15499_v1 = vadd.f32 %v3829_v6, %v20022_v25  ;;  %v4807_v29 = vrot.slane %v4514_v38, 1  ;;  %v20026_v47 = vld [vmem:[#allocation8_spill] sm:$0xff]  ;;  %v4175_v31 = vpop.f32.mrf.mxu0 }
 0x31d   :  { %20013 = vst [vmem:[#allocation23_spill] sm:$0xff] %v15472_v53  ;;  %20014 = vst [vmem:[#allocation27_spill] sm:$0xff] %v15475_v58  ;;  %v15493_v52 = vadd.f32 %v15331_v14, %v20019_v28  ;;  %v15501_v26 = vadd.f32 %v3831_v54, %v3411_v40  ;;  %v4515_v62 = vmax.f32 %v15486_v11, 0.0  ;;  %v15505_v21 = vadd.f32 %v15147_v63, %v4360_v48  ;;  %v15508_v14 = vld [vmem:[#allocation2 + $0x8] sm:$0xfe]  ;;  %v4655_v16 = vld [vmem:[#allocation2 + $0x120] sm:$0xff] }
 0x31e   :  { %20016 = vst [vmem:[#allocation24_spill] sm:$0xff] %v15479_v59  ;;  %20017 = vst [vmem:[#allocation25_spill] sm:$0xff] %v15482_v23  ;;  %v4361_v55 = vadd.f32 %v4171_v15, %v15216_v35  ;;  %v15511_v27 = vadd.f32 %v3835_v57, %v20026_v47  ;;  %v4803_v6 = vrot.slane %v4512_v22, 1  ;;  %v15513_v40 = vrot.slane %v4654_v61, 1  ;;  %v4177_v48 = vpop.f32.mrf.mxu0  ;;  %v20035_v53 = vld [vmem:[#allocation39_spill] sm:$0xff]  ;;  %v20049_v42 = vld [vmem:[#allocation41_spill] sm:$0xff] }
 0x31f   :  { %20018 = vst [vmem:[#allocation66_spill] sm:$0xff] %v15489_v45  ;;  %20020 = vst [vmem:[#allocation26_spill] sm:$0xff] %v15493_v52  ;;  %v4516_v3 = vmax.f32 %v15505_v21, 0.0  ;;  %v4362_v11 = vadd.f32 %v4175_v31, %v15220_v30  ;;  %v4809_v35 = vrot.slane %v4515_v62, 1  ;;  %v4805_v28 = vrot.slane %v4513_v9, 1  ;;  %v15525_v21 = vld [vmem:[#allocation2 + $0x40] sm:$0xff] }
 0x320   :  { %20021 = vst [vmem:[#allocation67_spill] sm:$0xff] %v15496_v13  ;;  %20023 = vst [vmem:[#allocation28_spill] sm:$0xff] %v15499_v1  ;;  %v4445_v41 = vadd.f32 %v15161_v32, %v4361_v55  ;;  %v4808_v25 = vsel %vm4788_vm1, %v4803_v6, %v4807_v29  ;;  %v15520_v57 = vrot.slane %v4655_v16, 1  ;;  %v4363_v54 = vadd.f32 %v4177_v48, %v15224_v56  ;;  %v4181_v55 = vpop.f32.mrf.mxu0  ;;  %v20042_v12 = vld [vmem:[#allocation51_spill] sm:$0xff]  ;;  %v20055_v0 = vld [vmem:[#allocation50_spill] sm:$0xff] }
 0x321   :  { %20024 = vst [vmem:[#allocation68_spill] sm:$0xff] %v15501_v26  ;;  %20025 = vst [vmem:[#allocation69_spill] sm:$0xff] %v15508_v14  ;;  %v4811_v26 = vrot.slane %v4516_v3, 1  ;;  %v4810_v30 = vsel %vm4788_vm1, %v4805_v28, %v4809_v35  ;;  %v15528_v31 = vmax.f32 %v4512_v22, %v4808_v25  ;;  %v4804_v13 = vsel %vm4788_vm1, %v15513_v40, %v4803_v6 }
 0x322   :  { %20027 = vst [vmem:[#allocation29_spill] sm:$0xff] %v15511_v27  ;;  %20028 = vst [vmem:[#allocation70_spill] sm:$0xff] %v15513_v40  ;;  %v4517_v47 = vmax.f32 %v4445_v41, 0.0  ;;  %v4446_v27 = vadd.f32 %v15147_v63, %v4362_v11  ;;  %v4806_v1 = vsel %vm4788_vm1, %v15520_v57, %v4805_v28  ;;  %v4447_v41 = vadd.f32 %v15161_v32, %v4363_v54  ;;  %v20032_v11 = vld [vmem:[#allocation46_spill] sm:$0xff]  ;;  %v4183_v48 = vpop.f32.mrf.mxu0 }
 0x323   :  { %20029 = vst [vmem:[#allocation30_spill] sm:$0xff] %v15520_v57  ;;  %20030 = vst [vmem:[#allocation71_spill] sm:$0xff] %v15525_v21  ;;  %v4364_v52 = vadd.f32 %v4181_v55, %v20032_v11  ;;  %v4812_v23 = vsel %vm4788_vm1, %v4807_v29, %v4811_v26  ;;  %v15537_v59 = vmax.f32 %v4513_v9, %v4810_v30  ;;  %v20038_v30 = vld [vmem:[#allocation49_spill] sm:$0xff]  ;;  %v20053_v21 = vld [vmem:[#allocation47_spill] sm:$0xff] }
 0x324   :  { %20031 = vst [vmem:[#allocation72_spill] sm:$0xff] %v15528_v31  ;;  %v4518_v15 = vmax.f32 %v4446_v27, 0.0  ;;  %v4813_v56 = vrot.slane %v4517_v47, 1  ;;  %v15539_v58 = vmax.f32 %v4655_v16, %v4806_v1  ;;  %v4519_v25 = vmax.f32 %v4447_v41, 0.0  ;;  %v4187_v54 = vpop.f32.mrf.mxu0  ;;  %v20057_v57 = vld [vmem:[#allocation52_spill] sm:$0xff] }
 0x325   :  { %20033 = vst [vmem:[#allocation31_spill] sm:$0xff] %v15537_v59  ;;  %v4448_v28 = vadd.f32 %v15147_v63, %v4364_v52  ;;  %v4365_v6 = vadd.f32 %v4183_v48, %v20035_v53  ;;  %v15545_v11 = vmax.f32 %v4514_v38, %v4812_v23  ;;  %v15548_v9 = vmax.f32 %v4654_v61, %v4804_v13  ;;  %v20040_v13 = vld [vmem:[#allocation37_spill] sm:$0xff] }
 0x326   :  { %20034 = vst [vmem:[#allocation73_spill] sm:$0xff] %v15539_v58  ;;  %v4815_v27 = vrot.slane %v4518_v15, 1  ;;  %v4814_v55 = vsel %vm4788_vm1, %v4809_v35, %v4813_v56  ;;  %v4366_v41 = vadd.f32 %v4187_v54, %v20038_v30  ;;  %v4817_v22 = vrot.slane %v4519_v25, 1  ;;  %v4189_v52 = vpop.f32.mrf.mxu0  ;;  %v20043_v30 = vld [vmem:[#allocation38_spill] sm:$0xff] }
 0x327   :  { %20036 = vst [vmem:[#allocation6_spill] sm:$0xff] %v15545_v11  ;;  %20037 = vst [vmem:[#allocation74_spill] sm:$0xff] %v15548_v9  ;;  %v4520_v1 = vmax.f32 %v4448_v28, 0.0  ;;  %v4449_v16 = vadd.f32 %v15161_v32, %v4365_v6  ;;  %v15553_v48 = vmax.f32 %v4515_v62, %v4814_v55  ;;  %v4367_v61 = vadd.f32 %v4189_v52, %v20040_v13  ;;  %v20058_v9 = vld [vmem:[#allocation54_spill] sm:$0xff] }
 0x328   :  { %v4816_v53 = vsel %vm4788_vm1, %v4811_v26, %v4815_v27  ;;  %v4450_v35 = vadd.f32 %v15147_v63, %v4366_v41  ;;  %v4193_v29 = vpop.f32.mrf.mxu0  ;;  %v4818_v6 = vsel %vm4788_vm1, %v4813_v56, %v4817_v22 }
 0x329   :  { %20039 = vst [vmem:[#allocation75_spill] sm:$0xff] %v15553_v48  ;;  %v4521_v38 = vmax.f32 %v4449_v16, 0.0  ;;  %v4819_v28 = vrot.slane %v4520_v1, 1  ;;  %v15560_v54 = vmax.f32 %v4516_v3, %v4816_v53  ;;  %v4451_v55 = vadd.f32 %v15161_v32, %v4367_v61  ;;  %v20046_v3 = vld [vmem:[#allocation53_spill] sm:$0xff] }
 0x32a   :  { %v4522_v62 = vmax.f32 %v4450_v35, 0.0  ;;  %v4368_v23 = vadd.f32 %v4193_v29, %v20042_v12  ;;  %v4195_v44 = vpop.f32.mrf.mxu0  ;;  %v15567_v52 = vmax.f32 %v4517_v47, %v4818_v6  ;;  %v20044_v47 = vrot.slane %v15545_v11, 2 }
 0x32b   :  { %20041 = vst [vmem:[#allocation33_spill] sm:$0xff] %v15560_v54  ;;  %v4821_v16 = vrot.slane %v4521_v38, 1  ;;  %v4820_v41 = vsel %vm4788_vm1, %v4815_v27, %v4819_v28  ;;  %v5198_v13 = vrot.slane %v15560_v54, 2  ;;  %v4523_v56 = vmax.f32 %v4451_v55, 0.0 }
 0x32c   :  { %v4452_v53 = vadd.f32 %v15147_v63, %v4368_v23  ;;  %v4369_v26 = vadd.f32 %v4195_v44, %v20043_v30  ;;  %v4823_v35 = vrot.slane %v4522_v62, 1  ;;  %v4199_v5 = vpop.f32.mrf.mxu0  ;;  %v15574_v12 = vmax.f32 %v4518_v15, %v4820_v41 }
 0x32d   :  { %v4822_v61 = vsel %vm4788_vm1, %v4817_v22, %v4821_v16  ;;  %v5200_v29 = vrot.slane %v15567_v52, 2  ;;  %v15580_v27 = vsel %vm5183_vm2, %v20044_v47, %v5198_v13  ;;  %v4370_v23 = vadd.f32 %v4199_v5, %v20046_v3 }
 0x32e   :  { %20045 = vst [vmem:[#allocation76_spill] sm:$0xff] %v15580_v27  ;;  %v4524_v6 = vmax.f32 %v4452_v53, 0.0  ;;  %v4453_v55 = vadd.f32 %v15161_v32, %v4369_v26  ;;  %v4825_v20 = vrot.slane %v4523_v56, 1  ;;  %v4201_v44 = vpop.f32.mrf.mxu0  ;;  %v4824_v30 = vsel %vm4788_vm1, %v4819_v28, %v4823_v35 }
 0x32f   :  { %v15585_v39 = vmax.f32 %v4519_v25, %v4822_v61  ;;  %v5202_v15 = vrot.slane %v15574_v12, 2  ;;  %v20047_v22 = vrot.slane %v15553_v48, 2  ;;  %v4454_v53 = vadd.f32 %v15147_v63, %v4370_v23 }
 0x330   :  { %v4525_v47 = vmax.f32 %v4453_v55, 0.0  ;;  %v4371_v26 = vadd.f32 %v4201_v44, %v20049_v42  ;;  %v4827_v43 = vrot.slane %v4524_v6, 1  ;;  %v4205_v5 = vpop.f32.mrf.mxu0  ;;  %v4826_v3 = vsel %vm4788_vm1, %v4821_v16, %v4825_v20 }
 0x331   :  { %v15591_v41 = vsel %vm5183_vm2, %v20047_v22, %v5200_v29  ;;  %v15596_v40 = vmax.f32 %v4520_v1, %v4824_v30  ;;  %v5204_v25 = vrot.slane %v15585_v39, 2  ;;  %v15600_v28 = vsel %vm5183_vm2, %v5198_v13, %v5202_v15 }
 0x332   :  { %20048 = vst [vmem:[#allocation36_spill] sm:$0xff] %v15591_v41  ;;  %20050 = vst [vmem:[#allocation77_spill] sm:$0xff] %v15600_v28  ;;  %v4526_v61 = vmax.f32 %v4454_v53, 0.0  ;;  %v4455_v22 = vadd.f32 %v15161_v32, %v4371_v26  ;;  %v4372_v55 = vadd.f32 %v4205_v5, %v20051_v17  ;;  %v4829_v45 = vrot.slane %v4525_v47, 1  ;;  %v4207_v23 = vpop.f32.mrf.mxu0 }
 0x333   :  { %v4828_v42 = vsel %vm4788_vm1, %v4823_v35, %v4827_v43  ;;  %v15605_v44 = vmax.f32 %v4521_v38, %v4826_v3  ;;  %v5206_v16 = vrot.slane %v15596_v40, 2  ;;  %v15609_v1 = vsel %vm5183_vm2, %v5200_v29, %v5204_v25 }
 0x334   :  { %20052 = vst [vmem:[#allocation63_spill] sm:$0xff] %v15609_v1  ;;  %v4527_v30 = vmax.f32 %v4455_v22, 0.0  ;;  %v4456_v13 = vadd.f32 %v15147_v63, %v4372_v55  ;;  %v4373_v53 = vadd.f32 %v4207_v23, %v20053_v21  ;;  %v4831_v14 = vrot.slane %v4526_v61, 1  ;;  %v4211_v26 = vpop.f32.mrf.mxu0 }
 0x335   :  { %v4830_v17 = vsel %vm4788_vm1, %v4825_v20, %v4829_v45  ;;  %v15614_v5 = vmax.f32 %v4522_v62, %v4828_v42  ;;  %v5208_v35 = vrot.slane %v15605_v44, 2  ;;  %v15618_v38 = vsel %vm5183_vm2, %v5202_v15, %v5206_v16 }
 0x336   :  { %20054 = vst [vmem:[#allocation78_spill] sm:$0xff] %v15618_v38  ;;  %v4528_v3 = vmax.f32 %v4456_v13, 0.0  ;;  %v4457_v29 = vadd.f32 %v15161_v32, %v4373_v53  ;;  %v4374_v22 = vadd.f32 %v4211_v26, %v20055_v0  ;;  %v4833_v50 = vrot.slane %v4527_v30, 1  ;;  %v4213_v55 = vpop.f32.mrf.mxu0 }
 0x337   :  { %v4832_v21 = vsel %vm4788_vm1, %v4827_v43, %v4831_v14  ;;  %v15623_v23 = vmax.f32 %v4523_v56, %v4830_v17  ;;  %v5210_v20 = vrot.slane %v15614_v5, 2  ;;  %v15627_v62 = vsel %vm5183_vm2, %v5204_v25, %v5208_v35 }
 0x338   :  { %20056 = vst [vmem:[#allocation9_spill] sm:$0xff] %v15627_v62  ;;  %v4529_v42 = vmax.f32 %v4457_v29, 0.0  ;;  %v4458_v15 = vadd.f32 %v15147_v63, %v4374_v22  ;;  %v4375_v13 = vadd.f32 %v4213_v55, %v20057_v57  ;;  %v4835_v4 = vrot.slane %v4528_v3, 1  ;;  %v4217_v53 = vpop.f32.mrf.mxu0 }
 0x339   :  { %v4834_v0 = vsel %vm4788_vm1, %v4829_v45, %v4833_v50  ;;  %v15632_v26 = vmax.f32 %v4524_v6, %v4832_v21  ;;  %v5212_v43 = vrot.slane %v15623_v23, 2  ;;  %v15636_v56 = vsel %vm5183_vm2, %v5206_v16, %v5210_v20 }
 0x33a   :  { %v4530_v17 = vmax.f32 %v4458_v15, 0.0  ;;  %v4459_v25 = vadd.f32 %v15161_v32, %v4375_v13  ;;  %v4376_v29 = vadd.f32 %v4217_v53, %v20058_v9  ;;  %v4837_v27 = vrot.slane %v4529_v42, 1  ;;  %v4219_v22 = vpop.f32.mrf.mxu0 }
 0x33b   :  { %v4836_v57 = vsel %vm4788_vm1, %v4831_v14, %v4835_v4  ;;  %v15641_v55 = vmax.f32 %v4525_v47, %v4834_v0  ;;  %v5214_v45 = vrot.slane %v15632_v26, 2  ;;  %v15645_v6 = vsel %vm5183_vm2, %v5208_v35, %v5212_v43 }
 0x33c   :  { %v4531_v21 = vmax.f32 %v4459_v25, 0.0  ;;  %v4460_v16 = vadd.f32 %v15147_v63, %v4376_v29  ;;  %v4377_v15 = vadd.f32 %v4219_v22, %v15297_v34  ;;  %v4839_v8 = vrot.slane %v4530_v17, 1  ;;  %v4223_v13 = vpop.f32.mrf.mxu0  ;;  %v20059_v25 = vld [vmem:[#allocation58_spill] sm:$0xff] }
 0x33d   :  { %v4838_v9 = vsel %vm4788_vm1, %v4833_v50, %v4837_v27  ;;  %v15650_v53 = vmax.f32 %v4526_v61, %v4836_v57  ;;  %v5216_v14 = vrot.slane %v15641_v55, 2  ;;  %v15654_v47 = vsel %vm5183_vm2, %v5210_v20, %v5214_v45 }
 0x33e   :  { %v4532_v0 = vmax.f32 %v4460_v16, 0.0  ;;  %v15657_v35 = vadd.f32 %v15161_v32, %v4377_v15  ;;  %v4378_v58 = vadd.f32 %v4223_v13, %v20059_v25  ;;  %v4841_v29 = vrot.slane %v4531_v21, 1  ;;  %v4225_v41 = vpop.f32.mrf.mxu0  ;;  %v20060_v16 = vld [vmem:[#allocation55_spill] sm:$0xff] }
 0x33f   :  { %v4840_v34 = vsel %vm4788_vm1, %v4835_v4, %v4839_v8  ;;  %v15661_v22 = vmax.f32 %v4527_v30, %v4838_v9  ;;  %v5218_v50 = vrot.slane %v15650_v53, 2  ;;  %v15665_v61 = vsel %vm5183_vm2, %v5212_v43, %v5216_v14 }
 0x340   :  { %v4533_v20 = vmax.f32 %v15657_v35, 0.0  ;;  %v15669_v57 = vadd.f32 %v15147_v63, %v4378_v58  ;;  %v4379_v15 = vadd.f32 %v4225_v41, %v20060_v16  ;;  %v4843_v31 = vrot.slane %v4532_v0, 1  ;;  %v4229_v13 = vpop.f32.mrf.mxu0 }
 0x341   :  { %v4842_v25 = vsel %vm4788_vm1, %v4837_v27, %v4841_v29  ;;  %v15673_v28 = vmax.f32 %v4528_v3, %v4840_v34  ;;  %v5220_v4 = vrot.slane %v15661_v22, 2  ;;  %v15677_v30 = vsel %vm5183_vm2, %v5214_v45, %v5218_v50 }
 0x342   :  { %v4534_v43 = vmax.f32 %v15669_v57, 0.0  ;;  %v4463_v9 = vadd.f32 %v15161_v32, %v4379_v15  ;;  %v4380_v58 = vadd.f32 %v4229_v13, %v15313_v60  ;;  %v4845_v35 = vrot.slane %v4533_v20, 1  ;;  %v4231_v59 = vpop.f32.mrf.mxu0 }
 0x343   :  { %v4844_v41 = vsel %vm4788_vm1, %v4839_v8, %v4843_v31  ;;  %v15683_v16 = vmax.f32 %v4529_v42, %v4842_v25  ;;  %v5222_v27 = vrot.slane %v15673_v28, 2  ;;  %v15687_v3 = vsel %vm5183_vm2, %v5216_v14, %v5220_v4 }
 0x344   :  { %v4535_v34 = vmax.f32 %v4463_v9, 0.0  ;;  %v15690_v45 = vadd.f32 %v15147_v63, %v4380_v58  ;;  %v4381_v57 = vadd.f32 %v4231_v59, %v15319_v49  ;;  %v4847_v15 = vrot.slane %v4534_v43, 1  ;;  %v4235_v1 = vpop.f32.mrf.mxu0 }
 0x345   :  { %v4846_v60 = vsel %vm4788_vm1, %v4841_v29, %v4845_v35  ;;  %v15694_v13 = vmax.f32 %v4530_v17, %v4844_v41  ;;  %v5224_v8 = vrot.slane %v15683_v16, 2  ;;  %v15698_v42 = vsel %vm5183_vm2, %v5218_v50, %v5222_v27 }
 0x346   :  { %v4536_v14 = vmax.f32 %v15690_v45, 0.0  ;;  %v15702_v25 = vadd.f32 %v15161_v32, %v4381_v57  ;;  %v4382_v9 = vadd.f32 %v4235_v1, %v15323_v24  ;;  %v4849_v58 = vrot.slane %v4535_v34, 1  ;;  %v4237_v49 = vpop.f32.mrf.mxu0  ;;  %v5455_v24 = vld [vmem:[%s19478_s5 + $0x8] sm:$0xff] }
 0x347   :  { %v4848_v59 = vsel %vm4788_vm1, %v4843_v31, %v4847_v15  ;;  %v15706_v11 = vmax.f32 %v4531_v21, %v4846_v60  ;;  %v19527_v17 = vrot.slane %v15694_v13, 2  ;;  %v15710_v29 = vsel %vm5183_vm2, %v5220_v4, %v5224_v8  ;;  %5604 = vmatprep.mubr.f32.mxu1 %v5455_v24 }
 0x348   :  { %v4537_v50 = vmax.f32 %v15702_v25, 0.0  ;;  %v15714_v41 = vadd.f32 %v15147_v63, %v4382_v9  ;;  %v4383_v45 = vadd.f32 %v4237_v49, %v15328_v7  ;;  %v4851_v57 = vrot.slane %v4536_v14, 1  ;;  %v4241_v31 = vpop.f32.mrf.mxu0 }
 0x349   :  { %v4850_v1 = vsel %vm4788_vm1, %v4845_v35, %v4849_v58  ;;  %v15721_v21 = vmax.f32 %v4532_v0, %v4848_v59  ;;  %v5228_v4 = vrot.slane %v15706_v11, 2  ;;  %v15727_v60 = vsel %vm5183_vm2, %v5222_v27, %v19527_v17 }
 0x34a   :  { %v4538_v7 = vmax.f32 %v15714_v41, 0.0  ;;  %v4467_v25 = vadd.f32 %v15161_v32, %v4383_v45  ;;  %v4384_v9 = vadd.f32 %v4241_v31, %v15336_v33  ;;  %v4853_v49 = vrot.slane %v4537_v50, 1  ;;  %v4243_v38 = vpop.f32.mrf.mxu0 }
 0x34b   :  { %v4852_v35 = vsel %vm4788_vm1, %v4847_v15, %v4851_v57  ;;  %v15733_v0 = vmax.f32 %v4533_v20, %v4850_v1  ;;  %v15737_v48 = vsel %vm5183_vm2, %v5224_v8, %v5228_v4  ;;  %v4385_v41 = vadd.f32 %v4243_v38, %v15341_v46  ;;  %v20061_v8 = vld [vmem:[#allocation56_spill] sm:$0xff] }
 0x34c   :  { %v4539_v27 = vmax.f32 %v4467_v25, 0.0  ;;  %v4468_v24 = vadd.f32 %v15147_v63, %v4384_v9  ;;  %v4854_v45 = vsel %vm4788_vm1, %v4849_v58, %v4853_v49  ;;  %v4247_v17 = vpop.f32.mrf.mxu0  ;;  %v4855_v31 = vrot.slane %v4538_v7, 1 }
 0x34d   :  { %v15742_v33 = vmax.f32 %v4535_v34, %v4854_v45  ;;  %v15744_v62 = vmax.f32 %v4534_v43, %v4852_v35  ;;  %v5232_v20 = vrot.slane %v15733_v0, 2  ;;  %v4469_v1 = vadd.f32 %v15161_v32, %v4385_v41 }
 0x34e   :  { %v4540_v15 = vmax.f32 %v4468_v24, 0.0  ;;  %v4386_v59 = vadd.f32 %v4247_v17, %v20061_v8  ;;  %v4857_v25 = vrot.slane %v4539_v27, 1  ;;  %v4249_v51 = vpop.f32.mrf.mxu0  ;;  %v4856_v38 = vsel %vm4788_vm1, %v4851_v57, %v4855_v31 }
 0x34f   :  { %v5236_v9 = vrot.slane %v15742_v33, 2  ;;  %v19531_v46 = vrot.slane %v15744_v62, 2  ;;  %v15753_v34 = vsel %vm5183_vm2, %v5228_v4, %v5232_v20  ;;  %v4541_v43 = vmax.f32 %v4469_v1, 0.0 }
 0x350   :  { %v15756_v58 = vadd.f32 %v15147_v63, %v4386_v59  ;;  %v4387_v35 = vadd.f32 %v4249_v51, %v15352_v10  ;;  %v4859_v24 = vrot.slane %v4540_v15, 1  ;;  %v4253_v41 = vpop.f32.mrf.mxu0  ;;  %v4858_v17 = vsel %vm4788_vm1, %v4853_v49, %v4857_v25 }
 0x351   :  { %v15760_v45 = vmax.f32 %v4536_v14, %v4856_v38  ;;  %v15763_v8 = vsel %vm5183_vm2, %v5232_v20, %v5236_v9  ;;  %v20065_v57 = vrot.slane %v15721_v21, 2  ;;  %v4388_v51 = vadd.f32 %v4253_v41, %v15356_v18 }
 0x352   :  { %20062 = vst [vmem:[#allocation79_spill] sm:$0xff] %v15756_v58  ;;  %20064 = vst [vmem:[#allocation64_spill] sm:$0xff] %v15763_v8  ;;  %v15774_v10 = vadd.f32 %v15161_v32, %v4387_v35  ;;  %v4861_v49 = vrot.slane %v4541_v43, 1  ;;  %v4255_v14 = vpop.f32.mrf.mxu0  ;;  %v4860_v1 = vsel %vm4788_vm1, %v4855_v31, %v4859_v24  ;;  %v15778_v20 = vmax.f32 %v4537_v50, %v4858_v17  ;;  %v20072_v8 = vld [vmem:[#allocation61_spill] sm:$0xff] }
 0x353   :  { %20063 = vst [vmem:[#allocation81_spill] sm:$0xff] %v15760_v45  ;;  %v15770_v4 = vsel %vm5183_vm2, %v20065_v57, %v19531_v46  ;;  %v5238_v38 = vrot.slane %v15760_v45, 2  ;;  %v4472_v46 = vadd.f32 %v15147_v63, %v4388_v51  ;;  %v4389_v35 = vadd.f32 %v4255_v14, %v15361_v36 }
 0x354   :  { %20066 = vst [vmem:[#allocation82_spill] sm:$0xff] %v15774_v10  ;;  %20067 = vst [vmem:[#allocation65_spill] sm:$0xff] %v15778_v20  ;;  %v4862_v59 = vsel %vm4788_vm1, %v4857_v25, %v4861_v49  ;;  %v4259_v18 = vpop.f32.mrf.mxu0  ;;  %v20069_v31 = vmax.f32 %v15756_v58, 0.0  ;;  %v15793_v17 = vmax.f32 %v4538_v7, %v4860_v1  ;;  %v5240_v45 = vrot.slane %v15778_v20, 2  ;;  %v20110_v58 = vld [vmem:[#allocation14_spill] sm:$0xff] }
 0x355   :  { %v15787_v41 = vmax.f32 %v4539_v27, %v4862_v59  ;;  %v4544_v54 = vmax.f32 %v4472_v46, 0.0  ;;  %v4473_v57 = vadd.f32 %v15161_v32, %v4389_v35  ;;  %v4390_v51 = vadd.f32 %v4259_v18, %v20072_v8 }
 0x356   :  { %v15791_v50 = vrot.slane %v20069_v31, 1  ;;  %20071 = vst [vmem:[#allocation86_spill] sm:$0xff] %v15793_v17  ;;  %v20073_v36 = vmax.f32 %v15774_v10, 0.0  ;;  %v4261_v25 = vpop.f32.mrf.mxu0  ;;  %v5242_v7 = vrot.slane %v15793_v17, 2  ;;  %v15807_v1 = vsel %vm5183_vm2, %v5236_v9, %v5240_v45 }
 0x357   :  { %20068 = vst [vmem:[#allocation83_spill] sm:$0xff] %v15787_v41  ;;  %v5244_v27 = vrot.slane %v15787_v41, 2  ;;  %4616 = vst [vmem:[#allocation2 + $0x48] sm:$0xff] %v4544_v54  ;;  %v4545_v46 = vmax.f32 %v4473_v57, 0.0  ;;  %v4474_v35 = vadd.f32 %v15147_v63, %v4390_v51  ;;  %v4391_v8 = vadd.f32 %v4261_v25, %v15374_v2  ;;  %v20077_v57 = vld [vmem:[#allocation57_spill] sm:$0xff] }
 0x358   :  { %20070 = vst [vmem:[#allocation85_spill] sm:$0xff] %v15791_v50  ;;  %v15800_v14 = vrot.slane %v20073_v36, 1  ;;  %v4864_v59 = vsel %vm4788_vm1, %v4859_v24, %v15791_v50  ;;  %v4265_v31 = vpop.f32.mrf.mxu0  ;;  %v5243_v17 = vsel %vm5183_vm2, %v5238_v38, %v5242_v7  ;;  %v20104_v41 = vld [vmem:[#allocation13_spill] sm:$0xff] }
 0x359   :  { %v15815_v20 = vmax.f32 %v4540_v15, %v4864_v59  ;;  %v5245_v24 = vsel %vm5183_vm2, %v5240_v45, %v5244_v27  ;;  %4617 = vst [vmem:[#allocation2 + $0x98] sm:$0xff] %v4545_v46  ;;  %v4546_v9 = vmax.f32 %v4474_v35, 0.0  ;;  %v4475_v54 = vadd.f32 %v15161_v32, %v4391_v8 }
 0x35a   :  { %20074 = vst [vmem:[#allocation11_spill] sm:$0xff] %v15800_v14  ;;  %v4866_v18 = vsel %vm4788_vm1, %v4861_v49, %v15800_v14  ;;  %v4392_v51 = vadd.f32 %v4265_v31, %v20077_v57  ;;  %v5415_v2 = vmax.f32 %v15733_v0, %v5245_v24  ;;  %v4267_v25 = vpop.f32.mrf.mxu0  ;;  %v5414_v15 = vmax.f32 %v15721_v21, %v5243_v17  ;;  %v20112_v14 = vld [vmem:[#allocation17_spill] sm:$0xff] }
 0x35b   :  { %v15813_v36 = vmax.f32 %v4541_v43, %v4866_v18  ;;  %20076 = vst [vmem:[#allocation89_spill] sm:$0xff] %v15815_v20  ;;  %v19536_v43 = vrot.slane %v15815_v20, 2  ;;  %v5413_v45 = vmax.f32 %v15706_v11, %v15807_v1  ;;  %4618 = vst [vmem:[#allocation2 + $0x238] sm:$0xff] %v4546_v9  ;;  %v4547_v59 = vmax.f32 %v4475_v54, 0.0 }
 0x35c   :  { %v4476_v46 = vadd.f32 %v15147_v63, %v4392_v51  ;;  %v4393_v35 = vadd.f32 %v4267_v25, %v15383_v37  ;;  %v20078_v8 = vrot.slane %v15744_v62, 2  ;;  %v4271_v18 = vpop.f32.mrf.mxu0  ;;  %v5410_v1 = vmax.f32 %v15673_v28, %v15770_v4  ;;  %v20081_v25 = vld [vmem:[#allocation59_spill] sm:$0xff] }
 0x35d   :  { %20075 = vst [vmem:[#allocation87_spill] sm:$0xff] %v15813_v36  ;;  %v19537_v49 = vrot.slane %v15813_v36, 2  ;;  %v5247_v17 = vsel %vm5183_vm2, %v5242_v7, %v19536_v43  ;;  %4619 = vst [vmem:[#allocation2 + $0x160] sm:$0xff] %v4547_v59  ;;  %v5409_v57 = vmax.f32 %v15661_v22, %v15753_v34  ;;  %v20079_v7 = vrot.slane %v15721_v21, 2 }
 0x35e   :  { %v5239_v0 = vsel %vm5183_vm2, %v20078_v8, %v5238_v38  ;;  %v4548_v37 = vmax.f32 %v4476_v46, 0.0  ;;  %v4477_v24 = vadd.f32 %v15161_v32, %v4393_v35  ;;  %v4394_v38 = vadd.f32 %v4271_v18, %v15389_v19  ;;  %v4273_v54 = vpop.f32.mrf.mxu0  ;;  %v20095_v18 = vld [vmem:[#allocation12_spill] sm:$0xff] }
 0x35f   :  { %v5249_v31 = vsel %vm5183_vm2, %v5244_v27, %v19537_v49  ;;  %v5412_v11 = vmax.f32 %v15694_v13, %v5239_v0  ;;  %v5416_v27 = vmax.f32 %v15744_v62, %v5247_v17  ;;  %v20080_v51 = vrot.slane %v15694_v13, 2  ;;  %v20082_v0 = vld [vmem:[#allocation62_spill] sm:$0xff]  ;;  %v20089_v49 = vld [vmem:[#allocation63_spill] sm:$0xff]  ;;  %v20096_v46 = vld [vmem:[#allocation64_spill] sm:$0xff] }
 0x360   :  { %v5417_v9 = vmax.f32 %v15742_v33, %v5249_v31  ;;  %4620 = vst [vmem:[#allocation2 + $0x50] sm:$0xff] %v4548_v37  ;;  %v4549_v19 = vmax.f32 %v4477_v24, 0.0  ;;  %v4478_v33 = vadd.f32 %v15147_v63, %v4394_v38  ;;  %v4395_v59 = vadd.f32 %v4273_v54, %v20081_v25  ;;  %v4277_v22 = vpop.f32.mrf.mxu0  ;;  %v20083_v38 = vld [vmem:[#allocation33_spill] sm:$0xff]  ;;  %v3837_v54 = vpop.f32.mrf.mxu1  ;;  %v5068_v25 = vld [vmem:[#allocation2 + $0xf0] sm:$0xf8] }
 0x361   :  { %v15852_v28 = vsel %vm5183_vm2, %v20080_v51, %v20079_v7  ;;  %v20084_v7 = vld [vmem:[#allocation60_spill] sm:$0xff]  ;;  %v20097_v43 = vmax.f32 %v15683_v16, %v20096_v46  ;;  %v5081_v46 = vrot.slane %v5068_v25, 1  ;;  %v15946_v34 = vadd.f32 %v3837_v54, %v20112_v14 }
 0x362   :  { %5540 = vmatprep.subr.mxu1 %v5417_v9  ;;  %v5408_v62 = vmax.f32 %v15650_v53, %v15852_v28  ;;  %4621 = vst [vmem:[#allocation2 + $0x100] sm:$0xff] %v4549_v19  ;;  %v4550_v35 = vmax.f32 %v4478_v33, 0.0  ;;  %v4479_v8 = vadd.f32 %v15161_v32, %v4395_v59  ;;  %v4396_v53 = vadd.f32 %v4277_v22, %v20082_v0  ;;  %v4279_v31 = vpop.f32.mrf.mxu0  ;;  %v20086_v28 = vld [vmem:[#allocation75_spill] sm:$0xff]  ;;  %v20087_v22 = vld [vmem:[#allocation78_spill] sm:$0xff]  ;;  %v20092_v24 = vld [vmem:[#allocation72_spill] sm:$0xff]  ;;  %v3841_v21 = vpop.f32.mrf.mxu1 }
 0x363   :  { %5541 = vmatpush1.msra.mxu1 %v5416_v27  ;;  %v4397_v51 = vadd.f32 %v4279_v31, %v20084_v7  ;;  %v15884_v33 = vld [vmem:[#allocation2 + $0x28] sm:$0xff]  ;;  %v20093_v37 = vld [vmem:[#allocation36_spill] sm:$0xff]  ;;  %v20094_v31 = vld [vmem:[#allocation73_spill] sm:$0xff] }
 0x364   :  { %5542 = vmatprep.subr.mxu1 %v5415_v2  ;;  %4622 = vst [vmem:[#allocation2 + $0x30] sm:$0xff] %v4550_v35  ;;  %v4551_v2 = vmax.f32 %v4479_v8, 0.0  ;;  %v4480_v27 = vadd.f32 %v15147_v63, %v4396_v53  ;;  %v4283_v59 = vpop.f32.mrf.mxu0  ;;  %v20088_v0 = vld [vmem:[#allocation6_spill] sm:$0xff]  ;;  %v20090_v9 = vld [vmem:[#allocation31_spill] sm:$0xff]  ;;  %v20091_v8 = vld [vmem:[#allocation77_spill] sm:$0xff]  ;;  %v3843_v14 = vpop.f32.mrf.mxu1 }
 0x365   :  { %5543 = vmatpush1.msra.mxu1 %v5414_v15  ;;  %v20085_v15 = vld [vmem:[#allocation9_spill] sm:$0xff]  ;;  %v15894_v7 = vld [vmem:[#allocation2 + $0xe8] sm:$0xff]  ;;  %v4481_v17 = vadd.f32 %v15161_v32, %v4397_v51  ;;  %v15903_v13 = vld [vmem:[#allocation2 + $0xf0] sm:$0xff]  ;;  %v20103_v51 = vrot.slane %v20092_v24, 2 }
 0x366   :  { %5544 = vmatprep.subr.mxu1 %v5413_v45  ;;  %4623 = vst [vmem:[#allocation2 + $0x1b0] sm:$0xff] %v4551_v2  ;;  %v4552_v19 = vmax.f32 %v4480_v27, 0.0  ;;  %v20099_v35 = vld [vmem:[#allocation74_spill] sm:$0xff]  ;;  %v4285_v53 = vpop.f32.mrf.mxu0  ;;  %v20100_v45 = vrot.slane %v20086_v28, 2  ;;  %v20101_v2 = vrot.slane %v20090_v9, 2  ;;  %v4797_v36 = vrot.slane %v15903_v13, 1 }
 0x367   :  { %5545 = vmatpush1.msra.mxu1 %v5412_v11  ;;  %v4398_v11 = vadd.f32 %v4283_v59, %v20095_v18  ;;  %v20102_v18 = vrot.slane %v20088_v0, 2  ;;  %v5067_v59 = vld [vmem:[#allocation2 + $0xe8] sm:$0xf8]  ;;  %v4399_v20 = vadd.f32 %v4285_v53, %v20104_v41 }
 0x368   :  { %5546 = vmatprep.subr.mxu1 %v20097_v43  ;;  %v15910_v27 = vsel %vm5183_vm2, %v20101_v2, %v20100_v45  ;;  %v4793_v43 = vrot.slane %v15884_v33, 1  ;;  %4624 = vst [vmem:[#allocation2 + $0x90] sm:$0xff] %v4552_v19  ;;  %v4795_v45 = vrot.slane %v15894_v7, 1  ;;  %v4289_v2 = vpop.f32.mrf.mxu0  ;;  %v20108_v19 = vrot.slane %v20099_v35, 2 }
 0x369   :  { %5547 = vmatpush1.msra.mxu1 %v5410_v1  ;;  %v15917_v16 = vsel %vm5183_vm2, %v20103_v51, %v20102_v18  ;;  %v4553_v1 = vmax.f32 %v4481_v17, 0.0  ;;  %v4482_v4 = vadd.f32 %v15147_v63, %v4398_v11  ;;  %v20105_v18 = vrot.slane %v20090_v9, 2 }
 0x36a   :  { %5548 = vmatprep.subr.mxu1 %v5409_v57  ;;  %v20106_v51 = vrot.slane %v20094_v31, 2  ;;  %v20107_v17 = vrot.slane %v20092_v24, 2  ;;  %v20109_v57 = vld [vmem:[#allocation30_spill] sm:$0xff]  ;;  %v4483_v11 = vadd.f32 %v15161_v32, %v4399_v20  ;;  %v4400_v10 = vadd.f32 %v4289_v2, %v20110_v58 }
 0x36b   :  { %5549 = vmatpush1.msra.mxu1 %v5408_v62  ;;  %v5082_v53 = vsel %vm4788_vm1, %v5081_v46, %v20109_v57  ;;  %4625 = vst [vmem:[#allocation2 + $0x130] sm:$0xff] %v4553_v1  ;;  %v4554_v62 = vmax.f32 %v4482_v4, 0.0  ;;  %v5079_v50 = vrot.slane %v5067_v59, 1  ;;  %v20114_v46 = vld [vmem:[#allocation69_spill] sm:$0xff]  ;;  %v20116_v1 = vld [vmem:[#allocation71_spill] sm:$0xff] }
 0x36c   :  { %v15929_v25 = vsel %vm5183_vm2, %v20106_v51, %v20105_v18  ;;  %v15936_v41 = vsel %vm5183_vm2, %v20108_v19, %v20107_v17  ;;  %v20111_v18 = vmax.f32 %v15641_v55, %v15737_v48  ;;  %v5060_v51 = vld [vmem:[#allocation2 + $0xf0] sm:$0xfc]  ;;  %v4291_v17 = vpop.f32.mrf.mxu0  ;;  %v20113_v19 = vmax.f32 %v15632_v26, %v15727_v60  ;;  %v20118_v48 = vld [vmem:[#allocation66_spill] sm:$0xff] }
 0x36d   :  { %v20115_v4 = vrot.slane %v20114_v46, 1  ;;  %v5106_v58 = vmax.f32 %v5060_v51, %v5082_v53  ;;  %v20117_v2 = vrot.slane %v20116_v1, 1  ;;  %v20119_v55 = vrot.slane %v20118_v48, 1  ;;  %4626 = vst [vmem:[#allocation2 + $0x68] sm:$0xff] %v4554_v62  ;;  %v20120_v26 = vld [vmem:[#allocation18_spill] sm:$0xff] }
 0x36e   :  { %5550 = vmatprep.subr.mxu1 %v20111_v18  ;;  %v4555_v54 = vmax.f32 %v4483_v11, 0.0  ;;  %v15964_v18 = vadd.f32 %v15147_v63, %v4400_v10  ;;  %v4401_v60 = vadd.f32 %v4291_v17, %v20120_v26  ;;  %v20122_v53 = vld [vmem:[#allocation70_spill] sm:$0xff]  ;;  %v4295_v46 = vpop.f32.mrf.mxu0  ;;  %v4802_v62 = vsel %vm4788_vm1, %v4797_v36, %v20109_v57 }
 0x36f   :  { %5551 = vmatpush1.msra.mxu1 %v20113_v19  ;;  %v15954_v20 = vsel %vm4788_vm1, %v20115_v4, %v4793_v43  ;;  %v15961_v59 = vsel %vm4788_vm1, %v20119_v55, %v20117_v2  ;;  %v20121_v19 = vmax.f32 %v15623_v23, %v15710_v29  ;;  %v5080_v51 = vsel %vm4788_vm1, %v5079_v50, %v20122_v53  ;;  %v15991_v48 = vld [vmem:[#allocation2 + $0xc8] sm:$0xff] }
 0x370   :  { %v20123_v4 = vmax.f32 %v15614_v5, %v15698_v42  ;;  %v4800_v10 = vsel %vm4788_vm1, %v4795_v45, %v20122_v53  ;;  %v4798_v11 = vsel %vm4788_vm1, %v4793_v43, %v4797_v36  ;;  %v20124_v17 = vmov %v20117_v2  ;;  %4627 = vst [vmem:[#allocation2 + $0x230] sm:$0xff] %v4555_v54  ;;  %v20125_v5 = vld [vmem:[#allocation15_spill] sm:$0xff]  ;;  %v4297_v26 = vpop.f32.mrf.mxu0 }
 0x371   :  { %5552 = vmatprep.subr.mxu1 %v20121_v19  ;;  %v4796_v23 = vsel %vm4788_vm1, %v20124_v17, %v4795_v45  ;;  %v4556_v29 = vmax.f32 %v15964_v18, 0.0  ;;  %v15985_v50 = vadd.f32 %v15161_v32, %v4401_v60  ;;  %v4402_v42 = vadd.f32 %v4295_v46, %v20125_v5  ;;  %v5059_v36 = vld [vmem:[#allocation2 + $0xe8] sm:$0xfc]  ;;  %v20128_v45 = vld [vmem:[#allocation22_spill] sm:$0xff] }
 0x372   :  { %5553 = vmatpush1.msra.mxu1 %v20123_v4  ;;  %v20126_v57 = vmax.f32 %v15605_v44, %v15687_v3  ;;  %v5187_v2 = vrot.slane %v5106_v58, 2  ;;  %v20127_v43 = vld [vmem:[#allocation35_spill] sm:$0xff]  ;;  %v15997_v54 = vadd.f32 %v3843_v14, %v20128_v45  ;;  %v20129_v60 = vmax.f32 %v15596_v40, %v15677_v30  ;;  %v4301_v40 = vpop.f32.mrf.mxu0 }
 0x373   :  { %v15994_v55 = vadd.f32 %v3841_v21, %v20127_v43  ;;  %v4649_v19 = vld [vmem:[#allocation2 + $0x8] sm:$0xff]  ;;  %v4991_v44 = vmax.f32 %v15991_v48, %v15961_v59  ;;  %v5105_v3 = vmax.f32 %v5059_v36, %v5080_v51  ;;  %v4557_v58 = vmax.f32 %v15985_v50, 0.0  ;;  %v20130_v21 = vld [vmem:[#allocation16_spill] sm:$0xff] }
 0x374   :  { %5554 = vmatprep.subr.mxu1 %v20126_v57  ;;  %v16006_v53 = vadd.f32 %v15147_v63, %v4402_v42  ;;  %v4403_v46 = vadd.f32 %v4297_v26, %v20130_v21  ;;  %v20131_v14 = vmax.f32 %v15585_v39, %v15665_v61  ;;  %v4992_v4 = vmax.f32 %v4649_v19, %v15954_v20  ;;  %v20133_v61 = vld [vmem:[#allocation21_spill] sm:$0xff]  ;;  %v20140_v19 = vld [vmem:[#allocation20_spill] sm:$0xff] }
 0x375   :  { %5555 = vmatpush1.msra.mxu1 %v20129_v60  ;;  %v20132_v30 = vmax.f32 %v15574_v12, %v15654_v47  ;;  %v4996_v51 = vmax.f32 %v15903_v13, %v4802_v62  ;;  %v4995_v17 = vmax.f32 %v15894_v7, %v4800_v10  ;;  %v4994_v5 = vmax.f32 %v15884_v33, %v4798_v11  ;;  %v4303_v13 = vpop.f32.mrf.mxu0  ;;  %v16037_v11 = vld [vmem:[#allocation2 + $0x68] sm:$0xff] }
 0x376   :  { %5556 = vmatprep.subr.mxu1 %v20131_v14  ;;  %v4993_v42 = vmax.f32 %v20116_v1, %v4796_v23  ;;  %v4558_v57 = vmax.f32 %v16006_v53, 0.0  ;;  %v16022_v39 = vadd.f32 %v15161_v32, %v4403_v46  ;;  %v4404_v20 = vadd.f32 %v4301_v40, %v20133_v61  ;;  %v20137_v23 = vld [vmem:[#allocation19_spill] sm:$0xff] }
 0x377   :  { %5557 = vmatpush1.msra.mxu1 %v20132_v30  ;;  %v20134_v36 = vmax.f32 %v15567_v52, %v15645_v6  ;;  %v20135_v12 = vrot.slane %v20094_v31, 2  ;;  %v20136_v33 = vmax.f32 %v20083_v38, %v15636_v56  ;;  %v5391_v7 = vmax.f32 %v4996_v51, %v15910_v27  ;;  %v4307_v27 = vpop.f32.mrf.mxu0  ;;  %v16055_v26 = vld [vmem:[#allocation2 + $0x230] sm:$0xff] }
 0x378   :  { %v5390_v1 = vmax.f32 %v4995_v17, %v15917_v16  ;;  %v5389_v62 = vmax.f32 %v4994_v5, %v15929_v25  ;;  %v5184_v10 = vrot.slane %v5105_v3, 2  ;;  %v4559_v52 = vmax.f32 %v16022_v39, 0.0  ;;  %v20144_v51 = vld [vmem:[#allocation32_spill] sm:$0xff] }
 0x379   :  { %5558 = vmatprep.subr.mxu1 %v20134_v36  ;;  %v5189_v47 = vsel %vm5183_vm2, %v5187_v2, %v20135_v12  ;;  %v16041_v6 = vadd.f32 %v15147_v63, %v4404_v20  ;;  %v4405_v2 = vadd.f32 %v4303_v13, %v20137_v23  ;;  %v20138_v56 = vmax.f32 %v20086_v28, %v20085_v15 }
 0x37a   :  { %5559 = vmatpush1.msra.mxu1 %v20136_v33  ;;  %v4895_v38 = vrot.slane %v4558_v57, 1  ;;  %v20139_v16 = vmax.f32 %v20088_v0, %v20087_v22  ;;  %v5388_v25 = vmax.f32 %v4993_v42, %v15936_v41  ;;  %v5387_v43 = vmax.f32 %v4992_v4, %v5189_v47  ;;  %v4309_v41 = vpop.f32.mrf.mxu0  ;;  %v20146_v42 = vld [vmem:[#allocation76_spill] sm:$0xff] }
 0x37b   :  { %5560 = vmatprep.subr.mxu1 %v20138_v56  ;;  %v4891_v45 = vrot.slane %v4556_v29, 1  ;;  %v4887_v60 = vrot.slane %v16037_v11, 1  ;;  %v4560_v15 = vmax.f32 %v16041_v6, 0.0  ;;  %v16060_v28 = vadd.f32 %v15161_v32, %v4405_v2  ;;  %v20149_v56 = vld [vmem:[#allocation27_spill] sm:$0xff] }
 0x37c   :  { %5561 = vmatpush1.msra.mxu1 %v20139_v16  ;;  %v4406_v3 = vadd.f32 %v4307_v27, %v20140_v19  ;;  %v20141_v22 = vmax.f32 %v20090_v9, %v20089_v49  ;;  %v4897_v0 = vrot.slane %v4559_v52, 1  ;;  %v20142_v21 = vmax.f32 %v20092_v24, %v20091_v8  ;;  %v4313_v5 = vpop.f32.mrf.mxu0 }
 0x37d   :  { %v20143_v46 = vrot.slane %v20099_v35, 2  ;;  %v4893_v4 = vrot.slane %v4557_v58, 1  ;;  %v4896_v40 = vsel %vm4788_vm1, %v4891_v45, %v4895_v38  ;;  %v4889_v49 = vrot.slane %v16055_v26, 1 }
 0x37e   :  { %5562 = vmatprep.subr.mxu1 %v20141_v22  ;;  %v4561_v9 = vmax.f32 %v16060_v28, 0.0  ;;  %v16080_v30 = vadd.f32 %v15147_v63, %v4406_v3  ;;  %v4407_v17 = vadd.f32 %v4309_v41, %v20144_v51  ;;  %v20145_v24 = vmax.f32 %v20094_v31, %v20093_v37  ;;  %v4315_v18 = vpop.f32.mrf.mxu0  ;;  %v20151_v41 = vld [vmem:[#allocation25_spill] sm:$0xff]  ;;  %v20152_v51 = vld [vmem:[#allocation26_spill] sm:$0xff] }
 0x37f   :  { %5563 = vmatpush1.msra.mxu1 %v20142_v21  ;;  %v5186_v14 = vsel %vm5183_vm2, %v5184_v10, %v20143_v46  ;;  %v4899_v8 = vrot.slane %v4560_v15, 1  ;;  %v20147_v61 = vmax.f32 %v20099_v35, %v20146_v42  ;;  %v4898_v20 = vsel %vm4788_vm1, %v4893_v4, %v4897_v0  ;;  %v20148_v35 = vld [vmem:[#allocation23_spill] sm:$0xff] }
 0x380   :  { %5564 = vmatprep.subr.mxu1 %v20145_v24  ;;  %v16092_v36 = vmax.f32 %v4556_v29, %v4896_v40  ;;  %v4894_v12 = vsel %vm4788_vm1, %v4889_v49, %v4893_v4  ;;  %v4892_v37 = vsel %vm4788_vm1, %v4887_v60, %v4891_v45  ;;  %v4562_v31 = vmax.f32 %v16080_v30, 0.0  ;;  %v4319_v59 = vpop.f32.mrf.mxu0  ;;  %v20150_v45 = vld [vmem:[#allocation24_spill] sm:$0xff] }
 0x381   :  { %5565 = vmatpush1.msra.mxu1 %v20147_v61  ;;  %v16102_v47 = vadd.f32 %v15161_v32, %v4407_v17  ;;  %v4408_v13 = vadd.f32 %v4313_v5, %v20148_v35  ;;  %v4901_v33 = vrot.slane %v4561_v9, 1  ;;  %v5386_v29 = vmax.f32 %v4991_v44, %v5186_v14 }
 0x382   :  { %5566 = vmatprep.subr.mxu1 %v5391_v7  ;;  %v4900_v10 = vsel %vm4788_vm1, %v4895_v38, %v4899_v8  ;;  %v16111_v6 = vmax.f32 %v4557_v58, %v4898_v20  ;;  %v16114_v23 = vmax.f32 %v16055_v26, %v4894_v12  ;;  %v4903_v27 = vrot.slane %v4562_v31, 1 }
 0x383   :  { %5567 = vmatpush1.msra.mxu1 %v5390_v1  ;;  %v4563_v2 = vmax.f32 %v16102_v47, 0.0  ;;  %v16118_v7 = vadd.f32 %v15147_v63, %v4408_v13  ;;  %v4409_v1 = vadd.f32 %v4315_v18, %v20149_v56  ;;  %v4902_v48 = vsel %vm4788_vm1, %v4897_v0, %v4901_v33  ;;  %v20154_v56 = vld [vmem:[#allocation28_spill] sm:$0xff] }
 0x384   :  { %5568 = vmatprep.subr.mxu1 %v5389_v62  ;;  %v16124_v50 = vmax.f32 %v4558_v57, %v4900_v10  ;;  %v5278_v44 = vrot.slane %v16092_v36, 2  ;;  %v16128_v58 = vmax.f32 %v16037_v11, %v4892_v37  ;;  %v4410_v62 = vadd.f32 %v4319_v59, %v20150_v45  ;;  %v20153_v37 = vld [vmem:[#allocation67_spill] sm:$0xff] }
 0x385   :  { %5569 = vmatpush1.msra.mxu1 %v5388_v25  ;;  %v4564_v38 = vmax.f32 %v16118_v7, 0.0  ;;  %v4493_v16 = vadd.f32 %v15161_v32, %v4409_v1  ;;  %v4905_v28 = vrot.slane %v4563_v2, 1  ;;  %v4321_v25 = vpop.f32.mrf.mxu0  ;;  %v4904_v19 = vsel %vm4788_vm1, %v4899_v8, %v4903_v27 }
 0x386   :  { %5570 = vmatprep.subr.mxu1 %v5387_v43  ;;  %v16136_v53 = vmax.f32 %v4559_v52, %v4902_v48  ;;  %v5280_v57 = vrot.slane %v16111_v6, 2  ;;  %v19548_v3 = vrot.slane %v16114_v23, 2  ;;  %v4494_v0 = vadd.f32 %v15147_v63, %v4410_v62 }
 0x387   :  { %5571 = vmatpush1.msra.mxu1 %v5386_v29  ;;  %v4565_v22 = vmax.f32 %v4493_v16, 0.0  ;;  %v4411_v21 = vadd.f32 %v4321_v25, %v20151_v41  ;;  %v4907_v46 = vrot.slane %v4564_v38, 1  ;;  %v4325_v43 = vpop.f32.mrf.mxu0  ;;  %v4906_v14 = vsel %vm4788_vm1, %v4901_v33, %v4905_v28  ;;  %v20155_v25 = vld [vmem:[#allocation68_spill] sm:$0xff] }
 0x388   :  { %v16143_v4 = vmax.f32 %v4560_v15, %v4904_v19  ;;  %v5282_v40 = vrot.slane %v16124_v50, 2  ;;  %v19547_v39 = vrot.slane %v16128_v58, 2  ;;  %v4566_v52 = vmax.f32 %v4494_v0, 0.0 }
 0x389   :  { %v4495_v30 = vadd.f32 %v15161_v32, %v4411_v21  ;;  %v4412_v17 = vadd.f32 %v4325_v43, %v20152_v51  ;;  %v4909_v24 = vrot.slane %v4565_v22, 1  ;;  %v4327_v8 = vpop.f32.mrf.mxu0  ;;  %v4908_v5 = vsel %vm4788_vm1, %v4903_v27, %v4907_v46  ;;  %v20156_v51 = vld [vmem:[#allocation29_spill] sm:$0xff] }
 0x38a   :  { %v16150_v42 = vmax.f32 %v4561_v9, %v4906_v14  ;;  %v5286_v61 = vrot.slane %v16143_v4, 2  ;;  %v5284_v15 = vrot.slane %v16136_v53, 2  ;;  %v4413_v47 = vadd.f32 %v4327_v8, %v20153_v37 }
 0x38b   :  { %v4567_v20 = vmax.f32 %v4495_v30, 0.0  ;;  %v4496_v12 = vadd.f32 %v15147_v63, %v4412_v17  ;;  %v4911_v35 = vrot.slane %v4566_v52, 1  ;;  %v4331_v13 = vpop.f32.mrf.mxu0  ;;  %v4910_v33 = vsel %vm4788_vm1, %v4905_v28, %v4909_v24 }
 0x38c   :  { %v16157_v18 = vmax.f32 %v4562_v31, %v4908_v5  ;;  %v5288_v29 = vrot.slane %v16150_v42, 2  ;;  %v16163_v9 = vsel %vm5183_vm2, %v5282_v40, %v5286_v61  ;;  %v4497_v7 = vadd.f32 %v15161_v32, %v4413_v47 }
 0x38d   :  { %v16165_v10 = vmax.f32 %v4496_v12, 0.0  ;;  %v4414_v1 = vadd.f32 %v4331_v13, %v20154_v56  ;;  %v4913_v27 = vrot.slane %v4567_v20, 1  ;;  %v4333_v59 = vpop.f32.mrf.mxu0  ;;  %v4912_v48 = vsel %vm4788_vm1, %v4907_v46, %v4911_v35 }
 0x38e   :  { %v16170_v16 = vmax.f32 %v4563_v2, %v4910_v33  ;;  %v5290_v31 = vrot.slane %v16157_v18, 2  ;;  %v16176_v45 = vsel %vm5183_vm2, %v5284_v15, %v5288_v29  ;;  %v16178_v62 = vmax.f32 %v4497_v7, 0.0 }
 0x38f   :  { %v4498_v28 = vadd.f32 %v15147_v63, %v4414_v1  ;;  %v4415_v19 = vadd.f32 %v4333_v59, %v20155_v25  ;;  %v16183_v0 = vrot.slane %v16165_v10, 1  ;;  %v4337_v41 = vpop.f32.mrf.mxu0  ;;  %v4914_v2 = vsel %vm4788_vm1, %v4909_v24, %v4913_v27 }
 0x390   :  { %v16186_v21 = vmax.f32 %v4564_v38, %v4912_v48  ;;  %v5292_v46 = vrot.slane %v16170_v16, 2  ;;  %v16192_v43 = vsel %vm5183_vm2, %v5286_v61, %v5290_v31  ;;  %v4416_v17 = vadd.f32 %v4337_v41, %v20156_v51 }
 0x391   :  { %v4570_v14 = vmax.f32 %v4498_v28, 0.0  ;;  %v4499_v30 = vadd.f32 %v15161_v32, %v4415_v19  ;;  %v16197_v8 = vrot.slane %v16178_v62, 1  ;;  %v4339_v5 = vpop.f32.mrf.mxu0  ;;  %v4916_v38 = vsel %vm4788_vm1, %v4911_v35, %v16183_v0 }
 0x392   :  { %v16201_v24 = vmax.f32 %v4565_v22, %v4914_v2  ;;  %v5294_v12 = vrot.slane %v16186_v21, 2  ;;  %v16205_v37 = vsel %vm5183_vm2, %v5288_v29, %v5292_v46  ;;  %v16208_v47 = vadd.f32 %v15147_v63, %v4416_v17 }
 0x393   :  { %4642 = vst [vmem:[#allocation2 + $0x118] sm:$0xff] %v4570_v14  ;;  %v4571_v61 = vmax.f32 %v4499_v30, 0.0  ;;  %v4417_v13 = vadd.f32 %v4339_v5, %v15946_v34  ;;  %v4918_v33 = vsel %vm4788_vm1, %v4913_v27, %v16197_v8  ;;  %v4343_v7 = vpop.f32.mrf.mxu0  ;;  %v16215_v22 = vmax.f32 %v4566_v52, %v4916_v38 }
 0x394   :  { %v16213_v56 = vmax.f32 %v4567_v20, %v4918_v33  ;;  %v5083_v35 = vrot.slane %v4570_v14, 1  ;;  %v5296_v1 = vrot.slane %v16201_v24, 2  ;;  %v4572_v29 = vmax.f32 %v16208_v47, 0.0 }
 0x395   :  { %4643 = vst [vmem:[#allocation2 + $0x20] sm:$0xff] %v4571_v61  ;;  %v4501_v59 = vadd.f32 %v15161_v32, %v4417_v13  ;;  %v4418_v48 = vadd.f32 %v4343_v7, %v15994_v55  ;;  %v5085_v28 = vrot.slane %v4571_v61, 1  ;;  %v4345_v34 = vpop.f32.mrf.mxu0  ;;  %v5298_v27 = vrot.slane %v16215_v22, 2 }
 0x396   :  { %v5300_v25 = vrot.slane %v16213_v56, 2  ;;  %v5084_v52 = vsel %vm4788_vm1, %v16183_v0, %v5083_v35  ;;  %v16226_v20 = vsel %vm5183_vm2, %v5292_v46, %v5296_v1  ;;  %v4419_v2 = vadd.f32 %v4345_v34, %v15997_v54 }
 0x397   :  { %v4573_v19 = vmax.f32 %v4501_v59, 0.0  ;;  %v4502_v41 = vadd.f32 %v15147_v63, %v4418_v48  ;;  %v5087_v30 = vrot.slane %v4572_v29, 1  ;;  %v5086_v55 = vsel %vm4788_vm1, %v16197_v8, %v5085_v28 }
 0x398   :  { %v5107_v51 = vmax.f32 %v16165_v10, %v5084_v52  ;;  %v16234_v17 = vsel %vm5183_vm2, %v5296_v1, %v5300_v25  ;;  %v16237_v5 = vsel %vm5183_vm2, %v5294_v12, %v5298_v27  ;;  %v4503_v46 = vadd.f32 %v15161_v32, %v4419_v2 }
 0x399   :  { %v4574_v38 = vmax.f32 %v4502_v41, 0.0  ;;  %v5089_v47 = vrot.slane %v4573_v19, 1  ;;  %v5088_v63 = vsel %vm4788_vm1, %v5083_v35, %v5087_v30  ;;  %v5108_v54 = vmax.f32 %v16178_v62, %v5086_v55 }
 0x39a   :  { %v5109_v13 = vmax.f32 %v4570_v14, %v5088_v63  ;;  %v5302_v33 = vrot.slane %v5107_v51, 2  ;;  %v5443_v7 = vmax.f32 %v16150_v42, %v16234_v17  ;;  %v4575_v59 = vmax.f32 %v4503_v46, 0.0  ;;  %v16327_v26 = vld [vmem:[#allocation2 + $0x118] sm:$0xf] }
 0x39b   :  { %4646 = vst [vmem:[#allocation2 + $0x150] sm:$0x3f] %v4574_v38  ;;  %v5090_v1 = vsel %vm4788_vm1, %v5085_v28, %v5089_v47  ;;  %v5442_v48 = vmax.f32 %v16143_v4, %v16237_v5  ;;  %v5441_v32 = vmax.f32 %v16136_v53, %v16226_v20  ;;  %v5304_v35 = vrot.slane %v5108_v54, 2 }
 0x39c   :  { %v5110_v34 = vmax.f32 %v4571_v61, %v5090_v1  ;;  %v5306_v52 = vrot.slane %v5109_v13, 2  ;;  %v16250_v14 = vsel %vm5183_vm2, %v5298_v27, %v5302_v33  ;;  %4647 = vst [vmem:[#allocation2 + $0xa0] sm:$0x3f] %v4575_v59  ;;  %v16257_v28 = vsel %vm5183_vm2, %v5290_v31, %v5294_v12 }
 0x39d   :  { %v5444_v41 = vmax.f32 %v16157_v18, %v16250_v14  ;;  %v5439_v2 = vmax.f32 %v16111_v6, %v16205_v37  ;;  %v5305_v27 = vsel %vm5183_vm2, %v5300_v25, %v5304_v35  ;;  %v5440_v38 = vmax.f32 %v16124_v50, %v16257_v28 }
 0x39e   :  { %v5308_v55 = vrot.slane %v5110_v34, 2  ;;  %v5307_v51 = vsel %vm5183_vm2, %v5302_v33, %v5306_v52  ;;  %v5445_v18 = vmax.f32 %v16170_v16, %v5305_v27  ;;  %v16279_v25 = vsel %vm5183_vm2, %v5280_v57, %v5284_v15  ;;  %v4695_v27 = vld [vmem:[#allocation2 + $0x1b0] sm:$0xff] }
 0x39f   :  { %v5446_v46 = vmax.f32 %v16186_v21, %v5307_v51  ;;  %v16287_v16 = vsel %vm5183_vm2, %v5278_v44, %v5282_v40  ;;  %v16294_v54 = vsel %vm5183_vm2, %v19548_v3, %v5280_v57  ;;  %v16301_v15 = vsel %vm5183_vm2, %v19547_v39, %v5278_v44 }
 0x3a0   :  { %v5309_v63 = vsel %vm5183_vm2, %v5304_v35, %v5308_v55  ;;  %v20158_v28 = vmax.f32 %v16092_v36, %v16192_v43  ;;  %v20160_v36 = vmax.f32 %v16128_v58, %v16163_v9 }
 0x3a1   :  { %v5447_v13 = vmax.f32 %v16201_v24, %v5309_v63  ;;  %v4697_v63 = vld [vmem:[#allocation2 + $0x130] sm:$0xff] }
 0x3a2   :  { %v5069_v21 = vld [vmem:[#allocation2 + $0x150] sm:$0x3f] }
 0x3a3   :  { %v5091_v33 = vrot.slane %v5069_v21, 1  ;;  %v5070_v24 = vld [vmem:[#allocation2 + $0xa0] sm:$0x3f]  ;;  %v5065_v61 = vld [vmem:[#allocation2 + $0x150] sm:$0x1f] }
 0x3a4   :  { %v5093_v59 = vrot.slane %v5070_v24, 1  ;;  %v4696_v24 = vld [vmem:[#allocation2 + $0x90] sm:$0xff]  ;;  %v5066_v3 = vld [vmem:[#allocation2 + $0xa0] sm:$0x1f] }
 0x3a5   :  { %v5092_v40 = vsel %vm4788_vm1, %v5087_v30, %v5091_v33  ;;  %v4693_v30 = vld [vmem:[#allocation2 + $0x100] sm:$0xff] }
 0x3a6   :  { %v16304_v1 = vmax.f32 %v4572_v29, %v5092_v40  ;;  %v5094_v34 = vsel %vm4788_vm1, %v5089_v47, %v5093_v59  ;;  %v4881_v40 = vrot.slane %v4695_v27, 1  ;;  %v4885_v47 = vrot.slane %v4697_v63, 1 }
 0x3a7   :  { %v5112_v35 = vmax.f32 %v4573_v19, %v5094_v34  ;;  %v16314_v19 = vld [vmem:[#allocation2 + $0x20] sm:$0xf]  ;;  %v4883_v34 = vrot.slane %v4696_v24, 1  ;;  %v4877_v39 = vrot.slane %v4693_v30, 1 }
 0x3a8   :  { %v19549_v57 = vrot.slane %v16304_v1, 2  ;;  %v4886_v11 = vsel %vm4788_vm1, %v4881_v40, %v4885_v47 }
 0x3a9   :  { %v5312_v14 = vrot.slane %v5112_v35, 2  ;;  %v4694_v35 = vld [vmem:[#allocation2 + $0x30] sm:$0xff] }
 0x3aa   :  { %v5311_v51 = vsel %vm5183_vm2, %v5306_v52, %v19549_v57  ;;  %v4692_v52 = vld [vmem:[#allocation2 + $0x50] sm:$0xff]  ;;  %v4879_v12 = vrot.slane %v4694_v35, 1  ;;  %v4919_v57 = vrot.slane %v16327_v26, 1 }
 0x3ab   :  { %v5448_v44 = vmax.f32 %v16215_v22, %v5311_v51  ;;  %v5313_v21 = vsel %vm5183_vm2, %v5308_v55, %v5312_v14  ;;  %v4890_v22 = vsel %vm4788_vm1, %v4885_v47, %v4889_v49  ;;  %v4691_v55 = vld [vmem:[#allocation2 + $0x160] sm:$0xff]  ;;  %v16319_v51 = vmax.f32 %v5066_v3, %v5093_v59  ;;  %v5464_v26 = vld [vmem:[%s19478_s5 + $0x50] sm:$0xff] }
 0x3ac   :  { %v5449_v29 = vmax.f32 %v16213_v56, %v5313_v21  ;;  %v4888_v56 = vsel %vm4788_vm1, %v4883_v34, %v4887_v60  ;;  %v4882_v21 = vsel %vm4788_vm1, %v4877_v39, %v4881_v40  ;;  %v5040_v49 = vmax.f32 %v4697_v63, %v4890_v22  ;;  %v20163_v22 = vld [vmem:[#allocation11_spill] sm:$0xff] }
 0x3ad   :  { %v4875_v31 = vrot.slane %v4692_v52, 1  ;;  %v4873_v3 = vrot.slane %v4691_v55, 1  ;;  %v4884_v60 = vsel %vm4788_vm1, %v4879_v12, %v4883_v34  ;;  %v16331_v59 = vmax.f32 %v4693_v30, %v4882_v21 }
 0x3ae   :  { %5572 = vmatprep.subr.mxu1 %v5449_v29  ;;  %v4921_v29 = vrot.slane %v16314_v19, 1  ;;  %v4920_v4 = vsel %vm4788_vm1, %v16183_v0, %v4919_v57  ;;  %v20157_v0 = vrot.slane %v16304_v1, 2  ;;  %v5458_v19 = vld [vmem:[%s19478_s5 + $0x20] sm:$0xff] }
 0x3af   :  { %5573 = vmatpush2.msra.mxu1 %v5448_v44  ;;  %v5316_v44 = vrot.slane %v16319_v51, 2  ;;  %v4880_v42 = vsel %vm4788_vm1, %v4875_v31, %v4879_v12  ;;  %v4878_v17 = vsel %vm4788_vm1, %v4873_v3, %v4877_v39  ;;  %v5038_v39 = vmax.f32 %v4695_v27, %v4886_v11  ;;  %v5461_v51 = vld [vmem:[%s19478_s5 + $0x38] sm:$0xff] }
 0x3b0   :  { %5574 = vmatprep.subr.mxu1 %v5447_v13  ;;  %v5039_v13 = vmax.f32 %v4696_v24, %v4888_v56  ;;  %v4688_v24 = vld [vmem:[#allocation2 + $0x48] sm:$0xff]  ;;  %v5055_v53 = vmax.f32 %v16165_v10, %v4920_v4  ;;  %v5435_v10 = vmax.f32 %v5040_v49, %v16279_v25  ;;  %v5035_v27 = vmax.f32 %v4692_v52, %v4880_v42 }
 0x3b1   :  { %5575 = vmatpush2.msra.mxu1 %v5446_v46  ;;  %v4690_v46 = vld [vmem:[#allocation2 + $0x238] sm:$0xff]  ;;  %v5317_v63 = vsel %vm5183_vm2, %v5312_v14, %v5316_v44  ;;  %v4867_v6 = vrot.slane %v4688_v24, 1  ;;  %v5268_v43 = vrot.slane %v5038_v39, 2  ;;  %v5034_v40 = vmax.f32 %v4691_v55, %v4878_v17 }
 0x3b2   :  { %5576 = vmatprep.subr.mxu1 %v5445_v18  ;;  %v16337_v18 = vmax.f32 %v5065_v61, %v5091_v33  ;;  %v5037_v33 = vmax.f32 %v4694_v35, %v4884_v60  ;;  %v5270_v20 = vrot.slane %v5039_v13, 2  ;;  %v5434_v12 = vmax.f32 %v5039_v13, %v16287_v16  ;;  %v20164_v55 = vld [vmem:[#allocation85_spill] sm:$0xff] }
 0x3b3   :  { %5577 = vmatpush2.msra.mxu1 %v5444_v41  ;;  %v4922_v41 = vsel %vm4788_vm1, %v16197_v8, %v4921_v29  ;;  %v5272_v8 = vrot.slane %v5040_v49, 2  ;;  %v20162_v16 = vrot.slane %v16128_v58, 2  ;;  %v4868_v21 = vsel %vm4788_vm1, %v20164_v55, %v4867_v6 }
 0x3b4   :  { %5578 = vmatprep.subr.mxu1 %v5443_v7  ;;  %v4689_v7 = vld [vmem:[#allocation2 + $0x98] sm:$0xff]  ;;  %v5056_v61 = vmax.f32 %v16178_v62, %v4922_v41  ;;  %v5314_v14 = vrot.slane %v16337_v18, 2  ;;  %v4871_v62 = vrot.slane %v4690_v46, 1  ;;  %v5266_v1 = vrot.slane %v5037_v33, 2  ;;  %v5463_v18 = vld [vmem:[%s19478_s5 + $0x48] sm:$0xff] }
 0x3b5   :  { %5579 = vmatpush2.msra.mxu1 %v5442_v48  ;;  %v5264_v48 = vrot.slane %v16331_v59, 2  ;;  %v5275_v34 = vsel %vm5183_vm2, %v5270_v20, %v20162_v16  ;;  %v5432_v52 = vmax.f32 %v5037_v33, %v16301_v15  ;;  %v5262_v49 = vrot.slane %v5035_v27, 2  ;;  %v20175_v16 = vld [vmem:[#allocation65_spill] sm:$0xff] }
 0x3b6   :  { %5580 = vmatprep.subr.mxu1 %v5441_v32  ;;  %v16363_v5 = vmax.f32 %v5056_v61, %v5317_v63  ;;  %v4869_v32 = vrot.slane %v4689_v7, 1  ;;  %v5315_v50 = vsel %vm5183_vm2, %v20157_v0, %v5314_v14  ;;  %v4872_v47 = vsel %vm4788_vm1, %v4867_v6, %v4871_v62 }
 0x3b7   :  { %5581 = vmatpush2.msra.mxu1 %v5440_v38  ;;  %v4876_v38 = vsel %vm4788_vm1, %v4871_v62, %v4875_v31  ;;  %v16380_v37 = vmax.f32 %v5055_v53, %v5315_v50  ;;  %v20161_v31 = vrot.slane %v16114_v23, 2  ;;  %v5271_v58 = vsel %vm5183_vm2, %v5266_v1, %v5270_v20 }
 0x3b8   :  { %5582 = vmatprep.subr.mxu1 %v5439_v2  ;;  %v20159_v2 = vmax.f32 %v16114_v23, %v16176_v45  ;;  %v4874_v30 = vsel %vm4788_vm1, %v4869_v32, %v4873_v3  ;;  %v5433_v45 = vmax.f32 %v5038_v39, %v16294_v54  ;;  %v5033_v35 = vmax.f32 %v4690_v46, %v4876_v38  ;;  %v20165_v46 = vld [vmem:[#allocation82_spill] sm:$0xff] }
 0x3b9   :  { %5583 = vmatpush2.msra.mxu1 %v20158_v28  ;;  %v5277_v25 = vsel %vm5183_vm2, %v5272_v8, %v20161_v31  ;;  %v4870_v9 = vsel %vm4788_vm1, %v20163_v22, %v4869_v32  ;;  %v5273_v23 = vsel %vm5183_vm2, %v5268_v43, %v5272_v8  ;;  %v5032_v56 = vmax.f32 %v4689_v7, %v4874_v30  ;;  %v20167_v7 = vld [vmem:[#allocation79_spill] sm:$0xff]  ;;  %v4714_v22 = vld [vmem:[#allocation2 + $0x118] sm:$0x7] }
 0x3ba   :  { %5584 = vmatprep.subr.mxu1 %v20159_v2  ;;  %v5431_v54 = vmax.f32 %v16331_v59, %v5277_v25  ;;  %v5031_v3 = vmax.f32 %v4688_v24, %v4872_v47  ;;  %v5430_v13 = vmax.f32 %v5035_v27, %v5275_v34  ;;  %v5260_v11 = vrot.slane %v5034_v40, 2 }
 0x3bb   :  { %5585 = vmatpush2.msra.mxu1 %v20160_v36  ;;  %v5269_v60 = vsel %vm5183_vm2, %v5264_v48, %v5268_v43  ;;  %v20166_v15 = vmax.f32 %v20165_v46, 0.0  ;;  %v5429_v63 = vmax.f32 %v5034_v40, %v5273_v23  ;;  %v5258_v42 = vrot.slane %v5033_v35, 2  ;;  %v20172_v36 = vld [vmem:[#allocation83_spill] sm:$0xff]  ;;  %v20174_v40 = vld [vmem:[#allocation86_spill] sm:$0xff]  ;;  %v5481_v46 = vld [vmem:[%s19478_s5 + $0xd8] sm:$0xff] }
 0x3bc   :  { %5586 = vmatprep.subr.mxu1 %v5435_v10  ;;  %v5267_v17 = vsel %vm5183_vm2, %v5262_v49, %v5266_v1  ;;  %v20168_v61 = vmax.f32 %v20167_v7, 0.0  ;;  %v5428_v8 = vmax.f32 %v5033_v35, %v5271_v58  ;;  %v5256_v33 = vrot.slane %v5032_v56, 2  ;;  %v5454_v23 = vld [vmem:[%s19478_s5] sm:$0xff]  ;;  %v5476_v58 = vld [vmem:[%s19478_s5 + $0xb0] sm:$0xff] }
 0x3bd   :  { %5587 = vmatpush2.msra.mxu1 %v5434_v12  ;;  %v5030_v41 = vmax.f32 %v20166_v15, %v4870_v9  ;;  %v5265_v24 = vsel %vm5183_vm2, %v5260_v11, %v5264_v48  ;;  %v5427_v4 = vmax.f32 %v5032_v56, %v5269_v60  ;;  %v5254_v39 = vrot.slane %v5031_v3, 2  ;;  %v20169_v48 = vld [vmem:[#allocation87_spill] sm:$0xff]  ;;  %v20170_v12 = vld [vmem:[#allocation89_spill] sm:$0xff] }
 0x3be   :  { %5588 = vmatprep.subr.mxu1 %v5433_v45  ;;  %v5029_v59 = vmax.f32 %v20168_v61, %v4868_v21  ;;  %v5263_v62 = vsel %vm5183_vm2, %v5258_v42, %v5262_v49  ;;  %v5426_v53 = vmax.f32 %v5031_v3, %v5267_v17  ;;  %v5261_v32 = vsel %vm5183_vm2, %v5256_v33, %v5260_v11  ;;  %v4715_v45 = vld [vmem:[#allocation2 + $0x20] sm:$0x7]  ;;  %v5469_v21 = vld [vmem:[%s19478_s5 + $0x78] sm:$0xff]  ;;  %v5472_v49 = vld [vmem:[%s19478_s5 + $0x90] sm:$0xff] }
 0x3bf   :  { %5589 = vmatpush2.msra.mxu1 %v5432_v52  ;;  %v5252_v20 = vrot.slane %v5030_v41, 2  ;;  %v5425_v0 = vmax.f32 %v5030_v41, %v5265_v24  ;;  %v5259_v28 = vsel %vm5183_vm2, %v5254_v39, %v5258_v42  ;;  %v5423_v6 = vmax.f32 %v20169_v48, %v5261_v32  ;;  %v20176_v9 = vld [vmem:[#allocation81_spill] sm:$0xff]  ;;  %v5475_v3 = vld [vmem:[%s19478_s5 + $0xa8] sm:$0xff]  ;;  %v5484_v41 = vld [vmem:[%s19478_s5 + $0xf0] sm:$0xff] }
 0x3c0   :  { %5590 = vmatprep.subr.mxu1 %v5431_v54  ;;  %v5250_v50 = vrot.slane %v5029_v59, 2  ;;  %v5424_v10 = vmax.f32 %v5029_v59, %v5263_v62  ;;  %v5422_v1 = vmax.f32 %v20170_v12, %v5259_v28  ;;  %v20171_v27 = vrot.slane %v20169_v48, 2  ;;  %v5473_v54 = vld [vmem:[%s19478_s5 + $0x98] sm:$0xff]  ;;  %v5478_v11 = vld [vmem:[%s19478_s5 + $0xc0] sm:$0xff]  ;;  %v5487_v42 = vld [vmem:[%s19478_s5 + $0x108] sm:$0xff] }
 0x3c1   :  { %5591 = vmatpush2.msra.mxu1 %v5430_v13  ;;  %v5257_v38 = vsel %vm5183_vm2, %v5252_v20, %v5256_v33  ;;  %v20173_v31 = vrot.slane %v20170_v12, 2  ;;  %v5058_v35 = vmax.f32 %v4715_v45, %v4921_v29  ;;  %v5057_v56 = vmax.f32 %v4714_v22, %v4919_v57  ;;  %v5457_v57 = vld [vmem:[%s19478_s5 + $0x18] sm:$0xff]  ;;  %v5479_v13 = vld [vmem:[%s19478_s5 + $0xc8] sm:$0xff]  ;;  %v5482_v60 = vld [vmem:[%s19478_s5 + $0xe0] sm:$0xff] }
 0x3c2   :  { %5592 = vmatprep.subr.mxu1 %v5429_v63  ;;  %v5255_v2 = vsel %vm5183_vm2, %v5250_v50, %v5254_v39  ;;  %v5253_v30 = vsel %vm5183_vm2, %v20171_v27, %v5252_v20  ;;  %v5421_v43 = vmax.f32 %v20172_v36, %v5257_v38  ;;  %v5485_v15 = vld [vmem:[%s19478_s5 + $0xf8] sm:$0xff]  ;;  %v5488_v63 = vld [vmem:[%s19478_s5 + $0x110] sm:$0xff]  ;;  %v5491_v17 = vld [vmem:[%s19478_s5 + $0x128] sm:$0xf]  ;;  %v20177_v61 = vmov 0.0  }
 0x3c3   :  { %5593 = vmatpush2.msra.mxu1 %v5428_v8  ;;  %v5251_v25 = vsel %vm5183_vm2, %v20173_v31, %v5250_v50  ;;  %v5420_v47 = vmax.f32 %v20174_v40, %v5255_v2  ;;  %v5419_v34 = vmax.f32 %v20175_v16, %v5253_v30  ;;  %v5453_v55 = vmax.f32 %v5058_v35, %v5316_v44  ;;  %v5460_v44 = vld [vmem:[%s19478_s5 + $0x30] sm:$0xff]  ;;  %v5490_v7 = vld [vmem:[%s19478_s5 + $0x120] sm:$0xf]  ;;  %v5459_v8 = vld [vmem:[%s19478_s5 + $0x28] sm:$0xff] }
 0x3c4   :  { %5594 = vmatprep.subr.mxu1 %v5427_v4  ;;  %v5418_v52 = vmax.f32 %v20176_v9, %v5251_v25  ;;  %v5452_v29 = vmax.f32 %v5057_v56, %v5314_v14  ;;  %v5467_v14 = vld [vmem:[%s19478_s5 + $0x68] sm:$0xff]  ;;  %v5456_v59 = vld [vmem:[%s19478_s5 + $0x10] sm:$0xff]  ;;  %v5462_v33 = vld [vmem:[%s19478_s5 + $0x40] sm:$0xff] }
 0x3c5   :  { %5595 = vmatpush2.msra.mxu1 %v5426_v53  ;;  %v5465_v24 = vld [vmem:[%s19478_s5 + $0x58] sm:$0xff]  ;;  %v5468_v4 = vld [vmem:[%s19478_s5 + $0x70] sm:$0xff]  ;;  %v5471_v39 = vld [vmem:[%s19478_s5 + $0x88] sm:$0xff] }
 0x3c6   :  { %5596 = vmatprep.subr.mxu1 %v5425_v0  ;;  %v5474_v62 = vld [vmem:[%s19478_s5 + $0xa0] sm:$0xff]  ;;  %v5477_v53 = vld [vmem:[%s19478_s5 + $0xb8] sm:$0xff]  ;;  %v5480_v0 = vld [vmem:[%s19478_s5 + $0xd0] sm:$0xff] }
 0x3c7   :  { %5597 = vmatpush2.msra.mxu1 %v5424_v10  ;;  %v5903_v20 = vld [vmem:[%s19479_s3 + $0xf8] sm:$0xff]  ;;  %v5483_v50 = vld [vmem:[%s19478_s5 + $0xe8] sm:$0xff]  ;;  %v5902_v28 = vld [vmem:[%s19479_s3 + $0xf0] sm:$0xff] }
 0x3c8   :  { %5598 = vmatprep.subr.mxu1 %v5423_v6  ;;  %11267 = vmatprep.subr.mxu0 %v5903_v20  ;;  %v5887_v32 = vld [vmem:[%s19479_s3 + $0x78] sm:$0xff]  ;;  %v5886_v10 = vld [vmem:[%s19479_s3 + $0x70] sm:$0xff]  ;;  %v5486_v38 = vld [vmem:[%s19478_s5 + $0x100] sm:$0xff] }
 0x3c9   :  { %5599 = vmatpush2.msra.mxu1 %v5422_v1  ;;  %11268 = vmatpush3.msra.mxu0 %v5887_v32  ;;  %v5489_v48 = vld [vmem:[%s19478_s5 + $0x118] sm:$0xff]  ;;  %v5901_v6 = vld [vmem:[%s19479_s3 + $0xe8] sm:$0xff]  ;;  %v5492_v2 = vld [vmem:[%s19478_s5 + $0x130] sm:$0xf] }
 0x3ca   :  { %5600 = vmatprep.subr.mxu1 %v5421_v43  ;;  %11269 = vmatprep.subr.mxu0 %v5902_v28  ;;  %v5885_v12 = vld [vmem:[%s19479_s3 + $0x68] sm:$0xff]  ;;  %v5900_v1 = vld [vmem:[%s19479_s3 + $0xe0] sm:$0xff]  ;;  %v10707_v27 = vld [vmem:[%s19479_s3 + $0x1f8] sm:$0xff] }
 0x3cb   :  { %5601 = vmatpush2.msra.mxu1 %v5420_v47  ;;  %11270 = vmatpush3.msra.mxu0 %v5886_v10  ;;  %v5884_v30 = vld [vmem:[%s19479_s3 + $0x60] sm:$0xff]  ;;  %v10691_v36 = vld [vmem:[%s19479_s3 + $0x178] sm:$0xff]  ;;  %v10706_v31 = vld [vmem:[%s19479_s3 + $0x1f0] sm:$0xff] }
 0x3cc   :  { %5602 = vmatprep.subr.mxu1 %v5419_v34  ;;  %11271 = vmatprep.subr.mxu0 %v5901_v6  ;;  %v5899_v43 = vld [vmem:[%s19479_s3 + $0xd8] sm:$0xff]  ;;  %v10690_v40 = vld [vmem:[%s19479_s3 + $0x170] sm:$0xff]  ;;  %v10705_v45 = vld [vmem:[%s19479_s3 + $0x1e8] sm:$0xff] }
 0x3cd   :  { %5603 = vmatpush2.msra.mxu1 %v5418_v52  ;;  %11272 = vmatpush3.msra.mxu0 %v5885_v12  ;;  %v5883_v25 = vld [vmem:[%s19479_s3 + $0x58] sm:$0xff]  ;;  %v5898_v47 = vld [vmem:[%s19479_s3 + $0xd0] sm:$0xff]  ;;  %v10689_v34 = vld [vmem:[%s19479_s3 + $0x168] sm:$0xff] }
 0x3ce   :  { %5605 = vmatmul.mubr.f32.vlgmr.msra.gmra.mxu1 %v5454_v23  ;;  %10661 = vmatprep.subr.msk.mxu1 %vm5533_vm3, %v5453_v55  ;;  %v5882_v16 = vld [vmem:[%s19479_s3 + $0x50] sm:$0xff]  ;;  %v5897_v35 = vld [vmem:[%s19479_s3 + $0xc8] sm:$0xff]  ;;  %v10704_v22 = vld [vmem:[%s19479_s3 + $0x1e0] sm:$0xff] }
 0x3cf   :  { %10662 = vmatpush1.msk.msra.mxu1 %vm5533_vm3, %v5452_v29  ;;  %5610 = vmatprep.mubr.f32.mxu1 %v5458_v19  ;;  %v5881_v9 = vld [vmem:[%s19479_s3 + $0x48] sm:$0xff]  ;;  %v10688_v52 = vld [vmem:[%s19479_s3 + $0x160] sm:$0xff]  ;;  %v10703_v56 = vld [vmem:[%s19479_s3 + $0x1d8] sm:$0xff] }
 0x3d0   :  { %5713 = vmatprep.subr.mxu1 %v16363_v5  ;;  %v5466_v5 = vld [vmem:[%s19478_s5 + $0x60] sm:$0xff]  ;;  %11273 = vmatprep.subr.mxu0 %v5900_v1  ;;  %v10687_v19 = vld [vmem:[%s19479_s3 + $0x158] sm:$0xff]  ;;  %v10694_v20 = vld [vmem:[%s19479_s3 + $0x190] sm:$0xff] }
 0x3d1   :  { %5714 = vmatpush1.msra.mxu1 %v16380_v37  ;;  %v5470_v37 = vld [vmem:[%s19478_s5 + $0x80] sm:$0xff]  ;;  %11274 = vmatpush3.msra.mxu0 %v5884_v30  ;;  %v5895_v29 = vld [vmem:[%s19479_s3 + $0xb8] sm:$0xff]  ;;  %v10678_v32 = vld [vmem:[%s19479_s3 + $0x110] sm:$0xff] }
 0x3d2   :  { %5611 = vmatmul.mubr.f32.gmra.mxu1 %v5457_v57  ;;  %11205 = vmatprep.subr.mxu1 %v10707_v27  ;;  %v5896_v23 = vld [vmem:[%s19479_s3 + $0xc0] sm:$0xff]  ;;  %v10702_v57 = vld [vmem:[%s19479_s3 + $0x1d0] sm:$0xff] }
 0x3d3   :  { %5616 = vmatprep.mubr.f32.mxu1 %v5461_v51  ;;  %11275 = vmatprep.subr.mxu0 %v5899_v43  ;;  %v5880_v55 = vld [vmem:[%s19479_s3 + $0x40] sm:$0xff]  ;;  %v5879_v51 = vld [vmem:[%s19479_s3 + $0x38] sm:$0xff] }
 0x3d4   :  { %11276 = vmatpush3.msra.mxu0 %v5883_v25  ;;  %v10692_v28 = vld [vmem:[%s19479_s3 + $0x180] sm:$0xff] }
 0x3d5   :  { %11277 = vmatprep.subr.mxu0 %v5898_v47  ;;  %v10676_v10 = vld [vmem:[%s19479_s3 + $0x100] sm:$0xff] }
 0x3d6   :  { %5617 = vmatmul.mubr.f32.gmra.mxu1 %v5460_v44  ;;  %11278 = vmatpush3.msra.mxu0 %v5882_v16  ;;  %v10686_v44 = vld [vmem:[%s19479_s3 + $0x150] sm:$0xff] }
 0x3d7   :  { %5622 = vmatprep.mubr.f32.mxu1 %v5464_v26  ;;  %11279 = vmatprep.subr.mxu0 %v5897_v35  ;;  %v5894_v26 = vld [vmem:[%s19479_s3 + $0xb0] sm:$0xff] }
 0x3d8   :  { %11280 = vmatpush3.msra.mxu0 %v5881_v9 }
 0x3d9   :  { %11281 = vmatprep.subr.mxu0 %v5896_v23 }
 0x3da   :  { %5623 = vmatmul.mubr.f32.gmra.mxu1 %v5463_v18  ;;  %11282 = vmatpush3.msra.mxu0 %v5880_v55  ;;  %v10701_v18 = vld [vmem:[%s19479_s3 + $0x1c8] sm:$0xff] }
 0x3db   :  { %5628 = vmatprep.mubr.f32.mxu1 %v5467_v14  ;;  %11283 = vmatprep.subr.mxu0 %v5895_v29  ;;  %v5878_v14 = vld [vmem:[%s19479_s3 + $0x30] sm:$0xff] }
 0x3dc   :  { %11284 = vmatpush3.msra.mxu0 %v5879_v51 }
 0x3dd   :  { %11285 = vmatprep.subr.mxu0 %v5894_v26 }
 0x3de   :  { %5629 = vmatmul.mubr.f32.gmra.mxu1 %v5466_v5  ;;  %11286 = vmatpush3.msra.mxu0 %v5878_v14  ;;  %v10685_v5 = vld [vmem:[%s19479_s3 + $0x148] sm:$0xff] }
 0x3df   :  { %5634 = vmatprep.mubr.f32.mxu1 %v5470_v37  ;;  %v5893_v37 = vld [vmem:[%s19479_s3 + $0xa8] sm:$0xff] }
 0x3e0   :  { %11287 = vmatprep.subr.mxu0 %v5893_v37  ;;  %v10755_v37 = vld [vmem:[%s19479_s3 + $0x378] sm:$0xff] }
 0x3e2   :  { %5635 = vmatmul.mubr.f32.gmra.mxu1 %v5469_v21  ;;  %v10700_v21 = vld [vmem:[%s19479_s3 + $0x1c0] sm:$0xff] }
 0x3e3   :  { %5640 = vmatprep.mubr.f32.mxu1 %v5473_v54  ;;  %v5877_v54 = vld [vmem:[%s19479_s3 + $0x28] sm:$0xff] }
 0x3e4   :  { %11288 = vmatpush3.msra.mxu0 %v5877_v54  ;;  %v10770_v54 = vld [vmem:[%s19479_s3 + $0x3f0] sm:$0xff] }
 0x3e6   :  { %5641 = vmatmul.mubr.f32.gmra.mxu1 %v5472_v49  ;;  %v10684_v49 = vld [vmem:[%s19479_s3 + $0x140] sm:$0xff] }
 0x3e7   :  { %5646 = vmatprep.mubr.f32.mxu1 %v5476_v58  ;;  %v5892_v58 = vld [vmem:[%s19479_s3 + $0xa0] sm:$0xff] }
 0x3e8   :  { %11289 = vmatprep.subr.mxu0 %v5892_v58  ;;  %v10754_v58 = vld [vmem:[%s19479_s3 + $0x370] sm:$0xff] }
 0x3ea   :  { %5647 = vmatmul.mubr.f32.gmra.mxu1 %v5475_v3  ;;  %v10699_v3 = vld [vmem:[%s19479_s3 + $0x1b8] sm:$0xff] }
 0x3eb   :  { %5652 = vmatprep.mubr.f32.mxu1 %v5479_v13  ;;  %v5876_v13 = vld [vmem:[%s19479_s3 + $0x20] sm:$0xff] }
 0x3ec   :  { %11290 = vmatpush3.msra.mxu0 %v5876_v13  ;;  %v10769_v13 = vld [vmem:[%s19479_s3 + $0x3e8] sm:$0xff] }
 0x3ee   :  { %5653 = vmatmul.mubr.f32.gmra.mxu1 %v5478_v11  ;;  %v10683_v11 = vld [vmem:[%s19479_s3 + $0x138] sm:$0xff] }
 0x3ef   :  { %5658 = vmatprep.mubr.f32.mxu1 %v5482_v60  ;;  %v5891_v60 = vld [vmem:[%s19479_s3 + $0x98] sm:$0xff] }
 0x3f0   :  { %11291 = vmatprep.subr.mxu0 %v5891_v60  ;;  %v10753_v60 = vld [vmem:[%s19479_s3 + $0x368] sm:$0xff] }
 0x3f2   :  { %5659 = vmatmul.mubr.f32.gmra.mxu1 %v5481_v46  ;;  %v10698_v46 = vld [vmem:[%s19479_s3 + $0x1b0] sm:$0xff] }
 0x3f3   :  { %5664 = vmatprep.mubr.f32.mxu1 %v5485_v15  ;;  %v5875_v15 = vld [vmem:[%s19479_s3 + $0x18] sm:$0xff] }
 0x3f4   :  { %11292 = vmatpush3.msra.mxu0 %v5875_v15  ;;  %v10768_v15 = vld [vmem:[%s19479_s3 + $0x3e0] sm:$0xff] }
 0x3f6   :  { %5665 = vmatmul.mubr.f32.gmra.mxu1 %v5484_v41  ;;  %v10682_v41 = vld [vmem:[%s19479_s3 + $0x130] sm:$0xff] }
 0x3f7   :  { %5670 = vmatprep.mubr.f32.mxu1 %v5488_v63  ;;  %v5890_v63 = vld [vmem:[%s19479_s3 + $0x90] sm:$0xff] }
 0x3f8   :  { %11293 = vmatprep.subr.mxu0 %v5890_v63 }
 0x3fa   :  { %5671 = vmatmul.mubr.f32.gmra.mxu1 %v5487_v42  ;;  %v10697_v42 = vld [vmem:[%s19479_s3 + $0x1a8] sm:$0xff] }
 0x3fb   :  { %5676 = vmatprep.mubr.f32.mxu1 %v5491_v17  ;;  %v5874_v17 = vld [vmem:[%s19479_s3 + $0x10] sm:$0xff] }
 0x3fc   :  { %11294 = vmatpush3.msra.mxu0 %v5874_v17 }
 0x3fe   :  { %5677 = vmatmul.mubr.f32.gmra.mxu1 %v5490_v7  ;;  %v10681_v7 = vld [vmem:[%s19479_s3 + $0x128] sm:$0xff] }
 0x3ff   :  { %5747 = vmatprep.mubr.f32.mxu1 %v20177_v61 }
 0x402   :  { %10663 = vmatmul.mubr.msk.f32.vlgmr.msra.gmra.mxu1 %vm5493_vm4, %v5456_v59  ;;  %v5889_v59 = vld [vmem:[%s19479_s3 + $0x88] sm:$0xff] }
 0x403   :  { %5753 = vmatprep.mubr.f32.mxu1 %v20177_v61  ;;  %11206 = vmatpush3.msra.mxu1 %v10691_v36 }
 0x404   :  { %11207 = vmatprep.subr.mxu1 %v10706_v31  ;;  %11295 = vmatprep.subr.mxu0 %v5889_v59 }
 0x405   :  { %11208 = vmatpush3.msra.mxu1 %v10690_v40 }
 0x406   :  { %10664 = vmatmul.mubr.msk.f32.gmra.mxu1 %vm5493_vm4, %v5459_v8  ;;  %11209 = vmatprep.subr.mxu1 %v10705_v45  ;;  %v10696_v8 = vld [vmem:[%s19479_s3 + $0x1a0] sm:$0xff] }
 0x407   :  { %5759 = vmatprep.mubr.f32.mxu1 %v20177_v61  ;;  %11210 = vmatpush3.msra.mxu1 %v10689_v34 }
 0x408   :  { %11211 = vmatprep.subr.mxu1 %v10704_v22 }
 0x409   :  { %11212 = vmatpush3.msra.mxu1 %v10688_v52 }
 0x40a   :  { %10665 = vmatmul.mubr.msk.f32.gmra.mxu1 %vm5493_vm4, %v5462_v33  ;;  %11213 = vmatprep.subr.mxu1 %v10703_v56  ;;  %v5873_v33 = vld [vmem:[%s19479_s3 + $0x8] sm:$0xff] }
 0x40b   :  { %5765 = vmatprep.mubr.f32.mxu1 %v20177_v61  ;;  %11214 = vmatpush3.msra.mxu1 %v10687_v19 }
 0x40c   :  { %11215 = vmatprep.subr.mxu1 %v10702_v57  ;;  %11296 = vmatpush3.msra.mxu0 %v5873_v33 }
 0x40d   :  { %11216 = vmatpush3.msra.mxu1 %v10686_v44 }
 0x40e   :  { %10666 = vmatmul.mubr.msk.f32.gmra.mxu1 %vm5493_vm4, %v5465_v24  ;;  %11217 = vmatprep.subr.mxu1 %v10701_v18  ;;  %v10680_v24 = vld [vmem:[%s19479_s3 + $0x120] sm:$0xff] }
 0x40f   :  { %5771 = vmatprep.mubr.f32.mxu1 %v20177_v61  ;;  %11218 = vmatpush3.msra.mxu1 %v10685_v5 }
 0x410   :  { %11219 = vmatprep.subr.mxu1 %v10700_v21 }
 0x411   :  { %11220 = vmatpush3.msra.mxu1 %v10684_v49 }
 0x412   :  { %10667 = vmatmul.mubr.msk.f32.gmra.mxu1 %vm5493_vm4, %v5468_v4  ;;  %11221 = vmatprep.subr.mxu1 %v10699_v3  ;;  %v5888_v4 = vld [vmem:[%s19479_s3 + $0x80] sm:$0xff] }
 0x413   :  { %5777 = vmatprep.mubr.f32.mxu1 %v20177_v61  ;;  %11222 = vmatpush3.msra.mxu1 %v10683_v11 }
 0x414   :  { %11223 = vmatprep.subr.mxu1 %v10698_v46  ;;  %11297 = vmatprep.subr.mxu0 %v5888_v4 }
 0x415   :  { %11224 = vmatpush3.msra.mxu1 %v10682_v41 }
 0x416   :  { %10668 = vmatmul.mubr.msk.f32.gmra.mxu1 %vm5493_vm4, %v5471_v39  ;;  %11225 = vmatprep.subr.mxu1 %v10697_v42  ;;  %v10695_v39 = vld [vmem:[%s19479_s3 + $0x198] sm:$0xff]  ;;  %v10752_v42 = vld [vmem:[%s19479_s3 + $0x360] sm:$0xff] }
 0x417   :  { %5783 = vmatprep.mubr.f32.mxu1 %v20177_v61  ;;  %11226 = vmatpush3.msra.mxu1 %v10681_v7  ;;  %v10767_v7 = vld [vmem:[%s19479_s3 + $0x3d8] sm:$0xff] }
 0x418   :  { %11227 = vmatprep.subr.mxu1 %v10696_v8 }
 0x419   :  { %11228 = vmatpush3.msra.mxu1 %v10680_v24  ;;  %v10751_v24 = vld [vmem:[%s19479_s3 + $0x358] sm:$0xff] }
 0x41a   :  { %10669 = vmatmul.mubr.msk.f32.gmra.mxu1 %vm5493_vm4, %v5474_v62  ;;  %v5872_v62 = vld [vmem:[%s19479_s3] sm:$0xff]  ;;  %11229 = vmatprep.subr.mxu1 %v10695_v39 }
 0x41b   :  { %5789 = vmatprep.mubr.f32.mxu1 %v20177_v61  ;;  %11298 = vmatpush3.msra.mxu0 %v5872_v62 }
 0x41e   :  { %10670 = vmatmul.mubr.msk.f32.gmra.mxu1 %vm5493_vm4, %v5477_v53  ;;  %v10679_v53 = vld [vmem:[%s19479_s3 + $0x118] sm:$0xff] }
 0x41f   :  { %5795 = vmatprep.mubr.f32.mxu1 %v20177_v61  ;;  %11230 = vmatpush3.msra.mxu1 %v10679_v53 }
 0x420   :  { %11231 = vmatprep.subr.mxu1 %v10694_v20  ;;  %v10766_v20 = vld [vmem:[%s19479_s3 + $0x3d0] sm:$0xff] }
 0x421   :  { %11232 = vmatpush3.msra.mxu1 %v10678_v32 }
 0x422   :  { %10671 = vmatmul.mubr.msk.f32.gmra.mxu1 %vm5493_vm4, %v5480_v0  ;;  %v10693_v0 = vld [vmem:[%s19479_s3 + $0x188] sm:$0xff] }
 0x423   :  { %5801 = vmatprep.mubr.f32.mxu1 %v20177_v61  ;;  %11233 = vmatprep.subr.mxu1 %v10693_v0 }
 0x426   :  { %10672 = vmatmul.mubr.msk.f32.gmra.mxu1 %vm5493_vm4, %v5483_v50  ;;  %v10677_v50 = vld [vmem:[%s19479_s3 + $0x108] sm:$0xff] }
 0x427   :  { %5807 = vmatprep.mubr.f32.mxu1 %v20177_v61  ;;  %11234 = vmatpush3.msra.mxu1 %v10677_v50 }
 0x428   :  { %11235 = vmatprep.subr.mxu1 %v10692_v28 }
 0x429   :  { %11236 = vmatpush3.msra.mxu1 %v10676_v10 }
 0x42a   :  { %10673 = vmatmul.mubr.msk.f32.gmra.mxu1 %vm5493_vm4, %v5486_v38  ;;  %v10771_v38 = vld [vmem:[%s19479_s3 + $0x3f8] sm:$0xff] }
 0x42b   :  { %5813 = vmatprep.mubr.f32.mxu1 %v20177_v61  ;;  %11391 = vmatprep.subr.mxu0 %v10771_v38 }
 0x42e   :  { %10674 = vmatmul.mubr.msk.f32.gmra.mxu1 %vm5493_vm4, %v5489_v48  ;;  %v10739_v48 = vld [vmem:[%s19479_s3 + $0x2f8] sm:$0xff] }
 0x42f   :  { %5819 = vmatprep.mubr.f32.mxu1 %v20177_v61  ;;  %11329 = vmatprep.subr.mxu1 %v10739_v48 }
 0x432   :  { %10675 = vmatmul.mubr.msk.f32.gmra.mxu1 %vm5493_vm4, %v5492_v2 }
 0x48e   :  { %v5606_v6 = vpop.f32.mrf.mxu1 }
 0x490   :  { %v5608_v2 = vpop.f32.mrf.mxu1 }
 0x492   :  { %v5612_v12 = vpop.f32.mrf.mxu1 }
 0x494   :  { %v5614_v1 = vpop.f32.mrf.mxu1 }
 0x496   :  { %v5618_v27 = vpop.f32.mrf.mxu1 }
 0x498   :  { %v5620_v30 = vpop.f32.mrf.mxu1 }
 0x49a   :  { %v5624_v36 = vpop.f32.mrf.mxu1 }
 0x49c   :  { %v16780_v43 = vpop.f32.mrf.mxu1 }
 0x49e   :  { %v16782_v31 = vpop.f32.mrf.mxu1 }
 0x4a0   :  { %v16784_v25 = vpop.f32.mrf.mxu1 }
 0x4a2   :  { %v16786_v40 = vpop.f32.mrf.mxu1 }
 0x4a4   :  { %v16788_v47 = vpop.f32.mrf.mxu1 }
 0x4a6   :  { %v16790_v45 = vpop.f32.mrf.mxu1 }
 0x4a8   :  { %v16792_v16 = vpop.f32.mrf.mxu1 }
 0x4aa   :  { %v16794_v34 = vpop.f32.mrf.mxu1 }
 0x4ac   :  { %v16796_v35 = vpop.f32.mrf.mxu1 }
 0x4ae   :  { %v16798_v22 = vpop.f32.mrf.mxu1 }
 0x4b0   :  { %v16800_v9 = vpop.f32.mrf.mxu1 }
 0x4b2   :  { %v16802_v52 = vpop.f32.mrf.mxu1 }
 0x4b4   :  { %v16804_v23 = vpop.f32.mrf.mxu1 }
 0x4b6   :  { %v16806_v56 = vpop.f32.mrf.mxu1 }
 0x4b8   :  { %v16808_v55 = vpop.f32.mrf.mxu1 }
 0x4ba   :  { %v16810_v19 = vpop.f32.mrf.mxu1 }
 0x4bc   :  { %v16812_v29 = vpop.f32.mrf.mxu1 }
 0x4be   :  { %v16814_v57 = vpop.f32.mrf.mxu1 }
 0x4c0   :  { %v16816_v51 = vpop.f32.mrf.mxu1 }
 0x4c2   :  { %v5749_v44 = vpop.f32.mrf.mxu1 }
 0x4c3   :  { %v5750_v26 = vadd.f32 %v5749_v44, %v5606_v6  ;;  %v10723_v6 = vld [vmem:[%s19479_s3 + $0x278] sm:$0xff] }
 0x4c4   :  { %v5751_v18 = vpop.f32.mrf.mxu1 }
 0x4c5   :  { %5826 = vst [vmem:[#allocation3 + $0x68] sm:$0xff] %v5750_v26  ;;  %v5752_v14 = vadd.f32 %v5751_v18, %v5608_v2  ;;  %v10750_v2 = vld [vmem:[%s19479_s3 + $0x350] sm:$0xff] }
 0x4c6   :  { %v5755_v5 = vpop.f32.mrf.mxu1 }
 0x4c7   :  { %5827 = vst [vmem:[#allocation3] sm:$0xff] %v5752_v14  ;;  %v16821_v21 = vadd.f32 %v5755_v5, %v5612_v12  ;;  %6198 = vmatprep.mubr.f32.mxu0 %v5752_v14  ;;  %v10722_v14 = vld [vmem:[%s19479_s3 + $0x270] sm:$0xff]  ;;  %v10749_v5 = vld [vmem:[%s19479_s3 + $0x348] sm:$0xff] }
 0x4c8   :  { %v5757_v49 = vpop.f32.mrf.mxu1  ;;  %6199 = vmatmul.mubr.f32.vlgmr.msra.gmra.mxu0 %v5750_v26 }
 0x4c9   :  { %5828 = vst [vmem:[#allocation3 + $0x10] sm:$0xff] %v16821_v21  ;;  %v16830_v3 = vadd.f32 %v5757_v49, %v5614_v1  ;;  %11392 = vmatpush3.msra.mxu0 %v10755_v37  ;;  %v5962_v0 = vrot.slane %v16821_v21, 1  ;;  %v10737_v49 = vld [vmem:[%s19479_s3 + $0x2e8] sm:$0xff] }
 0x4ca   :  { %v5761_v11 = vpop.f32.mrf.mxu1  ;;  %11393 = vmatprep.subr.mxu0 %v10770_v54 }
 0x4cb   :  { %5829 = vst [vmem:[#allocation3 + $0x30] sm:$0xff] %v16830_v3  ;;  %v16839_v46 = vadd.f32 %v5761_v11, %v5618_v27  ;;  %6203 = vmatprep.mubr.f32.mxu0 %v16830_v3  ;;  %11394 = vmatpush3.msra.mxu0 %v10754_v58  ;;  %v5965_v39 = vrot.slane %v16830_v3, 1  ;;  %v10764_v58 = vld [vmem:[%s19479_s3 + $0x3c0] sm:$0xff] }
 0x4cc   :  { %v5763_v41 = vpop.f32.mrf.mxu1  ;;  %6204 = vmatmul.mubr.f32.gmra.mxu0 %v16821_v21  ;;  %v5904_v63 = vld [vmem:[#allocation3 + $0x68] sm:$0xfe]  ;;  %11395 = vmatprep.subr.mxu0 %v10769_v13 }
 0x4cd   :  { %5830 = vst [vmem:[#allocation3 + $0xb8] sm:$0xff] %v16839_v46  ;;  %v16850_v17 = vadd.f32 %v5763_v41, %v5620_v30  ;;  %11396 = vmatpush3.msra.mxu0 %v10753_v60  ;;  %v5961_v33 = vrot.slane %v5904_v63, 1  ;;  %v5967_v48 = vrot.slane %v16839_v46, 1  ;;  %v10738_v30 = vld [vmem:[%s19479_s3 + $0x2f0] sm:$0xff]  ;;  %v10721_v41 = vld [vmem:[%s19479_s3 + $0x268] sm:$0xff]  ;;  %v10748_v63 = vld [vmem:[%s19479_s3 + $0x340] sm:$0xff] }
 0x4ce   :  { %v5767_v59 = vpop.f32.mrf.mxu1  ;;  %v5905_v8 = vld [vmem:[#allocation3] sm:$0xfe]  ;;  %11397 = vmatprep.subr.mxu0 %v10768_v15 }
 0x4cf   :  { %5831 = vst [vmem:[#allocation3 + $0x98] sm:$0xff] %v16850_v17  ;;  %v16859_v4 = vadd.f32 %v5767_v59, %v5624_v36  ;;  %v5964_v62 = vrot.slane %v5905_v8, 1  ;;  %v5969_v53 = vrot.slane %v16850_v17, 1  ;;  %6208 = vmatprep.mubr.f32.mxu0 %v16850_v17  ;;  %11398 = vmatpush3.msra.mxu0 %v10752_v42  ;;  %v5963_v38 = vsel %vm4788_vm1, %v5961_v33, %v5962_v0  ;;  %v10765_v36 = vld [vmem:[%s19479_s3 + $0x3c8] sm:$0xff]  ;;  %v10736_v59 = vld [vmem:[%s19479_s3 + $0x2e0] sm:$0xff]  ;;  %v10763_v8 = vld [vmem:[%s19479_s3 + $0x3b8] sm:$0xff] }
 0x4d0   :  { %v5769_v32 = vpop.f32.mrf.mxu1  ;;  %6209 = vmatmul.mubr.f32.gmra.mxu0 %v16839_v46  ;;  %11399 = vmatprep.subr.mxu0 %v10767_v7  ;;  %v5968_v26 = vsel %vm4788_vm1, %v5962_v0, %v5967_v48 }
 0x4d1   :  { %5832 = vst [vmem:[#allocation3 + $0xa0] sm:$0xff] %v16859_v4  ;;  %v16871_v50 = vadd.f32 %v5769_v32, %v16780_v43  ;;  %v5966_v28 = vsel %vm4788_vm1, %v5964_v62, %v5965_v39  ;;  %11400 = vmatpush3.msra.mxu0 %v10751_v24  ;;  %v5970_v1 = vsel %vm4788_vm1, %v5965_v39, %v5969_v53  ;;  %v5971_v18 = vrot.slane %v16859_v4, 1  ;;  %v10720_v24 = vld [vmem:[%s19479_s3 + $0x260] sm:$0xff] }
 0x4d2   :  { %v5773_v10 = vpop.f32.mrf.mxu1  ;;  %6083 = vmatprep.mubr.f32.mxu1 %v5966_v28  ;;  %11401 = vmatprep.subr.mxu0 %v10766_v20  ;;  %v10735_v20 = vld [vmem:[%s19479_s3 + $0x2d8] sm:$0xff] }
 0x4d3   :  { %5833 = vst [vmem:[#allocation3 + $0x40] sm:$0xff] %v16871_v50  ;;  %v16884_v12 = vadd.f32 %v5773_v10, %v16782_v31  ;;  %6084 = vmatmul.mubr.f32.vlgmr.msra.gmra.mxu1 %v5963_v38  ;;  %v5973_v27 = vrot.slane %v16871_v50, 1  ;;  %6213 = vmatprep.mubr.f32.mxu0 %v16871_v50  ;;  %v5972_v60 = vsel %vm4788_vm1, %v5967_v48, %v5971_v18  ;;  %v10719_v28 = vld [vmem:[%s19479_s3 + $0x258] sm:$0xff] }
 0x4d4   :  { %v5775_v43 = vpop.f32.mrf.mxu1  ;;  %6088 = vmatprep.mubr.f32.mxu1 %v5970_v1  ;;  %6214 = vmatmul.mubr.f32.gmra.mxu0 %v16859_v4  ;;  %v10747_v10 = vld [vmem:[%s19479_s3 + $0x338] sm:$0xff] }
 0x4d5   :  { %5834 = vst [vmem:[#allocation3 + $0x60] sm:$0xff] %v16884_v12  ;;  %v16898_v31 = vadd.f32 %v5775_v43, %v16784_v25  ;;  %11330 = vmatpush3.msra.mxu1 %v10723_v6  ;;  %11402 = vmatpush3.msra.mxu0 %v10750_v2  ;;  %v5974_v37 = vsel %vm4788_vm1, %v5969_v53, %v5973_v27  ;;  %v5975_v15 = vrot.slane %v16884_v12, 1  ;;  %v10718_v6 = vld [vmem:[%s19479_s3 + $0x250] sm:$0xff]  ;;  %v10733_v43 = vld [vmem:[%s19479_s3 + $0x2c8] sm:$0xff] }
 0x4d6   :  { %v5779_v44 = vpop.f32.mrf.mxu1  ;;  %11331 = vmatprep.subr.mxu1 %v10738_v30  ;;  %11403 = vmatprep.subr.mxu0 %v10765_v36  ;;  %v10762_v30 = vld [vmem:[%s19479_s3 + $0x3b0] sm:$0xff] }
 0x4d7   :  { %5835 = vst [vmem:[#allocation3 + $0x80] sm:$0xff] %v16898_v31  ;;  %v16910_v25 = vadd.f32 %v5779_v44, %v16786_v40  ;;  %6089 = vmatmul.mubr.f32.gmra.mxu1 %v5968_v26  ;;  %v5977_v54 = vrot.slane %v16898_v31, 1  ;;  %6218 = vmatprep.mubr.f32.mxu0 %v16898_v31  ;;  %v5976_v62 = vsel %vm4788_vm1, %v5971_v18, %v5975_v15  ;;  %v10746_v44 = vld [vmem:[%s19479_s3 + $0x330] sm:$0xff] }
 0x4d8   :  { %v5781_v13 = vpop.f32.mrf.mxu1  ;;  %6093 = vmatprep.mubr.f32.mxu1 %v5974_v37  ;;  %6219 = vmatmul.mubr.f32.gmra.mxu0 %v16884_v12 }
 0x4d9   :  { %5836 = vst [vmem:[#allocation3 + $0x20] sm:$0xff] %v16910_v25  ;;  %v16924_v40 = vadd.f32 %v5781_v13, %v16788_v47  ;;  %11332 = vmatpush3.msra.mxu1 %v10722_v14  ;;  %11404 = vmatpush3.msra.mxu0 %v10749_v5  ;;  %v5978_v42 = vsel %vm4788_vm1, %v5973_v27, %v5977_v54  ;;  %v5979_v53 = vrot.slane %v16910_v25, 1  ;;  %v10717_v14 = vld [vmem:[%s19479_s3 + $0x248] sm:$0xff] }
 0x4da   :  { %v5785_v11 = vpop.f32.mrf.mxu1  ;;  %11333 = vmatprep.subr.mxu1 %v10737_v49  ;;  %11405 = vmatprep.subr.mxu0 %v10764_v58  ;;  %v10761_v5 = vld [vmem:[%s19479_s3 + $0x3a8] sm:$0xff]  ;;  %v10732_v49 = vld [vmem:[%s19479_s3 + $0x2c0] sm:$0xff] }
 0x4db   :  { %5837 = vst [vmem:[#allocation3 + $0xa8] sm:$0xff] %v16924_v40  ;;  %v16936_v47 = vadd.f32 %v5785_v11, %v16790_v45  ;;  %6094 = vmatmul.mubr.f32.gmra.mxu1 %v5972_v60  ;;  %v5981_v7 = vrot.slane %v16924_v40, 1  ;;  %6223 = vmatprep.mubr.f32.mxu0 %v16924_v40  ;;  %v5980_v1 = vsel %vm4788_vm1, %v5975_v15, %v5979_v53  ;;  %v10745_v58 = vld [vmem:[%s19479_s3 + $0x328] sm:$0xff]  ;;  %v10716_v11 = vld [vmem:[%s19479_s3 + $0x240] sm:$0xff] }
 0x4dc   :  { %v5787_v33 = vpop.f32.mrf.mxu1  ;;  %6098 = vmatprep.mubr.f32.mxu1 %v5978_v42  ;;  %6224 = vmatmul.mubr.f32.gmra.mxu0 %v16910_v25  ;;  %v10760_v15 = vld [vmem:[%s19479_s3 + $0x3a0] sm:$0xff] }
 0x4dd   :  { %5838 = vst [vmem:[#allocation3 + $0x50] sm:$0xff] %v16936_v47  ;;  %v16950_v45 = vadd.f32 %v5787_v33, %v16792_v16  ;;  %11334 = vmatpush3.msra.mxu1 %v10721_v41  ;;  %11406 = vmatpush3.msra.mxu0 %v10748_v63  ;;  %v5982_v32 = vsel %vm4788_vm1, %v5977_v54, %v5981_v7  ;;  %v5983_v27 = vrot.slane %v16936_v47, 1  ;;  %v10731_v63 = vld [vmem:[%s19479_s3 + $0x2b8] sm:$0xff] }
 0x4de   :  { %v5791_v39 = vpop.f32.mrf.mxu1  ;;  %11335 = vmatprep.subr.mxu1 %v10736_v59  ;;  %11407 = vmatprep.subr.mxu0 %v10763_v8  ;;  %v10744_v59 = vld [vmem:[%s19479_s3 + $0x320] sm:$0xff] }
 0x4df   :  { %5839 = vst [vmem:[#allocation3 + $0x90] sm:$0xff] %v16950_v45  ;;  %v16962_v16 = vadd.f32 %v5791_v39, %v16794_v34  ;;  %6099 = vmatmul.mubr.f32.gmra.mxu1 %v5976_v62  ;;  %v5985_v0 = vrot.slane %v16950_v45, 1  ;;  %6228 = vmatprep.mubr.f32.mxu0 %v16950_v45  ;;  %v10734_v34 = vld [vmem:[%s19479_s3 + $0x2d0] sm:$0xff]  ;;  %v5984_v54 = vsel %vm4788_vm1, %v5979_v53, %v5983_v27 }
 0x4e0   :  { %v5793_v38 = vpop.f32.mrf.mxu1  ;;  %6103 = vmatprep.mubr.f32.mxu1 %v5982_v32  ;;  %11336 = vmatpush3.msra.mxu1 %v10720_v24  ;;  %v10759_v24 = vld [vmem:[%s19479_s3 + $0x398] sm:$0xff]  ;;  %v10730_v53 = vld [vmem:[%s19479_s3 + $0x2b0] sm:$0xff] }
 0x4e1   :  { %5840 = vst [vmem:[#allocation3 + $0x28] sm:$0xff] %v16962_v16  ;;  %v16978_v48 = vadd.f32 %v5793_v38, %v16796_v35  ;;  %11337 = vmatprep.subr.mxu1 %v10735_v20  ;;  %6229 = vmatmul.mubr.f32.gmra.mxu0 %v16936_v47  ;;  %v5986_v36 = vsel %vm4788_vm1, %v5981_v7, %v5985_v0  ;;  %v10714_v32 = vld [vmem:[%s19479_s3 + $0x230] sm:$0xff] }
 0x4e2   :  { %v5797_v2 = vpop.f32.mrf.mxu1  ;;  %11338 = vmatpush3.msra.mxu1 %v10719_v28  ;;  %11408 = vmatpush3.msra.mxu0 %v10747_v10  ;;  %v10758_v28 = vld [vmem:[%s19479_s3 + $0x390] sm:$0xff] }
 0x4e3   :  { %5841 = vst [vmem:[#allocation3 + $0x18] sm:$0xff] %v16978_v48  ;;  %v16991_v35 = vadd.f32 %v5797_v2, %v16798_v22  ;;  %6104 = vmatmul.mubr.f32.gmra.mxu1 %v5980_v1  ;;  %11339 = vmatprep.subr.mxu1 %v10734_v34  ;;  %v5989_v18 = vrot.slane %v16978_v48, 1  ;;  %v6474_v10 = vld [vmem:[#allocation3 + $0x30] sm:$0xfc]  ;;  %v10729_v34 = vld [vmem:[%s19479_s3 + $0x2a8] sm:$0xff] }
 0x4e4   :  { %v5799_v26 = vpop.f32.mrf.mxu1  ;;  %6108 = vmatprep.mubr.f32.mxu1 %v5986_v36  ;;  %11340 = vmatpush3.msra.mxu1 %v10718_v6  ;;  %v10742_v6 = vld [vmem:[%s19479_s3 + $0x310] sm:$0xff]  ;;  %v10713_v1 = vld [vmem:[%s19479_s3 + $0x228] sm:$0xff] }
 0x4e5   :  { %5842 = vst [vmem:[#allocation3 + $0xc8] sm:$0xff] %v16991_v35  ;;  %v17002_v22 = vadd.f32 %v5799_v26, %v16800_v9  ;;  %11409 = vmatprep.subr.mxu0 %v10762_v30  ;;  %6233 = vmatprep.mubr.f32.mxu0 %v16978_v48  ;;  %v5987_v9 = vrot.slane %v16962_v16, 1  ;;  %v5991_v62 = vrot.slane %v16991_v35, 1  ;;  %v10757_v36 = vld [vmem:[%s19479_s3 + $0x388] sm:$0xff]  ;;  %v6549_v26 = vrot.slane %v6474_v10, 2 }
 0x4e6   :  { %v5803_v37 = vpop.f32.mrf.mxu1  ;;  %11341 = vmatprep.subr.mxu1 %v10733_v43  ;;  %11410 = vmatpush3.msra.mxu0 %v10746_v44  ;;  %v10728_v43 = vld [vmem:[%s19479_s3 + $0x2a0] sm:$0xff]  ;;  %v10741_v44 = vld [vmem:[%s19479_s3 + $0x308] sm:$0xff]  ;;  %v6294_v10 = vrot.slane %v16830_v3, 2 }
 0x4e7   :  { %5843 = vst [vmem:[#allocation3 + $0xc0] sm:$0xff] %v17002_v22  ;;  %v17022_v13 = vadd.f32 %v5803_v37, %v16802_v52  ;;  %6109 = vmatmul.mubr.f32.gmra.mxu1 %v5984_v54  ;;  %6234 = vmatmul.mubr.f32.gmra.mxu0 %v16962_v16  ;;  %v5990_v52 = vsel %vm4788_vm1, %v5985_v0, %v5989_v18  ;;  %v5993_v33 = vrot.slane %v17002_v22, 1  ;;  %v17103_v37 = vrot.slane %v16850_v17, 2  ;;  %v10756_v17 = vld [vmem:[%s19479_s3 + $0x380] sm:$0xff] }
 0x4e8   :  { %v5805_v60 = vpop.f32.mrf.mxu1  ;;  %11342 = vmatpush3.msra.mxu1 %v10717_v14  ;;  %11411 = vmatprep.subr.mxu0 %v10761_v5  ;;  %v5988_v7 = vsel %vm4788_vm1, %v5983_v27, %v5987_v9  ;;  %v6473_v5 = vld [vmem:[#allocation3 + $0x10] sm:$0xfc]  ;;  %v10708_v3 = vld [vmem:[%s19479_s3 + $0x200] sm:$0xff] }
 0x4e9   :  { %5844 = vst [vmem:[#allocation3 + $0x8] sm:$0xff] %v17022_v13  ;;  %v17033_v41 = vadd.f32 %v5805_v60, %v16804_v23  ;;  %11343 = vmatprep.subr.mxu1 %v10732_v49  ;;  %11412 = vmatpush3.msra.mxu0 %v10745_v58  ;;  %v10715_v23 = vld [vmem:[%s19479_s3 + $0x238] sm:$0xff]  ;;  %v5994_v38 = vsel %vm4788_vm1, %v5989_v18, %v5993_v33  ;;  %v10712_v60 = vld [vmem:[%s19479_s3 + $0x220] sm:$0xff] }
 0x4ea   :  { %v5809_v42 = vpop.f32.mrf.mxu1  ;;  %6113 = vmatprep.mubr.f32.mxu1 %v5990_v52  ;;  %11344 = vmatpush3.msra.mxu1 %v10716_v11 }
 0x4eb   :  { %5845 = vst [vmem:[#allocation3 + $0x58] sm:$0xff] %v17033_v41  ;;  %v17048_v8 = vadd.f32 %v5809_v42, %v16806_v56  ;;  %11413 = vmatprep.subr.mxu0 %v10760_v15  ;;  %6114 = vmatmul.mubr.f32.gmra.mxu1 %v5988_v7  ;;  %v10743_v56 = vld [vmem:[%s19479_s3 + $0x318] sm:$0xff]  ;;  %v6551_v15 = vsel %vm5183_vm2, %v6549_v26, %v17103_v37  ;;  %v6546_v42 = vrot.slane %v6473_v5, 2  ;;  %v6302_v7 = vrot.slane %v16871_v50, 2 }
 0x4ec   :  { %v5811_v39 = vpop.f32.mrf.mxu1  ;;  %6238 = vmatprep.mubr.f32.mxu0 %v17002_v22  ;;  %11345 = vmatprep.subr.mxu1 %v10731_v63  ;;  %v10727_v63 = vld [vmem:[%s19479_s3 + $0x298] sm:$0xff] }
 0x4ed   :  { %5846 = vst [vmem:[#allocation3 + $0x88] sm:$0xff] %v17048_v8  ;;  %v17064_v20 = vadd.f32 %v5811_v39, %v16808_v55  ;;  %11414 = vmatpush3.msra.mxu0 %v10744_v59  ;;  %11346 = vmatpush3.msra.mxu1 %v10715_v23  ;;  %v6250_v59 = vld [vmem:[#allocation3] sm:$0xfc]  ;;  %v17127_v23 = vrot.slane %v16839_v46, 2  ;;  %v10711_v50 = vld [vmem:[%s19479_s3 + $0x218] sm:$0xff]  ;;  %v10710_v39 = vld [vmem:[%s19479_s3 + $0x210] sm:$0xff] }
 0x4ee   :  { %v5815_v0 = vpop.f32.mrf.mxu1  ;;  %6239 = vmatmul.mubr.f32.gmra.mxu0 %v16991_v35  ;;  %11415 = vmatprep.subr.mxu0 %v10759_v24  ;;  %v10726_v24 = vld [vmem:[%s19479_s3 + $0x290] sm:$0xff] }
 0x4ef   :  { %5847 = vst [vmem:[#allocation3 + $0x78] sm:$0xff] %v17064_v20  ;;  %v5816_v55 = vadd.f32 %v5815_v0, %v16810_v19  ;;  %11347 = vmatprep.subr.mxu1 %v10730_v53  ;;  %11416 = vmatpush3.msra.mxu0 %v10743_v56  ;;  %v5992_v19 = vsel %vm4788_vm1, %v5987_v9, %v5991_v62  ;;  %v6249_v53 = vld [vmem:[#allocation3 + $0x68] sm:$0xfc]  ;;  %v10835_v56 = vld [vmem:[%s19479_s3 + $0x5f8] sm:$0xff] }
 0x4f0   :  { %v5817_v2 = vpop.f32.mrf.mxu1  ;;  %6118 = vmatprep.mubr.f32.mxu1 %v5994_v38  ;;  %11348 = vmatpush3.msra.mxu1 %v10714_v32  ;;  %v17090_v27 = vld [vmem:[#allocation3 + $0x8] sm:$0x7f]  ;;  %v6548_v46 = vsel %vm5183_vm2, %v6546_v42, %v17127_v23  ;;  %v6300_v32 = vrot.slane %v16859_v4, 2  ;;  %v6555_v0 = vsel %vm5183_vm2, %v17103_v37, %v6302_v7  ;;  %v10724_v4 = vld [vmem:[%s19479_s3 + $0x280] sm:$0xff] }
 0x4f1   :  { %5848 = vst [vmem:[#allocation3 + $0x48] sm:$0xff] %v5816_v55  ;;  %v5818_v30 = vadd.f32 %v5817_v2, %v16812_v29  ;;  %11417 = vmatprep.subr.mxu0 %v10758_v28  ;;  %6119 = vmatmul.mubr.f32.gmra.mxu1 %v5992_v19  ;;  %v5870_v9 = vld [vmem:[#allocation3 + $0x8] sm:$0x3f]  ;;  %v5995_v58 = vrot.slane %v17090_v27, 1  ;;  %v6306_v55 = vrot.slane %v16898_v31, 2  ;;  %v6291_v31 = vrot.slane %v16821_v21, 2 }
 0x4f2   :  { %v5821_v18 = vpop.f32.mrf.mxu1  ;;  %v5871_v14 = vld [vmem:[#allocation3 + $0x58] sm:$0x3f]  ;;  %11349 = vmatprep.subr.mxu1 %v10729_v34  ;;  %11418 = vmatpush3.msra.mxu0 %v10742_v6  ;;  %v10725_v28 = vld [vmem:[%s19479_s3 + $0x288] sm:$0xff]  ;;  %v6290_v34 = vrot.slane %v6249_v53, 2  ;;  %v6304_v2 = vrot.slane %v16884_v12, 2  ;;  %v6553_v19 = vsel %vm5183_vm2, %v17127_v23, %v6300_v32  ;;  %v6310_v27 = vrot.slane %v16924_v40, 2 }
 0x4f3   :  { %v5907_v29 = vld [vmem:[#allocation3 + $0x58] sm:$0x7f]  ;;  %5849 = vst [vmem:[#allocation3 + $0x38] sm:$0xff] %v5818_v30  ;;  %v5822_v54 = vadd.f32 %v5821_v18, %v16814_v57  ;;  %6243 = vmatprep.mubr.f32.mxu0 %v5871_v14  ;;  %11350 = vmatpush3.msra.mxu1 %v10713_v1  ;;  %v10709_v38 = vld [vmem:[%s19479_s3 + $0x208] sm:$0xff]  ;;  %v6559_v30 = vsel %vm5183_vm2, %v6302_v7, %v6306_v55  ;;  %v10834_v21 = vld [vmem:[%s19479_s3 + $0x5f0] sm:$0xff]  ;;  %v6314_v14 = vrot.slane %v16950_v45, 2 }
 0x4f4   :  { %v5997_v49 = vrot.slane %v5907_v29, 1  ;;  %v5823_v11 = vpop.f32.mrf.mxu1  ;;  %6244 = vmatmul.mubr.f32.gmra.mxu0 %v5870_v9  ;;  %11419 = vmatprep.subr.mxu0 %v10757_v36  ;;  %v10819_v1 = vld [vmem:[%s19479_s3 + $0x578] sm:$0xff]  ;;  %v6292_v12 = vsel %vm5183_vm2, %v6290_v34, %v6291_v31  ;;  %v6299_v40 = vsel %vm5183_vm2, %v6294_v10, %v17103_v37  ;;  %v17187_v26 = vsel %vm5183_vm2, %v6300_v32, %v6304_v2  ;;  %v10833_v18 = vld [vmem:[%s19479_s3 + $0x5e8] sm:$0xff]  ;;  %v10832_v45 = vld [vmem:[%s19479_s3 + $0x5e0] sm:$0xff] }
 0x4f5   :  { %5850 = vst [vmem:[#allocation3 + $0x70] sm:$0xf] %v5822_v54  ;;  %v5824_v57 = vadd.f32 %v5823_v11, %v16816_v51  ;;  %11351 = vmatprep.subr.mxu1 %v10728_v43  ;;  %11420 = vmatpush3.msra.mxu0 %v10741_v44  ;;  %v10740_v51 = vld [vmem:[%s19479_s3 + $0x300] sm:$0xff]  ;;  %v10803_v36 = vld [vmem:[%s19479_s3 + $0x4f8] sm:$0xff]  ;;  %v10818_v43 = vld [vmem:[%s19479_s3 + $0x570] sm:$0xff]  ;;  %v6308_v44 = vrot.slane %v16910_v25, 2  ;;  %v17195_v29 = vsel %vm5183_vm2, %v6306_v55, %v6310_v27 }
 0x4f6   :  { %v5998_v52 = vsel %vm4788_vm1, %v5993_v33, %v5997_v49  ;;  %6668 = vmatprep.mubr.f32.mxu0 %v6551_v15  ;;  %11352 = vmatpush3.msra.mxu1 %v10712_v60  ;;  %v5996_v33 = vsel %vm4788_vm1, %v5991_v62, %v5995_v58  ;;  %v6293_v62 = vrot.slane %v6250_v59, 2  ;;  %v10817_v25 = vld [vmem:[%s19479_s3 + $0x568] sm:$0xff]  ;;  %v6297_v5 = vsel %vm5183_vm2, %v6291_v31, %v17127_v23  ;;  %v10816_v37 = vld [vmem:[%s19479_s3 + $0x560] sm:$0xff]  ;;  %v10786_v15 = vld [vmem:[%s19479_s3 + $0x470] sm:$0xff] }
 0x4f7   :  { %6123 = vmatprep.mubr.f32.mxu1 %v5998_v52  ;;  %5851 = vst [vmem:[#allocation3 + $0xb0] sm:$0xf] %v5824_v57  ;;  %11421 = vmatprep.subr.mxu0 %v10756_v17  ;;  %v6312_v54 = vrot.slane %v16936_v47, 2  ;;  %v17211_v9 = vsel %vm5183_vm2, %v6304_v2, %v6308_v44  ;;  %v17219_v11 = vsel %vm5183_vm2, %v6310_v27, %v6314_v14  ;;  %v10787_v47 = vld [vmem:[%s19479_s3 + $0x478] sm:$0xff]  ;;  %v6316_v60 = vrot.slane %v16962_v16, 2  ;;  %v10802_v17 = vld [vmem:[%s19479_s3 + $0x4f0] sm:$0xff] }
 0x4f8   :  { %6124 = vmatmul.mubr.f32.gmra.mxu1 %v5996_v33  ;;  %11353 = vmatprep.subr.mxu1 %v10727_v63  ;;  %v6295_v6 = vsel %vm5183_vm2, %v6293_v62, %v6294_v10  ;;  %v6322_v57 = vrot.slane %v17002_v22, 2  ;;  %v10830_v52 = vld [vmem:[%s19479_s3 + $0x5d0] sm:$0xff]  ;;  %v10801_v63 = vld [vmem:[%s19479_s3 + $0x4e8] sm:$0xff]  ;;  %v17250_v59 = vld [vmem:[#allocation3 + $0xa0] sm:$0xff]  ;;  %v17432_v22 = vrot.slane %v17022_v13, 2 }
 0x4f9   :  { %11422 = vmatpush3.msra.mxu0 %v10740_v51  ;;  %6128 = vmatprep.mubr.f32.mxu1 %v5997_v49  ;;  %v10831_v49 = vld [vmem:[%s19479_s3 + $0x5d8] sm:$0xff]  ;;  %v17243_v42 = vsel %vm5183_vm2, %v6308_v44, %v6312_v54  ;;  %v10814_v7 = vld [vmem:[%s19479_s3 + $0x550] sm:$0xff]  ;;  %v17248_v51 = vld [vmem:[#allocation3 + $0x40] sm:$0xff]  ;;  %v17271_v62 = vsel %vm5183_vm2, %v6312_v54, %v6316_v60  ;;  %v19552_v2 = vrot.slane %v17250_v59, 6 }
 0x4fa   :  { %11354 = vmatpush3.msra.mxu1 %v10711_v50  ;;  %6669 = vmatmul.mubr.f32.vlgmr.msra.gmra.mxu0 %v6548_v46  ;;  %v17252_v23 = vld [vmem:[#allocation3 + $0x80] sm:$0xff]  ;;  %v10785_v50 = vld [vmem:[%s19479_s3 + $0x468] sm:$0xff]  ;;  %v17278_v32 = vld [vmem:[#allocation3 + $0x50] sm:$0xff] }
 0x4fb   :  { %11355 = vmatprep.subr.mxu1 %v10726_v24  ;;  %6673 = vmatprep.mubr.f32.mxu0 %v6555_v0  ;;  %v17261_v24 = vld [vmem:[#allocation3 + $0x60] sm:$0xff]  ;;  %v17263_v46 = vld [vmem:[#allocation3 + $0xa8] sm:$0xff]  ;;  %v7765_v34 = vrot.slane %v17252_v23, 6  ;;  %v7771_v44 = vrot.slane %v17278_v32, 6 }
 0x4fc   :  { %11356 = vmatpush3.msra.mxu1 %v10710_v39  ;;  %11515 = vmatprep.subr.mxu0 %v10835_v56  ;;  %v17265_v39 = vld [vmem:[#allocation3 + $0x20] sm:$0xff]  ;;  %v10829_v53 = vld [vmem:[%s19479_s3 + $0x5c8] sm:$0xff]  ;;  %v17276_v56 = vld [vmem:[#allocation3 + $0x90] sm:$0xff] }
 0x4fd   :  { %6129 = vmatmul.mubr.f32.gmra.mxu1 %v5995_v58  ;;  %11357 = vmatprep.subr.mxu1 %v10725_v28  ;;  %v6318_v58 = vrot.slane %v16978_v48, 2  ;;  %v10815_v48 = vld [vmem:[%s19479_s3 + $0x558] sm:$0xff]  ;;  %v10800_v10 = vld [vmem:[%s19479_s3 + $0x4e0] sm:$0xff]  ;;  %v10813_v55 = vld [vmem:[%s19479_s3 + $0x548] sm:$0xff]  ;;  %v7767_v27 = vrot.slane %v17265_v39, 6 }
 0x4fe   :  { %11358 = vmatpush3.msra.mxu1 %v10709_v38  ;;  %6412 = vmatprep.mubr.f32.mxu1 %v6295_v6  ;;  %v17292_v38 = vld [vmem:[#allocation3 + $0x18] sm:$0xff]  ;;  %v10784_v6 = vld [vmem:[%s19479_s3 + $0x460] sm:$0xff]  ;;  %v10825_v13 = vld [vmem:[%s19479_s3 + $0x5a8] sm:$0xff] }
 0x4ff   :  { %6674 = vmatmul.mubr.f32.gmra.mxu0 %v6553_v19  ;;  %11359 = vmatprep.subr.mxu1 %v10724_v4  ;;  %v17256_v33 = vsel %vm5183_vm2, %v6314_v14, %v6318_v58  ;;  %v17284_v28 = vsel %vm5183_vm2, %v6318_v58, %v6322_v57  ;;  %v19553_v4 = vrot.slane %v17248_v51, 6  ;;  %v17302_v31 = vld [vmem:[#allocation3 + $0xc0] sm:$0xff]  ;;  %v17353_v54 = vsel %vm7756_vm5, %v7767_v27, %v7771_v44 }
 0x500   :  { %6678 = vmatprep.mubr.f32.mxu0 %v6559_v30  ;;  %11360 = vmatpush3.msra.mxu1 %v10708_v3  ;;  %v17300_v3 = vld [vmem:[#allocation3 + $0x28] sm:$0xff]  ;;  %v7781_v58 = vrot.slane %v17302_v31, 6 }
 0x501   :  { %6413 = vmatmul.mubr.f32.vlgmr.msra.gmra.mxu1 %v6292_v12  ;;  %11516 = vmatpush3.msra.mxu0 %v10819_v1  ;;  %v7769_v1 = vrot.slane %v17263_v46, 6  ;;  %v17314_v12 = vld [vmem:[#allocation3 + $0x58] sm:$0xff] }
 0x502   :  { %6417 = vmatprep.mubr.f32.mxu1 %v6299_v40  ;;  %11517 = vmatprep.subr.mxu0 %v10834_v21  ;;  %v17312_v21 = vld [vmem:[#allocation3 + $0xc8] sm:$0xff]  ;;  %v17321_v40 = vsel %vm7756_vm5, %v19553_v4, %v7765_v34 }
 0x503   :  { %6679 = vmatmul.mubr.f32.gmra.mxu0 %v17187_v26  ;;  %11453 = vmatprep.subr.mxu1 %v10803_v36  ;;  %v17316_v36 = vld [vmem:[#allocation3 + $0x8] sm:$0xff] }
 0x504   :  { %6683 = vmatprep.mubr.f32.mxu0 %v17195_v29  ;;  %11518 = vmatpush3.msra.mxu0 %v10818_v43  ;;  %v7773_v43 = vrot.slane %v17276_v56, 6 }
 0x505   :  { %6418 = vmatmul.mubr.f32.gmra.mxu1 %v6297_v5  ;;  %11519 = vmatprep.subr.mxu0 %v10833_v18  ;;  %v17331_v18 = vld [vmem:[#allocation3 + $0x88] sm:$0xff]  ;;  %v7777_v5 = vrot.slane %v17292_v38, 6 }
 0x506   :  { %6422 = vmatprep.mubr.f32.mxu1 %v6555_v0  ;;  %11520 = vmatpush3.msra.mxu0 %v10817_v25  ;;  %v6320_v0 = vrot.slane %v16991_v35, 2  ;;  %v10780_v35 = vld [vmem:[%s19479_s3 + $0x440] sm:$0xff] }
 0x507   :  { %6684 = vmatmul.mubr.f32.gmra.mxu0 %v17211_v9  ;;  %11521 = vmatprep.subr.mxu0 %v10832_v45  ;;  %v10799_v45 = vld [vmem:[%s19479_s3 + $0x4d8] sm:$0xff] }
 0x508   :  { %6688 = vmatprep.mubr.f32.mxu0 %v17219_v11  ;;  %11522 = vmatpush3.msra.mxu0 %v10816_v37  ;;  %v17350_v37 = vsel %vm7756_vm5, %v7769_v1, %v7773_v43 }
 0x509   :  { %6423 = vmatmul.mubr.f32.gmra.mxu1 %v6553_v19  ;;  %11523 = vmatprep.subr.mxu0 %v10831_v49  ;;  %v7763_v19 = vrot.slane %v17261_v24, 6  ;;  %v7775_v49 = vrot.slane %v17300_v3, 6 }
 0x50a   :  { %6427 = vmatprep.mubr.f32.mxu1 %v6559_v30  ;;  %11454 = vmatpush3.msra.mxu1 %v10787_v47  ;;  %v17310_v30 = vrot.slane %v17033_v41, 2  ;;  %v10828_v41 = vld [vmem:[%s19479_s3 + $0x5c0] sm:$0xff] }
 0x50b   :  { %6689 = vmatmul.mubr.f32.gmra.mxu0 %v17243_v42  ;;  %11455 = vmatprep.subr.mxu1 %v10802_v17  ;;  %v17336_v14 = vsel %vm7756_vm5, %v19552_v2, %v7763_v19  ;;  %v17342_v25 = vsel %vm7756_vm5, %v7763_v19, %v7767_v27  ;;  %v10812_v47 = vld [vmem:[%s19479_s3 + $0x540] sm:$0xff]  ;;  %v17361_v17 = vsel %vm7756_vm5, %v7773_v43, %v7777_v5  ;;  %v10811_v27 = vld [vmem:[%s19479_s3 + $0x538] sm:$0xff] }
 0x50c   :  { %6693 = vmatprep.mubr.f32.mxu0 %v17256_v33  ;;  %11524 = vmatpush3.msra.mxu0 %v10815_v48  ;;  %v7779_v48 = vrot.slane %v17312_v21, 6  ;;  %v10843_v2 = vld [vmem:[%s19479_s3 + $0x638] sm:$0xff] }
 0x50d   :  { %11456 = vmatpush3.msra.mxu1 %v10786_v15  ;;  %11525 = vmatprep.subr.mxu0 %v10830_v52  ;;  %v7785_v15 = vrot.slane %v17314_v12, 6  ;;  %v7783_v52 = vrot.slane %v17316_v36, 6 }
 0x50e   :  { %6428 = vmatmul.mubr.f32.gmra.mxu1 %v17187_v26  ;;  %11457 = vmatprep.subr.mxu1 %v10801_v63  ;;  %v17329_v26 = vld [vmem:[#allocation3 + $0x78] sm:$0xff] }
 0x50f   :  { %11526 = vmatpush3.msra.mxu0 %v10814_v7  ;;  %6432 = vmatprep.mubr.f32.mxu1 %v17195_v29  ;;  %v17339_v29 = vsel %vm7756_vm5, %v7765_v34, %v7769_v1  ;;  %v10783_v63 = vld [vmem:[%s19479_s3 + $0x458] sm:$0xff]  ;;  %v17370_v7 = vsel %vm7756_vm5, %v7771_v44, %v7775_v49  ;;  %v17382_v34 = vsel %vm7756_vm5, %v7775_v49, %v7779_v48  ;;  %v10798_v1 = vld [vmem:[%s19479_s3 + $0x4d0] sm:$0xff]  ;;  %v10796_v49 = vld [vmem:[%s19479_s3 + $0x4c0] sm:$0xff] }
 0x510   :  { %6694 = vmatmul.mubr.f32.gmra.mxu0 %v17271_v62  ;;  %11458 = vmatpush3.msra.mxu1 %v10785_v50  ;;  %v17373_v50 = vsel %vm7756_vm5, %v7777_v5, %v7781_v58  ;;  %v17388_v19 = vsel %vm7756_vm5, %v7779_v48, %v7783_v52  ;;  %v10826_v44 = vld [vmem:[%s19479_s3 + $0x5b0] sm:$0xff]  ;;  %v6582_v5 = vrot.slane %v17064_v20, 2  ;;  %v17450_v20 = vsel %vm5183_vm2, %v6320_v0, %v17432_v22  ;;  %v10808_v48 = vld [vmem:[%s19479_s3 + $0x520] sm:$0xff] }
 0x511   :  { %11527 = vmatprep.subr.mxu0 %v10829_v53  ;;  %6698 = vmatprep.mubr.f32.mxu0 %v17284_v28  ;;  %v19551_v53 = vrot.slane %v17329_v26, 6  ;;  %20179 = vst [vmem:[#allocation91_spill] sm:$0xff] %v17388_v19 }
 0x512   :  { %11459 = vmatprep.subr.mxu1 %v10800_v10  ;;  %11528 = vmatpush3.msra.mxu0 %v10813_v55  ;;  %v19550_v10 = vrot.slane %v17331_v18, 6  ;;  %v10827_v55 = vld [vmem:[%s19479_s3 + $0x5b8] sm:$0xff] }
 0x513   :  { %11460 = vmatpush3.msra.mxu1 %v10784_v6  ;;  %11529 = vmatprep.subr.mxu0 %v10828_v41  ;;  %v17385_v6 = vsel %vm7756_vm5, %v7781_v58, %v7785_v15  ;;  %v17407_v43 = vsel %vm7756_vm5, %v7785_v15, %v19551_v53  ;;  %v10797_v41 = vld [vmem:[%s19479_s3 + $0x4c8] sm:$0xff]  ;;  %v10795_v58 = vld [vmem:[%s19479_s3 + $0x4b8] sm:$0xff] }
 0x514   :  { %6433 = vmatmul.mubr.f32.gmra.mxu1 %v17211_v9  ;;  %11461 = vmatprep.subr.mxu1 %v10799_v45  ;;  %20178 = vst [vmem:[#allocation42_spill] sm:$0xff] %v17385_v6  ;;  %v17396_v9 = vsel %vm5183_vm2, %v6316_v60, %v6320_v0  ;;  %20180 = vst [vmem:[#allocation92_spill] sm:$0xff] %v17407_v43  ;;  %v17412_v16 = vsel %vm7756_vm5, %v7783_v52, %v19550_v10  ;;  %v10782_v60 = vld [vmem:[%s19479_s3 + $0x450] sm:$0xff]  ;;  %v10781_v45 = vld [vmem:[%s19479_s3 + $0x448] sm:$0xff] }
 0x515   :  { %11530 = vmatpush3.msra.mxu0 %v10812_v47  ;;  %6437 = vmatprep.mubr.f32.mxu1 %v17219_v11  ;;  %20181 = vst [vmem:[#allocation45_spill] sm:$0xff] %v17412_v16  ;;  %v17419_v11 = vsel %vm5183_vm2, %v6322_v57, %v17310_v30  ;;  %v10810_v57 = vld [vmem:[%s19479_s3 + $0x530] sm:$0xff]  ;;  %v10824_v0 = vld [vmem:[%s19479_s3 + $0x5a0] sm:$0xff]  ;;  %v6580_v47 = vrot.slane %v17048_v8, 2  ;;  %v10779_v15 = vld [vmem:[%s19479_s3 + $0x438] sm:$0xff] }
 0x516   :  { %6699 = vmatmul.mubr.f32.gmra.mxu0 %v17396_v9  ;;  %11462 = vmatpush3.msra.mxu1 %v10783_v63  ;;  %v10823_v52 = vld [vmem:[%s19479_s3 + $0x598] sm:$0xff]  ;;  %v10794_v63 = vld [vmem:[%s19479_s3 + $0x4b0] sm:$0xff]  ;;  %v10868_v43 = vld [vmem:[%s19479_s3 + $0x700] sm:$0xff] }
 0x517   :  { %11531 = vmatprep.subr.mxu0 %v10827_v55  ;;  %6703 = vmatprep.mubr.f32.mxu0 %v17419_v11  ;;  %v6581_v8 = vsel %vm5183_vm2, %v17432_v22, %v6580_v47  ;;  %v10807_v55 = vld [vmem:[%s19479_s3 + $0x518] sm:$0xff] }
 0x518   :  { %11463 = vmatprep.subr.mxu1 %v10798_v1  ;;  %11532 = vmatpush3.msra.mxu0 %v10811_v27  ;;  %v17496_v1 = vld [vmem:[#allocation3 + $0x98] sm:$0xff]  ;;  %v10793_v27 = vld [vmem:[%s19479_s3 + $0x4a8] sm:$0xff] }
 0x519   :  { %11464 = vmatpush3.msra.mxu1 %v10782_v60  ;;  %11533 = vmatprep.subr.mxu0 %v10826_v44  ;;  %v10806_v60 = vld [vmem:[%s19479_s3 + $0x510] sm:$0xff]  ;;  %v6750_v16 = vld [vmem:[#allocation3 + $0x38] sm:$0x1]  ;;  %v7224_v6 = vld [vmem:[#allocation3 + $0x98] sm:$0xf0] }
 0x51a   :  { %6438 = vmatmul.mubr.f32.gmra.mxu1 %v17243_v42  ;;  %11465 = vmatprep.subr.mxu1 %v10797_v41  ;;  %v10809_v42 = vld [vmem:[%s19479_s3 + $0x528] sm:$0xff]  ;;  %v6995_v44 = vld [vmem:[#allocation3 + $0x30] sm:$0xf0] }
 0x51b   :  { %11534 = vmatpush3.msra.mxu0 %v10810_v57  ;;  %6442 = vmatprep.mubr.f32.mxu1 %v17256_v33  ;;  %v6583_v33 = vsel %vm5183_vm2, %v17310_v30, %v6582_v5  ;;  %v10777_v41 = vld [vmem:[%s19479_s3 + $0x428] sm:$0xff]  ;;  %v7040_v57 = vrot.slane %v17496_v1, 4 }
 0x51c   :  { %6704 = vmatmul.mubr.f32.gmra.mxu0 %v17450_v20  ;;  %11466 = vmatpush3.msra.mxu1 %v10781_v45  ;;  %v10792_v45 = vld [vmem:[%s19479_s3 + $0x4a0] sm:$0xff] }
 0x51d   :  { %11535 = vmatprep.subr.mxu0 %v10825_v13  ;;  %6708 = vmatprep.mubr.f32.mxu0 %v6583_v33  ;;  %v17515_v13 = vld [vmem:[#allocation3 + $0xb8] sm:$0xff]  ;;  %v10820_v33 = vld [vmem:[%s19479_s3 + $0x580] sm:$0xff] }
 0x51e   :  { %11467 = vmatprep.subr.mxu1 %v10796_v49  ;;  %11536 = vmatpush3.msra.mxu0 %v10809_v42  ;;  %v10805_v49 = vld [vmem:[%s19479_s3 + $0x508] sm:$0xff]  ;;  %v7039_v42 = vrot.slane %v6995_v44, 4 }
 0x51f   :  { %11468 = vmatpush3.msra.mxu1 %v10780_v35  ;;  %11537 = vmatprep.subr.mxu0 %v10824_v0  ;;  %v6994_v35 = vld [vmem:[#allocation3 + $0x10] sm:$0xf0]  ;;  %v10791_v0 = vld [vmem:[%s19479_s3 + $0x498] sm:$0xff] }
 0x520   :  { %6443 = vmatmul.mubr.f32.gmra.mxu1 %v17271_v62  ;;  %11469 = vmatprep.subr.mxu1 %v10795_v58  ;;  %v10778_v62 = vld [vmem:[%s19479_s3 + $0x430] sm:$0xff]  ;;  %v7037_v58 = vrot.slane %v17515_v13, 4 }
 0x521   :  { %11538 = vmatpush3.msra.mxu0 %v10808_v48  ;;  %6447 = vmatprep.mubr.f32.mxu1 %v17284_v28  ;;  %v10822_v28 = vld [vmem:[%s19479_s3 + $0x590] sm:$0xff]  ;;  %v17536_v48 = vrot.slane %v17248_v51, 4 }
 0x522   :  { %6709 = vmatmul.mubr.f32.gmra.mxu0 %v6581_v8  ;;  %11470 = vmatpush3.msra.mxu1 %v10779_v15  ;;  %v10775_v15 = vld [vmem:[%s19479_s3 + $0x418] sm:$0xff]  ;;  %v10790_v8 = vld [vmem:[%s19479_s3 + $0x490] sm:$0xff] }
 0x523   :  { %11539 = vmatprep.subr.mxu0 %v10823_v52  ;;  %6713 = vmatprep.mubr.f32.mxu0 %v6582_v5  ;;  %v10821_v5 = vld [vmem:[%s19479_s3 + $0x588] sm:$0xff]  ;;  %v7036_v52 = vrot.slane %v6994_v35, 4 }
 0x524   :  { %11471 = vmatprep.subr.mxu1 %v10794_v63  ;;  %11540 = vmatpush3.msra.mxu0 %v10807_v55  ;;  %v6730_v63 = vld [vmem:[#allocation3 + $0x30] sm:$0xf8] }
 0x525   :  { %11472 = vmatpush3.msra.mxu1 %v10778_v62  ;;  %11541 = vmatprep.subr.mxu0 %v10822_v28  ;;  %v7038_v55 = vsel %vm7035_vm6, %v7036_v52, %v7037_v58  ;;  %v10774_v62 = vld [vmem:[%s19479_s3 + $0x410] sm:$0xff]  ;;  %v6811_v28 = vrot.slane %v17496_v1, 3  ;;  %v10773_v1 = vld [vmem:[%s19479_s3 + $0x408] sm:$0xff]  ;;  %v6810_v44 = vrot.slane %v6730_v63, 3  ;;  %v10867_v52 = vld [vmem:[%s19479_s3 + $0x6f8] sm:$0xff] }
 0x526   :  { %6448 = vmatmul.mubr.f32.gmra.mxu1 %v17396_v9  ;;  %11473 = vmatprep.subr.mxu1 %v10793_v27  ;;  %v10776_v9 = vld [vmem:[%s19479_s3 + $0x420] sm:$0xff]  ;;  %v7045_v27 = vsel %vm7035_vm6, %v7040_v57, %v17536_v48  ;;  %v10882_v63 = vld [vmem:[%s19479_s3 + $0x770] sm:$0xff] }
 0x527   :  { %11542 = vmatpush3.msra.mxu0 %v10806_v60  ;;  %6452 = vmatprep.mubr.f32.mxu1 %v17419_v11  ;;  %v7041_v11 = vsel %vm7035_vm6, %v7039_v42, %v7040_v57  ;;  %v17560_v60 = vrot.slane %v17250_v59, 4  ;;  %v10788_v57 = vld [vmem:[%s19479_s3 + $0x480] sm:$0xff] }
 0x528   :  { %6714 = vmatmul.mubr.f32.gmra.mxu0 %v6580_v47  ;;  %11474 = vmatpush3.msra.mxu1 %v10777_v41  ;;  %v10804_v47 = vld [vmem:[%s19479_s3 + $0x500] sm:$0xff]  ;;  %v7048_v41 = vrot.slane %v17252_v23, 4 }
 0x529   :  { %11543 = vmatprep.subr.mxu0 %v10821_v5  ;;  %11475 = vmatprep.subr.mxu1 %v10792_v45  ;;  %v6729_v5 = vld [vmem:[#allocation3 + $0x10] sm:$0xf8]  ;;  %v6808_v45 = vrot.slane %v17515_v13, 3  ;;  %v10772_v42 = vld [vmem:[%s19479_s3 + $0x400] sm:$0xff]  ;;  %v7046_v13 = vrot.slane %v17261_v24, 4 }
 0x52a   :  { %11544 = vmatpush3.msra.mxu0 %v10805_v49  ;;  %7162 = vmatprep.mubr.f32.mxu0 %v7041_v11  ;;  %v6812_v49 = vsel %vm6806_vm7, %v6810_v44, %v6811_v28  ;;  %v6807_v35 = vrot.slane %v6729_v5, 3  ;;  %v17584_v11 = vsel %vm7035_vm6, %v17536_v48, %v7048_v41  ;;  %v10896_v5 = vld [vmem:[%s19479_s3 + $0x7e0] sm:$0xff] }
 0x52b   :  { %11476 = vmatpush3.msra.mxu1 %v10776_v9  ;;  %11545 = vmatprep.subr.mxu0 %v10820_v33  ;;  %v6815_v9 = vrot.slane %v17248_v51, 3  ;;  %v7043_v33 = vsel %vm7035_vm6, %v7037_v58, %v17560_v60 }
 0x52c   :  { %6453 = vmatmul.mubr.f32.gmra.mxu1 %v17450_v20  ;;  %11477 = vmatprep.subr.mxu1 %v10791_v0  ;;  %v10899_v20 = vld [vmem:[%s19479_s3 + $0x7f8] sm:$0xff]  ;;  %v7052_v0 = vrot.slane %v17263_v46, 4  ;;  %v6809_v58 = vsel %vm6806_vm7, %v6807_v35, %v6808_v45 }
 0x52d   :  { %11546 = vmatpush3.msra.mxu0 %v10804_v47  ;;  %6457 = vmatprep.mubr.f32.mxu1 %v17310_v30  ;;  %v10789_v30 = vld [vmem:[%s19479_s3 + $0x488] sm:$0xff]  ;;  %v10898_v47 = vld [vmem:[%s19479_s3 + $0x7f0] sm:$0xff]  ;;  %v10895_v35 = vld [vmem:[%s19479_s3 + $0x7d8] sm:$0xff] }
 0x52e   :  { %11478 = vmatpush3.msra.mxu1 %v10775_v15  ;;  %7163 = vmatmul.mubr.f32.vlgmr.msra.gmra.mxu0 %v7038_v55  ;;  %v6813_v15 = vrot.slane %v17250_v59, 3  ;;  %v6819_v55 = vrot.slane %v17252_v23, 3 }
 0x52f   :  { %11479 = vmatprep.subr.mxu1 %v10790_v8  ;;  %7167 = vmatprep.mubr.f32.mxu0 %v7045_v27  ;;  %v6816_v8 = vsel %vm6806_vm7, %v6811_v28, %v6815_v9  ;;  %v10897_v27 = vld [vmem:[%s19479_s3 + $0x7e8] sm:$0xff]  ;;  %v17611_v28 = vsel %vm7035_vm6, %v7048_v41, %v7052_v0 }
 0x530   :  { %11480 = vmatpush3.msra.mxu1 %v10774_v62  ;;  %11639 = vmatprep.subr.mxu0 %v10899_v20  ;;  %v17603_v62 = vsel %vm7035_vm6, %v17560_v60, %v7046_v13  ;;  %v7050_v20 = vrot.slane %v17265_v39, 4  ;;  %v6814_v44 = vsel %vm6806_vm7, %v6808_v45, %v6813_v15  ;;  %v6820_v41 = vsel %vm6806_vm7, %v6815_v9, %v6819_v55 }
 0x531   :  { %6458 = vmatmul.mubr.f32.gmra.mxu1 %v17432_v22  ;;  %11481 = vmatprep.subr.mxu1 %v10789_v30  ;;  %v10883_v22 = vld [vmem:[%s19479_s3 + $0x778] sm:$0xff]  ;;  %v7056_v30 = vrot.slane %v17276_v56, 4 }
 0x532   :  { %11482 = vmatpush3.msra.mxu1 %v10773_v1  ;;  %6933 = vmatprep.mubr.f32.mxu1 %v6812_v49  ;;  %v10881_v1 = vld [vmem:[%s19479_s3 + $0x768] sm:$0xff]  ;;  %v10880_v49 = vld [vmem:[%s19479_s3 + $0x760] sm:$0xff]  ;;  %v17629_v45 = vsel %vm7035_vm6, %v7046_v13, %v7050_v20  ;;  %v7060_v13 = vrot.slane %v17292_v38, 4 }
 0x533   :  { %7168 = vmatmul.mubr.f32.gmra.mxu0 %v7043_v33  ;;  %11483 = vmatprep.subr.mxu1 %v10788_v57  ;;  %v6817_v57 = vrot.slane %v17261_v24, 3  ;;  %v7054_v33 = vrot.slane %v17278_v32, 4  ;;  %v17637_v9 = vsel %vm7035_vm6, %v7052_v0, %v7056_v30 }
 0x534   :  { %7172 = vmatprep.mubr.f32.mxu0 %v17584_v11  ;;  %11484 = vmatpush3.msra.mxu1 %v10772_v42  ;;  %v6823_v42 = vrot.slane %v17263_v46, 3 }
 0x535   :  { %6934 = vmatmul.mubr.f32.vlgmr.msra.gmra.mxu1 %v6809_v58  ;;  %11640 = vmatpush3.msra.mxu0 %v10883_v22  ;;  %v10851_v22 = vld [vmem:[%s19479_s3 + $0x678] sm:$0xff]  ;;  %v10866_v58 = vld [vmem:[%s19479_s3 + $0x6f0] sm:$0xff] }
 0x536   :  { %6938 = vmatprep.mubr.f32.mxu1 %v6816_v8  ;;  %11641 = vmatprep.subr.mxu0 %v10898_v47  ;;  %v6818_v47 = vsel %vm6806_vm7, %v6813_v15, %v6817_v57  ;;  %v6824_v0 = vsel %vm6806_vm7, %v6819_v55, %v6823_v42  ;;  %v6821_v8 = vrot.slane %v17265_v39, 3  ;;  %v10850_v15 = vld [vmem:[%s19479_s3 + $0x670] sm:$0xff] }
 0x537   :  { %7173 = vmatmul.mubr.f32.gmra.mxu0 %v17603_v62  ;;  %11577 = vmatprep.subr.mxu1 %v10867_v52  ;;  %v10879_v52 = vld [vmem:[%s19479_s3 + $0x758] sm:$0xff]  ;;  %v10894_v55 = vld [vmem:[%s19479_s3 + $0x7d0] sm:$0xff] }
 0x538   :  { %7177 = vmatprep.mubr.f32.mxu0 %v17611_v28  ;;  %11642 = vmatpush3.msra.mxu0 %v10882_v63  ;;  %v17654_v63 = vsel %vm7035_vm6, %v7050_v20, %v7054_v33  ;;  %v10865_v20 = vld [vmem:[%s19479_s3 + $0x6e8] sm:$0xff] }
 0x539   :  { %6939 = vmatmul.mubr.f32.gmra.mxu1 %v6814_v44  ;;  %11643 = vmatprep.subr.mxu0 %v10897_v27  ;;  %v6827_v27 = vrot.slane %v17276_v56, 3  ;;  %v7058_v44 = vrot.slane %v17300_v3, 4 }
 0x53a   :  { %6943 = vmatprep.mubr.f32.mxu1 %v6820_v41  ;;  %11644 = vmatpush3.msra.mxu0 %v10881_v1  ;;  %v17665_v1 = vsel %vm7035_vm6, %v7056_v30, %v7060_v13  ;;  %v7064_v41 = vrot.slane %v17302_v31, 4  ;;  %v6822_v30 = vsel %vm6806_vm7, %v6817_v57, %v6821_v8  ;;  %v10864_v57 = vld [vmem:[%s19479_s3 + $0x6e0] sm:$0xff] }
 0x53b   :  { %7178 = vmatmul.mubr.f32.gmra.mxu0 %v17629_v45  ;;  %11645 = vmatprep.subr.mxu0 %v10896_v5  ;;  %v10878_v5 = vld [vmem:[%s19479_s3 + $0x750] sm:$0xff] }
 0x53c   :  { %7182 = vmatprep.mubr.f32.mxu0 %v17637_v9  ;;  %11646 = vmatpush3.msra.mxu0 %v10880_v49  ;;  %v10849_v49 = vld [vmem:[%s19479_s3 + $0x668] sm:$0xff] }
 0x53d   :  { %6944 = vmatmul.mubr.f32.gmra.mxu1 %v6818_v47  ;;  %11647 = vmatprep.subr.mxu0 %v10895_v35  ;;  %v6828_v35 = vsel %vm6806_vm7, %v6823_v42, %v6827_v27  ;;  %v17685_v47 = vsel %vm7035_vm6, %v7054_v33, %v7058_v44  ;;  %v17696_v42 = vsel %vm7035_vm6, %v7060_v13, %v7064_v41  ;;  %v10848_v33 = vld [vmem:[%s19479_s3 + $0x660] sm:$0xff]  ;;  %v7062_v13 = vrot.slane %v17312_v21, 4 }
 0x53e   :  { %6948 = vmatprep.mubr.f32.mxu1 %v6824_v0  ;;  %11578 = vmatpush3.msra.mxu1 %v10851_v22  ;;  %v10893_v22 = vld [vmem:[%s19479_s3 + $0x7c8] sm:$0xff]  ;;  %v6825_v0 = vrot.slane %v17278_v32, 3 }
 0x53f   :  { %7183 = vmatmul.mubr.f32.gmra.mxu0 %v17654_v63  ;;  %11579 = vmatprep.subr.mxu1 %v10866_v58  ;;  %v10877_v58 = vld [vmem:[%s19479_s3 + $0x748] sm:$0xff] }
 0x540   :  { %7187 = vmatprep.mubr.f32.mxu0 %v17665_v1  ;;  %11648 = vmatpush3.msra.mxu0 %v10879_v52  ;;  %v10892_v52 = vld [vmem:[%s19479_s3 + $0x7c0] sm:$0xff] }
 0x541   :  { %11580 = vmatpush3.msra.mxu1 %v10850_v15  ;;  %11649 = vmatprep.subr.mxu0 %v10894_v55  ;;  %v6831_v15 = vrot.slane %v17292_v38, 3  ;;  %v10863_v55 = vld [vmem:[%s19479_s3 + $0x6d8] sm:$0xff] }
 0x542   :  { %6949 = vmatmul.mubr.f32.gmra.mxu1 %v6822_v30  ;;  %11581 = vmatprep.subr.mxu1 %v10865_v20  ;;  %v10876_v20 = vld [vmem:[%s19479_s3 + $0x740] sm:$0xff]  ;;  %v6826_v30 = vsel %vm6806_vm7, %v6821_v8, %v6825_v0  ;;  %v10862_v8 = vld [vmem:[%s19479_s3 + $0x6d0] sm:$0xff] }
 0x543   :  { %11650 = vmatpush3.msra.mxu0 %v10878_v5  ;;  %6953 = vmatprep.mubr.f32.mxu1 %v6828_v35  ;;  %v7068_v5 = vrot.slane %v17314_v12, 4  ;;  %v6832_v35 = vsel %vm6806_vm7, %v6827_v27, %v6831_v15 }
 0x544   :  { %7188 = vmatmul.mubr.f32.gmra.mxu0 %v17685_v47  ;;  %11582 = vmatpush3.msra.mxu1 %v10849_v49  ;;  %v10847_v49 = vld [vmem:[%s19479_s3 + $0x658] sm:$0xff] }
 0x545   :  { %11651 = vmatprep.subr.mxu0 %v10893_v22  ;;  %7192 = vmatprep.mubr.f32.mxu0 %v17696_v42  ;;  %v10891_v22 = vld [vmem:[%s19479_s3 + $0x7b8] sm:$0xff]  ;;  %v17734_v27 = vsel %vm7035_vm6, %v7064_v41, %v7068_v5  ;;  %v7066_v41 = vrot.slane %v17316_v36, 4 }
 0x546   :  { %11583 = vmatprep.subr.mxu1 %v10864_v57  ;;  %11652 = vmatpush3.msra.mxu0 %v10877_v58  ;;  %v17723_v57 = vsel %vm7035_vm6, %v7058_v44, %v7062_v13  ;;  %v10875_v58 = vld [vmem:[%s19479_s3 + $0x738] sm:$0xff]  ;;  %v10846_v44 = vld [vmem:[%s19479_s3 + $0x650] sm:$0xff] }
 0x547   :  { %11584 = vmatpush3.msra.mxu1 %v10848_v33  ;;  %11653 = vmatprep.subr.mxu0 %v10892_v52  ;;  %v6829_v33 = vrot.slane %v17300_v3, 3  ;;  %v10890_v52 = vld [vmem:[%s19479_s3 + $0x7b0] sm:$0xff]  ;;  %v17763_v10 = vsel %vm7035_vm6, %v7062_v13, %v7066_v41  ;;  %v10844_v13 = vld [vmem:[%s19479_s3 + $0x640] sm:$0xff] }
 0x548   :  { %6954 = vmatmul.mubr.f32.gmra.mxu1 %v6826_v30  ;;  %11585 = vmatprep.subr.mxu1 %v10863_v55  ;;  %v6835_v55 = vrot.slane %v17302_v31, 3  ;;  %v10874_v30 = vld [vmem:[%s19479_s3 + $0x730] sm:$0xff] }
 0x549   :  { %11654 = vmatpush3.msra.mxu0 %v10876_v20  ;;  %6958 = vmatprep.mubr.f32.mxu1 %v6832_v35  ;;  %v10861_v20 = vld [vmem:[%s19479_s3 + $0x6c8] sm:$0xff]  ;;  %v6830_v35 = vsel %vm6806_vm7, %v6825_v0, %v6829_v33  ;;  %v10860_v0 = vld [vmem:[%s19479_s3 + $0x6c0] sm:$0xff] }
 0x54a   :  { %7193 = vmatmul.mubr.f32.gmra.mxu0 %v17723_v57  ;;  %11586 = vmatpush3.msra.mxu1 %v10847_v49  ;;  %v17752_v49 = vrot.slane %v17329_v26, 4 }
 0x54b   :  { %11655 = vmatprep.subr.mxu0 %v10891_v22  ;;  %7197 = vmatprep.mubr.f32.mxu0 %v17734_v27  ;;  %v10845_v22 = vld [vmem:[%s19479_s3 + $0x648] sm:$0xff] }
 0x54c   :  { %11587 = vmatprep.subr.mxu1 %v10862_v8  ;;  %11656 = vmatpush3.msra.mxu0 %v10875_v58  ;;  %v6836_v8 = vsel %vm6806_vm7, %v6831_v15, %v6835_v55  ;;  %v10889_v58 = vld [vmem:[%s19479_s3 + $0x7a8] sm:$0xff]  ;;  %v6997_v15 = vld [vmem:[#allocation3 + $0x38] sm:$0x3] }
 0x54d   :  { %11588 = vmatpush3.msra.mxu1 %v10846_v44  ;;  %11657 = vmatprep.subr.mxu0 %v10890_v52  ;;  %v10873_v44 = vld [vmem:[%s19479_s3 + $0x728] sm:$0xff]  ;;  %v6833_v52 = vrot.slane %v17312_v21, 3  ;;  %v7076_v53 = vrot.slane %v6997_v15, 4 }
 0x54e   :  { %6959 = vmatmul.mubr.f32.gmra.mxu1 %v6830_v35  ;;  %11589 = vmatprep.subr.mxu1 %v10861_v20  ;;  %v17775_v20 = vsel %vm7035_vm6, %v7068_v5, %v17752_v49  ;;  %v6839_v35 = vrot.slane %v17314_v12, 3  ;;  %v17789_v5 = vrot.slane %v17331_v18, 4 }
 0x54f   :  { %11658 = vmatpush3.msra.mxu0 %v10874_v30  ;;  %6963 = vmatprep.mubr.f32.mxu1 %v6836_v8  ;;  %v10888_v30 = vld [vmem:[%s19479_s3 + $0x7a0] sm:$0xff] }
 0x550   :  { %7198 = vmatmul.mubr.f32.gmra.mxu0 %v17763_v10  ;;  %11590 = vmatpush3.msra.mxu1 %v10845_v22  ;;  %v10859_v22 = vld [vmem:[%s19479_s3 + $0x6b8] sm:$0xff]  ;;  %v10872_v8 = vld [vmem:[%s19479_s3 + $0x720] sm:$0xff]  ;;  %v6840_v4 = vsel %vm6806_vm7, %v6835_v55, %v6839_v35  ;;  %v17804_v15 = vsel %vm7035_vm6, %v7066_v41, %v17789_v5  ;;  %v6837_v55 = vrot.slane %v17316_v36, 3  ;;  %v10842_v41 = vld [vmem:[%s19479_s3 + $0x630] sm:$0xff] }
 0x551   :  { %11659 = vmatprep.subr.mxu0 %v10889_v58  ;;  %7202 = vmatprep.mubr.f32.mxu0 %v17775_v20  ;;  %v6834_v58 = vsel %vm6806_vm7, %v6829_v33, %v6833_v52  ;;  %v10858_v33 = vld [vmem:[%s19479_s3 + $0x6b0] sm:$0xff] }
 0x552   :  { %11591 = vmatprep.subr.mxu1 %v10860_v0  ;;  %11660 = vmatpush3.msra.mxu0 %v10873_v44  ;;  %v10887_v0 = vld [vmem:[%s19479_s3 + $0x798] sm:$0xff]  ;;  %v6996_v44 = vld [vmem:[#allocation3 + $0x48] sm:$0x3]  ;;  %v6838_v61 = vsel %vm6806_vm7, %v6833_v52, %v6837_v55 }
 0x553   :  { %11592 = vmatpush3.msra.mxu1 %v10844_v13  ;;  %11661 = vmatprep.subr.mxu0 %v10888_v30  ;;  %v10871_v13 = vld [vmem:[%s19479_s3 + $0x718] sm:$0xff]  ;;  %v10886_v30 = vld [vmem:[%s19479_s3 + $0x790] sm:$0xff] }
 0x554   :  { %6964 = vmatmul.mubr.f32.gmra.mxu1 %v6834_v58  ;;  %11593 = vmatprep.subr.mxu1 %v10859_v22  ;;  %v6843_v22 = vrot.slane %v17329_v26, 3  ;;  %v7488_v58 = vld [vmem:[#allocation3 + $0x98] sm:$0xe0] }
 0x555   :  { %11662 = vmatpush3.msra.mxu0 %v10872_v8  ;;  %6968 = vmatprep.mubr.f32.mxu1 %v6840_v4  ;;  %v7077_v4 = vsel %vm7035_vm6, %v17752_v49, %v7076_v53  ;;  %v10857_v8 = vld [vmem:[%s19479_s3 + $0x6a8] sm:$0xff]  ;;  %v10870_v53 = vld [vmem:[%s19479_s3 + $0x710] sm:$0xff] }
 0x556   :  { %7203 = vmatmul.mubr.f32.gmra.mxu0 %v17804_v15  ;;  %11594 = vmatpush3.msra.mxu1 %v10843_v2  ;;  %v7074_v2 = vrot.slane %v6996_v44, 4  ;;  %v6844_v44 = vsel %vm6806_vm7, %v6839_v35, %v6843_v22  ;;  %v6841_v35 = vrot.slane %v17331_v18, 3 }
 0x557   :  { %11663 = vmatprep.subr.mxu0 %v10887_v0  ;;  %7207 = vmatprep.mubr.f32.mxu0 %v7077_v4  ;;  %v10841_v0 = vld [vmem:[%s19479_s3 + $0x628] sm:$0xff]  ;;  %v7532_v4 = vrot.slane %v17248_v51, 5 }
 0x558   :  { %11595 = vmatprep.subr.mxu1 %v10858_v33  ;;  %11664 = vmatpush3.msra.mxu0 %v10871_v13  ;;  %v10885_v33 = vld [vmem:[%s19479_s3 + $0x788] sm:$0xff]  ;;  %v10856_v13 = vld [vmem:[%s19479_s3 + $0x6a0] sm:$0xff]  ;;  %v7075_v52 = vsel %vm7035_vm6, %v17789_v5, %v7074_v2 }
 0x559   :  { %11596 = vmatpush3.msra.mxu1 %v10842_v41  ;;  %11665 = vmatprep.subr.mxu0 %v10886_v30  ;;  %v7531_v41 = vrot.slane %v7488_v58, 5  ;;  %v10840_v30 = vld [vmem:[%s19479_s3 + $0x620] sm:$0xff]  ;;  %v10855_v58 = vld [vmem:[%s19479_s3 + $0x698] sm:$0xff] }
 0x55a   :  { %6969 = vmatmul.mubr.f32.gmra.mxu1 %v6838_v61  ;;  %11597 = vmatprep.subr.mxu1 %v10857_v8  ;;  %v10869_v61 = vld [vmem:[%s19479_s3 + $0x708] sm:$0xff]  ;;  %v10884_v8 = vld [vmem:[%s19479_s3 + $0x780] sm:$0xff] }
 0x55b   :  { %11666 = vmatpush3.msra.mxu0 %v10870_v53  ;;  %6973 = vmatprep.mubr.f32.mxu1 %v6844_v44  ;;  %v6847_v53 = vrot.slane %v6750_v16, 3  ;;  %v7487_v44 = vld [vmem:[#allocation3 + $0xb8] sm:$0xe0]  ;;  %v7533_v2 = vsel %vm5533_vm3, %v7531_v41, %v7532_v4  ;;  %v7536_v16 = vrot.slane %v17252_v23, 5 }
 0x55c   :  { %7208 = vmatmul.mubr.f32.gmra.mxu0 %v7075_v52  ;;  %11598 = vmatpush3.msra.mxu1 %v10841_v0  ;;  %v7529_v0 = vrot.slane %v17250_v59, 5  ;;  %v6749_v52 = vld [vmem:[#allocation3 + $0x48] sm:$0x1]  ;;  %v7528_v41 = vrot.slane %v7487_v44, 5  ;;  %v7540_v44 = vrot.slane %v17263_v46, 5 }
 0x55d   :  { %11667 = vmatprep.subr.mxu0 %v10885_v33  ;;  %11599 = vmatprep.subr.mxu1 %v10856_v13  ;;  %v6842_v33 = vsel %vm6806_vm7, %v6837_v55, %v6841_v35  ;;  %v10839_v13 = vld [vmem:[%s19479_s3 + $0x618] sm:$0xff]  ;;  %v6845_v19 = vrot.slane %v6749_v52, 3  ;;  %v10838_v55 = vld [vmem:[%s19479_s3 + $0x610] sm:$0xff] }
 0x55e   :  { %11668 = vmatpush3.msra.mxu0 %v10869_v61  ;;  %7654 = vmatprep.mubr.f32.mxu0 %v7533_v2  ;;  %v6848_v61 = vsel %vm6806_vm7, %v6843_v22, %v6847_v53  ;;  %v10854_v2 = vld [vmem:[%s19479_s3 + $0x690] sm:$0xff]  ;;  %v7530_v23 = vsel %vm5533_vm3, %v7528_v41, %v7529_v0  ;;  %v10853_v22 = vld [vmem:[%s19479_s3 + $0x688] sm:$0xff]  ;;  %v7303_v53 = vrot.slane %v7224_v6, 4  ;;  %v10915_v41 = vld [vmem:[%s19479_s3 + $0x878] sm:$0xff] }
 0x55f   :  { %11600 = vmatpush3.msra.mxu1 %v10840_v30  ;;  %11669 = vmatprep.subr.mxu0 %v10884_v8  ;;  %v7537_v30 = vsel %vm5533_vm3, %v7532_v4, %v7536_v16  ;;  %v7534_v8 = vrot.slane %v17261_v24, 5  ;;  %v6846_v52 = vsel %vm6806_vm7, %v6841_v35, %v6845_v19  ;;  %v10852_v4 = vld [vmem:[%s19479_s3 + $0x680] sm:$0xff]  ;;  %v7538_v19 = vrot.slane %v17265_v39, 5  ;;  %v10931_v35 = vld [vmem:[%s19479_s3 + $0x8f8] sm:$0xff]  ;;  %v10930_v39 = vld [vmem:[%s19479_s3 + $0x8f0] sm:$0xff] }
 0x560   :  { %6974 = vmatmul.mubr.f32.gmra.mxu1 %v6842_v33  ;;  %11601 = vmatprep.subr.mxu1 %v10855_v58  ;;  %v7223_v58 = vld [vmem:[#allocation3 + $0xb8] sm:$0xf0]  ;;  %v7305_v24 = vsel %vm7035_vm6, %v7303_v53, %v17536_v48  ;;  %v10836_v33 = vld [vmem:[%s19479_s3 + $0x600] sm:$0xff]  ;;  %v7544_v48 = vrot.slane %v17276_v56, 5  ;;  %v7550_v53 = vrot.slane %v17312_v21, 5 }
 0x561   :  { %11670 = vmatpush3.msra.mxu0 %v10868_v43  ;;  %6978 = vmatprep.mubr.f32.mxu1 %v6848_v61  ;;  %v10837_v43 = vld [vmem:[%s19479_s3 + $0x608] sm:$0xff]  ;;  %v7535_v46 = vsel %vm5533_vm3, %v7529_v0, %v7534_v8  ;;  %v7300_v6 = vrot.slane %v7223_v58, 4  ;;  %v7539_v56 = vsel %vm5533_vm3, %v7534_v8, %v7538_v19  ;;  %v7542_v61 = vrot.slane %v17278_v32, 5  ;;  %v10928_v32 = vld [vmem:[%s19479_s3 + $0x8e0] sm:$0xff] }
 0x562   :  { %11602 = vmatpush3.msra.mxu1 %v10839_v13  ;;  %7655 = vmatmul.mubr.f32.vlgmr.msra.gmra.mxu0 %v7530_v23  ;;  %v7541_v13 = vsel %vm5533_vm3, %v7536_v16, %v7540_v44  ;;  %v10914_v16 = vld [vmem:[%s19479_s3 + $0x870] sm:$0xff]  ;;  %v7548_v23 = vrot.slane %v17292_v38, 5  ;;  %v10924_v21 = vld [vmem:[%s19479_s3 + $0x8c0] sm:$0xff] }
 0x563   :  { %11603 = vmatprep.subr.mxu1 %v10854_v2  ;;  %7659 = vmatprep.mubr.f32.mxu0 %v7537_v30  ;;  %v7302_v0 = vsel %vm7035_vm6, %v7300_v6, %v17560_v60  ;;  %v10929_v60 = vld [vmem:[%s19479_s3 + $0x8e8] sm:$0xff]  ;;  %v7545_v2 = vsel %vm5533_vm3, %v7540_v44, %v7544_v48  ;;  %v7543_v38 = vsel %vm5533_vm3, %v7538_v19, %v7542_v61  ;;  %v7546_v30 = vrot.slane %v17300_v3, 5  ;;  %v10926_v3 = vld [vmem:[%s19479_s3 + $0x8d0] sm:$0xff] }
 0x564   :  { %11604 = vmatpush3.msra.mxu1 %v10838_v55  ;;  %v10913_v55 = vld [vmem:[%s19479_s3 + $0x868] sm:$0xff]  ;;  %v7549_v8 = vsel %vm5533_vm3, %v7544_v48, %v7548_v23  ;;  %v10906_v6 = vld [vmem:[%s19479_s3 + $0x830] sm:$0xff] }
 0x565   :  { %6979 = vmatmul.mubr.f32.gmra.mxu1 %v6846_v52  ;;  %11605 = vmatprep.subr.mxu1 %v10853_v22  ;;  %v10927_v22 = vld [vmem:[%s19479_s3 + $0x8d8] sm:$0xff]  ;;  %v10925_v44 = vld [vmem:[%s19479_s3 + $0x8c8] sm:$0xff] }
 0x566   :  { %11606 = vmatpush3.msra.mxu1 %v10837_v43  ;;  %7426 = vmatprep.mubr.f32.mxu1 %v7305_v24  ;;  %v10911_v43 = vld [vmem:[%s19479_s3 + $0x858] sm:$0xff]  ;;  %v10909_v52 = vld [vmem:[%s19479_s3 + $0x848] sm:$0xff] }
 0x567   :  { %7660 = vmatmul.mubr.f32.gmra.mxu0 %v7535_v46  ;;  %11607 = vmatprep.subr.mxu1 %v10852_v4  ;;  %v7554_v4 = vrot.slane %v17316_v36, 5  ;;  %v10923_v24 = vld [vmem:[%s19479_s3 + $0x8b8] sm:$0xff]  ;;  %v10922_v36 = vld [vmem:[%s19479_s3 + $0x8b0] sm:$0xff] }
 0x568   :  { %7664 = vmatprep.mubr.f32.mxu0 %v7541_v13  ;;  %11608 = vmatpush3.msra.mxu1 %v10836_v33  ;;  %v10907_v46 = vld [vmem:[%s19479_s3 + $0x838] sm:$0xff]  ;;  %v10921_v13 = vld [vmem:[%s19479_s3 + $0x8a8] sm:$0xff] }
 0x569   :  { %7427 = vmatmul.mubr.f32.vlgmr.msra.gmra.mxu1 %v7302_v0  ;;  %11701 = vmatprep.subr.mxu1 %v10931_v35  ;;  %v7555_v19 = vsel %vm5533_vm3, %v7550_v53, %v7554_v4  ;;  %v7558_v35 = vrot.slane %v17331_v18, 5  ;;  %v7490_v0 = vld [vmem:[#allocation3 + $0xb0] sm:$0x7] }
 0x56a   :  { %7431 = vmatprep.mubr.f32.mxu1 %v17584_v11  ;;  %11702 = vmatpush3.msra.mxu1 %v10915_v41  ;;  %v10912_v11 = vld [vmem:[%s19479_s3 + $0x860] sm:$0xff]  ;;  %v17992_v41 = vld [vmem:[#allocation3 + $0x48] sm:$0xff] }
 0x56b   :  { %7665 = vmatmul.mubr.f32.gmra.mxu0 %v7539_v56  ;;  %11703 = vmatprep.subr.mxu1 %v10930_v39  ;;  %v10920_v39 = vld [vmem:[%s19479_s3 + $0x8a0] sm:$0xff]  ;;  %v7559_v56 = vsel %vm5533_vm3, %v7554_v4, %v7558_v35 }
 0x56c   :  { %7669 = vmatprep.mubr.f32.mxu0 %v7545_v2  ;;  %11704 = vmatpush3.msra.mxu1 %v10914_v16  ;;  %v10904_v16 = vld [vmem:[%s19479_s3 + $0x820] sm:$0xff] }
 0x56d   :  { %7432 = vmatmul.mubr.f32.gmra.mxu1 %v17603_v62  ;;  %11705 = vmatprep.subr.mxu1 %v10929_v60  ;;  %v7552_v62 = vrot.slane %v17302_v31, 5  ;;  %v7547_v31 = vsel %vm5533_vm3, %v7542_v61, %v7546_v30  ;;  %v7562_v61 = vrot.slane %v17992_v41, 5  ;;  %v10919_v60 = vld [vmem:[%s19479_s3 + $0x898] sm:$0xff] }
 0x56e   :  { %7436 = vmatprep.mubr.f32.mxu1 %v17611_v28  ;;  %11706 = vmatpush3.msra.mxu1 %v10913_v55  ;;  %v10910_v28 = vld [vmem:[%s19479_s3 + $0x850] sm:$0xff]  ;;  %v10903_v55 = vld [vmem:[%s19479_s3 + $0x818] sm:$0xff] }
 0x56f   :  { %7670 = vmatmul.mubr.f32.gmra.mxu0 %v7543_v38  ;;  %11707 = vmatprep.subr.mxu1 %v10928_v32  ;;  %v7553_v58 = vsel %vm5533_vm3, %v7548_v23, %v7552_v62  ;;  %v7489_v23 = vld [vmem:[#allocation3 + $0x70] sm:$0x7]  ;;  %v7563_v38 = vsel %vm5533_vm3, %v7558_v35, %v7562_v61 }
 0x570   :  { %7674 = vmatprep.mubr.f32.mxu0 %v7549_v8  ;;  %11708 = vmatpush3.msra.mxu1 %v10912_v11  ;;  %v10902_v11 = vld [vmem:[%s19479_s3 + $0x810] sm:$0xff]  ;;  %v10917_v8 = vld [vmem:[%s19479_s3 + $0x888] sm:$0xff] }
 0x571   :  { %7437 = vmatmul.mubr.f32.gmra.mxu1 %v17629_v45  ;;  %11709 = vmatprep.subr.mxu1 %v10927_v22  ;;  %v7556_v45 = vrot.slane %v17314_v12, 5  ;;  %v7551_v12 = vsel %vm5533_vm3, %v7546_v30, %v7550_v53  ;;  %v7566_v30 = vrot.slane %v7489_v23, 5  ;;  %v7244_v22 = vld [vmem:[#allocation3 + $0xb0] sm:$0x3]  ;;  %v10900_v53 = vld [vmem:[%s19479_s3 + $0x800] sm:$0xff] }
 0x572   :  { %7441 = vmatprep.mubr.f32.mxu1 %v17637_v9  ;;  %11710 = vmatpush3.msra.mxu1 %v10911_v43  ;;  %v10908_v9 = vld [vmem:[%s19479_s3 + $0x840] sm:$0xff] }
 0x573   :  { %7675 = vmatmul.mubr.f32.gmra.mxu0 %v7547_v31  ;;  %11711 = vmatprep.subr.mxu1 %v10926_v3  ;;  %v7557_v33 = vsel %vm5533_vm3, %v7552_v62, %v7556_v45  ;;  %v10901_v62 = vld [vmem:[%s19479_s3 + $0x808] sm:$0xff]  ;;  %v10916_v43 = vld [vmem:[%s19479_s3 + $0x880] sm:$0xff]  ;;  %v7243_v31 = vld [vmem:[#allocation3 + $0x70] sm:$0x3] }
 0x574   :  { %7679 = vmatprep.mubr.f32.mxu0 %v7553_v58  ;;  %11712 = vmatpush3.msra.mxu1 %v10910_v28  ;;  %v7340_v28 = vrot.slane %v7244_v22, 4 }
 0x575   :  { %7442 = vmatmul.mubr.f32.gmra.mxu1 %v17654_v63  ;;  %11713 = vmatprep.subr.mxu1 %v10925_v44  ;;  %v7560_v63 = vrot.slane %v17329_v26, 5  ;;  %v7567_v44 = vsel %vm5533_vm3, %v7562_v61, %v7566_v30 }
 0x576   :  { %7446 = vmatprep.mubr.f32.mxu1 %v17665_v1  ;;  %11714 = vmatpush3.msra.mxu1 %v10909_v52  ;;  %v17975_v1 = vld [vmem:[#allocation3 + $0x38] sm:$0xff] }
 0x577   :  { %7680 = vmatmul.mubr.f32.gmra.mxu0 %v7551_v12  ;;  %11715 = vmatprep.subr.mxu1 %v10924_v21  ;;  %v7561_v48 = vsel %vm5533_vm3, %v7556_v45, %v7560_v63  ;;  %v7336_v32 = vrot.slane %v17975_v1, 4  ;;  %v7716_v45 = vld [vmem:[#allocation3 + $0x98] sm:$0xc0] }
 0x578   :  { %7684 = vmatprep.mubr.f32.mxu0 %v7557_v33  ;;  %11716 = vmatpush3.msra.mxu1 %v10908_v9  ;;  %v7760_v9 = vrot.slane %v7716_v45, 6  ;;  %v7715_v12 = vld [vmem:[#allocation3 + $0xb8] sm:$0xc0]  ;;  %v20182_v33 = vrot.slane %v17248_v51, 6 }
 0x579   :  { %7447 = vmatmul.mubr.f32.gmra.mxu1 %v17685_v47  ;;  %11717 = vmatprep.subr.mxu1 %v10923_v24  ;;  %v7564_v47 = vrot.slane %v17975_v1, 5  ;;  %v7337_v3 = vsel %vm7035_vm6, %v17752_v49, %v7336_v32  ;;  %v7341_v52 = vsel %vm7035_vm6, %v7336_v32, %v7340_v28  ;;  %v20185_v28 = vld [vmem:[#allocation91_spill] sm:$0xff] }
 0x57a   :  { %7451 = vmatprep.mubr.f32.mxu1 %v17696_v42  ;;  %11718 = vmatpush3.msra.mxu1 %v10907_v46  ;;  %v10905_v42 = vld [vmem:[%s19479_s3 + $0x828] sm:$0xff] }
 0x57b   :  { %7685 = vmatmul.mubr.f32.gmra.mxu0 %v7555_v19  ;;  %11719 = vmatprep.subr.mxu1 %v10922_v36  ;;  %v7565_v2 = vsel %vm5533_vm3, %v7560_v63, %v7564_v47  ;;  %v7762_v63 = vsel %vm7756_vm5, %v7760_v9, %v20182_v33  ;;  %v20183_v36 = vrot.slane %v17250_v59, 6  ;;  %v20188_v9 = vrot.slane %v17329_v26, 6 }
 0x57c   :  { %7689 = vmatprep.mubr.f32.mxu0 %v7561_v48  ;;  %11720 = vmatpush3.msra.mxu1 %v10906_v6 }
 0x57d   :  { %7452 = vmatmul.mubr.f32.gmra.mxu1 %v17723_v57  ;;  %11721 = vmatprep.subr.mxu1 %v10921_v13  ;;  %v7568_v57 = vrot.slane %v7490_v0, 5 }
 0x57e   :  { %7456 = vmatprep.mubr.f32.mxu1 %v17734_v27  ;;  %11722 = vmatpush3.msra.mxu1 %v10905_v42  ;;  %v10918_v27 = vld [vmem:[%s19479_s3 + $0x890] sm:$0xff] }
 0x57f   :  { %7690 = vmatmul.mubr.f32.gmra.mxu0 %v7559_v56  ;;  %11723 = vmatprep.subr.mxu1 %v10920_v39 }
 0x580   :  { %7694 = vmatprep.mubr.f32.mxu0 %v7565_v2  ;;  %11724 = vmatpush3.msra.mxu1 %v10904_v16 }
 0x581   :  { %7457 = vmatmul.mubr.f32.gmra.mxu1 %v17763_v10  ;;  %11725 = vmatprep.subr.mxu1 %v10919_v60  ;;  %v7569_v10 = vsel %vm5533_vm3, %v7564_v47, %v7568_v57 }
 0x582   :  { %7461 = vmatprep.mubr.f32.mxu1 %v17775_v20  ;;  %11726 = vmatpush3.msra.mxu1 %v10903_v55  ;;  %v7334_v20 = vrot.slane %v17992_v41, 4 }
 0x583   :  { %7695 = vmatmul.mubr.f32.gmra.mxu0 %v7563_v38  ;;  %11727 = vmatprep.subr.mxu1 %v10918_v27 }
 0x584   :  { %7699 = vmatprep.mubr.f32.mxu0 %v7569_v10  ;;  %11728 = vmatpush3.msra.mxu1 %v10902_v11  ;;  %v7335_v58 = vsel %vm7035_vm6, %v17789_v5, %v7334_v20  ;;  %v7757_v5 = vrot.slane %v7715_v12, 6  ;;  %v20184_v10 = vld [vmem:[#allocation42_spill] sm:$0xff] }
 0x585   :  { %7462 = vmatmul.mubr.f32.gmra.mxu1 %v17804_v15  ;;  %11729 = vmatprep.subr.mxu1 %v10917_v8  ;;  %v7338_v15 = vrot.slane %v7243_v31, 4 }
 0x586   :  { %7466 = vmatprep.mubr.f32.mxu1 %v7337_v3  ;;  %11730 = vmatpush3.msra.mxu1 %v10901_v62  ;;  %v7759_v6 = vsel %vm7756_vm5, %v7757_v5, %v20183_v36 }
 0x587   :  { %7700 = vmatmul.mubr.f32.gmra.mxu0 %v7567_v44  ;;  %11731 = vmatprep.subr.mxu1 %v10916_v43  ;;  %v7339_v4 = vsel %vm7035_vm6, %v7334_v20, %v7338_v15  ;;  %v7718_v44 = vld [vmem:[#allocation3 + $0xb0] sm:$0xf] }
 0x588   :  { %11732 = vmatpush3.msra.mxu1 %v10900_v53  ;;  %v11299_v49 = vpop.f32.mrf.mxu0  ;;  %v20186_v53 = vld [vmem:[#allocation92_spill] sm:$0xff] }
 0x589   :  { %7467 = vmatmul.mubr.f32.gmra.mxu1 %v7335_v58 }
 0x58a   :  { %7471 = vmatprep.mubr.f32.mxu1 %v7341_v52  ;;  %v11300_v21 = vpop.f32.mrf.mxu0 }
 0x58b   :  { %v11301_v51 = vadd.f32 %v11300_v21, %v11299_v49  ;;  %v7791_v49 = vrot.slane %v17992_v41, 6  ;;  %v20187_v21 = vld [vmem:[#allocation45_spill] sm:$0xff] }
 0x58c   :  { %v11302_v24 = vpop.f32.mrf.mxu0 }
 0x58d   :  { %7472 = vmatmul.mubr.f32.gmra.mxu1 %v7339_v4  ;;  %v7797_v4 = vrot.slane %v7718_v44, 6 }
 0x58e   :  { %7883 = vmatprep.mubr.f32.mxu1 %v7762_v63  ;;  %v11303_v46 = vpop.f32.mrf.mxu0 }
 0x590   :  { %v11305_v19 = vpop.f32.mrf.mxu0 }
 0x591   :  { %7884 = vmatmul.mubr.f32.vlgmr.msra.gmra.mxu1 %v7759_v6 }
 0x592   :  { %7888 = vmatprep.mubr.f32.mxu1 %v17321_v40  ;;  %v11306_v35 = vpop.f32.mrf.mxu0  ;;  %v11304_v40 = vadd.f32 %v11303_v46, %v11302_v24  ;;  %v20189_v46 = vrot.slane %v17331_v18, 6 }
 0x593   :  { %v11237_v13 = vpop.f32.mrf.mxu1  ;;  %v11307_v23 = vadd.f32 %v11306_v35, %v11305_v19 }
 0x594   :  { %v11308_v48 = vpop.f32.mrf.mxu0  ;;  %v7792_v36 = vsel %vm7756_vm5, %v20189_v46, %v7791_v49 }
 0x595   :  { %7889 = vmatmul.mubr.f32.gmra.mxu1 %v17336_v14  ;;  %v11238_v47 = vpop.f32.mrf.mxu1 }
 0x596   :  { %7893 = vmatprep.mubr.f32.mxu1 %v17339_v29  ;;  %v11239_v42 = vadd.f32 %v11238_v47, %v11237_v13  ;;  %v11309_v0 = vpop.f32.mrf.mxu0 }
 0x597   :  { %v11240_v39 = vpop.f32.mrf.mxu1  ;;  %v11310_v38 = vadd.f32 %v11309_v0, %v11308_v48 }
 0x598   :  { %v18055_v16 = vadd.f32 %v11301_v51, %v11239_v42  ;;  %v11311_v59 = vpop.f32.mrf.mxu0 }
 0x599   :  { %7894 = vmatmul.mubr.f32.gmra.mxu1 %v17342_v25  ;;  %v11241_v56 = vpop.f32.mrf.mxu1 }
 0x59a   :  { %7898 = vmatprep.mubr.f32.mxu1 %v17350_v37  ;;  %v11242_v61 = vadd.f32 %v11241_v56, %v11240_v39  ;;  %v11312_v60 = vpop.f32.mrf.mxu0  ;;  %v20190_v39 = vmov 0.0  }
 0x59b   :  { %v11243_v2 = vpop.f32.mrf.mxu1  ;;  %v11313_v62 = vadd.f32 %v11312_v60, %v11311_v59 }
 0x59c   :  { %v18059_v14 = vadd.f32 %v11304_v40, %v11242_v61  ;;  %v11314_v57 = vpop.f32.mrf.mxu0 }
 0x59d   :  { %7899 = vmatmul.mubr.f32.gmra.mxu1 %v17353_v54  ;;  %v11244_v29 = vpop.f32.mrf.mxu1 }
 0x59e   :  { %7903 = vmatprep.mubr.f32.mxu1 %v17361_v17  ;;  %v11245_v55 = vadd.f32 %v11244_v29, %v11243_v2  ;;  %v11315_v27 = vpop.f32.mrf.mxu0 }
 0x59f   :  { %v11246_v32 = vpop.f32.mrf.mxu1  ;;  %v11316_v58 = vadd.f32 %v11315_v27, %v11314_v57 }
 0x5a0   :  { %v18063_v25 = vadd.f32 %v11307_v23, %v11245_v55 }
 0x5a1   :  { %7904 = vmatmul.mubr.f32.gmra.mxu1 %v17370_v7  ;;  %v11247_v37 = vpop.f32.mrf.mxu1  ;;  %v11317_v11 = vpop.f32.mrf.mxu0 }
 0x5a2   :  { %7908 = vmatprep.mubr.f32.mxu1 %v17373_v50  ;;  %v11248_v30 = vadd.f32 %v11247_v37, %v11246_v32  ;;  %v7793_v50 = vrot.slane %v17975_v1, 6  ;;  %v7717_v1 = vld [vmem:[#allocation3 + $0x70] sm:$0xf] }
 0x5a3   :  { %v11249_v22 = vpop.f32.mrf.mxu1  ;;  %v11318_v8 = vpop.f32.mrf.mxu0  ;;  %v7795_v41 = vrot.slane %v7717_v1, 6 }
 0x5a4   :  { %v18067_v54 = vadd.f32 %v11310_v38, %v11248_v30  ;;  %v7794_v12 = vsel %vm7756_vm5, %v20188_v9, %v7793_v50  ;;  %v11319_v33 = vadd.f32 %v11318_v8, %v11317_v11  ;;  %v7798_v19 = vsel %vm7756_vm5, %v7793_v50, %v7797_v4 }
 0x5a5   :  { %7909 = vmatmul.mubr.f32.gmra.mxu1 %v17382_v34  ;;  %v11250_v17 = vpop.f32.mrf.mxu1  ;;  %v7796_v48 = vsel %vm7756_vm5, %v7791_v49, %v7795_v41 }
 0x5a6   :  { %7913 = vmatprep.mubr.f32.mxu1 %v20184_v10  ;;  %v11251_v20 = vadd.f32 %v11250_v17, %v11249_v22 }
 0x5a7   :  { %v11252_v43 = vpop.f32.mrf.mxu1  ;;  %v11320_v3 = vpop.f32.mrf.mxu0 }
 0x5a8   :  { %v18071_v7 = vadd.f32 %v11313_v62, %v11251_v20 }
 0x5a9   :  { %7914 = vmatmul.mubr.f32.gmra.mxu1 %v20185_v28  ;;  %v11253_v31 = vpop.f32.mrf.mxu1  ;;  %v11321_v34 = vpop.f32.mrf.mxu0 }
 0x5aa   :  { %7918 = vmatprep.mubr.f32.mxu1 %v20186_v53  ;;  %v11254_v15 = vadd.f32 %v11253_v31, %v11252_v43  ;;  %v11322_v47 = vadd.f32 %v11321_v34, %v11320_v3 }
 0x5ab   :  { %v11255_v45 = vpop.f32.mrf.mxu1 }
 0x5ac   :  { %v18077_v52 = vadd.f32 %v11316_v58, %v11254_v15 }
 0x5ad   :  { %7919 = vmatmul.mubr.f32.gmra.mxu1 %v20187_v21  ;;  %v11256_v24 = vpop.f32.mrf.mxu1 }
 0x5ae   :  { %7923 = vmatprep.mubr.f32.mxu1 %v7794_v12  ;;  %v11323_v63 = vpop.f32.mrf.mxu0  ;;  %v11257_v5 = vadd.f32 %v11256_v24, %v11255_v45 }
 0x5b0   :  { %v18086_v6 = vadd.f32 %v11319_v33, %v11257_v5  ;;  %v11324_v35 = vpop.f32.mrf.mxu0 }
 0x5b1   :  { %7924 = vmatmul.mubr.f32.gmra.mxu1 %v7792_v36  ;;  %v11258_v26 = vpop.f32.mrf.mxu1  ;;  %v11325_v61 = vadd.f32 %v11324_v35, %v11323_v63 }
 0x5b2   :  { %7928 = vmatprep.mubr.f32.mxu1 %v7798_v19 }
 0x5b3   :  { %v11259_v13 = vpop.f32.mrf.mxu1 }
 0x5b4   :  { %v11326_v51 = vpop.f32.mrf.mxu0  ;;  %v11260_v42 = vadd.f32 %v11259_v13, %v11258_v26 }
 0x5b5   :  { %7929 = vmatmul.mubr.f32.gmra.mxu1 %v7796_v48 }
 0x5b6   :  { %v18090_v0 = vadd.f32 %v11322_v47, %v11260_v42  ;;  %v11327_v18 = vpop.f32.mrf.mxu0  ;;  %8219 = vmatprep.mubr.f32.mxu1 %v20190_v39 }
 0x5b7   :  { %v11328_v27 = vadd.f32 %v11327_v18, %v11326_v51 }
 0x5b8   :  { %v11261_v59 = vpop.f32.mrf.mxu1 }
 0x5ba   :  { %v11423_v56 = vpop.f32.mrf.mxu0  ;;  %v11262_v40 = vpop.f32.mrf.mxu1 }
 0x5bb   :  { %v11263_v60 = vadd.f32 %v11262_v40, %v11261_v59 }
 0x5bc   :  { %v11424_v2 = vpop.f32.mrf.mxu0 }
 0x5bd   :  { %v18093_v57 = vadd.f32 %v11325_v61, %v11263_v60  ;;  %v11264_v29 = vpop.f32.mrf.mxu1  ;;  %v11425_v62 = vadd.f32 %v11424_v2, %v11423_v56 }
 0x5bf   :  { %v11426_v23 = vpop.f32.mrf.mxu0  ;;  %v11265_v55 = vpop.f32.mrf.mxu1 }
 0x5c0   :  { %v11266_v32 = vadd.f32 %v11265_v55, %v11264_v29 }
 0x5c1   :  { %v11427_v37 = vpop.f32.mrf.mxu0  ;;  %v11361_v11 = vpop.f32.mrf.mxu1 }
 0x5c2   :  { %v18095_v38 = vadd.f32 %v11328_v27, %v11266_v32  ;;  %v11428_v44 = vadd.f32 %v11427_v37, %v11426_v23 }
 0x5c3   :  { %v11429_v30 = vpop.f32.mrf.mxu0  ;;  %v11362_v22 = vpop.f32.mrf.mxu1 }
 0x5c4   :  { %v11363_v8 = vadd.f32 %v11362_v22, %v11361_v11 }
 0x5c5   :  { %v11430_v17 = vpop.f32.mrf.mxu0  ;;  %v11364_v10 = vpop.f32.mrf.mxu1 }
 0x5c6   :  { %v6463_v20 = vadd.f32 %v11363_v8, %v18055_v16  ;;  %v11431_v9 = vadd.f32 %v11430_v17, %v11429_v30 }
 0x5c7   :  { %v11432_v43 = vpop.f32.mrf.mxu0  ;;  %v11365_v3 = vpop.f32.mrf.mxu1 }
 0x5c8   :  { %v11366_v28 = vadd.f32 %v11365_v3, %v11364_v10  ;;  %v18098_v50 = vadd.f32 %v11425_v62, %v6463_v20 }
 0x5c9   :  { %v11433_v31 = vpop.f32.mrf.mxu0  ;;  %v11367_v53 = vpop.f32.mrf.mxu1 }
 0x5ca   :  { %v6464_v58 = vadd.f32 %v11366_v28, %v18059_v14  ;;  %v11434_v5 = vadd.f32 %v11433_v31, %v11432_v43 }
 0x5cb   :  { %v11435_v15 = vpop.f32.mrf.mxu0  ;;  %v11368_v34 = vpop.f32.mrf.mxu1 }
 0x5cc   :  { %v11369_v45 = vadd.f32 %v11368_v34, %v11367_v53  ;;  %v18101_v49 = vadd.f32 %v11428_v44, %v6464_v58 }
 0x5cd   :  { %v11436_v21 = vpop.f32.mrf.mxu0 }
 0x5ce   :  { %v6465_v12 = vadd.f32 %v11369_v45, %v18063_v25  ;;  %v11370_v16 = vpop.f32.mrf.mxu1  ;;  %v11437_v13 = vadd.f32 %v11436_v21, %v11435_v15 }
 0x5d0   :  { %v11438_v4 = vpop.f32.mrf.mxu0  ;;  %v11371_v1 = vpop.f32.mrf.mxu1  ;;  %v18104_v24 = vadd.f32 %v11431_v9, %v6465_v12 }
 0x5d1   :  { %v11372_v33 = vadd.f32 %v11371_v1, %v11370_v16 }
 0x5d2   :  { %v11439_v63 = vpop.f32.mrf.mxu0 }
 0x5d3   :  { %v6466_v46 = vadd.f32 %v11372_v33, %v18067_v54  ;;  %v11440_v56 = vadd.f32 %v11439_v63, %v11438_v4 }
 0x5d4   :  { %v11373_v14 = vpop.f32.mrf.mxu1 }
 0x5d5   :  { %v18107_v36 = vadd.f32 %v11434_v5, %v6466_v46 }
 0x5d6   :  { %v11441_v41 = vpop.f32.mrf.mxu0  ;;  %v11374_v19 = vpop.f32.mrf.mxu1 }
 0x5d7   :  { %v11375_v26 = vadd.f32 %v11374_v19, %v11373_v14 }
 0x5d8   :  { %v11442_v35 = vpop.f32.mrf.mxu0 }
 0x5d9   :  { %v6467_v25 = vadd.f32 %v11375_v26, %v18071_v7  ;;  %v11443_v55 = vadd.f32 %v11442_v35, %v11441_v41 }
 0x5da   :  { %v11376_v48 = vpop.f32.mrf.mxu1 }
 0x5db   :  { %v18110_v47 = vadd.f32 %v11437_v13, %v6467_v25 }
 0x5dc   :  { %v11444_v51 = vpop.f32.mrf.mxu0  ;;  %v11377_v42 = vpop.f32.mrf.mxu1 }
 0x5dd   :  { %v11378_v18 = vadd.f32 %v11377_v42, %v11376_v48 }
 0x5de   :  { %v11445_v59 = vpop.f32.mrf.mxu0 }
 0x5df   :  { %v6468_v54 = vadd.f32 %v11378_v18, %v18077_v52  ;;  %v11446_v8 = vadd.f32 %v11445_v59, %v11444_v51 }
 0x5e0   :  { %v11379_v40 = vpop.f32.mrf.mxu1 }
 0x5e1   :  { %v18113_v61 = vadd.f32 %v11440_v56, %v6468_v54 }
 0x5e2   :  { %v11447_v60 = vpop.f32.mrf.mxu0  ;;  %v11380_v2 = vpop.f32.mrf.mxu1 }
 0x5e3   :  { %v11381_v29 = vadd.f32 %v11380_v2, %v11379_v40 }
 0x5e4   :  { %v11448_v23 = vpop.f32.mrf.mxu0 }
 0x5e5   :  { %v6469_v7 = vadd.f32 %v11381_v29, %v18086_v6  ;;  %v11449_v6 = vadd.f32 %v11448_v23, %v11447_v60 }
 0x5e6   :  { %v11382_v27 = vpop.f32.mrf.mxu1 }
 0x5e7   :  { %v18116_v32 = vadd.f32 %v11443_v55, %v6469_v7 }
 0x5e8   :  { %v11450_v37 = vpop.f32.mrf.mxu0  ;;  %v11383_v11 = vpop.f32.mrf.mxu1 }
 0x5e9   :  { %v11384_v30 = vadd.f32 %v11383_v11, %v11382_v27 }
 0x5ea   :  { %v11451_v22 = vpop.f32.mrf.mxu0 }
 0x5eb   :  { %v6470_v52 = vadd.f32 %v11384_v30, %v18090_v0  ;;  %v11452_v45 = vadd.f32 %v11451_v22, %v11450_v37 }
 0x5ec   :  { %v11385_v17 = vpop.f32.mrf.mxu1 }
 0x5ed   :  { %v18119_v10 = vadd.f32 %v11446_v8, %v6470_v52 }
 0x5ee   :  { %v18121_v62 = vpop.f32.mrf.mxu0  ;;  %v11386_v20 = vpop.f32.mrf.mxu1 }
 0x5ef   :  { %v11387_v43 = vadd.f32 %v11386_v20, %v11385_v17 }
 0x5f0   :  { %v18123_v3 = vpop.f32.mrf.mxu0 }
 0x5f1   :  { %v6471_v28 = vadd.f32 %v11387_v43, %v18093_v57  ;;  %v11388_v31 = vpop.f32.mrf.mxu1 }
 0x5f3   :  { %v18126_v53 = vpop.f32.mrf.mxu0  ;;  %v11389_v44 = vpop.f32.mrf.mxu1  ;;  %v18128_v58 = vadd.f32 %v11449_v6, %v6471_v28  ;;  %v8147_v6 = vld [vmem:[%s19481_s7 + $0x70] sm:$0xff] }
 0x5f4   :  { %v11390_v15 = vadd.f32 %v11389_v44, %v11388_v31  ;;  %v8146_v31 = vld [vmem:[%s19481_s7 + $0x68] sm:$0xff]  ;;  %v8144_v44 = vld [vmem:[%s19481_s7 + $0x58] sm:$0xff] }
 0x5f5   :  { %v18130_v0 = vpop.f32.mrf.mxu0  ;;  %v11485_v34 = vpop.f32.mrf.mxu1 }
 0x5f6   :  { %v6472_v21 = vadd.f32 %v11390_v15, %v18095_v38 }
 0x5f7   :  { %v18133_v9 = vpop.f32.mrf.mxu0  ;;  %v11486_v12 = vpop.f32.mrf.mxu1 }
 0x5f8   :  { %v11487_v16 = vadd.f32 %v11486_v12, %v11485_v34  ;;  %v18135_v4 = vadd.f32 %v11452_v45, %v6472_v21  ;;  %v8143_v34 = vld [vmem:[%s19481_s7 + $0x50] sm:$0xff]  ;;  %v8142_v12 = vld [vmem:[%s19481_s7 + $0x48] sm:$0xff] }
 0x5f9   :  { %v18137_v57 = vpop.f32.mrf.mxu0  ;;  %v11488_v1 = vpop.f32.mrf.mxu1 }
 0x5fa   :  { %v18140_v33 = vadd.f32 %v11487_v16, %v18098_v50  ;;  %v8141_v16 = vld [vmem:[%s19481_s7 + $0x40] sm:$0xff] }
 0x5fb   :  { %v18142_v63 = vpop.f32.mrf.mxu0  ;;  %v11489_v5 = vpop.f32.mrf.mxu1 }
 0x5fc   :  { %v11490_v46 = vadd.f32 %v11489_v5, %v11488_v1 }
 0x5fd   :  { %v18144_v14 = vpop.f32.mrf.mxu0  ;;  %v11491_v41 = vpop.f32.mrf.mxu1 }
 0x5fe   :  { %v18147_v38 = vadd.f32 %v11490_v46, %v18101_v49  ;;  %v8140_v46 = vld [vmem:[%s19481_s7 + $0x38] sm:$0xff] }
 0x5ff   :  { %v18149_v19 = vpop.f32.mrf.mxu0  ;;  %v11492_v26 = vpop.f32.mrf.mxu1 }
 0x600   :  { %v11493_v35 = vadd.f32 %v11492_v26, %v11491_v41  ;;  %v8139_v41 = vld [vmem:[%s19481_s7 + $0x30] sm:$0xff] }
 0x601   :  { %v18151_v13 = vpop.f32.mrf.mxu0 }
 0x602   :  { %v18154_v25 = vadd.f32 %v11493_v35, %v18104_v24  ;;  %v11494_v50 = vpop.f32.mrf.mxu1 }
 0x604   :  { %v18156_v48 = vpop.f32.mrf.mxu0  ;;  %v11495_v51 = vpop.f32.mrf.mxu1 }
 0x605   :  { %v11496_v42 = vadd.f32 %v11495_v51, %v11494_v50  ;;  %v8138_v50 = vld [vmem:[%s19481_s7 + $0x28] sm:$0xff]  ;;  %v8137_v51 = vld [vmem:[%s19481_s7 + $0x20] sm:$0xff] }
 0x606   :  { %v18158_v18 = vpop.f32.mrf.mxu0 }
 0x607   :  { %v18161_v59 = vadd.f32 %v11496_v42, %v18107_v36 }
 0x608   :  { %v11497_v49 = vpop.f32.mrf.mxu1 }
 0x60a   :  { %v18163_v56 = vpop.f32.mrf.mxu0  ;;  %v11498_v54 = vpop.f32.mrf.mxu1 }
 0x60b   :  { %v11499_v40 = vadd.f32 %v11498_v54, %v11497_v49  ;;  %v8136_v49 = vld [vmem:[%s19481_s7 + $0x18] sm:$0xff] }
 0x60c   :  { %v18165_v60 = vpop.f32.mrf.mxu0 }
 0x60d   :  { %v18168_v24 = vadd.f32 %v11499_v40, %v18110_v47 }
 0x60e   :  { %v11500_v2 = vpop.f32.mrf.mxu1 }
 0x610   :  { %v18170_v29 = vpop.f32.mrf.mxu0  ;;  %v11501_v23 = vpop.f32.mrf.mxu1 }
 0x611   :  { %v11502_v55 = vadd.f32 %v11501_v23, %v11500_v2 }
 0x612   :  { %v18175_v36 = vpop.f32.mrf.mxu0 }
 0x613   :  { %v18173_v7 = vadd.f32 %v11502_v55, %v18113_v61  ;;  %v8046_v61 = vld [vmem:[%s19480_s6] sm:$0xff] }
 0x614   :  { %v11503_v27 = vpop.f32.mrf.mxu1  ;;  %12016 = vmatprep.mubr.msk.f32.mxu0 %vm8048_vm8, %v8046_v61 }
 0x616   :  { %v11504_v37 = vpop.f32.mrf.mxu1  ;;  %v18177_v11 = vpop.f32.mrf.mxu0 }
 0x617   :  { %v11505_v30 = vadd.f32 %v11504_v37, %v11503_v27 }
 0x618   :  { %v18182_v8 = vpop.f32.mrf.mxu0 }
 0x619   :  { %v18180_v22 = vadd.f32 %v11505_v30, %v18116_v32  ;;  %20191 = vst [vmem:[#allocation93_spill] sm:$0xff] %v18182_v8  ;;  %v8148_v32 = vld [vmem:[%s19481_s7 + $0x78] sm:$0xff] }
 0x61a   :  { %v11506_v47 = vpop.f32.mrf.mxu1  ;;  %8171 = vmatprep.subr.mxu1 %v8148_v32 }
 0x61b   :  { %8172 = vmatpush1.msra.mxu1 %v8147_v6 }
 0x61c   :  { %v11507_v52 = vpop.f32.mrf.mxu1  ;;  %v18187_v20 = vpop.f32.mrf.mxu0  ;;  %8173 = vmatprep.subr.mxu1 %v8146_v31 }
 0x61d   :  { %v11508_v17 = vadd.f32 %v11507_v52, %v11506_v47  ;;  %20192 = vst [vmem:[#allocation95_spill] sm:$0xff] %v18187_v20 }
 0x61e   :  { %v18211_v45 = vpop.f32.mrf.mxu0 }
 0x61f   :  { %v18190_v43 = vadd.f32 %v11508_v17, %v18119_v10  ;;  %v8145_v10 = vld [vmem:[%s19481_s7 + $0x60] sm:$0xff]  ;;  %20193 = vst [vmem:[#allocation96_spill] sm:$0xff] %v18211_v45 }
 0x620   :  { %v11509_v28 = vpop.f32.mrf.mxu1  ;;  %8174 = vmatpush1.msra.mxu1 %v8145_v10 }
 0x621   :  { %8175 = vmatprep.subr.mxu1 %v8144_v44 }
 0x622   :  { %v11510_v15 = vpop.f32.mrf.mxu1  ;;  %8176 = vmatpush1.msra.mxu1 %v8143_v34  ;;  %v11671_v26 = vpop.f32.mrf.mxu0 }
 0x623   :  { %v11511_v21 = vadd.f32 %v11510_v15, %v11509_v28  ;;  %8177 = vmatprep.subr.mxu1 %v8142_v12 }
 0x624   :  { %8178 = vmatpush1.msra.mxu1 %v8141_v16  ;;  %v11672_v40 = vpop.f32.mrf.mxu0 }
 0x625   :  { %v18220_v1 = vadd.f32 %v11511_v21, %v18128_v58  ;;  %v11512_v5 = vpop.f32.mrf.mxu1  ;;  %8179 = vmatprep.subr.mxu1 %v8140_v46 }
 0x626   :  { %8180 = vmatpush1.msra.mxu1 %v8139_v41 }
 0x627   :  { %20194 = vst [vmem:[#allocation48_spill] sm:$0xff] %v18220_v1  ;;  %v11513_v35 = vpop.f32.mrf.mxu1  ;;  %8181 = vmatprep.subr.mxu1 %v8138_v50  ;;  %v11674_v55 = vpop.f32.mrf.mxu0 }
 0x628   :  { %v11514_v58 = vadd.f32 %v11513_v35, %v11512_v5  ;;  %8182 = vmatpush1.msra.mxu1 %v8137_v51  ;;  %v11549_v35 = vadd.f32 %v18123_v3, %v18121_v62 }
 0x629   :  { %v11609_v42 = vpop.f32.mrf.mxu1  ;;  %8183 = vmatprep.subr.mxu1 %v8136_v49  ;;  %v11675_v30 = vpop.f32.mrf.mxu0  ;;  %v11552_v49 = vadd.f32 %v18130_v0, %v18126_v53 }
 0x62a   :  { %v18238_v54 = vadd.f32 %v11514_v58, %v18135_v4  ;;  %v7213_v51 = vadd.f32 %v11549_v35, %v18140_v33  ;;  %v11555_v33 = vadd.f32 %v18137_v57, %v18133_v9  ;;  %v11676_v0 = vadd.f32 %v11675_v30, %v11674_v55 }
 0x62b   :  { %v11610_v2 = vpop.f32.mrf.mxu1  ;;  %v11677_v17 = vpop.f32.mrf.mxu0  ;;  %v7214_v1 = vadd.f32 %v11552_v49, %v18147_v38  ;;  %v11561_v35 = vadd.f32 %v18151_v13, %v18149_v19 }
 0x62c   :  { %20195 = vst [vmem:[#allocation97_spill] sm:$0xff] %v18238_v54  ;;  %v11611_v50 = vadd.f32 %v11610_v2, %v11609_v42  ;;  %v7215_v38 = vadd.f32 %v11555_v33, %v18154_v25  ;;  %v11564_v33 = vadd.f32 %v18158_v18, %v18156_v48  ;;  %v11567_v18 = vadd.f32 %v18165_v60, %v18163_v56 }
 0x62d   :  { %v11612_v23 = vpop.f32.mrf.mxu1  ;;  %v11678_v6 = vpop.f32.mrf.mxu0  ;;  %v7217_v49 = vadd.f32 %v11561_v35, %v18168_v24  ;;  %v11570_v60 = vadd.f32 %v18175_v36, %v18170_v29  ;;  %v20198_v29 = vld [vmem:[#allocation93_spill] sm:$0xff] }
 0x62e   :  { %v7477_v20 = vadd.f32 %v11611_v50, %v7213_v51  ;;  %v11573_v36 = vadd.f32 %v20198_v29, %v18177_v11  ;;  %v20203_v11 = vld [vmem:[#allocation96_spill] sm:$0xff] }
 0x62f   :  { %v11613_v27 = vpop.f32.mrf.mxu1  ;;  %v11680_v4 = vpop.f32.mrf.mxu0 }
 0x630   :  { %v11614_v39 = vadd.f32 %v11613_v27, %v11612_v23  ;;  %v18279_v23 = vld [vmem:[%s19482_s4] ss:$0 sm:$0xff] }
 0x631   :  { %v11615_v37 = vpop.f32.mrf.mxu1  ;;  %v11681_v15 = vpop.f32.mrf.mxu0 }
 0x632   :  { %v7478_v8 = vadd.f32 %v11614_v39, %v7214_v1  ;;  %v11558_v39 = vadd.f32 %v18144_v14, %v18142_v63 }
 0x633   :  { %v11616_v47 = vpop.f32.mrf.mxu1  ;;  %v18250_v12 = vpop.f32.mrf.mxu0 }
 0x634   :  { %v11617_v42 = vadd.f32 %v11616_v47, %v11615_v37  ;;  %v11679_v47 = vadd.f32 %v11678_v6, %v11677_v17  ;;  %v11682_v6 = vadd.f32 %v11681_v15, %v11680_v4  ;;  %v7218_v15 = vadd.f32 %v11564_v33, %v18173_v7 }
 0x635   :  { %v11618_v52 = vpop.f32.mrf.mxu1  ;;  %v18256_v46 = vpop.f32.mrf.mxu0 }
 0x636   :  { %v7479_v57 = vadd.f32 %v11617_v42, %v7215_v38  ;;  %v11685_v24 = vadd.f32 %v18256_v46, %v18250_v12 }
 0x637   :  { %v11619_v61 = vpop.f32.mrf.mxu1  ;;  %v18267_v54 = vpop.f32.mrf.mxu0 }
 0x639   :  { %v11621_v32 = vpop.f32.mrf.mxu1  ;;  %v18272_v62 = vpop.f32.mrf.mxu0 }
 0x63a   :  { %v11688_v7 = vadd.f32 %v18272_v62, %v18267_v54  ;;  %v7220_v54 = vadd.f32 %v11570_v60, %v18190_v43 }
 0x63b   :  { %v11622_v28 = vpop.f32.mrf.mxu1  ;;  %v18284_v1 = vpop.f32.mrf.mxu0 }
 0x63c   :  { %v11623_v63 = vadd.f32 %v11622_v28, %v11621_v32 }
 0x63d   :  { %v18240_v31 = vpop.f32.mrf.mxu1  ;;  %v11690_v14 = vpop.f32.mrf.mxu0 }
 0x63e   :  { %v7481_v19 = vadd.f32 %v11623_v63, %v7217_v49  ;;  %v11691_v62 = vadd.f32 %v11690_v14, %v18284_v1  ;;  %v20201_v1 = vld [vmem:[#allocation48_spill] sm:$0xff] }
 0x63f   :  { %v18242_v10 = vpop.f32.mrf.mxu1  ;;  %v11692_v13 = vpop.f32.mrf.mxu0  ;;  %v7221_v14 = vadd.f32 %v11573_v36, %v20201_v1 }
 0x640   :  { %v11626_v28 = vadd.f32 %v18242_v10, %v18240_v31  ;;  %v7709_v38 = vadd.f32 %v11685_v24, %v7481_v19 }
 0x641   :  { %v18244_v44 = vpop.f32.mrf.mxu1 }
 0x642   :  { %v7482_v10 = vadd.f32 %v11626_v28, %v7218_v15 }
 0x643   :  { %v18246_v34 = vpop.f32.mrf.mxu1 }
 0x645   :  { %v18248_v21 = vpop.f32.mrf.mxu1 }
 0x647   :  { %v18252_v16 = vpop.f32.mrf.mxu1 }
 0x649   :  { %v18254_v5 = vpop.f32.mrf.mxu1 }
 0x64a   :  { %20196 = vst [vmem:[#allocation99_spill] sm:$0xff] %v18254_v5  ;;  %v11673_v5 = vadd.f32 %v11672_v40, %v11671_v26  ;;  %v7706_v40 = vadd.f32 %v11676_v0, %v7478_v8 }
 0x64b   :  { %v18258_v41 = vpop.f32.mrf.mxu1 }
 0x64c   :  { %20197 = vst [vmem:[#allocation100_spill] sm:$0xff] %v18258_v41  ;;  %v7705_v2 = vadd.f32 %v11673_v5, %v7477_v20  ;;  %v11620_v20 = vadd.f32 %v11619_v61, %v11618_v52  ;;  %v7216_v5 = vadd.f32 %v11558_v39, %v18161_v59  ;;  %v7707_v61 = vadd.f32 %v11679_v47, %v7479_v57 }
 0x64d   :  { %v18262_v58 = vpop.f32.mrf.mxu1 }
 0x64e   :  { %v7480_v8 = vadd.f32 %v11620_v20, %v7216_v5 }
 0x64f   :  { %v18269_v45 = vpop.f32.mrf.mxu1 }
 0x651   :  { %v11733_v41 = vpop.f32.mrf.mxu1 }
 0x653   :  { %v11734_v3 = vpop.f32.mrf.mxu1  ;;  %v20200_v35 = vld [vmem:[#allocation100_spill] sm:$0xff] }
 0x654   :  { %v11735_v53 = vadd.f32 %v11734_v3, %v11733_v41 }
 0x655   :  { %v11736_v27 = vpop.f32.mrf.mxu1 }
 0x656   :  { %v7934_v26 = vadd.f32 %v11735_v53, %v7705_v2  ;;  %v7708_v2 = vadd.f32 %v11682_v6, %v7480_v8 }
 0x657   :  { %v11737_v9 = vpop.f32.mrf.mxu1 }
 0x658   :  { %v7951_v55 = vadd.f32 %v18279_v23, %v7934_v26  ;;  %v11738_v37 = vadd.f32 %v11737_v9, %v11736_v27  ;;  %v11693_v27 = vpop.f32.mrf.mxu0  ;;  %v11629_v26 = vadd.f32 %v18246_v34, %v18244_v44  ;;  %v11632_v44 = vadd.f32 %v18252_v16, %v18248_v21 }
 0x659   :  { %v11739_v30 = vpop.f32.mrf.mxu1 }
 0x65a   :  { %v7961_v41 = vmax.f32 %v7951_v55, 0.0  ;;  %v7935_v25 = vadd.f32 %v11738_v37, %v7706_v40  ;;  %v7219_v40 = vadd.f32 %v11567_v18, %v18180_v22  ;;  %v11695_v57 = vpop.f32.mrf.mxu0  ;;  %v7710_v37 = vadd.f32 %v11688_v7, %v7482_v10 }
 0x65b   :  { %v11740_v50 = vpop.f32.mrf.mxu1  ;;  %v7484_v21 = vadd.f32 %v11632_v44, %v7220_v54 }
 0x65c   :  { %7972 = vst.msk [vmem:[#allocation4] sm:$0xff] %vm7971_vm9, %v7961_v41  ;;  %v7952_v52 = vadd.f32 %v18279_v23, %v7935_v25  ;;  %v11741_v51 = vadd.f32 %v11740_v50, %v11739_v30  ;;  %v7483_v20 = vadd.f32 %v11629_v26, %v7219_v40  ;;  %v11696_v41 = vpop.f32.mrf.mxu0  ;;  %v20199_v25 = vld [vmem:[#allocation99_spill] sm:$0xff] }
 0x65d   :  { %v11742_v17 = vpop.f32.mrf.mxu1  ;;  %v11635_v63 = vadd.f32 %v20200_v35, %v20199_v25 }
 0x65e   :  { %v7962_v59 = vmax.f32 %v7952_v52, 0.0  ;;  %v7936_v3 = vadd.f32 %v11741_v51, %v7707_v61  ;;  %v7711_v8 = vadd.f32 %v11691_v62, %v7483_v20  ;;  %v11694_v52 = vadd.f32 %v11693_v27, %v11692_v13 }
 0x65f   :  { %v11743_v32 = vpop.f32.mrf.mxu1  ;;  %v7485_v19 = vadd.f32 %v11635_v63, %v7221_v14 }
 0x660   :  { %7973 = vst.msk [vmem:[#allocation4 + $0x8] sm:$0xff] %vm7971_vm9, %v7962_v59  ;;  %v7953_v42 = vadd.f32 %v18279_v23, %v7936_v3  ;;  %v11744_v53 = vadd.f32 %v11743_v32, %v11742_v17  ;;  %v20202_v17 = vld [vmem:[#allocation95_spill] sm:$0xff]  ;;  %v11698_v59 = vpop.f32.mrf.mxu0  ;;  %v7712_v3 = vadd.f32 %v11694_v52, %v7484_v21  ;;  %v11638_v32 = vadd.f32 %v18269_v45, %v18262_v58 }
 0x661   :  { %v11745_v4 = vpop.f32.mrf.mxu1  ;;  %v11576_v6 = vadd.f32 %v20203_v11, %v20202_v17 }
 0x662   :  { %v7963_v0 = vmax.f32 %v7953_v42, 0.0  ;;  %v7937_v48 = vadd.f32 %v11744_v53, %v7708_v2  ;;  %v11697_v2 = vadd.f32 %v11696_v41, %v11695_v57  ;;  %v20204_v53 = vld [vmem:[#allocation97_spill] sm:$0xff] }
 0x663   :  { %v11746_v31 = vpop.f32.mrf.mxu1  ;;  %v7222_v24 = vadd.f32 %v11576_v6, %v20204_v53 }
 0x664   :  { %7974 = vst.msk [vmem:[#allocation4 + $0x10] sm:$0xff] %vm7971_vm9, %v7963_v0  ;;  %v7954_v39 = vadd.f32 %v18279_v23, %v7937_v48  ;;  %v11747_v12 = vadd.f32 %v11746_v31, %v11745_v4  ;;  %v11699_v0 = vpop.f32.mrf.mxu0 }
 0x665   :  { %v11748_v46 = vpop.f32.mrf.mxu1  ;;  %v7486_v18 = vadd.f32 %v11638_v32, %v7222_v24  ;;  %v11700_v31 = vadd.f32 %v11699_v0, %v11698_v59 }
 0x666   :  { %v7964_v9 = vmax.f32 %v7954_v39, 0.0  ;;  %v7938_v56 = vadd.f32 %v11747_v12, %v7709_v38  ;;  %v7713_v38 = vadd.f32 %v11697_v2, %v7485_v19 }
 0x667   :  { %v11749_v34 = vpop.f32.mrf.mxu1 }
 0x668   :  { %7975 = vst.msk [vmem:[#allocation4 + $0x18] sm:$0xff] %vm7971_vm9, %v7964_v9  ;;  %v7955_v55 = vadd.f32 %v18279_v23, %v7938_v56  ;;  %v11750_v30 = vadd.f32 %v11749_v34, %v11748_v46  ;;  %v7714_v46 = vadd.f32 %v11700_v31, %v7486_v18 }
 0x669   :  { %v11751_v22 = vpop.f32.mrf.mxu1 }
 0x66a   :  { %v7965_v47 = vmax.f32 %v7955_v55, 0.0  ;;  %v7939_v5 = vadd.f32 %v11750_v30, %v7710_v37 }
 0x66b   :  { %v11752_v16 = vpop.f32.mrf.mxu1  ;;  %v7985_v0 = vld [vmem:[#allocation4 + $0x10] sm:$0xff] }
 0x66c   :  { %7976 = vst.msk [vmem:[#allocation4 + $0x20] sm:$0xff] %vm7971_vm9, %v7965_v47  ;;  %v7956_v50 = vadd.f32 %v18279_v23, %v7939_v5  ;;  %v11753_v43 = vadd.f32 %v11752_v16, %v11751_v22  ;;  %v7993_v18 = vld [vmem:[#allocation4 + $0x9] sm:$0xff] }
 0x66d   :  { %v11754_v61 = vpop.f32.mrf.mxu1 }
 0x66e   :  { %v7966_v51 = vmax.f32 %v7956_v50, 0.0  ;;  %v7940_v49 = vadd.f32 %v11753_v43, %v7711_v8 }
 0x66f   :  { %v11755_v33 = vpop.f32.mrf.mxu1  ;;  %v7994_v2 = vld [vmem:[#allocation4 + $0x11] sm:$0xff] }
 0x670   :  { %7977 = vst.msk [vmem:[#allocation4 + $0x28] sm:$0xff] %vm7971_vm9, %v7966_v51  ;;  %v7957_v28 = vadd.f32 %v18279_v23, %v7940_v49  ;;  %v11756_v13 = vadd.f32 %v11755_v33, %v11754_v61  ;;  %v8011_v53 = vld [vmem:[#allocation4 + $0x12] sm:$0xff] }
 0x671   :  { %v11757_v42 = vpop.f32.mrf.mxu1  ;;  %v8020_v24 = vld [vmem:[#allocation4 + $0x13] sm:$0xff] }
 0x672   :  { %v7967_v4 = vmax.f32 %v7957_v28, 0.0  ;;  %v7941_v15 = vadd.f32 %v11756_v13, %v7712_v3  ;;  %v7986_v13 = vld [vmem:[#allocation4 + $0x18] sm:$0xff]  ;;  %v8029_v31 = vmax.f32 %v8011_v53, %v8020_v24  ;;  %v10958_v53 = vld [vmem:[%s19483_s9 + $0x50] sm:$0xff] }
 0x673   :  { %v11758_v48 = vpop.f32.mrf.mxu1  ;;  %v7987_v6 = vld [vmem:[#allocation4 + $0x20] sm:$0xff] }
 0x674   :  { %7978 = vst.msk [vmem:[#allocation4 + $0x30] sm:$0xff] %vm7971_vm9, %v7967_v4  ;;  %v7958_v27 = vadd.f32 %v18279_v23, %v7941_v15  ;;  %v11759_v45 = vadd.f32 %v11758_v48, %v11757_v42  ;;  %v7995_v3 = vld [vmem:[#allocation4 + $0x19] sm:$0xff] }
 0x675   :  { %v11760_v58 = vpop.f32.mrf.mxu1  ;;  %v8012_v33 = vld [vmem:[#allocation4 + $0x1a] sm:$0xff]  ;;  %v8004_v15 = vmax.f32 %v7986_v13, %v7995_v3 }
 0x676   :  { %v7968_v10 = vmax.f32 %v7958_v27, 0.0  ;;  %v7942_v26 = vadd.f32 %v11759_v45, %v7713_v38  ;;  %v8021_v19 = vld [vmem:[#allocation4 + $0x1b] sm:$0xff]  ;;  %v8010_v27 = vld [vmem:[#allocation4 + $0xa] sm:$0xff] }
 0x677   :  { %v11761_v39 = vpop.f32.mrf.mxu1  ;;  %v7988_v61 = vld [vmem:[#allocation4 + $0x28] sm:$0xff]  ;;  %v8030_v48 = vmax.f32 %v8012_v33, %v8021_v19  ;;  %v10994_v3 = vld [vmem:[%s19481_s7 + $0x170] sm:$0xff]  ;;  %v10957_v19 = vld [vmem:[%s19483_s9 + $0x48] sm:$0xff] }
 0x678   :  { %7979 = vst.msk [vmem:[#allocation4 + $0x38] sm:$0xff] %vm7971_vm9, %v7968_v10  ;;  %v7959_v12 = vadd.f32 %v18279_v23, %v7942_v26  ;;  %v11762_v7 = vadd.f32 %v11761_v39, %v11760_v58  ;;  %v7996_v14 = vld [vmem:[#allocation4 + $0x21] sm:$0xff]  ;;  %v8019_v38 = vld [vmem:[#allocation4 + $0xb] sm:$0xff]  ;;  %v8003_v58 = vmax.f32 %v7985_v0, %v7994_v2  ;;  %v11027_v13 = vld [vmem:[%s19481_s7 + $0x1e8] sm:$0xff] }
 0x679   :  { %v8013_v51 = vld [vmem:[#allocation4 + $0x22] sm:$0xff]  ;;  %v8005_v28 = vmax.f32 %v7987_v6, %v7996_v14  ;;  %v11026_v2 = vld [vmem:[%s19481_s7 + $0x1e0] sm:$0xff] }
 0x67a   :  { %v7969_v40 = vmax.f32 %v7959_v12, 0.0  ;;  %v7943_v9 = vadd.f32 %v11762_v7, %v7714_v46  ;;  %v8022_v49 = vld [vmem:[#allocation4 + $0x23] sm:$0xff]  ;;  %v8039_v39 = vmax.f32 %v8003_v58, %v8030_v48  ;;  %v8028_v46 = vmax.f32 %v8010_v27, %v8019_v38  ;;  %v10989_v38 = vld [vmem:[%s19481_s7 + $0x148] sm:$0xff]  ;;  %v10988_v58 = vld [vmem:[%s19481_s7 + $0x140] sm:$0xff] }
 0x67b   :  { %v7989_v25 = vld [vmem:[#allocation4 + $0x30] sm:$0xff]  ;;  %v8031_v42 = vmax.f32 %v8013_v51, %v8022_v49  ;;  %v7984_v10 = vld [vmem:[#allocation4 + $0x8] sm:$0xff]  ;;  %v7983_v7 = vld [vmem:[#allocation4] sm:$0xff] }
 0x67c   :  { %7980 = vst.msk [vmem:[#allocation4 + $0x40] sm:$0xff] %vm7971_vm9, %v7969_v40  ;;  %v7960_v56 = vadd.f32 %v18279_v23, %v7943_v9  ;;  %v7997_v63 = vld [vmem:[#allocation4 + $0x29] sm:$0xff]  ;;  %v7992_v26 = vld [vmem:[#allocation4 + $0x1] sm:$0xff]  ;;  %v8002_v12 = vmax.f32 %v7984_v10, %v7993_v18 }
 0x67d   :  { %v8014_v50 = vld [vmem:[#allocation4 + $0x2a] sm:$0xff]  ;;  %v8006_v11 = vmax.f32 %v7988_v61, %v7997_v63  ;;  %v8040_v45 = vmax.f32 %v8004_v15, %v8031_v42  ;;  %v8001_v9 = vmax.f32 %v7983_v7, %v7992_v26  ;;  %v11028_v33 = vld [vmem:[%s19481_s7 + $0x1f0] sm:$0xff] }
 0x67e   :  { %v7970_v60 = vmax.f32 %v7960_v56, 0.0  ;;  %v8023_v8 = vld [vmem:[#allocation4 + $0x2b] sm:$0xff]  ;;  %v8038_v40 = vmax.f32 %v8002_v12, %v8029_v31  ;;  %v8234_v24 = vld [vmem:[%s19483_s9 + $0x10] sm:$0xff] }
 0x67f   :  { %v7990_v47 = vld [vmem:[#allocation4 + $0x38] sm:$0xff]  ;;  %v8032_v59 = vmax.f32 %v8014_v50, %v8023_v8  ;;  %v8037_v56 = vmax.f32 %v8001_v9, %v8028_v46  ;;  %v10995_v6 = vld [vmem:[%s19481_s7 + $0x178] sm:$0xff]  ;;  %v10992_v42 = vld [vmem:[%s19481_s7 + $0x160] sm:$0xff] }
 0x680   :  { %7982 = vst.msk [vmem:[#allocation4 + $0x48] sm:$0x3f] %vm7981_vm10, %v7970_v60  ;;  %v7998_v36 = vld [vmem:[#allocation4 + $0x31] sm:$0xff]  ;;  %v11025_v15 = vld [vmem:[%s19481_s7 + $0x1d8] sm:$0xff]  ;;  %v10990_v0 = vld [vmem:[%s19481_s7 + $0x150] sm:$0xff] }
 0x681   :  { %v8015_v41 = vld [vmem:[#allocation4 + $0x32] sm:$0xff]  ;;  %v8007_v52 = vmax.f32 %v7989_v25, %v7998_v36  ;;  %v8041_v4 = vmax.f32 %v8005_v28, %v8032_v59  ;;  %v10941_v36 = vld [vmem:[%s19481_s7 + $0x98] sm:$0xff]  ;;  %v11024_v48 = vld [vmem:[%s19481_s7 + $0x1d0] sm:$0xff] }
 0x682   :  { %v8024_v21 = vld [vmem:[#allocation4 + $0x33] sm:$0xff]  ;;  %v11029_v59 = vld [vmem:[%s19481_s7 + $0x1f8] sm:$0xff]  ;;  %v10986_v46 = vld [vmem:[%s19481_s7 + $0x130] sm:$0xff] }
 0x683   :  { %v7991_v57 = vld [vmem:[#allocation4 + $0x40] sm:$0x7]  ;;  %v8033_v1 = vmax.f32 %v8015_v41, %v8024_v21  ;;  %v8047_v60 = vld [vmem:[%s19480_s6 + $0x8] sm:$0xff]  ;;  %v8133_v25 = vld [vmem:[%s19481_s7] sm:$0xff] }
 0x684   :  { %v8000_v44 = vld [vmem:[#allocation4 + $0x41] sm:$0x7]  ;;  %v7999_v34 = vld [vmem:[#allocation4 + $0x39] sm:$0xff]  ;;  %v10959_v18 = vld [vmem:[%s19483_s9 + $0x58] sm:$0xff] }
 0x685   :  { %v8016_v20 = vld [vmem:[#allocation4 + $0x3a] sm:$0xff]  ;;  %v8009_v22 = vmax.f32 %v7991_v57, %v8000_v44  ;;  %v8008_v16 = vmax.f32 %v7990_v47, %v7999_v34  ;;  %v8042_v32 = vmax.f32 %v8006_v11, %v8033_v1  ;;  %v10953_v57 = vld [vmem:[%s19481_s7 + $0xf8] sm:$0xff]  ;;  %v8232_v11 = vld [vmem:[%s19483_s9] sm:$0xff] }
 0x686   :  { %v8025_v55 = vld [vmem:[#allocation4 + $0x3b] sm:$0xff]  ;;  %v8235_v27 = vld [vmem:[%s19483_s9 + $0x18] sm:$0xff]  ;;  %v11022_v31 = vld [vmem:[%s19481_s7 + $0x1c0] sm:$0xff] }
 0x687   :  { %v8018_v37 = vld [vmem:[#allocation4 + $0x4a] sm:$0x7]  ;;  %v8017_v54 = vld [vmem:[#allocation4 + $0x42] sm:$0xff]  ;;  %v8034_v35 = vmax.f32 %v8016_v20, %v8025_v55  ;;  %v10951_v34 = vld [vmem:[%s19481_s7 + $0xe8] sm:$0xff] }
 0x688   :  { %v8027_v30 = vld [vmem:[#allocation4 + $0x4b] sm:$0x7]  ;;  %v8026_v5 = vld [vmem:[#allocation4 + $0x43] sm:$0xff]  ;;  %v10950_v20 = vld [vmem:[%s19481_s7 + $0xe0] sm:$0xff] }
 0x689   :  { %v8036_v62 = vmax.f32 %v8018_v37, %v8027_v30  ;;  %v8035_v29 = vmax.f32 %v8017_v54, %v8026_v5  ;;  %v8043_v17 = vmax.f32 %v8007_v52, %v8034_v35  ;;  %v10952_v44 = vld [vmem:[%s19481_s7 + $0xf0] sm:$0xff]  ;;  %v10949_v55 = vld [vmem:[%s19481_s7 + $0xd8] sm:$0xff]  ;;  %v20205_v37 = vmov 0.0   ;;  %v10947_v54 = vld [vmem:[%s19481_s7 + $0xc8] sm:$0xff] }
 0x68a   :  { %v10948_v30 = vld [vmem:[%s19481_s7 + $0xd0] sm:$0xff]  ;;  %v10943_v5 = vld [vmem:[%s19481_s7 + $0xa8] sm:$0xff]  ;;  %v10938_v35 = vld [vmem:[%s19481_s7 + $0x80] sm:$0xff] }
 0x68b   :  { %v8045_v23 = vmax.f32 %v8009_v22, %v8036_v62  ;;  %v8044_v43 = vmax.f32 %v8008_v16, %v8035_v29  ;;  %v10946_v22 = vld [vmem:[%s19481_s7 + $0xc0] sm:$0xff]  ;;  %v10945_v62 = vld [vmem:[%s19481_s7 + $0xb8] sm:$0xff]  ;;  %v10944_v47 = vld [vmem:[%s19481_s7 + $0xb0] sm:$0xff] }
 0x68c   :  { %v10942_v29 = vld [vmem:[%s19481_s7 + $0xa0] sm:$0xff]  ;;  %v8135_v41 = vld [vmem:[%s19481_s7 + $0x10] sm:$0xff]  ;;  %v10939_v16 = vld [vmem:[%s19481_s7 + $0x88] sm:$0xff] }
 0x68d   :  { %11998 = vmatprep.subr.msk.mxu0 %vm5533_vm3, %v8045_v23  ;;  %v10940_v21 = vld [vmem:[%s19481_s7 + $0x90] sm:$0xff]  ;;  %8184 = vmatpush1.msra.mxu1 %v8135_v41  ;;  %v10993_v28 = vld [vmem:[%s19481_s7 + $0x168] sm:$0xff]  ;;  %v10960_v10 = vld [vmem:[%s19483_s9 + $0x60] sm:$0xff] }
 0x68e   :  { %11999 = vmatpush3.msk.msra.mxu0 %vm5533_vm3, %v8045_v23  ;;  %v8134_v23 = vld [vmem:[%s19481_s7 + $0x8] sm:$0xff]  ;;  %v8236_v26 = vld [vmem:[%s19483_s9 + $0x20] sm:$0xff]  ;;  %v11021_v12 = vld [vmem:[%s19481_s7 + $0x1b8] sm:$0xff] }
 0x68f   :  { %12000 = vmatprep.subr.mxu0 %v8044_v43  ;;  %8185 = vmatprep.subr.mxu1 %v8134_v23  ;;  %v11020_v7 = vld [vmem:[%s19481_s7 + $0x1b0] sm:$0xff]  ;;  %v8237_v9 = vld [vmem:[%s19483_s9 + $0x28] sm:$0xff]  ;;  %v11014_v41 = vld [vmem:[%s19481_s7 + $0x180] sm:$0xff] }
 0x690   :  { %12001 = vmatpush3.msra.mxu0 %v8044_v43  ;;  %8186 = vmatpush1.msra.mxu1 %v8133_v25 }
 0x691   :  { %12002 = vmatprep.subr.mxu0 %v8043_v17 }
 0x692   :  { %12003 = vmatpush3.msra.mxu0 %v8043_v17  ;;  %v10956_v17 = vld [vmem:[%s19483_s9 + $0x40] sm:$0xff] }
 0x693   :  { %12004 = vmatprep.subr.mxu0 %v8042_v32 }
 0x694   :  { %12005 = vmatpush3.msra.mxu0 %v8042_v32  ;;  %v8233_v32 = vld [vmem:[%s19483_s9 + $0x8] sm:$0xff] }
 0x695   :  { %12006 = vmatprep.subr.mxu0 %v8041_v4 }
 0x696   :  { %12007 = vmatpush3.msra.mxu0 %v8041_v4  ;;  %v10991_v4 = vld [vmem:[%s19481_s7 + $0x158] sm:$0xff] }
 0x697   :  { %12008 = vmatprep.subr.mxu0 %v8040_v45 }
 0x698   :  { %12009 = vmatpush3.msra.mxu0 %v8040_v45  ;;  %v11023_v45 = vld [vmem:[%s19481_s7 + $0x1c8] sm:$0xff] }
 0x699   :  { %12010 = vmatprep.subr.mxu0 %v8039_v39 }
 0x69a   :  { %12011 = vmatpush3.msra.mxu0 %v8039_v39  ;;  %v10987_v39 = vld [vmem:[%s19481_s7 + $0x138] sm:$0xff] }
 0x69b   :  { %12012 = vmatprep.subr.mxu0 %v8038_v40 }
 0x69c   :  { %12013 = vmatpush3.msra.mxu0 %v8038_v40  ;;  %v10961_v40 = vld [vmem:[%s19483_s9 + $0x68] sm:$0xff] }
 0x69d   :  { %12014 = vmatprep.subr.mxu0 %v8037_v56 }
 0x69e   :  { %12015 = vmatpush3.msra.mxu0 %v8037_v56  ;;  %v10985_v56 = vld [vmem:[%s19481_s7 + $0x128] sm:$0xff] }
 0x69f   :  { %12017 = vmatmul.mubr.msk.f32.vlgmr.msra.gmra.mxu0 %vm8048_vm8, %v8047_v60  ;;  %8273 = vmatprep.subr.mxu0 %v10953_v57  ;;  %v11019_v60 = vld [vmem:[%s19481_s7 + $0x1a8] sm:$0xff]  ;;  %v10984_v57 = vld [vmem:[%s19481_s7 + $0x120] sm:$0xff] }
 0x6a0   :  { %8274 = vmatpush1.msra.mxu0 %v10952_v44  ;;  %8321 = vmatprep.mubr.f32.mxu0 %v20205_v37  ;;  %v11018_v44 = vld [vmem:[%s19481_s7 + $0x1a0] sm:$0xff] }
 0x6a1   :  { %8275 = vmatprep.subr.mxu0 %v10951_v34  ;;  %v10962_v34 = vld [vmem:[%s19483_s9 + $0x70] sm:$0xff] }
 0x6a2   :  { %8276 = vmatpush1.msra.mxu0 %v10950_v20  ;;  %v8238_v20 = vld [vmem:[%s19483_s9 + $0x30] sm:$0xff] }
 0x6a3   :  { %8277 = vmatprep.subr.mxu0 %v10949_v55  ;;  %v10983_v55 = vld [vmem:[%s19481_s7 + $0x118] sm:$0xff] }
 0x6a4   :  { %8278 = vmatpush1.msra.mxu0 %v10948_v30  ;;  %v11017_v30 = vld [vmem:[%s19481_s7 + $0x198] sm:$0xff] }
 0x6a5   :  { %8279 = vmatprep.subr.mxu0 %v10947_v54  ;;  %v10982_v54 = vld [vmem:[%s19481_s7 + $0x110] sm:$0xff] }
 0x6a6   :  { %8280 = vmatpush1.msra.mxu0 %v10946_v22  ;;  %v11016_v22 = vld [vmem:[%s19481_s7 + $0x190] sm:$0xff] }
 0x6a7   :  { %8281 = vmatprep.subr.mxu0 %v10945_v62  ;;  %v10963_v62 = vld [vmem:[%s19483_s9 + $0x78] sm:$0xff] }
 0x6a8   :  { %8282 = vmatpush1.msra.mxu0 %v10944_v47  ;;  %v8239_v47 = vld [vmem:[%s19483_s9 + $0x38] sm:$0xff] }
 0x6a9   :  { %8283 = vmatprep.subr.mxu0 %v10943_v5  ;;  %v10981_v5 = vld [vmem:[%s19481_s7 + $0x108] sm:$0xff] }
 0x6aa   :  { %8284 = vmatpush1.msra.mxu0 %v10942_v29  ;;  %v11015_v29 = vld [vmem:[%s19481_s7 + $0x188] sm:$0xff] }
 0x6ab   :  { %8285 = vmatprep.subr.mxu0 %v10941_v36  ;;  %v10980_v36 = vld [vmem:[%s19481_s7 + $0x100] sm:$0xff] }
 0x6ac   :  { %8286 = vmatpush1.msra.mxu0 %v10940_v21 }
 0x6ad   :  { %8287 = vmatprep.subr.mxu0 %v10939_v16 }
 0x6ae   :  { %8288 = vmatpush1.msra.mxu0 %v10938_v35 }
 0x75f   :  { %v18403_v63 = vpop.f32.mrf.mxu0 }
 0x761   :  { %v18405_v50 = vpop.f32.mrf.mxu0 }
 0x762   :  { %10936 = vmatmul.mubr.msk.f32.vlgmr.msra.gmra.mxu1 %vm7971_vm9, %v18405_v50  ;;  %10954 = vmatmul.mubr.msk.f32.vlgmr.msra.gmra.mxu0 %vm7971_vm9, %v18405_v50 }
 0x763   :  { %8225 = vmatprep.mubr.f32.mxu1 %v20205_v37  ;;  %8327 = vmatprep.mubr.f32.mxu0 %v20205_v37 }
 0x766   :  { %10937 = vmatmul.mubr.msk.f32.gmra.mxu1 %vm7971_vm9, %v18403_v63  ;;  %10955 = vmatmul.mubr.msk.f32.gmra.mxu0 %vm7971_vm9, %v18403_v63 }
 0x767   :  { %8431 = vmatprep.mubr.f32.mxu1 %v20205_v37  ;;  %8568 = vmatprep.mubr.f32.mxu0 %v20205_v37 }
 0x822   :  { %v8221_v8 = vpop.f32.mrf.mxu1  ;;  %v8323_v43 = vpop.f32.mrf.mxu0 }
 0x824   :  { %v8223_v52 = vpop.f32.mrf.mxu1  ;;  %v8325_v61 = vpop.f32.mrf.mxu0 }
 0x826   :  { %v8227_v1 = vpop.f32.mrf.mxu1  ;;  %v8329_v14 = vpop.f32.mrf.mxu0 }
 0x828   :  { %v8229_v51 = vpop.f32.mrf.mxu1  ;;  %v8331_v49 = vpop.f32.mrf.mxu0 }
 0x829   :  { %8395 = vmatprep.subr.mxu1 %v8331_v49  ;;  %8532 = vmatprep.subr.mxu0 %v8229_v51 }
 0x82a   :  { %8396 = vmatpush1.msra.mxu1 %v8329_v14  ;;  %8533 = vmatpush1.msra.mxu0 %v8227_v1 }
 0x82b   :  { %8397 = vmatprep.subr.mxu1 %v8325_v61  ;;  %8534 = vmatprep.subr.mxu0 %v8223_v52 }
 0x82c   :  { %8398 = vmatpush1.msra.mxu1 %v8323_v43  ;;  %8535 = vmatpush1.msra.mxu0 %v8221_v8 }
 0x82d   :  { %10964 = vmatmul.mubr.msk.f32.vlgmr.msra.gmra.mxu1 %vm127_vm0, %v10956_v17  ;;  %10972 = vmatmul.mubr.msk.f32.vlgmr.msra.gmra.mxu0 %vm127_vm0, %v8232_v11 }
 0x82e   :  { %8437 = vmatprep.mubr.f32.mxu1 %v20205_v37  ;;  %8574 = vmatprep.mubr.f32.mxu0 %v20205_v37 }
 0x82f   :  { %8650 = vmatprep.subr.mxu1 %v10995_v6  ;;  %8906 = vmatprep.subr.mxu0 %v11029_v59 }
 0x830   :  { %8651 = vmatpush1.msra.mxu1 %v10994_v3  ;;  %8907 = vmatpush1.msra.mxu0 %v11028_v33 }
 0x831   :  { %10965 = vmatmul.mubr.msk.f32.gmra.mxu1 %vm127_vm0, %v10957_v19  ;;  %10973 = vmatmul.mubr.msk.f32.gmra.mxu0 %vm127_vm0, %v8233_v32 }
 0x832   :  { %8443 = vmatprep.mubr.f32.mxu1 %v20205_v37  ;;  %8580 = vmatprep.mubr.f32.mxu0 %v20205_v37 }
 0x833   :  { %8652 = vmatprep.subr.mxu1 %v10993_v28  ;;  %8908 = vmatprep.subr.mxu0 %v11027_v13 }
 0x834   :  { %8653 = vmatpush1.msra.mxu1 %v10992_v42  ;;  %8909 = vmatpush1.msra.mxu0 %v11026_v2 }
 0x835   :  { %10966 = vmatmul.mubr.msk.f32.gmra.mxu1 %vm127_vm0, %v10958_v53  ;;  %10974 = vmatmul.mubr.msk.f32.gmra.mxu0 %vm127_vm0, %v8234_v24 }
 0x836   :  { %8449 = vmatprep.mubr.f32.mxu1 %v20205_v37  ;;  %8586 = vmatprep.mubr.f32.mxu0 %v20205_v37 }
 0x837   :  { %8654 = vmatprep.subr.mxu1 %v10991_v4  ;;  %8910 = vmatprep.subr.mxu0 %v11025_v15 }
 0x838   :  { %8655 = vmatpush1.msra.mxu1 %v10990_v0  ;;  %8911 = vmatpush1.msra.mxu0 %v11024_v48 }
 0x839   :  { %10967 = vmatmul.mubr.msk.f32.gmra.mxu1 %vm127_vm0, %v10959_v18  ;;  %10975 = vmatmul.mubr.msk.f32.gmra.mxu0 %vm127_vm0, %v8235_v27 }
 0x83a   :  { %8455 = vmatprep.mubr.f32.mxu1 %v20205_v37  ;;  %8592 = vmatprep.mubr.f32.mxu0 %v20205_v37 }
 0x83b   :  { %8656 = vmatprep.subr.mxu1 %v10989_v38  ;;  %8912 = vmatprep.subr.mxu0 %v11023_v45 }
 0x83c   :  { %8657 = vmatpush1.msra.mxu1 %v10988_v58  ;;  %8913 = vmatpush1.msra.mxu0 %v11022_v31 }
 0x83d   :  { %10968 = vmatmul.mubr.msk.f32.gmra.mxu1 %vm127_vm0, %v10960_v10  ;;  %10976 = vmatmul.mubr.msk.f32.gmra.mxu0 %vm127_vm0, %v8236_v26 }
 0x83e   :  { %8461 = vmatprep.mubr.f32.mxu1 %v20205_v37  ;;  %8598 = vmatprep.mubr.f32.mxu0 %v20205_v37 }
 0x83f   :  { %8658 = vmatprep.subr.mxu1 %v10987_v39  ;;  %8914 = vmatprep.subr.mxu0 %v11021_v12 }
 0x840   :  { %8659 = vmatpush1.msra.mxu1 %v10986_v46  ;;  %8915 = vmatpush1.msra.mxu0 %v11020_v7 }
 0x841   :  { %10969 = vmatmul.mubr.msk.f32.gmra.mxu1 %vm127_vm0, %v10961_v40  ;;  %10977 = vmatmul.mubr.msk.f32.gmra.mxu0 %vm127_vm0, %v8237_v9 }
 0x842   :  { %8467 = vmatprep.mubr.f32.mxu1 %v20205_v37  ;;  %8604 = vmatprep.mubr.f32.mxu0 %v20205_v37 }
 0x843   :  { %8660 = vmatprep.subr.mxu1 %v10985_v56  ;;  %8916 = vmatprep.subr.mxu0 %v11019_v60 }
 0x844   :  { %8661 = vmatpush1.msra.mxu1 %v10984_v57  ;;  %8917 = vmatpush1.msra.mxu0 %v11018_v44 }
 0x845   :  { %10970 = vmatmul.mubr.msk.f32.gmra.mxu1 %vm127_vm0, %v10962_v34  ;;  %10978 = vmatmul.mubr.msk.f32.gmra.mxu0 %vm127_vm0, %v8238_v20 }
 0x846   :  { %8473 = vmatprep.mubr.f32.mxu1 %v20205_v37  ;;  %8610 = vmatprep.mubr.f32.mxu0 %v20205_v37 }
 0x847   :  { %8662 = vmatprep.subr.mxu1 %v10983_v55  ;;  %8918 = vmatprep.subr.mxu0 %v11017_v30 }
 0x848   :  { %8663 = vmatpush1.msra.mxu1 %v10982_v54  ;;  %8919 = vmatpush1.msra.mxu0 %v11016_v22  ;;  %v10998_v22 = vld [vmem:[%s19483_s9 + $0x80] sm:$0xff] }
 0x849   :  { %10971 = vmatmul.mubr.msk.f32.gmra.mxu1 %vm127_vm0, %v10963_v62  ;;  %10979 = vmatmul.mubr.msk.f32.gmra.mxu0 %vm127_vm0, %v8239_v47  ;;  %v11032_v62 = vld [vmem:[%s19483_s9 + $0xc0] sm:$0xff]  ;;  %v9204_v47 = vld [vmem:[%s19484_s10 + $0xf8] sm:$0xff] }
 0x84a   :  { %8664 = vmatprep.subr.mxu1 %v10981_v5  ;;  %8920 = vmatprep.subr.mxu0 %v11015_v29  ;;  %v11079_v5 = vld [vmem:[%s19484_s10 + $0x1f8] sm:$0xff] }
 0x84b   :  { %8665 = vmatpush1.msra.mxu1 %v10980_v36  ;;  %8698 = vmatprep.mubr.f32.mxu1 %v20205_v37  ;;  %v9188_v29 = vld [vmem:[%s19484_s10 + $0x78] sm:$0xff] }
 0x84c   :  { %8921 = vmatpush1.msra.mxu0 %v11014_v41  ;;  %8954 = vmatprep.mubr.f32.mxu0 %v20205_v37  ;;  %v11063_v36 = vld [vmem:[%s19484_s10 + $0x178] sm:$0xff]  ;;  %v10999_v41 = vld [vmem:[%s19483_s9 + $0x88] sm:$0xff] }
 0x84d   :  { %10996 = vmatmul.mubr.msk.f32.vlgmr.msra.gmra.mxu1 %vm7971_vm9, %v18405_v50  ;;  %11030 = vmatmul.mubr.msk.f32.vlgmr.msra.gmra.mxu0 %vm7971_vm9, %v18405_v50 }
 0x84e   :  { %8704 = vmatprep.mubr.f32.mxu1 %v20205_v37  ;;  %8960 = vmatprep.mubr.f32.mxu0 %v20205_v37 }
 0x851   :  { %10997 = vmatmul.mubr.msk.f32.gmra.mxu1 %vm7971_vm9, %v18403_v63  ;;  %11031 = vmatmul.mubr.msk.f32.gmra.mxu0 %vm7971_vm9, %v18403_v63 }
 0x852   :  { %8808 = vmatprep.mubr.f32.mxu1 %v20205_v37  ;;  %9064 = vmatprep.mubr.f32.mxu0 %v20205_v37 }
 0x8ed   :  { %v8433_v21 = vpop.f32.mrf.mxu1  ;;  %v8570_v23 = vpop.f32.mrf.mxu0 }
 0x8ee   :  { %v18607_v16 = vadd.f32 %v8570_v23, %v8433_v21  ;;  %v11033_v21 = vld [vmem:[%s19483_s9 + $0xc8] sm:$0xff]  ;;  %v9203_v23 = vld [vmem:[%s19484_s10 + $0xf0] sm:$0xff] }
 0x8ef   :  { %v8435_v25 = vpop.f32.mrf.mxu1  ;;  %v8572_v35 = vpop.f32.mrf.mxu0 }
 0x8f0   :  { %v18609_v50 = vadd.f32 %v8572_v35, %v8435_v25  ;;  %v11078_v25 = vld [vmem:[%s19484_s10 + $0x1f0] sm:$0xff] }
 0x8f1   :  { %v8439_v8 = vpop.f32.mrf.mxu1  ;;  %v8576_v43 = vpop.f32.mrf.mxu0  ;;  %v9187_v35 = vld [vmem:[%s19484_s10 + $0x70] sm:$0xff] }
 0x8f2   :  { %v18611_v52 = vadd.f32 %v8576_v43, %v8439_v8  ;;  %v11062_v8 = vld [vmem:[%s19484_s10 + $0x170] sm:$0xff] }
 0x8f3   :  { %v8441_v61 = vpop.f32.mrf.mxu1  ;;  %v8578_v1 = vpop.f32.mrf.mxu0  ;;  %v11000_v43 = vld [vmem:[%s19483_s9 + $0x90] sm:$0xff] }
 0x8f4   :  { %v18613_v14 = vadd.f32 %v8578_v1, %v8441_v61  ;;  %v11034_v61 = vld [vmem:[%s19483_s9 + $0xd0] sm:$0xff]  ;;  %v9202_v1 = vld [vmem:[%s19484_s10 + $0xe8] sm:$0xff] }
 0x8f5   :  { %v8445_v63 = vpop.f32.mrf.mxu1  ;;  %v8582_v51 = vpop.f32.mrf.mxu0 }
 0x8f6   :  { %v18615_v49 = vadd.f32 %v8582_v51, %v8445_v63  ;;  %v11077_v63 = vld [vmem:[%s19484_s10 + $0x1e8] sm:$0xff] }
 0x8f7   :  { %v8447_v17 = vpop.f32.mrf.mxu1  ;;  %v8584_v11 = vpop.f32.mrf.mxu0  ;;  %v9186_v51 = vld [vmem:[%s19484_s10 + $0x68] sm:$0xff] }
 0x8f8   :  { %v18617_v6 = vadd.f32 %v8584_v11, %v8447_v17  ;;  %v11061_v17 = vld [vmem:[%s19484_s10 + $0x168] sm:$0xff]  ;;  %v11001_v11 = vld [vmem:[%s19483_s9 + $0x98] sm:$0xff] }
 0x8f9   :  { %v8451_v59 = vpop.f32.mrf.mxu1  ;;  %v8588_v3 = vpop.f32.mrf.mxu0 }
 0x8fa   :  { %v18619_v33 = vadd.f32 %v8588_v3, %v8451_v59  ;;  %v11035_v59 = vld [vmem:[%s19483_s9 + $0xd8] sm:$0xff]  ;;  %v9201_v3 = vld [vmem:[%s19484_s10 + $0xe0] sm:$0xff] }
 0x8fb   :  { %v8453_v19 = vpop.f32.mrf.mxu1  ;;  %v8590_v32 = vpop.f32.mrf.mxu0 }
 0x8fc   :  { %v18621_v28 = vadd.f32 %v8590_v32, %v8453_v19  ;;  %v11076_v19 = vld [vmem:[%s19484_s10 + $0x1e0] sm:$0xff] }
 0x8fd   :  { %v8457_v13 = vpop.f32.mrf.mxu1  ;;  %v8594_v42 = vpop.f32.mrf.mxu0  ;;  %v9185_v32 = vld [vmem:[%s19484_s10 + $0x60] sm:$0xff] }
 0x8fe   :  { %v18623_v2 = vadd.f32 %v8594_v42, %v8457_v13  ;;  %v11060_v13 = vld [vmem:[%s19484_s10 + $0x160] sm:$0xff] }
 0x8ff   :  { %v8459_v53 = vpop.f32.mrf.mxu1  ;;  %v8596_v24 = vpop.f32.mrf.mxu0  ;;  %v11002_v42 = vld [vmem:[%s19483_s9 + $0xa0] sm:$0xff] }
 0x900   :  { %v18625_v4 = vadd.f32 %v8596_v24, %v8459_v53  ;;  %v11036_v53 = vld [vmem:[%s19483_s9 + $0xe0] sm:$0xff]  ;;  %v9200_v24 = vld [vmem:[%s19484_s10 + $0xd8] sm:$0xff] }
 0x901   :  { %v8463_v15 = vpop.f32.mrf.mxu1  ;;  %v8600_v0 = vpop.f32.mrf.mxu0 }
 0x902   :  { %v18627_v48 = vadd.f32 %v8600_v0, %v8463_v15  ;;  %v11075_v15 = vld [vmem:[%s19484_s10 + $0x1d8] sm:$0xff] }
 0x903   :  { %v8465_v18 = vpop.f32.mrf.mxu1  ;;  %v8602_v27 = vpop.f32.mrf.mxu0  ;;  %v9184_v0 = vld [vmem:[%s19484_s10 + $0x58] sm:$0xff] }
 0x904   :  { %v18629_v38 = vadd.f32 %v8602_v27, %v8465_v18  ;;  %v11059_v18 = vld [vmem:[%s19484_s10 + $0x158] sm:$0xff]  ;;  %v11003_v27 = vld [vmem:[%s19483_s9 + $0xa8] sm:$0xff] }
 0x905   :  { %v8469_v45 = vpop.f32.mrf.mxu1  ;;  %v8606_v58 = vpop.f32.mrf.mxu0 }
 0x906   :  { %v18631_v31 = vadd.f32 %v8606_v58, %v8469_v45  ;;  %v11037_v45 = vld [vmem:[%s19483_s9 + $0xe8] sm:$0xff]  ;;  %v9199_v58 = vld [vmem:[%s19484_s10 + $0xd0] sm:$0xff] }
 0x907   :  { %v8471_v10 = vpop.f32.mrf.mxu1  ;;  %v8608_v26 = vpop.f32.mrf.mxu0 }
 0x908   :  { %v18633_v39 = vadd.f32 %v8608_v26, %v8471_v10  ;;  %v11074_v10 = vld [vmem:[%s19484_s10 + $0x1d0] sm:$0xff] }
 0x909   :  { %v8475_v12 = vpop.f32.mrf.mxu1  ;;  %v8612_v46 = vpop.f32.mrf.mxu0  ;;  %v9183_v26 = vld [vmem:[%s19484_s10 + $0x50] sm:$0xff] }
 0x90a   :  { %v18635_v7 = vadd.f32 %v8612_v46, %v8475_v12  ;;  %v11058_v12 = vld [vmem:[%s19484_s10 + $0x150] sm:$0xff] }
 0x90b   :  { %v8477_v40 = vpop.f32.mrf.mxu1  ;;  %v8614_v9 = vpop.f32.mrf.mxu0  ;;  %v11004_v46 = vld [vmem:[%s19483_s9 + $0xb0] sm:$0xff] }
 0x90c   :  { %v18637_v56 = vadd.f32 %v8614_v9, %v8477_v40  ;;  %v11038_v40 = vld [vmem:[%s19483_s9 + $0xf0] sm:$0xff]  ;;  %v9198_v9 = vld [vmem:[%s19484_s10 + $0xc8] sm:$0xff] }
 0x90d   :  { %v8700_v60 = vpop.f32.mrf.mxu1  ;;  %v8956_v57 = vpop.f32.mrf.mxu0 }
 0x90f   :  { %v8702_v44 = vpop.f32.mrf.mxu1  ;;  %v8958_v34 = vpop.f32.mrf.mxu0 }
 0x911   :  { %v8706_v20 = vpop.f32.mrf.mxu1  ;;  %v8962_v55 = vpop.f32.mrf.mxu0 }
 0x913   :  { %v8708_v30 = vpop.f32.mrf.mxu1  ;;  %v8964_v54 = vpop.f32.mrf.mxu0 }
 0x914   :  { %8772 = vmatprep.subr.mxu1 %v8708_v30  ;;  %9028 = vmatprep.subr.mxu0 %v8964_v54  ;;  %v11072_v30 = vld [vmem:[%s19484_s10 + $0x1c0] sm:$0xff] }
 0x915   :  { %8773 = vmatpush1.msra.mxu1 %v8706_v20  ;;  %9029 = vmatpush1.msra.mxu0 %v8962_v55  ;;  %v11039_v20 = vld [vmem:[%s19483_s9 + $0xf8] sm:$0xff]  ;;  %v9197_v55 = vld [vmem:[%s19484_s10 + $0xc0] sm:$0xff] }
 0x916   :  { %8774 = vmatprep.subr.mxu1 %v8702_v44  ;;  %9030 = vmatprep.subr.mxu0 %v8958_v34  ;;  %v11057_v44 = vld [vmem:[%s19484_s10 + $0x148] sm:$0xff]  ;;  %v11005_v34 = vld [vmem:[%s19483_s9 + $0xb8] sm:$0xff]  ;;  %v9181_v54 = vld [vmem:[%s19484_s10 + $0x40] sm:$0xff] }
 0x917   :  { %8775 = vmatpush1.msra.mxu1 %v8700_v60  ;;  %9031 = vmatpush1.msra.mxu0 %v8956_v57  ;;  %v11073_v60 = vld [vmem:[%s19484_s10 + $0x1c8] sm:$0xff] }
 0x918   :  { %11006 = vmatmul.mubr.msk.f32.vlgmr.msra.gmra.mxu1 %vm127_vm0, %v10998_v22  ;;  %11040 = vmatmul.mubr.msk.f32.vlgmr.msra.gmra.mxu0 %vm127_vm0, %v11032_v62  ;;  %v9182_v57 = vld [vmem:[%s19484_s10 + $0x48] sm:$0xff]  ;;  %v11056_v22 = vld [vmem:[%s19484_s10 + $0x140] sm:$0xff]  ;;  %v9196_v62 = vld [vmem:[%s19484_s10 + $0xb8] sm:$0xff] }
 0x919   :  { %8814 = vmatprep.mubr.f32.mxu1 %v20205_v37  ;;  %9070 = vmatprep.mubr.f32.mxu0 %v20205_v37 }
 0x91a   :  { %11774 = vmatprep.subr.mxu1 %v9204_v47  ;;  %11830 = vmatprep.subr.mxu0 %v11079_v5  ;;  %v11071_v47 = vld [vmem:[%s19484_s10 + $0x1b8] sm:$0xff] }
 0x91b   :  { %11775 = vmatpush3.msra.mxu1 %v9188_v29  ;;  %11831 = vmatpush3.msra.mxu0 %v11063_v36  ;;  %v9180_v5 = vld [vmem:[%s19484_s10 + $0x38] sm:$0xff]  ;;  %v9195_v36 = vld [vmem:[%s19484_s10 + $0xb0] sm:$0xff] }
 0x91c   :  { %11007 = vmatmul.mubr.msk.f32.gmra.mxu1 %vm127_vm0, %v10999_v41  ;;  %11041 = vmatmul.mubr.msk.f32.gmra.mxu0 %vm127_vm0, %v11033_v21  ;;  %v11055_v29 = vld [vmem:[%s19484_s10 + $0x138] sm:$0xff]  ;;  %v11070_v41 = vld [vmem:[%s19484_s10 + $0x1b0] sm:$0xff] }
 0x91d   :  { %8820 = vmatprep.mubr.f32.mxu1 %v20205_v37  ;;  %9076 = vmatprep.mubr.f32.mxu0 %v20205_v37  ;;  %v9179_v21 = vld [vmem:[%s19484_s10 + $0x30] sm:$0xff] }
 0x91e   :  { %11776 = vmatprep.subr.mxu1 %v9203_v23  ;;  %11832 = vmatprep.subr.mxu0 %v11078_v25  ;;  %v11054_v23 = vld [vmem:[%s19484_s10 + $0x130] sm:$0xff]  ;;  %v9194_v25 = vld [vmem:[%s19484_s10 + $0xa8] sm:$0xff] }
 0x91f   :  { %11777 = vmatpush3.msra.mxu1 %v9187_v35  ;;  %11833 = vmatpush3.msra.mxu0 %v11062_v8  ;;  %v11069_v35 = vld [vmem:[%s19484_s10 + $0x1a8] sm:$0xff] }
 0x920   :  { %11008 = vmatmul.mubr.msk.f32.gmra.mxu1 %vm127_vm0, %v11000_v43  ;;  %11042 = vmatmul.mubr.msk.f32.gmra.mxu0 %vm127_vm0, %v11034_v61  ;;  %v9178_v8 = vld [vmem:[%s19484_s10 + $0x28] sm:$0xff]  ;;  %v9193_v61 = vld [vmem:[%s19484_s10 + $0xa0] sm:$0xff] }
 0x921   :  { %8826 = vmatprep.mubr.f32.mxu1 %v20205_v37  ;;  %9082 = vmatprep.mubr.f32.mxu0 %v20205_v37  ;;  %v11053_v43 = vld [vmem:[%s19484_s10 + $0x128] sm:$0xff] }
 0x922   :  { %11778 = vmatprep.subr.mxu1 %v9202_v1  ;;  %11834 = vmatprep.subr.mxu0 %v11077_v63  ;;  %v11068_v1 = vld [vmem:[%s19484_s10 + $0x1a0] sm:$0xff] }
 0x923   :  { %11779 = vmatpush3.msra.mxu1 %v9186_v51  ;;  %11835 = vmatpush3.msra.mxu0 %v11061_v17  ;;  %v9177_v63 = vld [vmem:[%s19484_s10 + $0x20] sm:$0xff]  ;;  %v9192_v17 = vld [vmem:[%s19484_s10 + $0x98] sm:$0xff] }
 0x924   :  { %11009 = vmatmul.mubr.msk.f32.gmra.mxu1 %vm127_vm0, %v11001_v11  ;;  %11043 = vmatmul.mubr.msk.f32.gmra.mxu0 %vm127_vm0, %v11035_v59  ;;  %v11052_v51 = vld [vmem:[%s19484_s10 + $0x120] sm:$0xff]  ;;  %v11067_v11 = vld [vmem:[%s19484_s10 + $0x198] sm:$0xff] }
 0x925   :  { %8832 = vmatprep.mubr.f32.mxu1 %v20205_v37  ;;  %9088 = vmatprep.mubr.f32.mxu0 %v20205_v37  ;;  %v9176_v59 = vld [vmem:[%s19484_s10 + $0x18] sm:$0xff] }
 0x926   :  { %11780 = vmatprep.subr.mxu1 %v9201_v3  ;;  %11836 = vmatprep.subr.mxu0 %v11076_v19  ;;  %v11051_v3 = vld [vmem:[%s19484_s10 + $0x118] sm:$0xff]  ;;  %v9191_v19 = vld [vmem:[%s19484_s10 + $0x90] sm:$0xff] }
 0x927   :  { %11781 = vmatpush3.msra.mxu1 %v9185_v32  ;;  %11837 = vmatpush3.msra.mxu0 %v11060_v13  ;;  %v11066_v32 = vld [vmem:[%s19484_s10 + $0x190] sm:$0xff] }
 0x928   :  { %11010 = vmatmul.mubr.msk.f32.gmra.mxu1 %vm127_vm0, %v11002_v42  ;;  %11044 = vmatmul.mubr.msk.f32.gmra.mxu0 %vm127_vm0, %v11036_v53  ;;  %v9175_v13 = vld [vmem:[%s19484_s10 + $0x10] sm:$0xff]  ;;  %v9190_v53 = vld [vmem:[%s19484_s10 + $0x88] sm:$0xff] }
 0x929   :  { %8838 = vmatprep.mubr.f32.mxu1 %v20205_v37  ;;  %9094 = vmatprep.mubr.f32.mxu0 %v20205_v37  ;;  %v11050_v42 = vld [vmem:[%s19484_s10 + $0x110] sm:$0xff] }
 0x92a   :  { %11782 = vmatprep.subr.mxu1 %v9200_v24  ;;  %11838 = vmatprep.subr.mxu0 %v11075_v15  ;;  %v11065_v24 = vld [vmem:[%s19484_s10 + $0x188] sm:$0xff] }
 0x92b   :  { %11783 = vmatpush3.msra.mxu1 %v9184_v0  ;;  %11839 = vmatpush3.msra.mxu0 %v11059_v18  ;;  %v9174_v15 = vld [vmem:[%s19484_s10 + $0x8] sm:$0xff]  ;;  %v9189_v18 = vld [vmem:[%s19484_s10 + $0x80] sm:$0xff] }
 0x92c   :  { %11011 = vmatmul.mubr.msk.f32.gmra.mxu1 %vm127_vm0, %v11003_v27  ;;  %11045 = vmatmul.mubr.msk.f32.gmra.mxu0 %vm127_vm0, %v11037_v45  ;;  %v11049_v0 = vld [vmem:[%s19484_s10 + $0x108] sm:$0xff]  ;;  %v11064_v27 = vld [vmem:[%s19484_s10 + $0x180] sm:$0xff] }
 0x92d   :  { %8844 = vmatprep.mubr.f32.mxu1 %v20205_v37  ;;  %9100 = vmatprep.mubr.f32.mxu0 %v20205_v37  ;;  %v9173_v45 = vld [vmem:[%s19484_s10] sm:$0xff] }
 0x92e   :  { %11784 = vmatprep.subr.mxu1 %v9199_v58  ;;  %11840 = vmatprep.subr.mxu0 %v11074_v10  ;;  %v11048_v58 = vld [vmem:[%s19484_s10 + $0x100] sm:$0xff] }
 0x92f   :  { %11785 = vmatpush3.msra.mxu1 %v9183_v26  ;;  %11841 = vmatpush3.msra.mxu0 %v11058_v12  ;;  %v9129_v10 = vld [vmem:[%s19485_s8] sm:$0x3] }
 0x930   :  { %11012 = vmatmul.mubr.msk.f32.gmra.mxu1 %vm127_vm0, %v11004_v46  ;;  %11046 = vmatmul.mubr.msk.f32.gmra.mxu0 %vm127_vm0, %v11038_v40 }
 0x931   :  { %8850 = vmatprep.mubr.f32.mxu1 %v20205_v37  ;;  %9106 = vmatprep.mubr.f32.mxu0 %v20205_v37 }
 0x932   :  { %11786 = vmatprep.subr.mxu1 %v9198_v9  ;;  %11842 = vmatprep.subr.mxu0 %v11073_v60  ;;  %v20206_v9 = vld [vmem:[#allocation125_spill] sm:$0xff] }
 0x933   :  { %11787 = vmatpush3.msra.mxu1 %v9182_v57  ;;  %11843 = vmatpush3.msra.mxu0 %v11057_v44  ;;  %v20207_v60 = vsub.s32 0, %v20206_v9 }
 0x934   :  { %11013 = vmatmul.mubr.msk.f32.gmra.mxu1 %vm127_vm0, %v11005_v34  ;;  %11047 = vmatmul.mubr.msk.f32.gmra.mxu0 %vm127_vm0, %v11039_v20 }
 0x935   :  { %11788 = vmatprep.subr.mxu1 %v9197_v55  ;;  %11844 = vmatprep.subr.mxu0 %v11072_v30  ;;  %v18915_v57 = vrot.slane %v9129_v10, %v20207_v60  ;;  %v20208_v55 = vsub.s32 1, %v20206_v9 }
 0x936   :  { %11789 = vmatpush3.msra.mxu1 %v9181_v54  ;;  %11845 = vmatpush3.msra.mxu0 %v11056_v22 }
 0x937   :  { %11790 = vmatprep.subr.mxu1 %v9196_v62  ;;  %11846 = vmatprep.subr.mxu0 %v11071_v47  ;;  %v18920_v30 = vrot.slane %v9129_v10, %v20208_v55 }
 0x938   :  { %11791 = vmatpush3.msra.mxu1 %v9180_v5  ;;  %11847 = vmatpush3.msra.mxu0 %v11055_v29 }
 0x939   :  { %11792 = vmatprep.subr.mxu1 %v9195_v36  ;;  %11848 = vmatprep.subr.mxu0 %v11070_v41 }
 0x93a   :  { %11793 = vmatpush3.msra.mxu1 %v9179_v21  ;;  %11849 = vmatpush3.msra.mxu0 %v11054_v23 }
 0x93b   :  { %11794 = vmatprep.subr.mxu1 %v9194_v25  ;;  %11850 = vmatprep.subr.mxu0 %v11069_v35 }
 0x93c   :  { %11795 = vmatpush3.msra.mxu1 %v9178_v8  ;;  %11851 = vmatpush3.msra.mxu0 %v11053_v43 }
 0x93d   :  { %11796 = vmatprep.subr.mxu1 %v9193_v61  ;;  %11852 = vmatprep.subr.mxu0 %v11068_v1 }
 0x93e   :  { %11797 = vmatpush3.msra.mxu1 %v9177_v63  ;;  %11853 = vmatpush3.msra.mxu0 %v11052_v51 }
 0x93f   :  { %11798 = vmatprep.subr.mxu1 %v9192_v17  ;;  %11854 = vmatprep.subr.mxu0 %v11067_v11 }
 0x940   :  { %11799 = vmatpush3.msra.mxu1 %v9176_v59  ;;  %11855 = vmatpush3.msra.mxu0 %v11051_v3 }
 0x941   :  { %11800 = vmatprep.subr.mxu1 %v9191_v19  ;;  %11856 = vmatprep.subr.mxu0 %v11066_v32 }
 0x942   :  { %11801 = vmatpush3.msra.mxu1 %v9175_v13  ;;  %11857 = vmatpush3.msra.mxu0 %v11050_v42 }
 0x943   :  { %11802 = vmatprep.subr.mxu1 %v9190_v53  ;;  %11858 = vmatprep.subr.mxu0 %v11065_v24 }
 0x944   :  { %11803 = vmatpush3.msra.mxu1 %v9174_v15  ;;  %11859 = vmatpush3.msra.mxu0 %v11049_v0 }
 0x945   :  { %11804 = vmatprep.subr.mxu1 %v9189_v18  ;;  %11860 = vmatprep.subr.mxu0 %v11064_v27 }
 0x946   :  { %11805 = vmatpush3.msra.mxu1 %v9173_v45  ;;  %11861 = vmatpush3.msra.mxu0 %v11048_v58 }
 0x9d8   :  { %v8810_v26 = vpop.f32.mrf.mxu1  ;;  %v9066_v12 = vpop.f32.mrf.mxu0 }
 0x9d9   :  { %v8857_v46 = vadd.f32 %v8810_v26, %v18607_v16 }
 0x9da   :  { %v8812_v40 = vpop.f32.mrf.mxu1  ;;  %v9068_v44 = vpop.f32.mrf.mxu0 }
 0x9db   :  { %v8858_v34 = vadd.f32 %v8812_v40, %v18609_v50  ;;  %v9113_v20 = vadd.f32 %v9066_v12, %v8857_v46 }
 0x9dc   :  { %v8816_v54 = vpop.f32.mrf.mxu1  ;;  %v9072_v22 = vpop.f32.mrf.mxu0 }
 0x9dd   :  { %v8859_v62 = vadd.f32 %v8816_v54, %v18611_v52  ;;  %v9114_v47 = vadd.f32 %v9068_v44, %v8858_v34  ;;  %v9141_v16 = vadd.f32 %v18915_v57, %v9113_v20 }
 0x9de   :  { %v8818_v5 = vpop.f32.mrf.mxu1  ;;  %v9074_v29 = vpop.f32.mrf.mxu0 }
 0x9df   :  { %v9142_v36 = vadd.f32 %v18920_v30, %v9114_v47  ;;  %v8860_v41 = vadd.f32 %v8818_v5, %v18613_v14  ;;  %v9115_v21 = vadd.f32 %v9072_v22, %v8859_v62  ;;  %v18929_v43 = vmax.f32 %v9141_v16, 0.0 }
 0x9e0   :  { %v8822_v50 = vpop.f32.mrf.mxu1  ;;  %v9078_v23 = vpop.f32.mrf.mxu0 }
 0x9e1   :  { %v18926_v25 = vmax.f32 %v9142_v36, 0.0  ;;  %v8861_v35 = vadd.f32 %v8822_v50, %v18615_v49  ;;  %v9116_v8 = vadd.f32 %v9074_v29, %v8860_v41  ;;  %v9143_v52 = vadd.f32 %v18915_v57, %v9115_v21 }
 0x9e2   :  { %v8824_v61 = vpop.f32.mrf.mxu1  ;;  %v9080_v1 = vpop.f32.mrf.mxu0 }
 0x9e3   :  { %v9144_v63 = vadd.f32 %v18920_v30, %v9116_v8  ;;  %v8862_v51 = vadd.f32 %v8824_v61, %v18617_v6  ;;  %v9117_v17 = vadd.f32 %v9078_v23, %v8861_v35  ;;  %9269 = vmatprep.mubr.f32.mxu1 %v18926_v25  ;;  %9423 = vmatprep.mubr.f32.mxu0 %v18926_v25  ;;  %v18941_v19 = vmax.f32 %v9143_v52, 0.0 }
 0x9e4   :  { %v8828_v14 = vpop.f32.mrf.mxu1  ;;  %9270 = vmatmul.mubr.f32.vlgmr.msra.gmra.mxu1 %v18929_v43  ;;  %9424 = vmatmul.mubr.f32.vlgmr.msra.gmra.mxu0 %v18929_v43  ;;  %v9084_v49 = vpop.f32.mrf.mxu0 }
 0x9e5   :  { %v18938_v11 = vmax.f32 %v9144_v63, 0.0  ;;  %v8863_v59 = vadd.f32 %v8828_v14, %v18619_v33  ;;  %v9118_v3 = vadd.f32 %v9080_v1, %v8862_v51  ;;  %v9145_v6 = vadd.f32 %v18915_v57, %v9117_v17 }
 0x9e6   :  { %v8830_v32 = vpop.f32.mrf.mxu1  ;;  %v9086_v13 = vpop.f32.mrf.mxu0 }
 0x9e7   :  { %v9146_v42 = vadd.f32 %v18920_v30, %v9118_v3  ;;  %v8864_v53 = vadd.f32 %v8830_v32, %v18621_v28  ;;  %v9119_v24 = vadd.f32 %v9084_v49, %v8863_v59  ;;  %9274 = vmatprep.mubr.f32.mxu1 %v18938_v11  ;;  %9428 = vmatprep.mubr.f32.mxu0 %v18938_v11  ;;  %v18953_v45 = vmax.f32 %v9145_v6, 0.0 }
 0x9e8   :  { %v8834_v15 = vpop.f32.mrf.mxu1  ;;  %9275 = vmatmul.mubr.f32.gmra.mxu1 %v18941_v19  ;;  %9429 = vmatmul.mubr.f32.gmra.mxu0 %v18941_v19  ;;  %v9090_v33 = vpop.f32.mrf.mxu0 }
 0x9e9   :  { %v18950_v0 = vmax.f32 %v9146_v42, 0.0  ;;  %v8865_v18 = vadd.f32 %v8834_v15, %v18623_v2  ;;  %v9120_v27 = vadd.f32 %v9086_v13, %v8864_v53  ;;  %v9147_v28 = vadd.f32 %v18915_v57, %v9119_v24  ;;  %v11093_v53 = vld [vmem:[%s19486_s12 + $0xe8] sm:$0xff]  ;;  %v11092_v24 = vld [vmem:[%s19486_s12 + $0xe0] sm:$0xff]  ;;  %v11091_v15 = vld [vmem:[%s19486_s12 + $0xd8] sm:$0xff] }
 0x9ea   :  { %v8836_v58 = vpop.f32.mrf.mxu1  ;;  %v9092_v10 = vpop.f32.mrf.mxu0 }
 0x9eb   :  { %v9148_v26 = vadd.f32 %v18920_v30, %v9120_v27  ;;  %v8866_v12 = vadd.f32 %v8836_v58, %v18625_v4  ;;  %v9121_v46 = vadd.f32 %v9090_v33, %v8865_v18  ;;  %9279 = vmatprep.mubr.f32.mxu1 %v18950_v0  ;;  %9433 = vmatprep.mubr.f32.mxu0 %v18950_v0  ;;  %v18965_v34 = vmax.f32 %v9147_v28, 0.0  ;;  %v11090_v33 = vld [vmem:[%s19486_s12 + $0xd0] sm:$0xff]  ;;  %v11089_v18 = vld [vmem:[%s19486_s12 + $0xc8] sm:$0xff]  ;;  %v11088_v27 = vld [vmem:[%s19486_s12 + $0xc0] sm:$0xff] }
 0x9ec   :  { %v8840_v40 = vpop.f32.mrf.mxu1  ;;  %9280 = vmatmul.mubr.f32.gmra.mxu1 %v18953_v45  ;;  %9434 = vmatmul.mubr.f32.gmra.mxu0 %v18953_v45  ;;  %v9096_v2 = vpop.f32.mrf.mxu0  ;;  %v11087_v28 = vld [vmem:[%s19486_s12 + $0xb8] sm:$0xff]  ;;  %v11086_v58 = vld [vmem:[%s19486_s12 + $0xb0] sm:$0xff] }
 0x9ed   :  { %v18962_v9 = vmax.f32 %v9148_v26, 0.0  ;;  %v8867_v60 = vadd.f32 %v8840_v40, %v18627_v48  ;;  %v9122_v44 = vadd.f32 %v9092_v10, %v8866_v12  ;;  %v9149_v4 = vadd.f32 %v18915_v57, %v9121_v46  ;;  %v11085_v10 = vld [vmem:[%s19486_s12 + $0xa8] sm:$0xff]  ;;  %v11084_v26 = vld [vmem:[%s19486_s12 + $0xa0] sm:$0xff]  ;;  %v11083_v12 = vld [vmem:[%s19486_s12 + $0x98] sm:$0xff] }
 0x9ee   :  { %v8842_v20 = vpop.f32.mrf.mxu1  ;;  %v9098_v55 = vpop.f32.mrf.mxu0  ;;  %v11082_v46 = vld [vmem:[%s19486_s12 + $0x90] sm:$0xff]  ;;  %v11081_v40 = vld [vmem:[%s19486_s12 + $0x88] sm:$0xff] }
 0x9ef   :  { %v9150_v54 = vadd.f32 %v18920_v30, %v9122_v44  ;;  %v8868_v22 = vadd.f32 %v8842_v20, %v18629_v38  ;;  %v9123_v62 = vadd.f32 %v9096_v2, %v8867_v60  ;;  %9284 = vmatprep.mubr.f32.mxu1 %v18962_v9  ;;  %9438 = vmatprep.mubr.f32.mxu0 %v18962_v9  ;;  %v18977_v36 = vmax.f32 %v9149_v4, 0.0  ;;  %v11080_v2 = vld [vmem:[%s19486_s12 + $0x80] sm:$0xff]  ;;  %v11131_v60 = vld [vmem:[%s19484_s10 + $0x2f8] sm:$0xff] }
 0x9f0   :  { %v8846_v47 = vpop.f32.mrf.mxu1  ;;  %9285 = vmatmul.mubr.f32.gmra.mxu1 %v18965_v34  ;;  %9439 = vmatmul.mubr.f32.gmra.mxu0 %v18965_v34  ;;  %v9102_v48 = vpop.f32.mrf.mxu0 }
 0x9f1   :  { %v18974_v16 = vmax.f32 %v9150_v54, 0.0  ;;  %v8869_v5 = vadd.f32 %v8846_v47, %v18631_v31  ;;  %v9124_v29 = vadd.f32 %v9098_v55, %v8868_v22  ;;  %v9151_v38 = vadd.f32 %v18915_v57, %v9123_v62 }
 0x9f2   :  { %v8848_v41 = vpop.f32.mrf.mxu1  ;;  %v9104_v21 = vpop.f32.mrf.mxu0 }
 0x9f3   :  { %v9152_v50 = vadd.f32 %v18920_v30, %v9124_v29  ;;  %v8870_v23 = vadd.f32 %v8848_v41, %v18633_v39  ;;  %v9125_v35 = vadd.f32 %v9102_v48, %v8869_v5  ;;  %9289 = vmatprep.mubr.f32.mxu1 %v18974_v16  ;;  %9443 = vmatprep.mubr.f32.mxu0 %v18974_v16  ;;  %v18989_v63 = vmax.f32 %v9151_v38, 0.0 }
 0x9f4   :  { %v8852_v8 = vpop.f32.mrf.mxu1  ;;  %9290 = vmatmul.mubr.f32.gmra.mxu1 %v18977_v36  ;;  %9444 = vmatmul.mubr.f32.gmra.mxu0 %v18977_v36  ;;  %v9108_v31 = vpop.f32.mrf.mxu0 }
 0x9f5   :  { %v18986_v52 = vmax.f32 %v9152_v50, 0.0  ;;  %v8871_v61 = vadd.f32 %v8852_v8, %v18635_v7  ;;  %v9126_v1 = vadd.f32 %v9104_v21, %v8870_v23  ;;  %v9153_v39 = vadd.f32 %v18915_v57, %v9125_v35 }
 0x9f6   :  { %v8854_v51 = vpop.f32.mrf.mxu1  ;;  %v9110_v59 = vpop.f32.mrf.mxu0 }
 0x9f7   :  { %v9154_v17 = vadd.f32 %v18920_v30, %v9126_v1  ;;  %v8872_v14 = vadd.f32 %v8854_v51, %v18637_v56  ;;  %v9127_v49 = vadd.f32 %v9108_v31, %v8871_v61  ;;  %9294 = vmatprep.mubr.f32.mxu1 %v18986_v52  ;;  %9448 = vmatprep.mubr.f32.mxu0 %v18986_v52  ;;  %v19000_v6 = vmax.f32 %v9153_v39, 0.0 }
 0x9f8   :  { %9295 = vmatmul.mubr.f32.gmra.mxu1 %v18989_v63  ;;  %9449 = vmatmul.mubr.f32.gmra.mxu0 %v18989_v63 }
 0x9f9   :  { %v18998_v7 = vmax.f32 %v9154_v17, 0.0  ;;  %v9128_v3 = vadd.f32 %v9110_v59, %v8872_v14  ;;  %v9155_v32 = vadd.f32 %v18915_v57, %v9127_v49  ;;  %v11095_v57 = vld [vmem:[%s19486_s12 + $0xf8] sm:$0xff] }
 0x9fa   :  { %9535 = vmatprep.subr.mxu1 %v11095_v57 }
 0x9fb   :  { %v9156_v13 = vadd.f32 %v18920_v30, %v9128_v3  ;;  %9299 = vmatprep.mubr.f32.mxu1 %v18998_v7  ;;  %9453 = vmatprep.mubr.f32.mxu0 %v18998_v7  ;;  %v19010_v42 = vmax.f32 %v9155_v32, 0.0  ;;  %v11094_v30 = vld [vmem:[%s19486_s12 + $0xf0] sm:$0xff] }
 0x9fc   :  { %9300 = vmatmul.mubr.f32.gmra.mxu1 %v19000_v6  ;;  %9454 = vmatmul.mubr.f32.gmra.mxu0 %v19000_v6 }
 0x9fd   :  { %v19008_v56 = vmax.f32 %v9156_v13, 0.0  ;;  %9536 = vmatpush1.msra.mxu1 %v11094_v30 }
 0x9fe   :  { %9537 = vmatprep.subr.mxu1 %v11093_v53 }
 0x9ff   :  { %9304 = vmatprep.mubr.f32.mxu1 %v19008_v56  ;;  %9458 = vmatprep.mubr.f32.mxu0 %v19008_v56 }
 0xa00   :  { %9305 = vmatmul.mubr.f32.gmra.mxu1 %v19010_v42  ;;  %9459 = vmatmul.mubr.f32.gmra.mxu0 %v19010_v42 }
 0xa01   :  { %9583 = vmatprep.mubr.f32.mxu1 %v20205_v37  ;;  %9698 = vmatprep.mubr.f32.mxu0 %v20205_v37 }
 0xa02   :  { %9538 = vmatpush1.msra.mxu1 %v11092_v24 }
 0xa03   :  { %9539 = vmatprep.subr.mxu1 %v11091_v15 }
 0xa04   :  { %9540 = vmatpush1.msra.mxu1 %v11090_v33 }
 0xa05   :  { %9541 = vmatprep.subr.mxu1 %v11089_v18 }
 0xa06   :  { %9542 = vmatpush1.msra.mxu1 %v11088_v27 }
 0xa07   :  { %9543 = vmatprep.subr.mxu1 %v11087_v28 }
 0xa08   :  { %9544 = vmatpush1.msra.mxu1 %v11086_v58 }
 0xa09   :  { %9545 = vmatprep.subr.mxu1 %v11085_v10 }
 0xa0a   :  { %9546 = vmatpush1.msra.mxu1 %v11084_v26 }
 0xa0b   :  { %9547 = vmatprep.subr.mxu1 %v11083_v12 }
 0xa0c   :  { %9548 = vmatpush1.msra.mxu1 %v11082_v46 }
 0xa0d   :  { %9549 = vmatprep.subr.mxu1 %v11081_v40 }
 0xa0e   :  { %9550 = vmatpush1.msra.mxu1 %v11080_v2 }
 0xa0f   :  { %11886 = vmatprep.subr.mxu1 %v11131_v60 }
 0xaa4   :  { %v11806_v44 = vpop.f32.mrf.mxu1  ;;  %v11862_v4 = vpop.f32.mrf.mxu0 }
 0xaa6   :  { %v11807_v20 = vpop.f32.mrf.mxu1  ;;  %v11863_v55 = vpop.f32.mrf.mxu0 }
 0xaa7   :  { %v11864_v54 = vadd.f32 %v11863_v55, %v11862_v4  ;;  %v11808_v22 = vadd.f32 %v11807_v20, %v11806_v44  ;;  %v9325_v4 = vld [vmem:[%s19486_s12 + $0x78] sm:$0xff]  ;;  %v9324_v20 = vld [vmem:[%s19486_s12 + $0x70] sm:$0xff]  ;;  %v9323_v55 = vld [vmem:[%s19486_s12 + $0x68] sm:$0xff] }
 0xaa8   :  { %v11809_v62 = vpop.f32.mrf.mxu1  ;;  %v11865_v47 = vpop.f32.mrf.mxu0  ;;  %9650 = vmatprep.subr.mxu0 %v9325_v4  ;;  %v11117_v4 = vld [vmem:[%s19484_s10 + $0x288] sm:$0xff] }
 0xaa9   :  { %9481 = vxpose.xlu0.b32.start [1/8] (short) (narrow) %v11864_v54, 16  ;;  %9596 = vxpose.xlu1.b32.start [1/8] (short) (narrow) %v11808_v22, 16  ;;  %v9322_v54 = vld [vmem:[%s19486_s12 + $0x60] sm:$0xff]  ;;  %v9321_v22 = vld [vmem:[%s19486_s12 + $0x58] sm:$0xff] }
 0xaaa   :  { %v11810_v48 = vpop.f32.mrf.mxu1  ;;  %v11866_v5 = vpop.f32.mrf.mxu0  ;;  %9651 = vmatpush1.msra.mxu0 %v9324_v20  ;;  %v11101_v20 = vld [vmem:[%s19484_s10 + $0x208] sm:$0xff] }
 0xaab   :  { %v11811_v29 = vadd.f32 %v11810_v48, %v11809_v62  ;;  %v11867_v38 = vadd.f32 %v11866_v5, %v11865_v47  ;;  %9652 = vmatprep.subr.mxu0 %v9323_v55  ;;  %v9320_v62 = vld [vmem:[%s19486_s12 + $0x50] sm:$0xff]  ;;  %v9319_v47 = vld [vmem:[%s19486_s12 + $0x48] sm:$0xff]  ;;  %v9318_v48 = vld [vmem:[%s19486_s12 + $0x40] sm:$0xff] }
 0xaac   :  { %v11812_v41 = vpop.f32.mrf.mxu1  ;;  %v11868_v21 = vpop.f32.mrf.mxu0  ;;  %9653 = vmatpush1.msra.mxu0 %v9322_v54  ;;  %v9317_v5 = vld [vmem:[%s19486_s12 + $0x38] sm:$0xff]  ;;  %v11116_v55 = vld [vmem:[%s19484_s10 + $0x280] sm:$0xff] }
 0xaad   :  { %9482 = vxpose.xlu0.b32.cont [2/8] (short) (narrow) %v11867_v38, 16  ;;  %9597 = vxpose.xlu1.b32.cont [2/8] (short) (narrow) %v11811_v29, 16  ;;  %v9316_v29 = vld [vmem:[%s19486_s12 + $0x30] sm:$0xff]  ;;  %v9315_v38 = vld [vmem:[%s19486_s12 + $0x28] sm:$0xff]  ;;  %v11100_v54 = vld [vmem:[%s19484_s10 + $0x200] sm:$0xff] }
 0xaae   :  { %v11813_v50 = vpop.f32.mrf.mxu1  ;;  %v11869_v23 = vpop.f32.mrf.mxu0  ;;  %9654 = vmatprep.subr.mxu0 %v9321_v22  ;;  %v11147_v22 = vld [vmem:[%s19486_s12 + $0x178] sm:$0xff] }
 0xaaf   :  { %v11814_v35 = vadd.f32 %v11813_v50, %v11812_v41  ;;  %v11870_v8 = vadd.f32 %v11869_v23, %v11868_v21  ;;  %9655 = vmatpush1.msra.mxu0 %v9320_v62  ;;  %v9314_v41 = vld [vmem:[%s19486_s12 + $0x20] sm:$0xff]  ;;  %v9313_v21 = vld [vmem:[%s19486_s12 + $0x18] sm:$0xff]  ;;  %v9312_v50 = vld [vmem:[%s19486_s12 + $0x10] sm:$0xff] }
 0xab0   :  { %v11815_v31 = vpop.f32.mrf.mxu1  ;;  %v11871_v61 = vpop.f32.mrf.mxu0  ;;  %9656 = vmatprep.subr.mxu0 %v9319_v47  ;;  %v9311_v23 = vld [vmem:[%s19486_s12 + $0x8] sm:$0xff]  ;;  %v11146_v62 = vld [vmem:[%s19486_s12 + $0x170] sm:$0xff] }
 0xab1   :  { %9483 = vxpose.xlu0.b32.cont [3/8] (short) (narrow) %v11870_v8, 16  ;;  %9598 = vxpose.xlu1.b32.cont [3/8] (short) (narrow) %v11814_v35, 16  ;;  %v9310_v35 = vld [vmem:[%s19486_s12] sm:$0xff]  ;;  %v11115_v8 = vld [vmem:[%s19484_s10 + $0x278] sm:$0xff]  ;;  %v11145_v47 = vld [vmem:[%s19486_s12 + $0x168] sm:$0xff] }
 0xab2   :  { %v11816_v1 = vpop.f32.mrf.mxu1  ;;  %v11872_v39 = vpop.f32.mrf.mxu0  ;;  %9657 = vmatpush1.msra.mxu0 %v9318_v48  ;;  %v11144_v48 = vld [vmem:[%s19486_s12 + $0x160] sm:$0xff] }
 0xab3   :  { %v11817_v51 = vadd.f32 %v11816_v1, %v11815_v31  ;;  %v11873_v17 = vadd.f32 %v11872_v39, %v11871_v61  ;;  %9658 = vmatprep.subr.mxu0 %v9317_v5  ;;  %v11130_v61 = vld [vmem:[%s19484_s10 + $0x2f0] sm:$0xff]  ;;  %v11143_v5 = vld [vmem:[%s19486_s12 + $0x158] sm:$0xff] }
 0xab4   :  { %v11818_v14 = vpop.f32.mrf.mxu1  ;;  %v11874_v49 = vpop.f32.mrf.mxu0  ;;  %9659 = vmatpush1.msra.mxu0 %v9316_v29  ;;  %v11114_v39 = vld [vmem:[%s19484_s10 + $0x270] sm:$0xff] }
 0xab5   :  { %9484 = vxpose.xlu0.b32.cont [4/8] (short) (narrow) %v11873_v17, 16  ;;  %9599 = vxpose.xlu1.b32.cont [4/8] (short) (narrow) %v11817_v51, 16  ;;  %v11129_v51 = vld [vmem:[%s19484_s10 + $0x2e8] sm:$0xff]  ;;  %v11142_v29 = vld [vmem:[%s19486_s12 + $0x150] sm:$0xff] }
 0xab6   :  { %v11819_v59 = vpop.f32.mrf.mxu1  ;;  %v11875_v3 = vpop.f32.mrf.mxu0  ;;  %9660 = vmatprep.subr.mxu0 %v9315_v38  ;;  %v11113_v17 = vld [vmem:[%s19484_s10 + $0x268] sm:$0xff] }
 0xab7   :  { %v11820_v32 = vadd.f32 %v11819_v59, %v11818_v14  ;;  %v11876_v13 = vadd.f32 %v11875_v3, %v11874_v49  ;;  %9661 = vmatpush1.msra.mxu0 %v9314_v41  ;;  %v11128_v49 = vld [vmem:[%s19484_s10 + $0x2e0] sm:$0xff]  ;;  %v11141_v38 = vld [vmem:[%s19486_s12 + $0x148] sm:$0xff] }
 0xab8   :  { %v11821_v57 = vpop.f32.mrf.mxu1  ;;  %v11877_v30 = vpop.f32.mrf.mxu0  ;;  %9662 = vmatprep.subr.mxu0 %v9313_v21  ;;  %v11112_v3 = vld [vmem:[%s19484_s10 + $0x260] sm:$0xff]  ;;  %v11139_v21 = vld [vmem:[%s19486_s12 + $0x138] sm:$0xff] }
 0xab9   :  { %9485 = vxpose.xlu0.b32.cont [5/8] (short) (narrow) %v11876_v13, 16  ;;  %9600 = vxpose.xlu1.b32.cont [5/8] (short) (narrow) %v11820_v32, 16  ;;  %v11127_v32 = vld [vmem:[%s19484_s10 + $0x2d8] sm:$0xff]  ;;  %v11140_v41 = vld [vmem:[%s19486_s12 + $0x140] sm:$0xff] }
 0xaba   :  { %v11822_v53 = vpop.f32.mrf.mxu1  ;;  %v11878_v24 = vpop.f32.mrf.mxu0  ;;  %9663 = vmatpush1.msra.mxu0 %v9312_v50  ;;  %v11111_v13 = vld [vmem:[%s19484_s10 + $0x258] sm:$0xff]  ;;  %v11138_v50 = vld [vmem:[%s19486_s12 + $0x130] sm:$0xff] }
 0xabb   :  { %v11823_v15 = vadd.f32 %v11822_v53, %v11821_v57  ;;  %v11879_v33 = vadd.f32 %v11878_v24, %v11877_v30  ;;  %9664 = vmatprep.subr.mxu0 %v9311_v23  ;;  %v11126_v57 = vld [vmem:[%s19484_s10 + $0x2d0] sm:$0xff]  ;;  %v11125_v53 = vld [vmem:[%s19484_s10 + $0x2c8] sm:$0xff] }
 0xabc   :  { %v11824_v18 = vpop.f32.mrf.mxu1  ;;  %v11880_v27 = vpop.f32.mrf.mxu0  ;;  %9665 = vmatpush1.msra.mxu0 %v9310_v35  ;;  %v11110_v30 = vld [vmem:[%s19484_s10 + $0x250] sm:$0xff]  ;;  %v11109_v24 = vld [vmem:[%s19484_s10 + $0x248] sm:$0xff]  ;;  %v11136_v35 = vld [vmem:[%s19486_s12 + $0x120] sm:$0xff] }
 0xabd   :  { %9486 = vxpose.xlu0.b32.cont [6/8] (short) (narrow) %v11879_v33, 16  ;;  %9601 = vxpose.xlu1.b32.cont [6/8] (short) (narrow) %v11823_v15, 16  ;;  %v11124_v15 = vld [vmem:[%s19484_s10 + $0x2c0] sm:$0xff]  ;;  %v11137_v23 = vld [vmem:[%s19486_s12 + $0x128] sm:$0xff] }
 0xabe   :  { %v11825_v28 = vpop.f32.mrf.mxu1  ;;  %v11881_v58 = vpop.f32.mrf.mxu0  ;;  %v11108_v33 = vld [vmem:[%s19484_s10 + $0x240] sm:$0xff]  ;;  %9920 = vmatprep.subr.mxu0 %v11147_v22 }
 0xabf   :  { %v11826_v10 = vadd.f32 %v11825_v28, %v11824_v18  ;;  %v11882_v26 = vadd.f32 %v11881_v58, %v11880_v27  ;;  %v11123_v18 = vld [vmem:[%s19484_s10 + $0x2b8] sm:$0xff]  ;;  %v11122_v28 = vld [vmem:[%s19484_s10 + $0x2b0] sm:$0xff] }
 0xac0   :  { %v11827_v12 = vpop.f32.mrf.mxu1  ;;  %v11883_v46 = vpop.f32.mrf.mxu0  ;;  %v11107_v27 = vld [vmem:[%s19484_s10 + $0x238] sm:$0xff]  ;;  %v11106_v58 = vld [vmem:[%s19484_s10 + $0x230] sm:$0xff] }
 0xac1   :  { %9487 = vxpose.xlu0.b32.cont [7/8] (short) (narrow) %v11882_v26, 16  ;;  %9602 = vxpose.xlu1.b32.cont [7/8] (short) (narrow) %v11826_v10, 16  ;;  %v11121_v10 = vld [vmem:[%s19484_s10 + $0x2a8] sm:$0xff] }
 0xac2   :  { %v11828_v40 = vpop.f32.mrf.mxu1  ;;  %v11884_v2 = vpop.f32.mrf.mxu0  ;;  %v11105_v26 = vld [vmem:[%s19484_s10 + $0x228] sm:$0xff] }
 0xac3   :  { %v11829_v60 = vadd.f32 %v11828_v40, %v11827_v12  ;;  %v11885_v44 = vadd.f32 %v11884_v2, %v11883_v46  ;;  %v11120_v12 = vld [vmem:[%s19484_s10 + $0x2a0] sm:$0xff]  ;;  %v11119_v40 = vld [vmem:[%s19484_s10 + $0x298] sm:$0xff] }
 0xac4   :  { %v11104_v46 = vld [vmem:[%s19484_s10 + $0x220] sm:$0xff]  ;;  %v11103_v2 = vld [vmem:[%s19484_s10 + $0x218] sm:$0xff] }
 0xac5   :  { %9488 = vxpose.xlu0.b32.end [8/8] (short) (narrow) %v11885_v44, 16  ;;  %9603 = vxpose.xlu1.b32.end [8/8] (short) (narrow) %v11829_v60, 16  ;;  %v11118_v60 = vld [vmem:[%s19484_s10 + $0x290] sm:$0xff] }
 0xac6   :  { %v11102_v44 = vld [vmem:[%s19484_s10 + $0x210] sm:$0xff] }
 0xb25   :  { %v9497_v31 = vpop.trf.xlu0  ;;  %v9612_v1 = vpop.trf.xlu1 }
 0xb26   :  { %11096 = vmatmul.mubr.msk.f32.vlgmr.msra.gmra.mxu1 %vm7971_vm9, %v9497_v31  ;;  %11098 = vmatmul.mubr.msk.f32.vlgmr.msra.gmra.mxu0 %vm7971_vm9, %v9612_v1  ;;  %v11134_v31 = vld [vmem:[%s19486_s12 + $0x110] sm:$0xff]  ;;  %v11132_v1 = vld [vmem:[%s19486_s12 + $0x100] sm:$0xff] }
 0xb27   :  { %11887 = vmatpush3.msra.mxu1 %v11115_v8  ;;  %9589 = vmatprep.mubr.f32.mxu1 %v20205_v37  ;;  %v11135_v8 = vld [vmem:[%s19486_s12 + $0x118] sm:$0xff] }
 0xb28   :  { %11888 = vmatprep.subr.mxu1 %v11130_v61  ;;  %9704 = vmatprep.mubr.f32.mxu0 %v20205_v37  ;;  %v11133_v61 = vld [vmem:[%s19486_s12 + $0x108] sm:$0xff] }
 0xb29   :  { %11889 = vmatpush3.msra.mxu1 %v11114_v39  ;;  %v9498_v14 = vpop.trf.xlu0  ;;  %v9613_v59 = vpop.trf.xlu1  ;;  %9921 = vmatpush1.msra.mxu0 %v11146_v62 }
 0xb2a   :  { %11890 = vmatprep.subr.mxu1 %v11129_v51  ;;  %11097 = vmatmul.mubr.msk.f32.gmra.mxu1 %vm7971_vm9, %v9498_v14 }
 0xb2b   :  { %11891 = vmatpush3.msra.mxu1 %v11113_v17  ;;  %9808 = vmatprep.mubr.f32.mxu1 %v18926_v25 }
 0xb2c   :  { %11892 = vmatprep.subr.mxu1 %v11128_v49  ;;  %11099 = vmatmul.mubr.msk.f32.gmra.mxu0 %vm7971_vm9, %v9613_v59 }
 0xb2d   :  { %11893 = vmatpush3.msra.mxu1 %v11112_v3  ;;  %9968 = vmatprep.mubr.f32.mxu0 %v20205_v37 }
 0xb2e   :  { %11894 = vmatprep.subr.mxu1 %v11127_v32  ;;  %9922 = vmatprep.subr.mxu0 %v11145_v47 }
 0xb2f   :  { %11895 = vmatpush3.msra.mxu1 %v11111_v13  ;;  %9923 = vmatpush1.msra.mxu0 %v11144_v48 }
 0xb30   :  { %11896 = vmatprep.subr.mxu1 %v11126_v57  ;;  %9924 = vmatprep.subr.mxu0 %v11143_v5  ;;  %v11165_v5 = vld [vmem:[%s19484_s10 + $0x378] sm:$0xff] }
 0xb31   :  { %11897 = vmatpush3.msra.mxu1 %v11110_v30  ;;  %9925 = vmatpush1.msra.mxu0 %v11142_v29 }
 0xb32   :  { %11898 = vmatprep.subr.mxu1 %v11125_v53  ;;  %9926 = vmatprep.subr.mxu0 %v11141_v38  ;;  %v11181_v53 = vld [vmem:[%s19484_s10 + $0x3f8] sm:$0xff]  ;;  %v11180_v38 = vld [vmem:[%s19484_s10 + $0x3f0] sm:$0xff] }
 0xb33   :  { %11899 = vmatpush3.msra.mxu1 %v11109_v24  ;;  %9927 = vmatpush1.msra.mxu0 %v11140_v41  ;;  %v11164_v41 = vld [vmem:[%s19484_s10 + $0x370] sm:$0xff] }
 0xb34   :  { %11900 = vmatprep.subr.mxu1 %v11124_v15  ;;  %9928 = vmatprep.subr.mxu0 %v11139_v21  ;;  %v11179_v21 = vld [vmem:[%s19484_s10 + $0x3e8] sm:$0xff] }
 0xb35   :  { %11901 = vmatpush3.msra.mxu1 %v11108_v33  ;;  %9929 = vmatpush1.msra.mxu0 %v11138_v50  ;;  %v11163_v50 = vld [vmem:[%s19484_s10 + $0x368] sm:$0xff] }
 0xb36   :  { %11902 = vmatprep.subr.mxu1 %v11123_v18  ;;  %9930 = vmatprep.subr.mxu0 %v11137_v23 }
 0xb37   :  { %11903 = vmatpush3.msra.mxu1 %v11107_v27  ;;  %9931 = vmatpush1.msra.mxu0 %v11136_v35  ;;  %v11178_v35 = vld [vmem:[%s19484_s10 + $0x3e0] sm:$0xff] }
 0xb38   :  { %11904 = vmatprep.subr.mxu1 %v11122_v28  ;;  %9932 = vmatprep.subr.mxu0 %v11135_v8  ;;  %v11162_v8 = vld [vmem:[%s19484_s10 + $0x360] sm:$0xff] }
 0xb39   :  { %11905 = vmatpush3.msra.mxu1 %v11106_v58  ;;  %9933 = vmatpush1.msra.mxu0 %v11134_v31  ;;  %v11177_v31 = vld [vmem:[%s19484_s10 + $0x3d8] sm:$0xff] }
 0xb3a   :  { %11906 = vmatprep.subr.mxu1 %v11121_v10  ;;  %9934 = vmatprep.subr.mxu0 %v11133_v61  ;;  %v11161_v61 = vld [vmem:[%s19484_s10 + $0x358] sm:$0xff] }
 0xb3b   :  { %11907 = vmatpush3.msra.mxu1 %v11105_v26  ;;  %9935 = vmatpush1.msra.mxu0 %v11132_v1  ;;  %v11176_v1 = vld [vmem:[%s19484_s10 + $0x3d0] sm:$0xff] }
 0xb3c   :  { %11908 = vmatprep.subr.mxu1 %v11120_v12  ;;  %11942 = vmatprep.subr.mxu0 %v11181_v53  ;;  %v11156_v53 = vld [vmem:[%s19484_s10 + $0x330] sm:$0xff] }
 0xb3d   :  { %11909 = vmatpush3.msra.mxu1 %v11104_v46 }
 0xb3e   :  { %11910 = vmatprep.subr.mxu1 %v11119_v40 }
 0xb3f   :  { %11911 = vmatpush3.msra.mxu1 %v11103_v2 }
 0xb40   :  { %11912 = vmatprep.subr.mxu1 %v11118_v60 }
 0xb41   :  { %11913 = vmatpush3.msra.mxu1 %v11102_v44 }
 0xb42   :  { %11914 = vmatprep.subr.mxu1 %v11117_v4 }
 0xb43   :  { %11915 = vmatpush3.msra.mxu1 %v11101_v20 }
 0xb44   :  { %11916 = vmatprep.subr.mxu1 %v11116_v55 }
 0xb45   :  { %11917 = vmatpush3.msra.mxu1 %v11100_v54 }
 0xb46   :  { %9809 = vmatmul.mubr.f32.vlgmr.msra.gmra.mxu1 %v18929_v43 }
 0xb47   :  { %9813 = vmatprep.mubr.f32.mxu1 %v18938_v11 }
 0xb4a   :  { %9814 = vmatmul.mubr.f32.gmra.mxu1 %v18941_v19 }
 0xb4b   :  { %9818 = vmatprep.mubr.f32.mxu1 %v18950_v0 }
 0xb4e   :  { %9819 = vmatmul.mubr.f32.gmra.mxu1 %v18953_v45 }
 0xb4f   :  { %9823 = vmatprep.mubr.f32.mxu1 %v18962_v9 }
 0xb52   :  { %9824 = vmatmul.mubr.f32.gmra.mxu1 %v18965_v34 }
 0xb53   :  { %9828 = vmatprep.mubr.f32.mxu1 %v18974_v16 }
 0xb56   :  { %9829 = vmatmul.mubr.f32.gmra.mxu1 %v18977_v36 }
 0xb57   :  { %9833 = vmatprep.mubr.f32.mxu1 %v18986_v52 }
 0xb5a   :  { %9834 = vmatmul.mubr.f32.gmra.mxu1 %v18989_v63 }
 0xb5b   :  { %9838 = vmatprep.mubr.f32.mxu1 %v18998_v7 }
 0xb5e   :  { %9839 = vmatmul.mubr.f32.gmra.mxu1 %v19000_v6 }
 0xb5f   :  { %9843 = vmatprep.mubr.f32.mxu1 %v19008_v56 }
 0xb62   :  { %9844 = vmatmul.mubr.f32.gmra.mxu1 %v19010_v42 }
 0xb63   :  { %10242 = vmatprep.mubr.f32.mxu1 %v20205_v37 }
 0xbe6   :  { %v9585_v39 = vpop.f32.mrf.mxu1  ;;  %v9700_v51 = vpop.f32.mrf.mxu0 }
 0xbe7   :  { %v19282_v17 = vadd.f32 %v9700_v51, %v9585_v39  ;;  %v11160_v39 = vld [vmem:[%s19484_s10 + $0x350] sm:$0xff]  ;;  %v11159_v51 = vld [vmem:[%s19484_s10 + $0x348] sm:$0xff] }
 0xbe8   :  { %v9587_v14 = vpop.f32.mrf.mxu1  ;;  %v9702_v49 = vpop.f32.mrf.mxu0 }
 0xbe9   :  { %v19284_v59 = vadd.f32 %v9702_v49, %v9587_v14  ;;  %v11174_v14 = vld [vmem:[%s19484_s10 + $0x3c0] sm:$0xff] }
 0xbea   :  { %v9591_v3 = vpop.f32.mrf.mxu1  ;;  %v11158_v49 = vld [vmem:[%s19484_s10 + $0x340] sm:$0xff] }
 0xbec   :  { %v9706_v32 = vpop.f32.mrf.mxu0  ;;  %v19288_v57 = vpop.f32.mrf.mxu1 }
 0xbed   :  { %v19286_v13 = vadd.f32 %v9706_v32, %v9591_v3  ;;  %v11173_v3 = vld [vmem:[%s19484_s10 + $0x3b8] sm:$0xff] }
 0xbee   :  { %v11157_v32 = vld [vmem:[%s19484_s10 + $0x338] sm:$0xff] }
 0xc06   :  { %v11918_v30 = vpop.f32.mrf.mxu1 }
 0xc08   :  { %v11919_v24 = vpop.f32.mrf.mxu1 }
 0xc09   :  { %v11920_v15 = vadd.f32 %v11919_v24, %v11918_v30  ;;  %v11172_v30 = vld [vmem:[%s19484_s10 + $0x3b0] sm:$0xff]  ;;  %v11171_v24 = vld [vmem:[%s19484_s10 + $0x3a8] sm:$0xff] }
 0xc0a   :  { %v11921_v33 = vpop.f32.mrf.mxu1 }
 0xc0b   :  { %9866 = vxpose.xlu0.b32.start [1/8] (short) (narrow) %v11920_v15, 16  ;;  %v11155_v15 = vld [vmem:[%s19484_s10 + $0x328] sm:$0xff] }
 0xc0c   :  { %v11922_v18 = vpop.f32.mrf.mxu1 }
 0xc0d   :  { %v11923_v27 = vadd.f32 %v11922_v18, %v11921_v33  ;;  %v11170_v33 = vld [vmem:[%s19484_s10 + $0x3a0] sm:$0xff] }
 0xc0e   :  { %v11924_v28 = vpop.f32.mrf.mxu1  ;;  %v11154_v18 = vld [vmem:[%s19484_s10 + $0x320] sm:$0xff] }
 0xc0f   :  { %9867 = vxpose.xlu0.b32.cont [2/8] (short) (narrow) %v11923_v27, 16  ;;  %v11169_v27 = vld [vmem:[%s19484_s10 + $0x398] sm:$0xff] }
 0xc10   :  { %v11925_v58 = vpop.f32.mrf.mxu1 }
 0xc11   :  { %v11926_v10 = vadd.f32 %v11925_v58, %v11924_v28  ;;  %v11153_v28 = vld [vmem:[%s19484_s10 + $0x318] sm:$0xff]  ;;  %v11168_v58 = vld [vmem:[%s19484_s10 + $0x390] sm:$0xff] }
 0xc12   :  { %v11927_v26 = vpop.f32.mrf.mxu1 }
 0xc13   :  { %9868 = vxpose.xlu0.b32.cont [3/8] (short) (narrow) %v11926_v10, 16  ;;  %v11152_v10 = vld [vmem:[%s19484_s10 + $0x310] sm:$0xff] }
 0xc14   :  { %v11928_v12 = vpop.f32.mrf.mxu1 }
 0xc15   :  { %v11929_v46 = vadd.f32 %v11928_v12, %v11927_v26  ;;  %v11167_v26 = vld [vmem:[%s19484_s10 + $0x388] sm:$0xff] }
 0xc16   :  { %v11930_v40 = vpop.f32.mrf.mxu1  ;;  %v11151_v12 = vld [vmem:[%s19484_s10 + $0x308] sm:$0xff] }
 0xc17   :  { %9869 = vxpose.xlu0.b32.cont [4/8] (short) (narrow) %v11929_v46, 16  ;;  %v11166_v46 = vld [vmem:[%s19484_s10 + $0x380] sm:$0xff] }
 0xc18   :  { %v11931_v2 = vpop.f32.mrf.mxu1 }
 0xc19   :  { %v11932_v60 = vadd.f32 %v11931_v2, %v11930_v40  ;;  %v11150_v40 = vld [vmem:[%s19484_s10 + $0x300] sm:$0xff] }
 0xc1a   :  { %v11933_v44 = vpop.f32.mrf.mxu1  ;;  %v11182_v2 = vld [vmem:[%s19486_s12 + $0x180] sm:$0xff] }
 0xc1b   :  { %9870 = vxpose.xlu0.b32.cont [5/8] (short) (narrow) %v11932_v60, 16  ;;  %v9708_v60 = vpop.f32.mrf.mxu0 }
 0xc1c   :  { %v11934_v4 = vpop.f32.mrf.mxu1 }
 0xc1d   :  { %v11935_v20 = vadd.f32 %v11934_v4, %v11933_v44 }
 0xc1e   :  { %v11936_v55 = vpop.f32.mrf.mxu1 }
 0xc1f   :  { %9871 = vxpose.xlu0.b32.cont [6/8] (short) (narrow) %v11935_v20, 16 }
 0xc20   :  { %v11937_v54 = vpop.f32.mrf.mxu1 }
 0xc21   :  { %v11938_v22 = vadd.f32 %v11937_v54, %v11936_v55 }
 0xc22   :  { %v11939_v62 = vpop.f32.mrf.mxu1 }
 0xc23   :  { %9872 = vxpose.xlu0.b32.cont [7/8] (short) (narrow) %v11938_v22, 16  ;;  %v9709_v22 = vadd.f32 %v9708_v60, %v19288_v57 }
 0xc24   :  { %v11940_v47 = vpop.f32.mrf.mxu1 }
 0xc25   :  { %v11941_v48 = vadd.f32 %v11940_v47, %v11939_v62 }
 0xc27   :  { %9873 = vxpose.xlu0.b32.end [8/8] (short) (narrow) %v11941_v48, 16 }
 0xc87   :  { %v9882_v29 = vpop.trf.xlu0 }
 0xc88   :  { %11148 = vmatmul.mubr.msk.f32.vlgmr.msra.gmra.mxu0 %vm7971_vm9, %v9882_v29 }
 0xc89   :  { %11943 = vmatpush3.msra.mxu0 %v11165_v5  ;;  %9974 = vmatprep.mubr.f32.mxu0 %v20205_v37 }
 0xc8a   :  { %11944 = vmatprep.subr.mxu0 %v11180_v38 }
 0xc8b   :  { %11945 = vmatpush3.msra.mxu0 %v11164_v41  ;;  %v9883_v23 = vpop.trf.xlu0 }
 0xc8c   :  { %11946 = vmatprep.subr.mxu0 %v11179_v21  ;;  %11149 = vmatmul.mubr.msk.f32.gmra.mxu0 %vm7971_vm9, %v9883_v23  ;;  %v12043_v23 = vmov 0  }
 0xc8d   :  { %11947 = vmatpush3.msra.mxu0 %v11163_v50  ;;  %10082 = vmatprep.mubr.f32.mxu0 %v18926_v25  ;;  %v11175_v25 = vld [vmem:[%s19484_s10 + $0x3c8] sm:$0xff] }
 0xc8e   :  { %11948 = vmatprep.subr.mxu0 %v11178_v35  ;;  %12025 = vset.pattern.permute.xlu0 %v12043_v23 }
 0xc8f   :  { %11949 = vmatpush3.msra.mxu0 %v11162_v8 }
 0xc90   :  { %11950 = vmatprep.subr.mxu0 %v11177_v31 }
 0xc91   :  { %11951 = vmatpush3.msra.mxu0 %v11161_v61 }
 0xc92   :  { %11952 = vmatprep.subr.mxu0 %v11176_v1 }
 0xc93   :  { %11953 = vmatpush3.msra.mxu0 %v11160_v39 }
 0xc94   :  { %11954 = vmatprep.subr.mxu0 %v11175_v25 }
 0xc95   :  { %11955 = vmatpush3.msra.mxu0 %v11159_v51 }
 0xc96   :  { %11956 = vmatprep.subr.mxu0 %v11174_v14 }
 0xc97   :  { %11957 = vmatpush3.msra.mxu0 %v11158_v49 }
 0xc98   :  { %11958 = vmatprep.subr.mxu0 %v11173_v3 }
 0xc99   :  { %11959 = vmatpush3.msra.mxu0 %v11157_v32 }
 0xc9a   :  { %11960 = vmatprep.subr.mxu0 %v11172_v30 }
 0xc9b   :  { %11961 = vmatpush3.msra.mxu0 %v11156_v53 }
 0xc9c   :  { %11962 = vmatprep.subr.mxu0 %v11171_v24 }
 0xc9d   :  { %11963 = vmatpush3.msra.mxu0 %v11155_v15 }
 0xc9e   :  { %11964 = vmatprep.subr.mxu0 %v11170_v33 }
 0xc9f   :  { %11965 = vmatpush3.msra.mxu0 %v11154_v18 }
 0xca0   :  { %11966 = vmatprep.subr.mxu0 %v11169_v27 }
 0xca1   :  { %11967 = vmatpush3.msra.mxu0 %v11153_v28 }
 0xca2   :  { %11968 = vmatprep.subr.mxu0 %v11168_v58 }
 0xca3   :  { %11969 = vmatpush3.msra.mxu0 %v11152_v10 }
 0xca4   :  { %11970 = vmatprep.subr.mxu0 %v11167_v26 }
 0xca5   :  { %11971 = vmatpush3.msra.mxu0 %v11151_v12 }
 0xca6   :  { %11972 = vmatprep.subr.mxu0 %v11166_v46 }
 0xca7   :  { %11973 = vmatpush3.msra.mxu0 %v11150_v40 }
 0xca8   :  { %10083 = vmatmul.mubr.f32.vlgmr.msra.gmra.mxu0 %v18929_v43  ;;  %v11197_v43 = vld [vmem:[%s19486_s12 + $0x1f8] sm:$0xff] }
 0xca9   :  { %10087 = vmatprep.mubr.f32.mxu0 %v18938_v11  ;;  %v11196_v11 = vld [vmem:[%s19486_s12 + $0x1f0] sm:$0xff]  ;;  %10194 = vmatprep.subr.mxu1 %v11197_v43 }
 0xcaa   :  { %10195 = vmatpush1.msra.mxu1 %v11196_v11 }
 0xcac   :  { %10088 = vmatmul.mubr.f32.gmra.mxu0 %v18941_v19  ;;  %v11195_v19 = vld [vmem:[%s19486_s12 + $0x1e8] sm:$0xff] }
 0xcad   :  { %10092 = vmatprep.mubr.f32.mxu0 %v18950_v0  ;;  %v11194_v0 = vld [vmem:[%s19486_s12 + $0x1e0] sm:$0xff]  ;;  %10196 = vmatprep.subr.mxu1 %v11195_v19 }
 0xcae   :  { %10197 = vmatpush1.msra.mxu1 %v11194_v0 }
 0xcb0   :  { %10093 = vmatmul.mubr.f32.gmra.mxu0 %v18953_v45  ;;  %v11193_v45 = vld [vmem:[%s19486_s12 + $0x1d8] sm:$0xff] }
 0xcb1   :  { %10097 = vmatprep.mubr.f32.mxu0 %v18962_v9  ;;  %v11192_v9 = vld [vmem:[%s19486_s12 + $0x1d0] sm:$0xff]  ;;  %10198 = vmatprep.subr.mxu1 %v11193_v45 }
 0xcb2   :  { %10199 = vmatpush1.msra.mxu1 %v11192_v9 }
 0xcb4   :  { %10098 = vmatmul.mubr.f32.gmra.mxu0 %v18965_v34  ;;  %v11191_v34 = vld [vmem:[%s19486_s12 + $0x1c8] sm:$0xff] }
 0xcb5   :  { %10102 = vmatprep.mubr.f32.mxu0 %v18974_v16  ;;  %v11190_v16 = vld [vmem:[%s19486_s12 + $0x1c0] sm:$0xff]  ;;  %10200 = vmatprep.subr.mxu1 %v11191_v34 }
 0xcb6   :  { %10201 = vmatpush1.msra.mxu1 %v11190_v16 }
 0xcb8   :  { %10103 = vmatmul.mubr.f32.gmra.mxu0 %v18977_v36  ;;  %v11189_v36 = vld [vmem:[%s19486_s12 + $0x1b8] sm:$0xff] }
 0xcb9   :  { %10107 = vmatprep.mubr.f32.mxu0 %v18986_v52  ;;  %v11188_v52 = vld [vmem:[%s19486_s12 + $0x1b0] sm:$0xff]  ;;  %10202 = vmatprep.subr.mxu1 %v11189_v36 }
 0xcba   :  { %10203 = vmatpush1.msra.mxu1 %v11188_v52 }
 0xcbc   :  { %10108 = vmatmul.mubr.f32.gmra.mxu0 %v18989_v63  ;;  %v11187_v63 = vld [vmem:[%s19486_s12 + $0x1a8] sm:$0xff] }
 0xcbd   :  { %10112 = vmatprep.mubr.f32.mxu0 %v18998_v7  ;;  %v11186_v7 = vld [vmem:[%s19486_s12 + $0x1a0] sm:$0xff]  ;;  %10204 = vmatprep.subr.mxu1 %v11187_v63 }
 0xcbe   :  { %10205 = vmatpush1.msra.mxu1 %v11186_v7 }
 0xcc0   :  { %10113 = vmatmul.mubr.f32.gmra.mxu0 %v19000_v6  ;;  %v11185_v6 = vld [vmem:[%s19486_s12 + $0x198] sm:$0xff] }
 0xcc1   :  { %10117 = vmatprep.mubr.f32.mxu0 %v19008_v56  ;;  %v11184_v56 = vld [vmem:[%s19486_s12 + $0x190] sm:$0xff]  ;;  %10206 = vmatprep.subr.mxu1 %v11185_v6 }
 0xcc2   :  { %10207 = vmatpush1.msra.mxu1 %v11184_v56 }
 0xcc4   :  { %10118 = vmatmul.mubr.f32.gmra.mxu0 %v19010_v42  ;;  %v11183_v42 = vld [vmem:[%s19486_s12 + $0x188] sm:$0xff] }
 0xcc5   :  { %10208 = vmatprep.subr.mxu1 %v11183_v42 }
 0xcc6   :  { %10209 = vmatpush1.msra.mxu1 %v11182_v2 }
 0xd48   :  { %v9970_v44 = vpop.f32.mrf.mxu0 }
 0xd49   :  { %v9981_v4 = vadd.f32 %v9970_v44, %v19282_v17  ;;  %v18_v17 = vstv %s19487_s11 }
 0xd4a   :  { %v9972_v20 = vpop.f32.mrf.mxu0  ;;  %19 = vst [vmem:[#allocation5] sm:$0x1] %v18_v17 }
 0xd4b   :  { %v9982_v55 = vadd.f32 %v9972_v20, %v19284_v59 }
 0xd4c   :  { %v9976_v54 = vpop.f32.mrf.mxu0 }
 0xd4d   :  { %v9983_v62 = vadd.f32 %v9976_v54, %v19286_v13 }
 0xd4e   :  { %v9978_v47 = vpop.f32.mrf.mxu0 }
 0xd4f   :  { %v9984_v48 = vadd.f32 %v9978_v47, %v9709_v22 }
 0xd51   :  { %v11200_v61 = vld [vmem:[#allocation5] ss:$0 sm:$0xff] }
 0xd52   :  { %10266 = vperm.xlu0 %12025, %v11200_v61  }
 0xd68   :  { %v11974_v5 = vpop.f32.mrf.mxu0 }
 0xd6a   :  { %v11975_v29 = vpop.f32.mrf.mxu0 }
 0xd6b   :  { %v11976_v38 = vadd.f32 %v11975_v29, %v11974_v5 }
 0xd6c   :  { %v11977_v41 = vpop.f32.mrf.mxu0 }
 0xd6d   :  { %10140 = vxpose.xlu1.b32.start [1/8] (short) (narrow) %v11976_v38, 16 }
 0xd6e   :  { %v11978_v21 = vpop.f32.mrf.mxu0 }
 0xd6f   :  { %v11979_v50 = vadd.f32 %v11978_v21, %v11977_v41 }
 0xd70   :  { %v11980_v59 = vpop.f32.mrf.mxu0 }
 0xd71   :  { %10141 = vxpose.xlu1.b32.cont [2/8] (short) (narrow) %v11979_v50, 16 }
 0xd72   :  { %v11981_v57 = vpop.f32.mrf.mxu0 }
 0xd73   :  { %v11982_v13 = vadd.f32 %v11981_v57, %v11980_v59 }
 0xd74   :  { %v11983_v35 = vpop.f32.mrf.mxu0 }
 0xd75   :  { %10142 = vxpose.xlu1.b32.cont [3/8] (short) (narrow) %v11982_v13, 16 }
 0xd76   :  { %v11984_v8 = vpop.f32.mrf.mxu0 }
 0xd77   :  { %v11985_v31 = vadd.f32 %v11984_v8, %v11983_v35 }
 0xd78   :  { %v11986_v1 = vpop.f32.mrf.mxu0 }
 0xd79   :  { %10143 = vxpose.xlu1.b32.cont [4/8] (short) (narrow) %v11985_v31, 16 }
 0xd7a   :  { %v11987_v39 = vpop.f32.mrf.mxu0 }
 0xd7b   :  { %v11988_v25 = vadd.f32 %v11987_v39, %v11986_v1 }
 0xd7c   :  { %v11989_v51 = vpop.f32.mrf.mxu0 }
 0xd7d   :  { %10144 = vxpose.xlu1.b32.cont [5/8] (short) (narrow) %v11988_v25, 16 }
 0xd7e   :  { %v11990_v14 = vpop.f32.mrf.mxu0 }
 0xd7f   :  { %v11991_v49 = vadd.f32 %v11990_v14, %v11989_v51 }
 0xd80   :  { %v11992_v3 = vpop.f32.mrf.mxu0 }
 0xd81   :  { %10145 = vxpose.xlu1.b32.cont [6/8] (short) (narrow) %v11991_v49, 16 }
 0xd82   :  { %v11993_v32 = vpop.f32.mrf.mxu0 }
 0xd83   :  { %v11994_v30 = vadd.f32 %v11993_v32, %v11992_v3 }
 0xd84   :  { %v11995_v53 = vpop.f32.mrf.mxu0 }
 0xd85   :  { %10146 = vxpose.xlu1.b32.cont [7/8] (short) (narrow) %v11994_v30, 16 }
 0xd86   :  { %v11996_v24 = vpop.f32.mrf.mxu0 }
 0xd87   :  { %v11997_v15 = vadd.f32 %v11996_v24, %v11995_v53 }
 0xd89   :  { %10147 = vxpose.xlu1.b32.end [8/8] (short) (narrow) %v11997_v15, 16 }
 0xdcd   :  { %v10267_v28 = vpop.permute.xlu0 %10266 }
 0xde9   :  { %v10156_v33 = vpop.trf.xlu1 }
 0xdea   :  { %11198 = vmatmul.mubr.msk.f32.vlgmr.msra.gmra.mxu1 %vm7971_vm9, %v10156_v33 }
 0xdeb   :  { %10248 = vmatprep.mubr.f32.mxu1 %v20205_v37 }
 0xded   :  { %v10157_v18 = vpop.trf.xlu1 }
 0xdee   :  { %11199 = vmatmul.mubr.msk.f32.gmra.mxu1 %vm7971_vm9, %v10157_v18 }
 0xeaa   :  { %v10244_v27 = vpop.f32.mrf.mxu1 }
 0xeab   :  { %v10255_v58 = vadd.f32 %v10244_v27, %v9981_v4 }
 0xeac   :  { %v10246_v10 = vpop.f32.mrf.mxu1 }
 0xead   :  { %v10269_v26 = vadd.f32 %v10267_v28, %v10255_v58  ;;  %v10256_v12 = vadd.f32 %v10246_v10, %v9982_v55 }
 0xeae   :  { %v10250_v46 = vpop.f32.mrf.mxu1 }
 0xeaf   :  { %v11201_v40 = vmul.f32 -1.442695, %v10269_v26  ;;  %v10270_v43 = vadd.f32 %v10267_v28, %v10256_v12  ;;  %v10257_v11 = vadd.f32 %v10250_v46, %v9983_v62 }
 0xeb0   :  { %v10252_v19 = vpop.f32.mrf.mxu1 }
 0xeb1   :  { %12026 = vpow2.f32 %v11201_v40  ;;  %v11202_v0 = vmul.f32 -1.442695, %v10270_v43  ;;  %v10271_v45 = vadd.f32 %v10267_v28, %v10257_v11  ;;  %v10258_v9 = vadd.f32 %v10252_v19, %v9984_v48 }
 0xeb3   :  { %12028 = vpow2.f32 %v11202_v0  ;;  %v11203_v37 = vmul.f32 -1.442695, %v10271_v45  ;;  %v10272_v34 = vadd.f32 %v10267_v28, %v10258_v9 }
 0xeb5   :  { %12030 = vpow2.f32 %v11203_v37  ;;  %v11204_v16 = vmul.f32 -1.442695, %v10272_v34 }
 0xeb7   :  { %12032 = vpow2.f32 %v11204_v16 }
 0xebe   :  { %v12027_v36 = vpop.eup %12026 }
 0xebf   :  { %v10285_v52 = vadd.f32 1.0, %v12027_v36 }
 0xec0   :  { %v12029_v63 = vpop.eup %12028 }
 0xec1   :  { %12034 = vrcp.f32 %v10285_v52  ;;  %v10286_v7 = vadd.f32 1.0, %v12029_v63 }
 0xec2   :  { %v12031_v6 = vpop.eup %12030 }
 0xec3   :  { %12036 = vrcp.f32 %v10286_v7  ;;  %v10287_v56 = vadd.f32 1.0, %v12031_v6 }
 0xec4   :  { %v12033_v42 = vpop.eup %12032 }
 0xec5   :  { %12038 = vrcp.f32 %v10287_v56  ;;  %v10288_v2 = vadd.f32 1.0, %v12033_v42 }
 0xec7   :  { %12040 = vrcp.f32 %v10288_v2 }
 0xece   :  { %v12035_v60 = vpop.eup %12034 }
 0xecf   :  { %10297 = vst [vmem:[%s19488_s13] sm:$0xff] %v12035_v60 }
 0xed0   :  { %v12037_v44 = vpop.eup %12036 }
 0xed1   :  { %10298 = vst [vmem:[%s19488_s13 + $0x8] sm:$0xff] %v12037_v44 }
 0xed2   :  { %v12039_v4 = vpop.eup %12038 }
 0xed3   :  { %10299 = vst [vmem:[%s19488_s13 + $0x10] sm:$0xff] %v12039_v4 }
 0xed4   :  { %v12041_v20 = vpop.eup %12040 }
 0xed5   :  { %10300 = vst [vmem:[%s19488_s13 + $0x18] sm:$0xff] %v12041_v20 }

</bundles_post_ra>
